<compile_context>
chip_gen: v7x
topology: tpu7x:2x2x1
jax: 0.10.0
libtpu: 0.0.40
codegen_flags: <defaults>
</compile_context>

<pallas_src>
import jax
import jax.numpy as jnp
import numpy as np
from jax import lax
from jax.experimental import pallas as pl
from jax.experimental.pallas import tpu as pltpu

# ------------------------- config (mirrors `args`) -------------------------
WAYS = 4                     # args.few_shot_ways
SHOTS = 2                    # args.few_shot_shots
QUERIES = 3                  # args.few_shot_queries
PER = SHOTS + QUERIES
N_TOTAL = WAYS * PER         # 20 images per episode
C, H, W_IMG = 4, 16, 16
D_IN = C * H * W_IMG         # 1024
D_FEAT = 128                 # backbone feature dim (lane friendly)

EPB = 8                      # episodes fused per grid step (multiple of 4 -> BLK_M % 16 == 0;
                             # use 16 on v6e for >=256-row MXU blocks)
BLK_M = EPB * N_TOTAL        # 160 backbone rows per block
R = EPB * WAYS * QUERIES     # 96 query rows per block
WC = EPB * WAYS              # 32 prototype columns per block
OUT_LANES = 128              # lane-dense output row per episode


# --------------- baked head constants (built once, DMA'd once) ---------------
def _build_head_constants():
    psel = np.zeros((WC, BLK_M), np.float32)     # prototype mean selection
    qsel = np.zeros((R, BLK_M), np.float32)      # query-row gather
    p1 = np.zeros((R, R), np.float32)            # class-shift-by-1 permutation (block-diag)
    p2 = np.zeros((R, R), np.float32)            # class-shift-by-2 permutation (block-diag)
    epsum = np.zeros((EPB, R), np.float32)       # per-episode row sum
    colmask = np.zeros((R, WC), np.float32)      # same-episode column validity
    colw = np.zeros((1, WC), np.float32)         # prototype class of each column
    rowc = np.zeros((R, 1), np.float32)          # query class of each row
    for e in range(EPB):
        for c in range(WAYS):
            base = e * N_TOTAL + c * PER
            for s in range(SHOTS):
                psel[e * WAYS + c, base + s] = 1.0 / SHOTS
            for q in range(QUERIES):
                r = e * WAYS * QUERIES + c * QUERIES + q
                qsel[r, base + SHOTS + q] = 1.0
                p1[r, e * WAYS * QUERIES + ((c + 1) % WAYS) * QUERIES + q] = 1.0
                p2[r, e * WAYS * QUERIES + ((c + 2) % WAYS) * QUERIES + q] = 1.0
                epsum[e, r] = 1.0
                rowc[r, 0] = float(c)
                colmask[r, e * WAYS:(e + 1) * WAYS] = 1.0
        for wcol in range(WAYS):
            colw[0, e * WAYS + wcol] = float(wcol)
    return tuple(jnp.asarray(a) for a in
                 (psel, qsel, p1, p2, epsum, colmask, colw, rowc))


_HEAD_CONSTS = _build_head_constants()


# --------------------------- fused ProtoNet kernel ---------------------------
def _protonet_kernel(x_ref, w_ref, b_ref, psel_ref, qsel_ref, p1_ref, p2_ref,
                     epsum_ref, colmask_ref, colw_ref, rowc_ref, out_ref):
    # x: (BLK_M, D_IN) f32   w: (D_IN, D_FEAT) bf16   b: (1, D_FEAT) f32
    # out: (EPB, 128) f32 with lane0 = loss, lane1 = score (per episode).
    f32 = jnp.float32
    HI = lax.Precision.HIGHEST

    # ---- backbone: bf16 MXU matmul (f32 accumulation) + f32 bias + ReLU ----
    x_bf = x_ref[...].astype(jnp.bfloat16)
    feats = jnp.maximum(
        jnp.dot(x_bf, w_ref[...], preferred_element_type=f32) + b_ref[...],
        0.0)                                                   # (BLK_M, D_FEAT)

    # ---- prototypes & gathered query features via baked selection matmuls ----
    protos = jnp.dot(psel_ref[...], feats, preferred_element_type=f32,
                     precision=HI)                             # (WC, D_FEAT)
    qf = jnp.dot(qsel_ref[...], feats, preferred_element_type=f32,
                 precision=HI)                                 # (R, D_FEAT)

    # ---- -||q - p||^2, dropping ||p||^2 (constant along the softmax axis c,
    #      cancels exactly in log_softmax) ----
    fp = lax.dot_general(qf, protos, (((1,), (1,)), ((), ())),
                         preferred_element_type=f32, precision=HI)  # (R, WC)
    qq = jnp.sum(qf * qf, axis=1, keepdims=True)                    # (R, 1)
    qlogits = 2.0 * fp - qq                                         # (R, WC)

    # ---- log_softmax over the query-class axis c (groups of WAYS rows) ----
    # p1/p2 are block-diagonal cyclic class shifts, so group max / group sum
    # = two shift-and-combine steps (whole-tile ops, MXU permutes are exact
    # at HIGHEST precision).
    p1 = p1_ref[...]
    p2 = p2_ref[...]

    def perm(pm, v):
        return jnp.dot(pm, v, preferred_element_type=f32, precision=HI)

    m = jnp.maximum(qlogits, perm(p1, qlogits))
    m = jnp.maximum(m, perm(p2, m))                 # group max, replicated per row
    ex = jnp.exp(qlogits - m)
    s = ex + perm(p1, ex)
    s = s + perm(p2, s)                             # group sum, replicated per row
    logp = qlogits - (m + jnp.log(s))               # (R, WC)

    colmask = colmask_ref[...]
    colw = colw_ref[...]
    rowc = rowc_ref[...]
    valid = colmask > 0.5                           # same-episode columns

    # ---- NLL: gather log p at the target class column of the row's episode ----
    pick = jnp.where(valid & (colw == rowc), 1.0, 0.0)
    nll_rows = -jnp.sum(pick * logp, axis=1, keepdims=True)         # (R, 1)

    # ---- accuracy: first-index argmax over the episode's prototypes ----
    masked = jnp.where(valid, logp, jnp.float32(-1e30))
    rowmax = jnp.max(masked, axis=1, keepdims=True)
    hit = jnp.where(valid & (masked == rowmax), colw, jnp.float32(WAYS))
    yhat = jnp.min(hit, axis=1, keepdims=True)                      # (R, 1)
    correct = (yhat == rowc).astype(f32)                            # (R, 1)

    # ---- per-episode means ----
    nq = jnp.float32(WAYS * QUERIES)
    ep = epsum_ref[...]
    ep_loss = jnp.dot(ep, nll_rows, preferred_element_type=f32, precision=HI) / nq
    ep_score = jnp.dot(ep, correct, preferred_element_type=f32, precision=HI) / nq

    # ---- lane-dense store: (EPB, 128), lane0 = loss, lane1 = score ----
    lane = lax.broadcasted_iota(jnp.int32, out_ref.shape, 1)
    out_ref[...] = jnp.where(lane == 0, ep_loss,
                             jnp.where(lane == 1, ep_score, 0.0))


# -------------------------------- wrapper ------------------------------------
@jax.jit
def protonet_forward(backbone_params, data_step):
    """Mirrors ProtoNet.forward per episode, batched over a leading episode axis.

    backbone_params = (w_bf16 (D_IN, D_FEAT), b_f32 (1, D_FEAT))
    data_step: (E, N_TOTAL, C, H, W) f32, E a multiple of EPB.
    Returns per-episode (loss, score), each shape (E,).
    """
    w_bf, b = backbone_params
    E = data_step.shape[0]
    assert data_step.shape[1] == N_TOTAL and E % EPB == 0
    n_blk = E // EPB
    x_flat = data_step.reshape(E * N_TOTAL, D_IN)   # stays f32; cast to bf16 in-kernel

    in_specs = [
        pl.BlockSpec((BLK_M, D_IN), lambda g: (g, 0)),        # x: per-block activations
        pl.BlockSpec((D_IN, D_FEAT), lambda g: (0, 0)),       # w: VMEM-resident (fetched once)
        pl.BlockSpec((1, D_FEAT), lambda g: (0, 0)),          # b
        pl.BlockSpec((WC, BLK_M), lambda g: (0, 0)),          # psel
        pl.BlockSpec((R, BLK_M), lambda g: (0, 0)),           # qsel
        pl.BlockSpec((R, R), lambda g: (0, 0)),               # p1
        pl.BlockSpec((R, R), lambda g: (0, 0)),               # p2
        pl.BlockSpec((EPB, R), lambda g: (0, 0)),             # epsum
        pl.BlockSpec((R, WC), lambda g: (0, 0)),              # colmask
        pl.BlockSpec((1, WC), lambda g: (0, 0)),              # colw
        pl.BlockSpec((R, 1), lambda g: (0, 0)),               # rowc
    ]
    cost = pl.CostEstimate(
        flops=int(2 * E * N_TOTAL * D_IN * D_FEAT
                  + 8 * n_blk * R * BLK_M * D_FEAT),
        transcendentals=int(2 * n_blk * R * WC),
        bytes_accessed=int(x_flat.size * 4 + w_bf.size * 2 + b.size * 4
                           + E * OUT_LANES * 4),
    )
    out = pl.pallas_call(
        _protonet_kernel,
        out_shape=jax.ShapeDtypeStruct((E, OUT_LANES), jnp.float32),
        grid=(n_blk,),
        in_specs=in_specs,
        out_specs=pl.BlockSpec((EPB, OUT_LANES), lambda g: (g, 0)),
        compiler_params=pltpu.CompilerParams(
            dimension_semantics=("parallel",)),
        cost_estimate=cost,
    )(x_flat, w_bf, b, *_HEAD_CONSTS)
    return out[:, 0], out[:, 1]


# ------------------------------- pure-JAX ref --------------------------------
def reference_forward(backbone_params, data_step):
    w_bf, b = backbone_params
    E = data_step.shape[0]
    x = data_step.reshape(E, N_TOTAL, D_IN).astype(jnp.bfloat16)
    feats = jnp.maximum(
        jnp.einsum("end,df->enf", x, w_bf,
                   preferred_element_type=jnp.float32) + b[None], 0.0)
    g = feats.reshape(E, WAYS, PER, D_FEAT)
    shots = g[:, :, :SHOTS]
    queries = g[:, :, SHOTS:]
    protos = shots.mean(axis=2)                                     # (E, WAYS, D)
    q = queries.reshape(E, WAYS * QUERIES, D_FEAT)
    dist = -jnp.sum((q[:, :, None, :] - protos[:, None, :, :]) ** 2, axis=-1)
    dist = dist.reshape(E, WAYS, QUERIES, WAYS)
    logp = jax.nn.log_softmax(dist, axis=1)
    ci = jnp.arange(WAYS)[:, None]
    qi = jnp.arange(QUERIES)[None, :]
    loss = -jnp.mean(logp[:, ci, qi, ci], axis=(1, 2))
    yhat = jnp.argmax(logp, axis=3)
    score = jnp.mean((yhat == ci[None]).astype(jnp.float32), axis=(1, 2))
    return loss, score


if __name__ == "__main__":
    key = jax.random.PRNGKey(0)
    k_x, k_w, k_b = jax.random.split(key, 3)
    E = 16  # episodes (multiple of EPB)
    data_step = jax.random.normal(k_x, (E, N_TOTAL, C, H, W_IMG), dtype=jnp.float32)
    # Weight cast to bf16 ONCE at param init (no per-call wrapper cast).
    w = (jax.random.normal(k_w, (D_IN, D_FEAT), dtype=jnp.float32) * 0.05
         ).astype(jnp.bfloat16)
    b = jax.random.normal(k_b, (1, D_FEAT), dtype=jnp.float32) * 0.1
    params = (w, b)

    loss, score = protonet_forward(params, data_step)
    loss, score = jax.block_until_ready((loss, score))

    ref_loss, ref_score = reference_forward(params, data_step)
    np.testing.assert_allclose(np.asarray(loss), np.asarray(ref_loss),
                               rtol=2e-3, atol=1e-2)
    score_diff = np.max(np.abs(np.asarray(score) - np.asarray(ref_score)))
    assert score_diff <= 1.0 / (WAYS * QUERIES) + 1e-6  # allow a tie-induced flip
    print("KERNEL_OK")
</pallas_src>

<mosaic_0001>
module attributes {stable_mosaic.version = 11 : i64} {
  func.func @_protonet_kernel(%arg0: i32, %arg1: memref<160x1024xf32, #tpu.memory_space<vmem>>, %arg2: memref<1024x128xbf16, #tpu.memory_space<vmem>>, %arg3: memref<1x128xf32, #tpu.memory_space<vmem>>, %arg4: memref<32x160xf32, #tpu.memory_space<vmem>>, %arg5: memref<96x160xf32, #tpu.memory_space<vmem>>, %arg6: memref<96x96xf32, #tpu.memory_space<vmem>>, %arg7: memref<96x96xf32, #tpu.memory_space<vmem>>, %arg8: memref<8x96xf32, #tpu.memory_space<vmem>>, %arg9: memref<96x32xf32, #tpu.memory_space<vmem>>, %arg10: memref<1x32xf32, #tpu.memory_space<vmem>>, %arg11: memref<96x1xf32, #tpu.memory_space<vmem>>, %arg12: memref<8x128xf32, #tpu.memory_space<vmem>>) attributes {dimension_semantics = [#tpu.dimension_semantics<parallel>], iteration_bounds = array<i64: 2>, scalar_prefetch = 0 : i64, scratch_operands = 0 : i64, tpu.core_type = #tpu.core_type<tc>, window_params = [{transform_indices = @transform_0, window_bounds = array<i64: 160, 1024>}, {pipeline_mode = #tpu.pipeline_mode<synchronous>, transform_indices = @transform_1, window_bounds = array<i64: 1024, 128>}, {pipeline_mode = #tpu.pipeline_mode<synchronous>, transform_indices = @transform_2, window_bounds = array<i64: 1, 128>}, {pipeline_mode = #tpu.pipeline_mode<synchronous>, transform_indices = @transform_3, window_bounds = array<i64: 32, 160>}, {pipeline_mode = #tpu.pipeline_mode<synchronous>, transform_indices = @transform_4, window_bounds = array<i64: 96, 160>}, {pipeline_mode = #tpu.pipeline_mode<synchronous>, transform_indices = @transform_5, window_bounds = array<i64: 96, 96>}, {pipeline_mode = #tpu.pipeline_mode<synchronous>, transform_indices = @transform_6, window_bounds = array<i64: 96, 96>}, {pipeline_mode = #tpu.pipeline_mode<synchronous>, transform_indices = @transform_7, window_bounds = array<i64: 8, 96>}, {pipeline_mode = #tpu.pipeline_mode<synchronous>, transform_indices = @transform_8, window_bounds = array<i64: 96, 32>}, {pipeline_mode = #tpu.pipeline_mode<synchronous>, transform_indices = @transform_9, window_bounds = array<i64: 1, 32>}, {pipeline_mode = #tpu.pipeline_mode<synchronous>, transform_indices = @transform_10, window_bounds = array<i64: 96, 1>}, {transform_indices = @transform_11, window_bounds = array<i64: 8, 128>}]} {
    %c0 = arith.constant 0 : index
    %c0_0 = arith.constant 0 : index
    %0 = vector.load %arg1[%c0, %c0_0] : memref<160x1024xf32, #tpu.memory_space<vmem>>, vector<160x1024xf32>
    %1 = arith.truncf %0 : vector<160x1024xf32> to vector<160x1024xbf16>
    %c0_1 = arith.constant 0 : index
    %c0_2 = arith.constant 0 : index
    %2 = vector.load %arg2[%c0_1, %c0_2] : memref<1024x128xbf16, #tpu.memory_space<vmem>>, vector<1024x128xbf16>
    %cst = arith.constant dense<0.000000e+00> : vector<160x128xf32>
    %3 = tpu.matmul %1, %2, %cst {dimension_numbers = #tpu.dot_dimension_numbers<[1], [0], [0], [1], [0, 0, 1, 1], [], []>} : vector<160x1024xbf16>, vector<1024x128xbf16>, vector<160x128xf32> -> vector<160x128xf32>
    %c0_3 = arith.constant 0 : index
    %c0_4 = arith.constant 0 : index
    %4 = vector.load %arg3[%c0_3, %c0_4] : memref<1x128xf32, #tpu.memory_space<vmem>>, vector<1x128xf32>
    %5 = vector.broadcast %4 : vector<1x128xf32> to vector<160x128xf32>
    %6 = arith.addf %3, %5 : vector<160x128xf32>
    %cst_5 = arith.constant 0.000000e+00 : f32
    %7 = vector.broadcast %cst_5 : f32 to vector<160x128xf32>
    %8 = arith.maximumf %6, %7 : vector<160x128xf32>
    %c0_6 = arith.constant 0 : index
    %c0_7 = arith.constant 0 : index
    %9 = vector.load %arg4[%c0_6, %c0_7] : memref<32x160xf32, #tpu.memory_space<vmem>>, vector<32x160xf32>
    %cst_8 = arith.constant dense<0.000000e+00> : vector<32x128xf32>
    %10 = tpu.matmul %9, %8, %cst_8 {dimension_numbers = #tpu.dot_dimension_numbers<[1], [0], [0], [1], [0, 0, 1, 1], [], []>, precision = #tpu.contract_precision<fp32>} : vector<32x160xf32>, vector<160x128xf32>, vector<32x128xf32> -> vector<32x128xf32>
    %c0_9 = arith.constant 0 : index
    %c0_10 = arith.constant 0 : index
    %11 = vector.load %arg5[%c0_9, %c0_10] : memref<96x160xf32, #tpu.memory_space<vmem>>, vector<96x160xf32>
    %cst_11 = arith.constant dense<0.000000e+00> : vector<96x128xf32>
    %12 = tpu.matmul %11, %8, %cst_11 {dimension_numbers = #tpu.dot_dimension_numbers<[1], [0], [0], [1], [0, 0, 1, 1], [], []>, precision = #tpu.contract_precision<fp32>} : vector<96x160xf32>, vector<160x128xf32>, vector<96x128xf32> -> vector<96x128xf32>
    %cst_12 = arith.constant dense<0.000000e+00> : vector<96x32xf32>
    %13 = tpu.matmul %12, %10, %cst_12 {dimension_numbers = #tpu.dot_dimension_numbers<[1], [1], [0], [0], [0, 0, 1, 0], [], []>, precision = #tpu.contract_precision<fp32>} : vector<96x128xf32>, vector<32x128xf32>, vector<96x32xf32> -> vector<96x32xf32>
    %14 = arith.mulf %12, %12 : vector<96x128xf32>
    %cst_13 = arith.constant dense<0.000000e+00> : vector<96xf32>
    %15 = vector.multi_reduction <add>, %14, %cst_13 [1] : vector<96x128xf32> to vector<96xf32>
    %16 = vector.shape_cast %15 : vector<96xf32> to vector<96x1xf32>
    %cst_14 = arith.constant 2.000000e+00 : f32
    %17 = vector.broadcast %cst_14 : f32 to vector<96x32xf32>
    %18 = arith.mulf %17, %13 : vector<96x32xf32>
    %19 = vector.broadcast %16 : vector<96x1xf32> to vector<96x32xf32>
    %20 = arith.subf %18, %19 : vector<96x32xf32>
    %c0_15 = arith.constant 0 : index
    %c0_16 = arith.constant 0 : index
    %21 = vector.load %arg6[%c0_15, %c0_16] : memref<96x96xf32, #tpu.memory_space<vmem>>, vector<96x96xf32>
    %c0_17 = arith.constant 0 : index
    %c0_18 = arith.constant 0 : index
    %22 = vector.load %arg7[%c0_17, %c0_18] : memref<96x96xf32, #tpu.memory_space<vmem>>, vector<96x96xf32>
    %cst_19 = arith.constant dense<0.000000e+00> : vector<96x32xf32>
    %23 = tpu.matmul %21, %20, %cst_19 {dimension_numbers = #tpu.dot_dimension_numbers<[1], [0], [0], [1], [0, 0, 1, 1], [], []>, precision = #tpu.contract_precision<fp32>} : vector<96x96xf32>, vector<96x32xf32>, vector<96x32xf32> -> vector<96x32xf32>
    %24 = arith.maximumf %20, %23 : vector<96x32xf32>
    %cst_20 = arith.constant dense<0.000000e+00> : vector<96x32xf32>
    %25 = tpu.matmul %22, %24, %cst_20 {dimension_numbers = #tpu.dot_dimension_numbers<[1], [0], [0], [1], [0, 0, 1, 1], [], []>, precision = #tpu.contract_precision<fp32>} : vector<96x96xf32>, vector<96x32xf32>, vector<96x32xf32> -> vector<96x32xf32>
    %26 = arith.maximumf %24, %25 : vector<96x32xf32>
    %27 = arith.subf %20, %26 : vector<96x32xf32>
    %28 = math.exp %27 : vector<96x32xf32>
    %cst_21 = arith.constant dense<0.000000e+00> : vector<96x32xf32>
    %29 = tpu.matmul %21, %28, %cst_21 {dimension_numbers = #tpu.dot_dimension_numbers<[1], [0], [0], [1], [0, 0, 1, 1], [], []>, precision = #tpu.contract_precision<fp32>} : vector<96x96xf32>, vector<96x32xf32>, vector<96x32xf32> -> vector<96x32xf32>
    %30 = arith.addf %28, %29 : vector<96x32xf32>
    %cst_22 = arith.constant dense<0.000000e+00> : vector<96x32xf32>
    %31 = tpu.matmul %22, %30, %cst_22 {dimension_numbers = #tpu.dot_dimension_numbers<[1], [0], [0], [1], [0, 0, 1, 1], [], []>, precision = #tpu.contract_precision<fp32>} : vector<96x96xf32>, vector<96x32xf32>, vector<96x32xf32> -> vector<96x32xf32>
    %32 = arith.addf %30, %31 : vector<96x32xf32>
    %33 = math.log %32 : vector<96x32xf32>
    %34 = arith.addf %26, %33 : vector<96x32xf32>
    %35 = arith.subf %20, %34 : vector<96x32xf32>
    %c0_23 = arith.constant 0 : index
    %c0_24 = arith.constant 0 : index
    %36 = vector.load %arg9[%c0_23, %c0_24] : memref<96x32xf32, #tpu.memory_space<vmem>>, vector<96x32xf32>
    %c0_25 = arith.constant 0 : index
    %c0_26 = arith.constant 0 : index
    %37 = vector.load %arg10[%c0_25, %c0_26] : memref<1x32xf32, #tpu.memory_space<vmem>>, vector<1x32xf32>
    %c0_27 = arith.constant 0 : index
    %c0_28 = arith.constant 0 : index
    %38 = vector.load %arg11[%c0_27, %c0_28] : memref<96x1xf32, #tpu.memory_space<vmem>>, vector<96x1xf32>
    %cst_29 = arith.constant 5.000000e-01 : f32
    %39 = vector.broadcast %cst_29 : f32 to vector<96x32xf32>
    %40 = arith.cmpf ogt, %36, %39 : vector<96x32xf32>
    %41 = vector.broadcast %37 : vector<1x32xf32> to vector<96x32xf32>
    %42 = vector.broadcast %38 : vector<96x1xf32> to vector<96x32xf32>
    %43 = arith.cmpf oeq, %41, %42 : vector<96x32xf32>
    %44 = arith.andi %40, %43 : vector<96x32xi1>
    %cst_30 = arith.constant 1.000000e+00 : f32
    %cst_31 = arith.constant 0.000000e+00 : f32
    %45 = vector.broadcast %cst_30 : f32 to vector<96x32xf32>
    %46 = vector.broadcast %cst_31 : f32 to vector<96x32xf32>
    %47 = arith.select %44, %45, %46 : vector<96x32xi1>, vector<96x32xf32>
    %48 = arith.mulf %47, %35 : vector<96x32xf32>
    %cst_32 = arith.constant dense<0.000000e+00> : vector<96xf32>
    %49 = vector.multi_reduction <add>, %48, %cst_32 [1] : vector<96x32xf32> to vector<96xf32>
    %50 = vector.shape_cast %49 : vector<96xf32> to vector<96x1xf32>
    %cst_33 = arith.constant 0.000000e+00 : f32
    %51 = vector.broadcast %cst_33 : f32 to vector<96x1xf32>
    %52 = arith.subf %51, %50 : vector<96x1xf32>
    %cst_34 = arith.constant -1.000000e+30 : f32
    %53 = vector.broadcast %cst_34 : f32 to vector<96x32xf32>
    %54 = arith.select %40, %35, %53 : vector<96x32xi1>, vector<96x32xf32>
    %cst_35 = arith.constant dense<0xFF800000> : vector<96xf32>
    %55 = vector.multi_reduction <maximumf>, %54, %cst_35 [1] : vector<96x32xf32> to vector<96xf32>
    %56 = vector.shape_cast %55 : vector<96xf32> to vector<96x1xf32>
    %57 = vector.broadcast %56 : vector<96x1xf32> to vector<96x32xf32>
    %58 = arith.cmpf oeq, %54, %57 : vector<96x32xf32>
    %59 = arith.andi %40, %58 : vector<96x32xi1>
    %cst_36 = arith.constant 4.000000e+00 : f32
    %60 = vector.shape_cast %37 : vector<1x32xf32> to vector<1x32xf32>
    %61 = vector.broadcast %60 : vector<1x32xf32> to vector<96x32xf32>
    %62 = vector.broadcast %cst_36 : f32 to vector<96x32xf32>
    %63 = arith.select %59, %61, %62 : vector<96x32xi1>, vector<96x32xf32>
    %cst_37 = arith.constant dense<0x7F800000> : vector<96xf32>
    %64 = vector.multi_reduction <minimumf>, %63, %cst_37 [1] : vector<96x32xf32> to vector<96xf32>
    %65 = vector.shape_cast %64 : vector<96xf32> to vector<96x1xf32>
    %66 = arith.cmpf oeq, %65, %38 : vector<96x1xf32>
    %67 = arith.extui %66 : vector<96x1xi1> to vector<96x1xi32>
    %68 = arith.sitofp %67 : vector<96x1xi32> to vector<96x1xf32>
    %c0_38 = arith.constant 0 : index
    %c0_39 = arith.constant 0 : index
    %69 = vector.load %arg8[%c0_38, %c0_39] : memref<8x96xf32, #tpu.memory_space<vmem>>, vector<8x96xf32>
    %cst_40 = arith.constant dense<0.000000e+00> : vector<8x1xf32>
    %70 = tpu.matmul %69, %52, %cst_40 {dimension_numbers = #tpu.dot_dimension_numbers<[1], [0], [0], [1], [0, 0, 1, 1], [], []>, precision = #tpu.contract_precision<fp32>} : vector<8x96xf32>, vector<96x1xf32>, vector<8x1xf32> -> vector<8x1xf32>
    %cst_41 = arith.constant 1.200000e+01 : f32
    %71 = vector.broadcast %cst_41 : f32 to vector<8x1xf32>
    %72 = arith.divf %70, %71 : vector<8x1xf32>
    %cst_42 = arith.constant dense<0.000000e+00> : vector<8x1xf32>
    %73 = tpu.matmul %69, %68, %cst_42 {dimension_numbers = #tpu.dot_dimension_numbers<[1], [0], [0], [1], [0, 0, 1, 1], [], []>, precision = #tpu.contract_precision<fp32>} : vector<8x96xf32>, vector<96x1xf32>, vector<8x1xf32> -> vector<8x1xf32>
    %cst_43 = arith.constant 1.200000e+01 : f32
    %74 = vector.broadcast %cst_43 : f32 to vector<8x1xf32>
    %75 = arith.divf %73, %74 : vector<8x1xf32>
    %76 = tpu.iota {dimensions = array<i32: 1>} : vector<8x128xi32>
    %c0_i32 = arith.constant 0 : i32
    %77 = vector.broadcast %c0_i32 : i32 to vector<8x128xi32>
    %78 = arith.cmpi eq, %76, %77 : vector<8x128xi32>
    %c1_i32 = arith.constant 1 : i32
    %79 = vector.broadcast %c1_i32 : i32 to vector<8x128xi32>
    %80 = arith.cmpi eq, %76, %79 : vector<8x128xi32>
    %cst_44 = arith.constant 0.000000e+00 : f32
    %81 = vector.shape_cast %75 : vector<8x1xf32> to vector<8x1xf32>
    %82 = vector.broadcast %81 : vector<8x1xf32> to vector<8x128xf32>
    %83 = vector.broadcast %cst_44 : f32 to vector<8x128xf32>
    %84 = arith.select %80, %82, %83 : vector<8x128xi1>, vector<8x128xf32>
    %85 = vector.shape_cast %72 : vector<8x1xf32> to vector<8x1xf32>
    %86 = vector.broadcast %85 : vector<8x1xf32> to vector<8x128xf32>
    %87 = arith.select %78, %86, %84 : vector<8x128xi1>, vector<8x128xf32>
    %c0_45 = arith.constant 0 : index
    %c0_46 = arith.constant 0 : index
    %88 = vector.load %arg12[%c0_45, %c0_46] : memref<8x128xf32, #tpu.memory_space<vmem>>, vector<8x128xf32>
    tpu.vector_store %arg12[%c0_45, %c0_46], %87 {strides = array<i32>} : memref<8x128xf32, #tpu.memory_space<vmem>>, vector<8x128xf32>,
    return
  }
  func.func @transform_0(%arg0: i32) -> (i32, i32) {
    %c0_i32 = arith.constant 0 : i32
    %c0_i32_0 = arith.constant 0 : i32
    return %arg0, %c0_i32 : i32, i32
  }
  func.func @transform_1(%arg0: i32) -> (i32, i32) {
    %c0_i32 = arith.constant 0 : i32
    %c0_i32_0 = arith.constant 0 : i32
    %c0_i32_1 = arith.constant 0 : i32
    return %c0_i32, %c0_i32_0 : i32, i32
  }
  func.func @transform_2(%arg0: i32) -> (i32, i32) {
    %c0_i32 = arith.constant 0 : i32
    %c0_i32_0 = arith.constant 0 : i32
    %c0_i32_1 = arith.constant 0 : i32
    return %c0_i32, %c0_i32_0 : i32, i32
  }
  func.func @transform_3(%arg0: i32) -> (i32, i32) {
    %c0_i32 = arith.constant 0 : i32
    %c0_i32_0 = arith.constant 0 : i32
    %c0_i32_1 = arith.constant 0 : i32
    return %c0_i32, %c0_i32_0 : i32, i32
  }
  func.func @transform_4(%arg0: i32) -> (i32, i32) {
    %c0_i32 = arith.constant 0 : i32
    %c0_i32_0 = arith.constant 0 : i32
    %c0_i32_1 = arith.constant 0 : i32
    return %c0_i32, %c0_i32_0 : i32, i32
  }
  func.func @transform_5(%arg0: i32) -> (i32, i32) {
    %c0_i32 = arith.constant 0 : i32
    %c0_i32_0 = arith.constant 0 : i32
    %c0_i32_1 = arith.constant 0 : i32
    return %c0_i32, %c0_i32_0 : i32, i32
  }
  func.func @transform_6(%arg0: i32) -> (i32, i32) {
    %c0_i32 = arith.constant 0 : i32
    %c0_i32_0 = arith.constant 0 : i32
    %c0_i32_1 = arith.constant 0 : i32
    return %c0_i32, %c0_i32_0 : i32, i32
  }
  func.func @transform_7(%arg0: i32) -> (i32, i32) {
    %c0_i32 = arith.constant 0 : i32
    %c0_i32_0 = arith.constant 0 : i32
    %c0_i32_1 = arith.constant 0 : i32
    return %c0_i32, %c0_i32_0 : i32, i32
  }
  func.func @transform_8(%arg0: i32) -> (i32, i32) {
    %c0_i32 = arith.constant 0 : i32
    %c0_i32_0 = arith.constant 0 : i32
    %c0_i32_1 = arith.constant 0 : i32
    return %c0_i32, %c0_i32_0 : i32, i32
  }
  func.func @transform_9(%arg0: i32) -> (i32, i32) {
    %c0_i32 = arith.constant 0 : i32
    %c0_i32_0 = arith.constant 0 : i32
    %c0_i32_1 = arith.constant 0 : i32
    return %c0_i32, %c0_i32_0 : i32, i32
  }
  func.func @transform_10(%arg0: i32) -> (i32, i32) {
    %c0_i32 = arith.constant 0 : i32
    %c0_i32_0 = arith.constant 0 : i32
    %c0_i32_1 = arith.constant 0 : i32
    return %c0_i32, %c0_i32_0 : i32, i32
  }
  func.func @transform_11(%arg0: i32) -> (i32, i32) {
    %c0_i32 = arith.constant 0 : i32
    %c0_i32_0 = arith.constant 0 : i32
    return %arg0, %c0_i32 : i32, i32
  }
}

</mosaic_0001>

<bundles_post_ra>
// kernel: protonet_forward.1
= control target key start
LH: loop header
LB: loop body
LE: loop exit
PB: predicated region body
PF: predicated region fallthrough
CT: control target
= control target key end

     0   :  { %s15650_s17 = smov 0   ;;  %s19749_s0 = inlined_call_operand.vmem [shape: f32[320,1024], index: 0, kind: input, shape index: {}]   ;;  %s19750_s1 = inlined_call_operand.vmem [shape: bf16[1024,128], index: 1, kind: input, shape index: {}]   ;;  %s19751_s2 = inlined_call_operand.vmem [shape: f32[1,128], index: 2, kind: input, shape index: {}]   ;;  %s19752_s3 = inlined_call_operand.vmem [shape: f32[32,160], index: 3, kind: input, shape index: {}]   ;;  %s19753_s4 = inlined_call_operand.vmem [shape: f32[96,160], index: 4, kind: input, shape index: {}]   ;;  %s19754_s5 = inlined_call_operand.vmem [shape: f32[96,96], index: 5, kind: input, shape index: {}]   ;;  %s19755_s6 = inlined_call_operand.vmem [shape: f32[96,96], index: 6, kind: input, shape index: {}]   ;;  %s19756_s7 = inlined_call_operand.vmem [shape: f32[8,96], index: 7, kind: input, shape index: {}]   ;;  %s19757_s8 = inlined_call_operand.vmem [shape: f32[96,32], index: 8, kind: input, shape index: {}]   ;;  %s19758_s9 = inlined_call_operand.vmem [shape: f32[1,32], index: 9, kind: input, shape index: {}]   ;;  %s19759_s10 = inlined_call_operand.vmem [shape: f32[96,1], index: 10, kind: input, shape index: {}]   ;;  %s19760_s11 = inlined_call_operand.vmem [shape: f32[16,128], index: 11, kind: output, shape index: {}]  }
   0x1 LB: > { %s15656_s18 = sadd.s32 4294967295, %s15583_s17   ;;  %p11008_p0 = scmp.ge.s32.totalorder %s15583_s17, 1  ;;  %s15583_s17 = sphi %s15650_s17, %s21_s17  }
   0x2   : > { %p339_p1 = scmp.lt.s32.totalorder %s15583_s17, 3 }
   0x4   : > { %p340_p2 = pnand %p11008_p0, %p339_p1 }
   0x6   : > { %343 = sbr.rel (%p340_p2) target bundleno = 3613 (0xe1d), region = 64 }
   0xd   : > { %v15460_v0 = vld [vmem:[%s19750_s1 + $0x40] sm:$0xff]   ;;  %s379_s21 = smul.u32 20, %s15656_s18  ;;  %v15462_v2 = vld [vmem:[%s19750_s1 + $0x48] sm:$0xff]   ;;  %v15464_v4 = vld [vmem:[%s19750_s1 + $0x50] sm:$0xff]   ;;  %vm1630_vm0 = vcmask 261120   ;;  %vm20087_vm1 = vcmask 785408  }
   0xe   : > { %v15461_v1 = vld [vmem:[%s19750_s1] sm:$0xff]   ;;  %11129 = vmatprep.subr.bf16.mxu0 %v15460_v0  ;;  %14949 = vmatprep.subr.bf16.mxu1 %v15460_v0  ;;  %v15463_v3 = vld [vmem:[%s19750_s1 + $0x8] sm:$0xff]   ;;  %v15465_v5 = vld [vmem:[%s19750_s1 + $0x10] sm:$0xff]   ;;  %p386_p4 = scmp.lt.s32.totalorder %s15656_s18, 1 }
   0xf   : > { %p380_p3 = scmp.lt.s32.totalorder %s379_s21, 39  ;;  %11130 = vmatpush3.bf16.msra.mxu0 %v15461_v1  ;;  %14957 = vmatpush3.bf16.msra.mxu1 %v15461_v1  ;;  %v15466_v6 = vld [vmem:[%s19750_s1 + $0x58] sm:$0xff]   ;;  %v15468_v8 = vld [vmem:[%s19750_s1 + $0x60] sm:$0xff]   ;;  %v15470_v10 = vld [vmem:[%s19750_s1 + $0x68] sm:$0xff]  }
  0x10   : > { %11131 = vmatprep.subr.bf16.mxu0 %v15462_v2  ;;  %14950 = vmatprep.subr.bf16.mxu1 %v15462_v2  ;;  %v15467_v7 = vld [vmem:[%s19750_s1 + $0x18] sm:$0xff]   ;;  %v15469_v9 = vld [vmem:[%s19750_s1 + $0x20] sm:$0xff]   ;;  %v15471_v17 = vld [vmem:[%s19750_s1 + $0x28] sm:$0xff]   ;;  %s20670_s18 = smov (!%p386_p4, %s15656_s18), 1 }
  0x11   : > { %s20668_s21 = smov (!%p380_p3, %s379_s21), 39  ;;  %v15472_v18 = vld [vmem:[%s19750_s1 + $0x70] sm:$0xff]   ;;  %v15474_v20 = vld [vmem:[%s19750_s1 + $0x78] sm:$0xff]   ;;  %v15476_v26 = vld [vmem:[%s19750_s1 + $0xc0] sm:$0xff]   ;;  %s11011_s28 = sshll.u32 %s20670_s18, 3 }
  0x12   : > { %s11128_s15 = sshll.u32 %s20668_s21, 6  ;;  %v15473_v19 = vld [vmem:[%s19750_s1 + $0x30] sm:$0xff]   ;;  %v15475_v21 = vld [vmem:[%s19750_s1 + $0x38] sm:$0xff]   ;;  %v15477_v33 = vld [vmem:[%s19750_s1 + $0x80] sm:$0xff]   ;;  %s389_s12 = scalar_lea.vmem %s19760_s11, %s11011_s28 }
  0x13   : > { %11132 = vmatpush3.bf16.msra.mxu0 %v15463_v3  ;;  %14958 = vmatpush3.bf16.msra.mxu1 %v15463_v3  ;;  %s15691_s25 = scalar_lea.vmem %s19749_s0, %s11128_s15  ;;  %v15478_v35 = vld [vmem:[%s19750_s1 + $0xc8] sm:$0xff]   ;;  %v15485_v42 = vld [vmem:[%s19750_s1 + $0x140] sm:$0xff]   ;;  %v15480_v43 = vld [vmem:[%s19750_s1 + $0xd0] sm:$0xff]  }
  0x14   : > { %11133 = vmatprep.subr.bf16.mxu0 %v15464_v4  ;;  %14951 = vmatprep.subr.bf16.mxu1 %v15464_v4  ;;  %v392_v11 = vld [vmem:[%s15691_s25 + $0x8] sm:$0xff]  ;;  %v391_v22 = vld [vmem:[%s15691_s25] sm:$0xff]  ;;  %v15481_v52 = vld [vmem:[%s19750_s1 + $0x90] sm:$0xff]  }
  0x15   : > { %v400_v12 = vld [vmem:[%s15691_s25 + $0x48] sm:$0xff]  ;;  %v399_v23 = vld [vmem:[%s15691_s25 + $0x40] sm:$0xff]  ;;  %v15482_v54 = vld [vmem:[%s19750_s1 + $0xd8] sm:$0xff]  }
  0x16   : > { %v488_v13 = vld [vmem:[%s15691_s25 + $0x308] sm:$0xff]  ;;  %v552_v14 = vpack.c.bf16 %v400_v12, %v392_v11  ;;  %v487_v24 = vld [vmem:[%s15691_s25 + $0x300] sm:$0xff]  ;;  %v551_v31 = vpack.c.bf16 %v399_v23, %v391_v22  ;;  %v15483_v56 = vld [vmem:[%s19750_s1 + $0x98] sm:$0xff]  }
  0x17   : > { %11134 = vmatpush3.bf16.msra.mxu0 %v15465_v5  ;;  %14959 = vmatpush3.bf16.msra.mxu1 %v15465_v5  ;;  %v496_v15 = vld [vmem:[%s15691_s25 + $0x348] sm:$0xff]  ;;  %v495_v25 = vld [vmem:[%s15691_s25 + $0x340] sm:$0xff]  ;;  %v15493_v2 = vld [vmem:[%s19750_s1 + $0x150] sm:$0xff]  }
  0x18   : > { %11135 = vmatprep.subr.bf16.mxu0 %v15466_v6  ;;  %14952 = vmatprep.subr.bf16.mxu1 %v15466_v6  ;;  %v600_v16 = vpack.c.bf16 %v496_v15, %v488_v13  ;;  %v408_v27 = vld [vmem:[%s15691_s25 + $0x88] sm:$0xff]  ;;  %v599_v32 = vpack.c.bf16 %v495_v25, %v487_v24  ;;  %v407_v38 = vld [vmem:[%s15691_s25 + $0x80] sm:$0xff]  ;;  %v15495_v6 = vld [vmem:[%s19750_s1 + $0x110] sm:$0xff]  }
  0x19   : > { %1182 = vmatprep.mubr.bf16.mxu0 %v552_v14  ;;  %v416_v28 = vld [vmem:[%s15691_s25 + $0xc8] sm:$0xff]  ;;  %v415_v39 = vld [vmem:[%s15691_s25 + $0xc0] sm:$0xff]  ;;  %v15497_v13 = vld [vmem:[%s19750_s1 + $0x158] sm:$0xff]  }
  0x1a   : > { %1230 = vmatprep.mubr.bf16.mxu1 %v600_v16  ;;  %v504_v29 = vld [vmem:[%s15691_s25 + $0x388] sm:$0xff]  ;;  %v560_v34 = vpack.c.bf16 %v416_v28, %v408_v27  ;;  %v503_v40 = vld [vmem:[%s15691_s25 + $0x380] sm:$0xff]  ;;  %v559_v50 = vpack.c.bf16 %v415_v39, %v407_v38  ;;  %v15499_v15 = vld [vmem:[%s19750_s1 + $0x118] sm:$0xff]  }
  0x1b   : > { %11136 = vmatpush3.bf16.msra.mxu0 %v15467_v7  ;;  %14960 = vmatpush3.bf16.msra.mxu1 %v15467_v7  ;;  %v512_v30 = vld [vmem:[%s15691_s25 + $0x3c8] sm:$0xff]  ;;  %v511_v41 = vld [vmem:[%s15691_s25 + $0x3c0] sm:$0xff]  ;;  %v402_v22 = vld [vmem:[%s15691_s25 + $0x58] sm:$0xff] }
  0x1c   : > { %11137 = vmatprep.subr.bf16.mxu0 %v15468_v8  ;;  %14953 = vmatprep.subr.bf16.mxu1 %v15468_v8  ;;  %v608_v36 = vpack.c.bf16 %v512_v30, %v504_v29  ;;  %v15479_v37 = vld [vmem:[%s19750_s1 + $0x88] sm:$0xff]   ;;  %v15487_v47 = vld [vmem:[%s19750_s1 + $0x100] sm:$0xff]   ;;  %v607_v51 = vpack.c.bf16 %v511_v41, %v503_v40  ;;  %v15496_v28 = vld [vmem:[%s19750_s1 + $0xf8] sm:$0xff]  }
  0x1d   : > { %v424_v44 = vld [vmem:[%s15691_s25 + $0x108] sm:$0xff]  ;;  %v423_v57 = vld [vmem:[%s15691_s25 + $0x100] sm:$0xff]  ;;  %v15498_v30 = vld [vmem:[%s19750_s1 + $0xb8] sm:$0xff]  }
  0x1e   : > { %v432_v45 = vld [vmem:[%s15691_s25 + $0x148] sm:$0xff]  ;;  %v431_v58 = vld [vmem:[%s15691_s25 + $0x140] sm:$0xff]  ;;  %v410_v39 = vld [vmem:[%s15691_s25 + $0x98] sm:$0xff] }
  0x1f   : > { %11138 = vmatpush3.bf16.msra.mxu0 %v15469_v9  ;;  %14961 = vmatpush3.bf16.msra.mxu1 %v15469_v9  ;;  %v520_v46 = vld [vmem:[%s15691_s25 + $0x408] sm:$0xff]  ;;  %v568_v53 = vpack.c.bf16 %v432_v45, %v424_v44  ;;  %v519_v59 = vld [vmem:[%s15691_s25 + $0x400] sm:$0xff]  ;;  %v567_v4 = vpack.c.bf16 %v431_v58, %v423_v57  ;;  %v418_v40 = vld [vmem:[%s15691_s25 + $0xd8] sm:$0xff] }
  0x20   : > { %11139 = vmatprep.subr.bf16.mxu0 %v15470_v10  ;;  %14954 = vmatprep.subr.bf16.mxu1 %v15470_v10  ;;  %v528_v48 = vld [vmem:[%s15691_s25 + $0x448] sm:$0xff]  ;;  %v527_v60 = vld [vmem:[%s15691_s25 + $0x440] sm:$0xff]  ;;  %v562_v45 = vpack.c.bf16 %v418_v40, %v410_v39  ;;  %v15507_v57 = vld [vmem:[%s19750_s1 + $0x138] sm:$0xff]  }
  0x21   : > { %v15489_v49 = vld [vmem:[%s19750_s1 + $0x148] sm:$0xff]   ;;  %v616_v55 = vpack.c.bf16 %v528_v48, %v520_v46  ;;  %v15484_v62 = vld [vmem:[%s19750_s1 + $0xe0] sm:$0xff]   ;;  %v615_v5 = vpack.c.bf16 %v527_v60, %v519_v59  ;;  %v15504_v46 = vld [vmem:[%s19750_s1 + $0x170] sm:$0xff]  }
  0x22   : > { %v15491_v61 = vld [vmem:[%s19750_s1 + $0x108] sm:$0xff]   ;;  %v15486_v7 = vld [vmem:[%s19750_s1 + $0xa0] sm:$0xff]  }
  0x23   : > { %11140 = vmatpush3.bf16.msra.mxu0 %v15471_v17  ;;  %14962 = vmatpush3.bf16.msra.mxu1 %v15471_v17  ;;  %v440_v63 = vld [vmem:[%s15691_s25 + $0x188] sm:$0xff]  ;;  %v439_v12 = vld [vmem:[%s15691_s25 + $0x180] sm:$0xff] }
  0x24   : > { %11141 = vmatprep.subr.bf16.mxu0 %v15472_v18  ;;  %14955 = vmatprep.subr.bf16.mxu1 %v15472_v18  ;;  %v448_v0 = vld [vmem:[%s15691_s25 + $0x1c8] sm:$0xff]  ;;  %v447_v14 = vld [vmem:[%s15691_s25 + $0x1c0] sm:$0xff]  ;;  %v15492_v18 = vld [vmem:[%s19750_s1 + $0xf0] sm:$0xff]  }
  0x25   : > { %v536_v1 = vld [vmem:[%s15691_s25 + $0x488] sm:$0xff]  ;;  %v576_v8 = vpack.c.bf16 %v448_v0, %v440_v63  ;;  %v535_v16 = vld [vmem:[%s15691_s25 + $0x480] sm:$0xff]  ;;  %v575_v23 = vpack.c.bf16 %v447_v14, %v439_v12  ;;  %v425_v0 = vld [vmem:[%s15691_s25 + $0x110] sm:$0xff] }
  0x26   : > { %v544_v3 = vld [vmem:[%s15691_s25 + $0x4c8] sm:$0xff]  ;;  %v543_v17 = vld [vmem:[%s15691_s25 + $0x4c0] sm:$0xff]  ;;  %v15512_v14 = vld [vmem:[%s19750_s1 + $0x1d0] sm:$0xff]  }
  0x27   : > { %11142 = vmatpush3.bf16.msra.mxu0 %v15473_v19  ;;  %14963 = vmatpush3.bf16.msra.mxu1 %v15473_v19  ;;  %v15488_v9 = vld [vmem:[%s19750_s1 + $0xe8] sm:$0xff]   ;;  %v624_v10 = vpack.c.bf16 %v544_v3, %v536_v1  ;;  %v623_v24 = vpack.c.bf16 %v543_v17, %v535_v16  ;;  %v15500_v25 = vld [vmem:[%s19750_s1 + $0x160] sm:$0xff]   ;;  %v433_v1 = vld [vmem:[%s15691_s25 + $0x150] sm:$0xff] }
  0x28   : > { %11143 = vmatprep.subr.bf16.mxu0 %v15474_v20  ;;  %14956 = vmatprep.subr.bf16.mxu1 %v15474_v20  ;;  %v15490_v11 = vld [vmem:[%s19750_s1 + $0xa8] sm:$0xff]   ;;  %v471_v48 = vld [vmem:[%s15691_s25 + $0x280] sm:$0xff]  ;;  %v441_v16 = vld [vmem:[%s15691_s25 + $0x190] sm:$0xff] }
  0x29   : > { %v456_v19 = vld [vmem:[%s15691_s25 + $0x208] sm:$0xff]  ;;  %v15508_v60 = vld [vmem:[%s19750_s1 + $0x1c0] sm:$0xff]   ;;  %v449_v17 = vld [vmem:[%s15691_s25 + $0x1d0] sm:$0xff] }
  0x2a   : > { %v464_v20 = vld [vmem:[%s15691_s25 + $0x248] sm:$0xff]  ;;  %v15509_v63 = vld [vmem:[%s19750_s1 + $0x180] sm:$0xff]  }
  0x2b   : > { %11144 = vmatpush3.bf16.msra.mxu0 %v15475_v21  ;;  %14964 = vmatpush3.bf16.msra.mxu1 %v15475_v21  ;;  %v394_v21 = vld [vmem:[%s15691_s25 + $0x18] sm:$0xff]  ;;  %v584_v27 = vpack.c.bf16 %v464_v20, %v456_v19  ;;  %v480_v38 = vld [vmem:[%s15691_s25 + $0x2c8] sm:$0xff]  ;;  %v403_v3 = vld [vmem:[%s15691_s25 + $0x60] sm:$0xff] }
  0x2c   : > { %11205 = vmatprep.subr.bf16.mxu1 %v15476_v26  ;;  %11281 = vmatprep.subr.bf16.mxu0 %v15485_v42  ;;  %v15494_v26 = vld [vmem:[%s19750_s1 + $0xb0] sm:$0xff]   ;;  %v554_v29 = vpack.c.bf16 %v402_v22, %v394_v21  ;;  %v15503_v41 = vld [vmem:[%s19750_s1 + $0x128] sm:$0xff]   ;;  %v419_v19 = vld [vmem:[%s15691_s25 + $0xe0] sm:$0xff] }
  0x2d   : > { %v458_v20 = vld [vmem:[%s15691_s25 + $0x218] sm:$0xff]  ;;  %v428_v22 = vld [vmem:[%s15691_s25 + $0x128] sm:$0xff]  ;;  %v15517_v39 = vld [vmem:[%s19750_s1 + $0x1a0] sm:$0xff]  }
  0x2e   : > { %1183 = vmatmul.mubr.bf16.vlgmr.msra.gmra.mrb[0].mxu0 %v551_v31  ;;  %1231 = vmatmul.mubr.bf16.vlgmr.msra.gmra.mrb[0].mxu1 %v599_v32  ;;  %v455_v31 = vld [vmem:[%s15691_s25 + $0x200] sm:$0xff]  ;;  %v466_v21 = vld [vmem:[%s15691_s25 + $0x258] sm:$0xff]  ;;  %v15518_v40 = vld [vmem:[%s19750_s1 + $0x1e8] sm:$0xff]  }
  0x2f   : > { %11206 = vmatpush3.bf16.msra.mxu1 %v15477_v33  ;;  %1190 = vmatprep.mubr.bf16.mxu0 %v560_v34  ;;  %v463_v32 = vld [vmem:[%s15691_s25 + $0x240] sm:$0xff]  ;;  %v393_v34 = vld [vmem:[%s15691_s25 + $0x10] sm:$0xff] }
  0x30   : > { %11207 = vmatprep.subr.bf16.mxu1 %v15478_v35  ;;  %1238 = vmatprep.mubr.bf16.mxu1 %v608_v36  ;;  %v15501_v33 = vld [vmem:[%s19750_s1 + $0x120] sm:$0xff]   ;;  %v401_v35 = vld [vmem:[%s15691_s25 + $0x50] sm:$0xff]  ;;  %v15502_v36 = vld [vmem:[%s19750_s1 + $0x168] sm:$0xff]   ;;  %v583_v42 = vpack.c.bf16 %v463_v32, %v455_v31 }
  0x31   : > { %11282 = vmatpush3.bf16.msra.mxu0 %v15487_v47  ;;  %v15505_v47 = vld [vmem:[%s19750_s1 + $0x130] sm:$0xff]   ;;  %v427_v32 = vld [vmem:[%s15691_s25 + $0x120] sm:$0xff] }
  0x32   : > { %11283 = vmatprep.subr.bf16.mxu0 %v15489_v49  ;;  %v479_v49 = vld [vmem:[%s15691_s25 + $0x2c0] sm:$0xff]  ;;  %v465_v31 = vld [vmem:[%s15691_s25 + $0x250] sm:$0xff] }
  0x33   : > { %11208 = vmatpush3.bf16.msra.mxu1 %v15479_v37  ;;  %v472_v37 = vld [vmem:[%s15691_s25 + $0x288] sm:$0xff]  ;;  %v591_v58 = vpack.c.bf16 %v479_v49, %v471_v48  ;;  %v443_v48 = vld [vmem:[%s15691_s25 + $0x1a0] sm:$0xff] }
  0x34   : > { %11209 = vmatprep.subr.bf16.mxu1 %v15480_v43  ;;  %v553_v43 = vpack.c.bf16 %v401_v35, %v393_v34  ;;  %v592_v44 = vpack.c.bf16 %v480_v38, %v472_v37  ;;  %v474_v34 = vld [vmem:[%s15691_s25 + $0x298] sm:$0xff]  ;;  %v452_v37 = vld [vmem:[%s15691_s25 + $0x1e8] sm:$0xff]  ;;  %v15516_v38 = vld [vmem:[%s19750_s1 + $0x1e0] sm:$0xff]  }
  0x35   : > { %11284 = vmatpush3.bf16.msra.mxu0 %v15491_v61  ;;  %v482_v35 = vld [vmem:[%s15691_s25 + $0x2d8] sm:$0xff]  ;;  %v451_v49 = vld [vmem:[%s15691_s25 + $0x1e0] sm:$0xff] }
  0x36   : > { %1191 = vmatmul.mubr.bf16.gmra.mrb[4].mxu0 %v559_v50  ;;  %1239 = vmatmul.mubr.bf16.gmra.mrb[4].mxu1 %v607_v51  ;;  %v15506_v50 = vld [vmem:[%s19750_s1 + $0x178] sm:$0xff]   ;;  %v409_v51 = vld [vmem:[%s15691_s25 + $0x90] sm:$0xff] }
  0x37   : > { %11210 = vmatpush3.bf16.msra.mxu1 %v15481_v52  ;;  %1198 = vmatprep.mubr.bf16.mxu0 %v568_v53  ;;  %v417_v52 = vld [vmem:[%s15691_s25 + $0xd0] sm:$0xff]  ;;  %v426_v53 = vld [vmem:[%s15691_s25 + $0x118] sm:$0xff] }
  0x38   : > { %11211 = vmatprep.subr.bf16.mxu1 %v15482_v54  ;;  %1246 = vmatprep.mubr.bf16.mxu1 %v616_v55  ;;  %v434_v54 = vld [vmem:[%s15691_s25 + $0x158] sm:$0xff]  ;;  %v396_v55 = vld [vmem:[%s15691_s25 + $0x28] sm:$0xff]  ;;  %v561_v59 = vpack.c.bf16 %v417_v52, %v409_v51 }
  0x39   : > { %11285 = vmatprep.subr.bf16.mxu0 %v15493_v2  ;;  %v570_v61 = vpack.c.bf16 %v434_v54, %v426_v53  ;;  %v395_v2 = vld [vmem:[%s15691_s25 + $0x20] sm:$0xff]  ;;  %v498_v51 = vld [vmem:[%s15691_s25 + $0x358] sm:$0xff]  ;;  %v460_v52 = vld [vmem:[%s15691_s25 + $0x228] sm:$0xff] }
  0x3a   : > { %11286 = vmatpush3.bf16.msra.mxu0 %v15495_v6  ;;  %v15511_v6 = vld [vmem:[%s19750_s1 + $0x188] sm:$0xff]   ;;  %v15520_v53 = vld [vmem:[%s19750_s1 + $0x1f0] sm:$0xff]  }
  0x3b   : > { %11212 = vmatpush3.bf16.msra.mxu1 %v15483_v56  ;;  %11287 = vmatprep.subr.bf16.mxu0 %v15497_v13  ;;  %v404_v56 = vld [vmem:[%s15691_s25 + $0x68] sm:$0xff] }
  0x3c   : > { %11213 = vmatprep.subr.bf16.mxu1 %v15484_v62  ;;  %v556_v62 = vpack.c.bf16 %v404_v56, %v396_v55  ;;  %v468_v54 = vld [vmem:[%s15691_s25 + $0x268] sm:$0xff]  ;;  %v15521_v55 = vld [vmem:[%s19750_s1 + $0x1b0] sm:$0xff]   ;;  %v15522_v56 = vld [vmem:[%s19750_s1 + $0x1f8] sm:$0xff]  }
  0x3e   : > { %1199 = vmatmul.mubr.bf16.gmra.mrb[8].mxu0 %v567_v4  ;;  %1247 = vmatmul.mubr.bf16.gmra.mrb[8].mxu1 %v615_v5  ;;  %v442_v4 = vld [vmem:[%s15691_s25 + $0x198] sm:$0xff]  ;;  %v15510_v5 = vld [vmem:[%s19750_s1 + $0x1c8] sm:$0xff]  }
  0x3f   : > { %11214 = vmatpush3.bf16.msra.mxu1 %v15486_v7  ;;  %1206 = vmatprep.mubr.bf16.mxu0 %v576_v8  ;;  %v450_v7 = vld [vmem:[%s15691_s25 + $0x1d8] sm:$0xff]  ;;  %v412_v8 = vld [vmem:[%s15691_s25 + $0xa8] sm:$0xff] }
  0x40   : > { %11215 = vmatprep.subr.bf16.mxu1 %v15488_v9  ;;  %1254 = vmatprep.mubr.bf16.mxu1 %v624_v10  ;;  %v420_v9 = vld [vmem:[%s15691_s25 + $0xe8] sm:$0xff]  ;;  %v569_v10 = vpack.c.bf16 %v433_v1, %v425_v0  ;;  %v578_v12 = vpack.c.bf16 %v450_v7, %v442_v4  ;;  %v459_v0 = vld [vmem:[%s15691_s25 + $0x220] sm:$0xff] }
  0x41   : > { %11288 = vmatpush3.bf16.msra.mxu0 %v15499_v15  ;;  %v564_v13 = vpack.c.bf16 %v420_v9, %v412_v8  ;;  %v15513_v15 = vld [vmem:[%s19750_s1 + $0x190] sm:$0xff]   ;;  %v467_v1 = vld [vmem:[%s15691_s25 + $0x260] sm:$0xff]  ;;  %v476_v4 = vld [vmem:[%s15691_s25 + $0x2a8] sm:$0xff] }
  0x42   : > { %11289 = vmatprep.subr.bf16.mxu0 %v15500_v25  ;;  %v577_v25 = vpack.c.bf16 %v449_v17, %v441_v16  ;;  %v587_v7 = vpack.c.bf16 %v467_v1, %v459_v0  ;;  %v492_v16 = vld [vmem:[%s15691_s25 + $0x328] sm:$0xff] }
  0x43   : > { %11216 = vmatpush3.bf16.msra.mxu1 %v15490_v11  ;;  %v555_v11 = vpack.c.bf16 %v403_v3, %v395_v2  ;;  %v506_v2 = vld [vmem:[%s15691_s25 + $0x398] sm:$0xff]  ;;  %v500_v17 = vld [vmem:[%s15691_s25 + $0x368] sm:$0xff] }
  0x44   : > { %11217 = vmatprep.subr.bf16.mxu1 %v15492_v18  ;;  %v411_v18 = vld [vmem:[%s15691_s25 + $0xa0] sm:$0xff]  ;;  %v514_v3 = vld [vmem:[%s15691_s25 + $0x3d8] sm:$0xff] }
  0x45   : > { %11290 = vmatpush3.bf16.msra.mxu0 %v15501_v33  ;;  %v435_v33 = vld [vmem:[%s15691_s25 + $0x160] sm:$0xff]  ;;  %v610_v8 = vpack.c.bf16 %v514_v3, %v506_v2  ;;  %v429_v3 = vld [vmem:[%s15691_s25 + $0x130] sm:$0xff] }
  0x46   : > { %1207 = vmatmul.mubr.bf16.gmra.mrb[12].mxu0 %v575_v23  ;;  %1255 = vmatmul.mubr.bf16.gmra.mrb[12].mxu1 %v623_v24  ;;  %v436_v23 = vld [vmem:[%s15691_s25 + $0x168] sm:$0xff]  ;;  %v15514_v24 = vld [vmem:[%s19750_s1 + $0x1d8] sm:$0xff]  }
  0x47   : > { %11218 = vmatpush3.bf16.msra.mxu1 %v15494_v26  ;;  %1214 = vmatprep.mubr.bf16.mxu0 %v584_v27  ;;  %v563_v26 = vpack.c.bf16 %v419_v19, %v411_v18  ;;  %v15515_v27 = vld [vmem:[%s19750_s1 + $0x198] sm:$0xff]  }
  0x48   : > { %11219 = vmatprep.subr.bf16.mxu1 %v15496_v28  ;;  %1295 = vmatprep.mubr.bf16.mxu1 %v554_v29  ;;  %v586_v28 = vpack.c.bf16 %v466_v21, %v458_v20  ;;  %v572_v29 = vpack.c.bf16 %v436_v23, %v428_v22  ;;  %v604_v21 = vpack.c.bf16 %v500_v17, %v492_v16  ;;  %v521_v22 = vld [vmem:[%s15691_s25 + $0x410] sm:$0xff]  ;;  %v478_v17 = vld [vmem:[%s15691_s25 + $0x2b8] sm:$0xff] }
  0x49   : > { %11291 = vmatprep.subr.bf16.mxu0 %v15502_v36  ;;  %v444_v36 = vld [vmem:[%s15691_s25 + $0x1a8] sm:$0xff]  ;;  %v529_v23 = vld [vmem:[%s15691_s25 + $0x450] sm:$0xff] }
  0x4a   : > { %11292 = vmatpush3.bf16.msra.mxu0 %v15503_v41  ;;  %v469_v16 = vld [vmem:[%s15691_s25 + $0x270] sm:$0xff] }
  0x4b   : > { %11220 = vmatpush3.bf16.msra.mxu1 %v15498_v30  ;;  %11293 = vmatprep.subr.bf16.mxu0 %v15504_v46  ;;  %v457_v30 = vld [vmem:[%s15691_s25 + $0x210] sm:$0xff] }
  0x4c   : > { %11357 = vmatprep.subr.bf16.mxu1 %v15508_v60  ;;  %v585_v41 = vpack.c.bf16 %v465_v31, %v457_v30  ;;  %v473_v46 = vld [vmem:[%s15691_s25 + $0x290] sm:$0xff]  ;;  %v588_v60 = vpack.c.bf16 %v468_v54, %v460_v52  ;;  %v617_v30 = vpack.c.bf16 %v529_v23, %v521_v22  ;;  %v414_v52 = vld [vmem:[%s15691_s25 + $0xb8] sm:$0xff] }
  0x4d   : > { %v485_v22 = vld [vmem:[%s15691_s25 + $0x2f0] sm:$0xff]  ;;  %v494_v23 = vld [vmem:[%s15691_s25 + $0x338] sm:$0xff] }
  0x4e   : > { %1215 = vmatmul.mubr.bf16.gmra.mrb[16].mxu0 %v583_v42  ;;  %1296 = vmatmul.mubr.bf16.vlgmr.msra.gmra.mrb[16].mxu1 %v553_v43  ;;  %v571_v42 = vpack.c.bf16 %v435_v33, %v427_v32  ;;  %v594_v43 = vpack.c.bf16 %v482_v35, %v474_v34  ;;  %v537_v34 = vld [vmem:[%s15691_s25 + $0x490] sm:$0xff] }
  0x4f   : > { %1222 = vmatprep.mubr.bf16.mxu0 %v592_v44  ;;  %1303 = vmatprep.mubr.bf16.mxu1 %v562_v45  ;;  %v580_v44 = vpack.c.bf16 %v452_v37, %v444_v36  ;;  %v15519_v45 = vld [vmem:[%s19750_s1 + $0x1a8] sm:$0xff]   ;;  %v545_v35 = vld [vmem:[%s15691_s25 + $0x4d0] sm:$0xff]  ;;  %v507_v36 = vld [vmem:[%s15691_s25 + $0x3a0] sm:$0xff] }
  0x50   : > { %11294 = vmatpush3.bf16.msra.mxu0 %v15505_v47  ;;  %11358 = vmatpush3.bf16.msra.mxu1 %v15509_v63  ;;  %v481_v47 = vld [vmem:[%s15691_s25 + $0x2d0] sm:$0xff]  ;;  %v515_v37 = vld [vmem:[%s15691_s25 + $0x3e0] sm:$0xff] }
  0x51   : > { %11295 = vmatprep.subr.bf16.mxu0 %v15506_v50  ;;  %11359 = vmatprep.subr.bf16.mxu1 %v15510_v5  ;;  %v490_v50 = vld [vmem:[%s15691_s25 + $0x318] sm:$0xff]  ;;  %v497_v63 = vld [vmem:[%s15691_s25 + $0x350] sm:$0xff]  ;;  %v484_v5 = vld [vmem:[%s15691_s25 + $0x2e8] sm:$0xff] }
  0x52   : > { %v596_v9 = vpack.c.bf16 %v484_v5, %v476_v4  ;;  %v437_v4 = vld [vmem:[%s15691_s25 + $0x170] sm:$0xff]  ;;  %v446_v5 = vld [vmem:[%s15691_s25 + $0x1b8] sm:$0xff] }
  0x54   : > { %11296 = vmatpush3.bf16.msra.mxu0 %v15507_v57  ;;  %11360 = vmatpush3.bf16.msra.mxu1 %v15511_v6  ;;  %v593_v57 = vpack.c.bf16 %v481_v47, %v473_v46  ;;  %v523_v46 = vld [vmem:[%s15691_s25 + $0x420] sm:$0xff] }
  0x55   : > { %11361 = vmatprep.subr.bf16.mxu1 %v15512_v14  ;;  %v522_v14 = vld [vmem:[%s15691_s25 + $0x418] sm:$0xff]  ;;  %v531_v47 = vld [vmem:[%s15691_s25 + $0x460] sm:$0xff] }
  0x56   : > { %1223 = vmatmul.mubr.bf16.gmra.mrb[20].mxu0 %v591_v58  ;;  %1304 = vmatmul.mubr.bf16.gmra.mrb[20].mxu1 %v561_v59  ;;  %v579_v58 = vpack.c.bf16 %v451_v49, %v443_v48  ;;  %v602_v59 = vpack.c.bf16 %v498_v51, %v490_v50  ;;  %v397_v48 = vld [vmem:[%s15691_s25 + $0x30] sm:$0xff]  ;;  %v540_v50 = vld [vmem:[%s15691_s25 + $0x4a8] sm:$0xff]  ;;  %v619_v54 = vpack.c.bf16 %v531_v47, %v523_v46 }
  0x57   : > { %1311 = vmatprep.mubr.bf16.mxu1 %v570_v61  ;;  %1408 = vmatprep.mubr.bf16.mxu0 %v556_v62  ;;  %v15523_v61 = vld [vmem:[%s19750_s1 + $0x1b8] sm:$0xff]   ;;  %v489_v62 = vld [vmem:[%s15691_s25 + $0x310] sm:$0xff]  ;;  %v548_v51 = vld [vmem:[%s15691_s25 + $0x4e8] sm:$0xff] }
  0x58   : > { %11362 = vmatpush3.bf16.msra.mxu1 %v15513_v15  ;;  %v601_v6 = vpack.c.bf16 %v497_v63, %v489_v62  ;;  %v530_v15 = vld [vmem:[%s15691_s25 + $0x458] sm:$0xff]  ;;  %v405_v49 = vld [vmem:[%s15691_s25 + $0x70] sm:$0xff] }
  0x59   : > { %11363 = vmatprep.subr.bf16.mxu1 %v15514_v24  ;;  %v618_v20 = vpack.c.bf16 %v530_v15, %v522_v14  ;;  %v491_v24 = vld [vmem:[%s15691_s25 + $0x320] sm:$0xff]  ;;  %v430_v62 = vld [vmem:[%s15691_s25 + $0x138] sm:$0xff]  ;;  %v461_v15 = vld [vmem:[%s15691_s25 + $0x230] sm:$0xff] }
  0x5a   : > { %v438_v63 = vld [vmem:[%s15691_s25 + $0x178] sm:$0xff]  ;;  %v549_v46 = vld [vmem:[%s15691_s25 + $0x4f0] sm:$0xff] }
  0x5b   : > { %v574_v2 = vpack.c.bf16 %v438_v63, %v430_v62 }
  0x5c   : > { %11364 = vmatpush3.bf16.msra.mxu1 %v15515_v27  ;;  %v546_v27 = vld [vmem:[%s15691_s25 + $0x4d8] sm:$0xff] }
  0x5d   : > { %11365 = vmatprep.subr.bf16.mxu1 %v15516_v38  ;;  %v524_v38 = vld [vmem:[%s15691_s25 + $0x428] sm:$0xff] }
  0x5e   : > { %1312 = vmatmul.mubr.bf16.gmra.mrb[24].mxu1 %v569_v10  ;;  %1409 = vmatmul.mubr.bf16.vlgmr.msra.gmra.mrb[24].mxu0 %v555_v11  ;;  %v505_v10 = vld [vmem:[%s15691_s25 + $0x390] sm:$0xff] }
  0x5f   : > { %1319 = vmatprep.mubr.bf16.mxu1 %v578_v12  ;;  %1416 = vmatprep.mubr.bf16.mxu0 %v564_v13  ;;  %v513_v11 = vld [vmem:[%s15691_s25 + $0x3d0] sm:$0xff]  ;;  %v475_v12 = vld [vmem:[%s15691_s25 + $0x2a0] sm:$0xff] }
  0x60   : > { %11366 = vmatpush3.bf16.msra.mxu1 %v15517_v39  ;;  %v483_v13 = vld [vmem:[%s15691_s25 + $0x2e0] sm:$0xff]  ;;  %v609_v18 = vpack.c.bf16 %v513_v11, %v505_v10  ;;  %v532_v39 = vld [vmem:[%s15691_s25 + $0x468] sm:$0xff]  ;;  %v453_v10 = vld [vmem:[%s15691_s25 + $0x1f0] sm:$0xff] }
  0x61   : > { %11367 = vmatprep.subr.bf16.mxu1 %v15518_v40  ;;  %v595_v19 = vpack.c.bf16 %v483_v13, %v475_v12  ;;  %v398_v40 = vld [vmem:[%s15691_s25 + $0x38] sm:$0xff] }
  0x62   : > { %v462_v11 = vld [vmem:[%s15691_s25 + $0x238] sm:$0xff] }
  0x63   : > { %v470_v12 = vld [vmem:[%s15691_s25 + $0x278] sm:$0xff] }
  0x64   : > { %11368 = vmatpush3.bf16.msra.mxu1 %v15519_v45  ;;  %v590_v14 = vpack.c.bf16 %v470_v12, %v462_v11 }
  0x65   : > { %11369 = vmatprep.subr.bf16.mxu1 %v15520_v53  ;;  %v422_v53 = vld [vmem:[%s15691_s25 + $0xf8] sm:$0xff] }
  0x66   : > { %1320 = vmatmul.mubr.bf16.gmra.mrb[28].mxu1 %v577_v25  ;;  %1417 = vmatmul.mubr.bf16.gmra.mrb[28].mxu0 %v563_v26  ;;  %v499_v25 = vld [vmem:[%s15691_s25 + $0x360] sm:$0xff]  ;;  %v538_v26 = vld [vmem:[%s15691_s25 + $0x498] sm:$0xff] }
  0x67   : > { %1327 = vmatprep.mubr.bf16.mxu1 %v586_v28  ;;  %1424 = vmatprep.mubr.bf16.mxu0 %v572_v29  ;;  %v508_v28 = vld [vmem:[%s15691_s25 + $0x3a8] sm:$0xff]  ;;  %v603_v31 = vpack.c.bf16 %v499_v25, %v491_v24  ;;  %v626_v32 = vpack.c.bf16 %v546_v27, %v538_v26  ;;  %v502_v24 = vld [vmem:[%s15691_s25 + $0x378] sm:$0xff]  ;;  %v493_v27 = vld [vmem:[%s15691_s25 + $0x330] sm:$0xff] }
  0x68   : > { %11370 = vmatpush3.bf16.msra.mxu1 %v15521_v55  ;;  %v516_v29 = vld [vmem:[%s15691_s25 + $0x3e8] sm:$0xff]  ;;  %v557_v55 = vpack.c.bf16 %v405_v49, %v397_v48  ;;  %v606_v26 = vpack.c.bf16 %v502_v24, %v494_v23  ;;  %v19763_v48 = vmov 0.0|0.0  }
  0x69   : > { %11371 = vmatprep.subr.bf16.mxu1 %v15522_v56  ;;  %v612_v33 = vpack.c.bf16 %v516_v29, %v508_v28  ;;  %v628_v56 = vpack.c.bf16 %v548_v51, %v540_v50  ;;  %v501_v28 = vld [vmem:[%s15691_s25 + $0x370] sm:$0xff]  ;;  %v510_v29 = vld [vmem:[%s15691_s25 + $0x3b8] sm:$0xff]  ;;  %13749 = vmatprep.subr.bf16.mxu0 %v19763_v48 }
  0x6c   : > { %11372 = vmatpush3.bf16.msra.mxu1 %v15523_v61  ;;  %v421_v61 = vld [vmem:[%s15691_s25 + $0xf0] sm:$0xff] }
  0x6d   : > { %13929 = vmatprep.subr.bf16.mxu1 %v19763_v48 }
  0x6e   : > { %1328 = vmatmul.mubr.bf16.gmra.mrb[32].mxu1 %v585_v41  ;;  %1425 = vmatmul.mubr.bf16.gmra.mrb[32].mxu0 %v571_v42  ;;  %v406_v41 = vld [vmem:[%s15691_s25 + $0x78] sm:$0xff]  ;;  %v625_v42 = vpack.c.bf16 %v545_v35, %v537_v34  ;;  %v517_v34 = vld [vmem:[%s15691_s25 + $0x3f0] sm:$0xff] }
  0x6f   : > { %1335 = vmatprep.mubr.bf16.mxu1 %v594_v43  ;;  %1432 = vmatprep.mubr.bf16.mxu0 %v580_v44  ;;  %v611_v43 = vpack.c.bf16 %v515_v37, %v507_v36  ;;  %v620_v44 = vpack.c.bf16 %v532_v39, %v524_v38  ;;  %v558_v45 = vpack.c.bf16 %v406_v41, %v398_v40  ;;  %v526_v35 = vld [vmem:[%s15691_s25 + $0x438] sm:$0xff]  ;;  %v525_v39 = vld [vmem:[%s15691_s25 + $0x430] sm:$0xff] }
  0x70   : > { %v534_v36 = vld [vmem:[%s15691_s25 + $0x478] sm:$0xff]  ;;  %v533_v40 = vld [vmem:[%s15691_s25 + $0x470] sm:$0xff] }
  0x71   : > { %v622_v38 = vpack.c.bf16 %v534_v36, %v526_v35  ;;  %v542_v41 = vld [vmem:[%s15691_s25 + $0x4b8] sm:$0xff] }
  0x76   : > { %1336 = vmatmul.mubr.bf16.gmra.mrb[36].mxu1 %v593_v57  ;;  %1433 = vmatmul.mubr.bf16.gmra.mrb[36].mxu0 %v579_v58  ;;  %v566_v57 = vpack.c.bf16 %v422_v53, %v414_v52  ;;  %v539_v58 = vld [vmem:[%s15691_s25 + $0x4a0] sm:$0xff] }
  0x77   : > { %1343 = vmatprep.mubr.bf16.mxu1 %v602_v59  ;;  %1440 = vmatprep.mubr.bf16.mxu0 %v588_v60  ;;  %v547_v59 = vld [vmem:[%s15691_s25 + $0x4e0] sm:$0xff]  ;;  %v413_v60 = vld [vmem:[%s15691_s25 + $0xb0] sm:$0xff] }
  0x78   : > { %v627_v0 = vpack.c.bf16 %v547_v59, %v539_v58  ;;  %v565_v1 = vpack.c.bf16 %v421_v61, %v413_v60 }
  0x7e   : > { %1344 = vmatmul.mubr.bf16.gmra.mrb[40].mxu1 %v601_v6  ;;  %1441 = vmatmul.mubr.bf16.gmra.mrb[40].mxu0 %v587_v7  ;;  %v454_v6 = vld [vmem:[%s15691_s25 + $0x1f8] sm:$0xff]  ;;  %v573_v7 = vpack.c.bf16 %v437_v4, %v429_v3 }
  0x7f   : > { %1351 = vmatprep.mubr.bf16.mxu1 %v610_v8  ;;  %1448 = vmatprep.mubr.bf16.mxu0 %v596_v9  ;;  %v582_v8 = vpack.c.bf16 %v454_v6, %v446_v5  ;;  %v445_v9 = vld [vmem:[%s15691_s25 + $0x1b0] sm:$0xff] }
  0x80   : > { %v581_v13 = vpack.c.bf16 %v453_v10, %v445_v9 }
  0x86   : > { %1352 = vmatmul.mubr.bf16.gmra.mrb[44].mxu1 %v609_v18  ;;  %1449 = vmatmul.mubr.bf16.gmra.mrb[44].mxu0 %v595_v19  ;;  %v486_v18 = vld [vmem:[%s15691_s25 + $0x2f8] sm:$0xff]  ;;  %v589_v19 = vpack.c.bf16 %v469_v16, %v461_v15 }
  0x87   : > { %1359 = vmatprep.mubr.bf16.mxu1 %v618_v20  ;;  %1456 = vmatprep.mubr.bf16.mxu0 %v604_v21  ;;  %v598_v20 = vpack.c.bf16 %v486_v18, %v478_v17  ;;  %v477_v21 = vld [vmem:[%s15691_s25 + $0x2b0] sm:$0xff]  ;;  %v16031_v17 = vld [vmem:[%s19751_s2] ss:$0 sm:$0xff] }
  0x88   : > { %v597_v25 = vpack.c.bf16 %v485_v22, %v477_v21 }
  0x8e   : > { %1360 = vmatmul.mubr.bf16.gmra.mrb[48].mxu1 %v617_v30  ;;  %1457 = vmatmul.mubr.bf16.gmra.mrb[48].mxu0 %v603_v31  ;;  %v518_v30 = vld [vmem:[%s15691_s25 + $0x3f8] sm:$0xff]  ;;  %v605_v31 = vpack.c.bf16 %v501_v28, %v493_v27 }
  0x8f   : > { %1367 = vmatprep.mubr.bf16.mxu1 %v626_v32  ;;  %1464 = vmatprep.mubr.bf16.mxu0 %v612_v33  ;;  %v614_v32 = vpack.c.bf16 %v518_v30, %v510_v29  ;;  %v509_v33 = vld [vmem:[%s15691_s25 + $0x3b0] sm:$0xff] }
  0x90   : > { %v613_v37 = vpack.c.bf16 %v517_v34, %v509_v33 }
  0x96   : > { %1368 = vmatmul.mubr.bf16.gmra.mrb[52].mxu1 %v625_v42  ;;  %1465 = vmatmul.mubr.bf16.gmra.mrb[52].mxu0 %v611_v43  ;;  %v550_v42 = vld [vmem:[%s15691_s25 + $0x4f8] sm:$0xff]  ;;  %v621_v43 = vpack.c.bf16 %v533_v40, %v525_v39 }
  0x97   : > { %1472 = vmatprep.mubr.bf16.mxu0 %v620_v44  ;;  %1521 = vmatprep.mubr.bf16.mxu1 %v558_v45  ;;  %v630_v44 = vpack.c.bf16 %v550_v42, %v542_v41  ;;  %v541_v45 = vld [vmem:[%s15691_s25 + $0x4b0] sm:$0xff] }
  0x98   : > { %v629_v47 = vpack.c.bf16 %v549_v46, %v541_v45 }
  0x9e   : > { %1473 = vmatmul.mubr.bf16.gmra.mrb[56].mxu0 %v619_v54  ;;  %1522 = vmatmul.mubr.bf16.vlgmr.msra.gmra.mrb[56].mxu1 %v557_v55 }
  0x9f   : > { %1480 = vmatprep.mubr.bf16.mxu0 %v628_v56  ;;  %1529 = vmatprep.mubr.bf16.mxu1 %v566_v57 }
  0xa6   : > { %1481 = vmatmul.mubr.bf16.gmra.mrb[60].mxu0 %v627_v0  ;;  %1530 = vmatmul.mubr.bf16.gmra.mrb[60].mxu1 %v565_v1 }
  0xa7   : > { %1537 = vmatprep.mubr.bf16.mxu1 %v574_v2 }
  0xae   : > { %1538 = vmatmul.mubr.bf16.gmra.mrb[64].mxu1 %v573_v7 }
  0xaf   : > { %1545 = vmatprep.mubr.bf16.mxu1 %v582_v8 }
  0xb6   : > { %1546 = vmatmul.mubr.bf16.gmra.mrb[68].mxu1 %v581_v13 }
  0xb7   : > { %1553 = vmatprep.mubr.bf16.mxu1 %v590_v14 }
  0xbe   : > { %1554 = vmatmul.mubr.bf16.gmra.mrb[72].mxu1 %v589_v19 }
  0xbf   : > { %1561 = vmatprep.mubr.bf16.mxu1 %v598_v20 }
  0xc6   : > { %1562 = vmatmul.mubr.bf16.gmra.mrb[76].mxu1 %v597_v25 }
  0xc7   : > { %1569 = vmatprep.mubr.bf16.mxu1 %v606_v26 }
  0xce   : > { %1570 = vmatmul.mubr.bf16.gmra.mrb[80].mxu1 %v605_v31 }
  0xcf   : > { %1577 = vmatprep.mubr.bf16.mxu1 %v614_v32 }
  0xd6   : > { %1578 = vmatmul.mubr.bf16.gmra.mrb[84].mxu1 %v613_v37 }
  0xd7   : > { %1585 = vmatprep.mubr.bf16.mxu1 %v622_v38 }
  0xde   : > { %1586 = vmatmul.mubr.bf16.gmra.mrb[88].mxu1 %v621_v43 }
  0xdf   : > { %1593 = vmatprep.mubr.bf16.mxu1 %v630_v44 }
  0xe6   : > { %1594 = vmatmul.mubr.bf16.gmra.mrb[92].mxu1 %v629_v47 }
 0x101   : > { %v11181_v49 = vpop.f32.mrb[0].mxu1  ;;  %v11145_v50 = vpop.f32.mrb[0].mxu0 }
 0x102   : > { %v11182_v51 = vpop.f32.mrb[1].mxu1  ;;  %v11146_v52 = vpop.f32.mrb[1].mxu0 }
 0x103   : > { %v16020_v53 = vadd.f32 %v11182_v51, %v11181_v49  ;;  %v11184_v54 = vpop.f32.mrb[2].mxu1  ;;  %v11147_v55 = vadd.f32 %v11146_v52, %v11145_v50  ;;  %v11148_v56 = vpop.f32.mrb[2].mxu0 }
 0x104   : > { %v11185_v57 = vpop.f32.mrb[3].mxu1  ;;  %v11149_v58 = vpop.f32.mrb[3].mxu0 }
 0x105   : > { %v16022_v59 = vadd.f32 %v11185_v57, %v11184_v54  ;;  %v11150_v60 = vadd.f32 %v11149_v58, %v11148_v56  ;;  %v1185_v38 = vadd.f32 %v11147_v55, %v16031_v17 }
 0x107   : > { %v1188_v43 = vadd.f32 %v11150_v60, %v16031_v17 }
 0x109   : > { %v11187_v61 = vpop.f32.mrb[4].mxu1  ;;  %v11151_v62 = vpop.f32.mrb[4].mxu0 }
 0x10a   : > { %v11188_v63 = vpop.f32.mrb[5].mxu1  ;;  %v11152_v0 = vpop.f32.mrb[5].mxu0 }
 0x10b   : > { %v16024_v1 = vadd.f32 %v11188_v63, %v11187_v61  ;;  %v11190_v2 = vpop.f32.mrb[6].mxu1  ;;  %v11153_v3 = vadd.f32 %v11152_v0, %v11151_v62  ;;  %v11154_v4 = vpop.f32.mrb[6].mxu0 }
 0x10c   : > { %v11191_v5 = vpop.f32.mrb[7].mxu1  ;;  %v11155_v6 = vpop.f32.mrb[7].mxu0 }
 0x10d   : > { %v16026_v7 = vadd.f32 %v11191_v5, %v11190_v2  ;;  %v11156_v8 = vadd.f32 %v11155_v6, %v11154_v4  ;;  %v1193_v55 = vadd.f32 %v11153_v3, %v16031_v17 }
 0x10f   : > { %v1196_v60 = vadd.f32 %v11156_v8, %v16031_v17 }
 0x111   : > { %v11193_v9 = vpop.f32.mrb[8].mxu1  ;;  %v11157_v10 = vpop.f32.mrb[8].mxu0 }
 0x112   : > { %v11194_v11 = vpop.f32.mrb[9].mxu1  ;;  %v11158_v12 = vpop.f32.mrb[9].mxu0 }
 0x113   : > { %v11195_v13 = vadd.f32 %v11194_v11, %v11193_v9  ;;  %v11196_v14 = vpop.f32.mrb[10].mxu1  ;;  %v11159_v15 = vadd.f32 %v11158_v12, %v11157_v10  ;;  %v11160_v16 = vpop.f32.mrb[10].mxu0 }
 0x114   : > { %v11197_v18 = vpop.f32.mrb[11].mxu1  ;;  %v11161_v19 = vpop.f32.mrb[11].mxu0 }
 0x115   : > { %v16034_v20 = vadd.f32 %v11195_v13, %v16031_v17  ;;  %v11198_v21 = vadd.f32 %v11197_v18, %v11196_v14  ;;  %v11162_v22 = vadd.f32 %v11161_v19, %v11160_v16  ;;  %v1201_v3 = vadd.f32 %v11159_v15, %v16031_v17 }
 0x117   : > { %v16037_v23 = vadd.f32 %v11198_v21, %v16031_v17  ;;  %v1204_v8 = vadd.f32 %v11162_v22, %v16031_v17 }
 0x119   : > { %v11199_v24 = vpop.f32.mrb[12].mxu1  ;;  %v11163_v25 = vpop.f32.mrb[12].mxu0 }
 0x11a   : > { %v11200_v26 = vpop.f32.mrb[13].mxu1  ;;  %v11164_v27 = vpop.f32.mrb[13].mxu0 }
 0x11b   : > { %v11201_v28 = vadd.f32 %v11200_v26, %v11199_v24  ;;  %v11202_v29 = vpop.f32.mrb[14].mxu1  ;;  %v11165_v30 = vadd.f32 %v11164_v27, %v11163_v25  ;;  %v11166_v31 = vpop.f32.mrb[14].mxu0 }
 0x11c   : > { %v11203_v32 = vpop.f32.mrb[15].mxu1  ;;  %v11167_v33 = vpop.f32.mrb[15].mxu0 }
 0x11d   : > { %v16040_v34 = vadd.f32 %v11201_v28, %v16031_v17  ;;  %v11204_v35 = vadd.f32 %v11203_v32, %v11202_v29  ;;  %v11168_v36 = vadd.f32 %v11167_v33, %v11166_v31  ;;  %v1209_v15 = vadd.f32 %v11165_v30, %v16031_v17  ;;  %v2518_v30 = vld [vmem:[%s19753_s4 + $0x8] sm:$0xff] }
 0x11f   : > { %v16043_v37 = vadd.f32 %v11204_v35, %v16031_v17 }
 0x121   : > { %v11221_v39 = vpop.f32.mrb[16].mxu1  ;;  %v11169_v40 = vpop.f32.mrb[16].mxu0 }
 0x122   : > { %v11222_v41 = vpop.f32.mrb[17].mxu1  ;;  %v11170_v42 = vpop.f32.mrb[17].mxu0 }
 0x123   : > { %v11223_v44 = vadd.f32 %v11222_v41, %v11221_v39  ;;  %v11224_v45 = vpop.f32.mrb[18].mxu1  ;;  %v16047_v46 = vadd.f32 %v11170_v42, %v11169_v40  ;;  %v11172_v47 = vpop.f32.mrb[18].mxu0  ;;  %v1212_v41 = vadd.f32 %v11168_v36, %v16031_v17  ;;  %v2542_v36 = vsel %vm1630_vm0, %v2518_v30, 0 }
 0x124   : > { %v11225_v49 = vpop.f32.mrb[19].mxu1  ;;  %v11173_v50 = vpop.f32.mrb[19].mxu0 }
 0x125   : > { %v1298_v51 = vadd.f32 %v11223_v44, %v1185_v38  ;;  %v11226_v52 = vadd.f32 %v11225_v49, %v11224_v45  ;;  %v16049_v54 = vadd.f32 %v11173_v50, %v11172_v47 }
 0x127   : > { %v1301_v56 = vadd.f32 %v11226_v52, %v1188_v43 }
 0x129   : > { %v11227_v57 = vpop.f32.mrb[20].mxu1  ;;  %v11175_v58 = vpop.f32.mrb[20].mxu0 }
 0x12a   : > { %v11228_v61 = vpop.f32.mrb[21].mxu1  ;;  %v11176_v62 = vpop.f32.mrb[21].mxu0 }
 0x12b   : > { %v11229_v63 = vadd.f32 %v11228_v61, %v11227_v57  ;;  %v11230_v0 = vpop.f32.mrb[22].mxu1  ;;  %v16053_v2 = vadd.f32 %v11176_v62, %v11175_v58  ;;  %v11178_v4 = vpop.f32.mrb[22].mxu0  ;;  %v1623_v58 = vld [vmem:[%s19752_s3 + $0x8] sm:$0xff]  ;;  %v16076_v61 = vand.u32 4294901760, %v2542_v36 }
 0x12c   : > { %v11231_v5 = vpop.f32.mrb[23].mxu1  ;;  %v11179_v6 = vpop.f32.mrb[23].mxu0  ;;  %v1632_v62 = vsel %vm1630_vm0, %v1623_v58, 0 }
 0x12d   : > { %v1306_v9 = vadd.f32 %v11229_v63, %v1193_v55  ;;  %v11232_v10 = vadd.f32 %v11231_v5, %v11230_v0  ;;  %v16055_v11 = vadd.f32 %v11179_v6, %v11178_v4  ;;  %v16081_v4 = vand.u32 4294901760, %v1632_v62 }
 0x12f   : > { %v1309_v12 = vadd.f32 %v11232_v10, %v1196_v60  ;;  %v1217_v60 = vadd.f32 %v16047_v46, %v16031_v17  ;;  %20106 = vst [vmem:[#allocation2_spill] sm:$0xff] %v16081_v4  ;;  %v1220_v10 = vadd.f32 %v16049_v54, %v16031_v17 }
 0x131   : > { %v11233_v13 = vpop.f32.mrb[24].mxu1  ;;  %v11297_v14 = vpop.f32.mrb[24].mxu0 }
 0x132   : > { %v11234_v16 = vpop.f32.mrb[25].mxu1  ;;  %v11298_v18 = vpop.f32.mrb[25].mxu0 }
 0x133   : > { %v11235_v19 = vadd.f32 %v11234_v16, %v11233_v13  ;;  %v11299_v21 = vadd.f32 %v11298_v18, %v11297_v14  ;;  %v11236_v24 = vpop.f32.mrb[26].mxu1  ;;  %v11300_v25 = vpop.f32.mrb[26].mxu0  ;;  %v16089_v16 = vsub.f32 %v1632_v62, %v16081_v4 }
 0x134   : > { %v11237_v26 = vpop.f32.mrb[27].mxu1  ;;  %v11301_v27 = vpop.f32.mrb[27].mxu0 }
 0x135   : > { %v1314_v28 = vadd.f32 %v11235_v19, %v1201_v3  ;;  %v16059_v29 = vadd.f32 %v11299_v21, %v1298_v51  ;;  %v11238_v31 = vadd.f32 %v11237_v26, %v11236_v24  ;;  %v11302_v32 = vadd.f32 %v11301_v27, %v11300_v25 }
 0x136   : > { %v19762_v26 = vand.u32 4294901760, %v16089_v16 }
 0x137   : > { %v1317_v33 = vadd.f32 %v11238_v31, %v1204_v8  ;;  %v16061_v35 = vadd.f32 %v11302_v32, %v1301_v56 }
 0x139   : > { %v11239_v38 = vpop.f32.mrb[28].mxu1  ;;  %v11303_v39 = vpop.f32.mrb[28].mxu0 }
 0x13a   : > { %v11240_v40 = vpop.f32.mrb[29].mxu1  ;;  %v11304_v22 = vpop.f32.mrb[29].mxu0 }
 0x13b   : > { %v11241_v42 = vadd.f32 %v11240_v40, %v11239_v38  ;;  %v11305_v43 = vadd.f32 %v11304_v22, %v11303_v39  ;;  %v11242_v44 = vpop.f32.mrb[30].mxu1  ;;  %v11306_v45 = vpop.f32.mrb[30].mxu0 }
 0x13c   : > { %v11243_v47 = vpop.f32.mrb[31].mxu1  ;;  %v11307_v49 = vpop.f32.mrb[31].mxu0 }
 0x13d   : > { %v1322_v50 = vadd.f32 %v11241_v42, %v1209_v15  ;;  %v16065_v51 = vadd.f32 %v11305_v43, %v1306_v9  ;;  %v11244_v52 = vadd.f32 %v11243_v47, %v11242_v44  ;;  %v11308_v56 = vadd.f32 %v11307_v49, %v11306_v45 }
 0x13e   : > { %v16084_v9 = vsub.f32 %v2542_v36, %v16076_v61  ;;  %v1730_v15 = vsub.f32 %v16089_v16, %v19762_v26  ;;  %v1228_v42 = vadd.f32 %v16055_v11, %v16031_v17  ;;  %v1233_v11 = vadd.f32 %v16020_v53, %v16031_v17 }
 0x13f   : > { %v1325_v55 = vadd.f32 %v11244_v52, %v1212_v41  ;;  %v16070_v57 = vadd.f32 %v11308_v56, %v1309_v12 }
 0x140   : > { %20107 = vst [vmem:[#allocation3_spill] sm:$0xff] %v16084_v9  ;;  %v19761_v8 = vand.u32 4294901760, %v16084_v9  ;;  %v1731_v41 = vand.u32 4294901760, %v1730_v15 }
 0x141   : > { %v11245_v63 = vpop.f32.mrb[32].mxu1  ;;  %v11309_v0 = vpop.f32.mrb[32].mxu0 }
 0x142   : > { %v11246_v5 = vpop.f32.mrb[33].mxu1  ;;  %v11310_v6 = vpop.f32.mrb[33].mxu0  ;;  %v2664_v54 = vsub.f32 %v16084_v9, %v19761_v8  ;;  %1732 = vmatprep.mubr.f32.mxu0 %v1731_v41 }
 0x143   : > { %v11247_v12 = vadd.f32 %v11246_v5, %v11245_v63  ;;  %v11311_v3 = vadd.f32 %v11310_v6, %v11309_v0  ;;  %v11248_v13 = vpop.f32.mrb[34].mxu1  ;;  %v11312_v14 = vpop.f32.mrb[34].mxu0 }
 0x144   : > { %v11249_v46 = vpop.f32.mrb[35].mxu1  ;;  %v11313_v18 = vpop.f32.mrb[35].mxu0  ;;  %v2665_v32 = vand.u32 4294901760, %v2664_v54 }
 0x145   : > { %v1330_v19 = vadd.f32 %v11247_v12, %v1217_v60  ;;  %v16092_v21 = vadd.f32 %v11311_v3, %v1314_v28  ;;  %v11250_v24 = vadd.f32 %v11249_v46, %v11248_v13  ;;  %v11314_v25 = vadd.f32 %v11313_v18, %v11312_v14 }
 0x146   : > { %v1225_v28 = vadd.f32 %v16053_v2, %v16031_v17  ;;  %2666 = vmatprep.mubr.f32.mxu1 %v2665_v32 }
 0x147   : > { %v1333_v27 = vadd.f32 %v11250_v24, %v1220_v10  ;;  %v16098_v31 = vadd.f32 %v11314_v25, %v1317_v33 }
 0x149   : > { %v11251_v38 = vpop.f32.mrb[36].mxu1  ;;  %v11315_v39 = vpop.f32.mrb[36].mxu0 }
 0x14a   : > { %v11252_v40 = vpop.f32.mrb[37].mxu1  ;;  %v11316_v22 = vpop.f32.mrb[37].mxu0 }
 0x14b   : > { %v11253_v43 = vadd.f32 %v11252_v40, %v11251_v38  ;;  %v11317_v33 = vadd.f32 %v11316_v22, %v11315_v39  ;;  %v11254_v44 = vpop.f32.mrb[38].mxu1  ;;  %v11318_v45 = vpop.f32.mrb[38].mxu0 }
 0x14c   : > { %v11255_v47 = vpop.f32.mrb[39].mxu1  ;;  %v11319_v49 = vpop.f32.mrb[39].mxu0 }
 0x14d   : > { %v1338_v52 = vadd.f32 %v11253_v43, %v1225_v28  ;;  %v16107_v56 = vadd.f32 %v11317_v33, %v1322_v50  ;;  %v11256_v2 = vadd.f32 %v11255_v47, %v11254_v44  ;;  %v11320_v30 = vadd.f32 %v11319_v49, %v11318_v45 }
 0x14e   : > { %v1236_v50 = vadd.f32 %v16022_v59, %v16031_v17  ;;  %v1241_v28 = vadd.f32 %v16024_v1, %v16031_v17 }
 0x14f   : > { %v1341_v36 = vadd.f32 %v11256_v2, %v1228_v42  ;;  %v16109_v58 = vadd.f32 %v11320_v30, %v1325_v55 }
 0x151   : > { %v11257_v62 = vpop.f32.mrb[40].mxu1  ;;  %v11321_v60 = vpop.f32.mrb[40].mxu0 }
 0x152   : > { %v11258_v63 = vpop.f32.mrb[41].mxu1  ;;  %v11322_v0 = vpop.f32.mrb[41].mxu0 }
 0x153   : > { %v11259_v5 = vadd.f32 %v11258_v63, %v11257_v62  ;;  %v11323_v6 = vadd.f32 %v11322_v0, %v11321_v60  ;;  %v11260_v10 = vpop.f32.mrb[42].mxu1  ;;  %v11324_v12 = vpop.f32.mrb[42].mxu0 }
 0x154   : > { %v11261_v3 = vpop.f32.mrb[43].mxu1  ;;  %v11325_v13 = vpop.f32.mrb[43].mxu0 }
 0x155   : > { %v1346_v14 = vadd.f32 %v11259_v5, %v1233_v11  ;;  %v16115_v46 = vadd.f32 %v11323_v6, %v1330_v19  ;;  %v11262_v55 = vadd.f32 %v11261_v3, %v11260_v10  ;;  %v11326_v18 = vadd.f32 %v11325_v13, %v11324_v12 }
 0x156   : > { %v1244_v19 = vadd.f32 %v16026_v7, %v16031_v17 }
 0x157   : > { %v1349_v24 = vadd.f32 %v11262_v55, %v1236_v50  ;;  %v16117_v25 = vadd.f32 %v11326_v18, %v1333_v27 }
 0x159   : > { %v11263_v54 = vpop.f32.mrb[44].mxu1  ;;  %v11327_v32 = vpop.f32.mrb[44].mxu0 }
 0x15a   : > { %v11264_v53 = vpop.f32.mrb[45].mxu1  ;;  %v11328_v15 = vpop.f32.mrb[45].mxu0 }
 0x15b   : > { %v11265_v38 = vadd.f32 %v11264_v53, %v11263_v54  ;;  %v11329_v39 = vadd.f32 %v11328_v15, %v11327_v32  ;;  %v11266_v59 = vpop.f32.mrb[46].mxu1  ;;  %v11330_v40 = vpop.f32.mrb[46].mxu0 }
 0x15c   : > { %v11267_v22 = vpop.f32.mrb[47].mxu1  ;;  %v11331_v41 = vpop.f32.mrb[47].mxu0 }
 0x15d   : > { %v1354_v42 = vadd.f32 %v11265_v38, %v1241_v28  ;;  %v16123_v43 = vadd.f32 %v11329_v39, %v1338_v52  ;;  %v11268_v27 = vadd.f32 %v11267_v22, %v11266_v59  ;;  %v11332_v33 = vadd.f32 %v11331_v41, %v11330_v40 }
 0x15f   : > { %v1357_v44 = vadd.f32 %v11268_v27, %v1244_v19  ;;  %v16125_v45 = vadd.f32 %v11332_v33, %v1341_v36 }
 0x161   : > { %v11269_v47 = vpop.f32.mrb[48].mxu1  ;;  %v11333_v49 = vpop.f32.mrb[48].mxu0 }
 0x162   : > { %v11270_v1 = vpop.f32.mrb[49].mxu1  ;;  %v11334_v2 = vpop.f32.mrb[49].mxu0 }
 0x163   : > { %v11271_v30 = vadd.f32 %v11270_v1, %v11269_v47  ;;  %v11335_v62 = vadd.f32 %v11334_v2, %v11333_v49  ;;  %v11272_v60 = vpop.f32.mrb[50].mxu1  ;;  %v11336_v63 = vpop.f32.mrb[50].mxu0 }
 0x164   : > { %v11273_v0 = vpop.f32.mrb[51].mxu1  ;;  %v11337_v7 = vpop.f32.mrb[51].mxu0 }
 0x165   : > { %v1362_v17 = vadd.f32 %v11271_v30, %v16034_v20  ;;  %v16128_v11 = vadd.f32 %v11335_v62, %v1346_v14  ;;  %v11274_v52 = vadd.f32 %v11273_v0, %v11272_v60  ;;  %v11338_v5 = vadd.f32 %v11337_v7, %v11336_v63 }
 0x167   : > { %v1365_v6 = vadd.f32 %v11274_v52, %v16037_v23  ;;  %v16131_v36 = vadd.f32 %v11338_v5, %v1349_v24 }
 0x169   : > { %v11275_v10 = vpop.f32.mrb[52].mxu1  ;;  %v11339_v12 = vpop.f32.mrb[52].mxu0 }
 0x16a   : > { %v11276_v50 = vpop.f32.mrb[53].mxu1  ;;  %v11340_v3 = vpop.f32.mrb[53].mxu0 }
 0x16b   : > { %v11277_v13 = vadd.f32 %v11276_v50, %v11275_v10  ;;  %v11341_v55 = vadd.f32 %v11340_v3, %v11339_v12  ;;  %v11278_v18 = vpop.f32.mrb[54].mxu1  ;;  %v11342_v54 = vpop.f32.mrb[54].mxu0 }
 0x16c   : > { %v11279_v32 = vpop.f32.mrb[55].mxu1  ;;  %v11343_v53 = vpop.f32.mrb[55].mxu0 }
 0x16d   : > { %v1370_v20 = vadd.f32 %v11277_v13, %v16040_v34  ;;  %v16134_v14 = vadd.f32 %v11341_v55, %v1354_v42  ;;  %v11280_v15 = vadd.f32 %v11279_v32, %v11278_v18  ;;  %v11344_v28 = vadd.f32 %v11343_v53, %v11342_v54 }
 0x16f   : > { %v1373_v23 = vadd.f32 %v11280_v15, %v16043_v37  ;;  %v16137_v24 = vadd.f32 %v11344_v28, %v1357_v44 }
 0x171   : > { %v11345_v38 = vpop.f32.mrb[56].mxu0  ;;  %v11373_v39 = vpop.f32.mrb[56].mxu1 }
 0x172   : > { %v11346_v59 = vpop.f32.mrb[57].mxu0  ;;  %v11374_v40 = vpop.f32.mrb[57].mxu1 }
 0x173   : > { %v11347_v19 = vadd.f32 %v11346_v59, %v11345_v38  ;;  %v11375_v22 = vadd.f32 %v11374_v40, %v11373_v39  ;;  %v11348_v41 = vpop.f32.mrb[58].mxu0  ;;  %v11376_v27 = vpop.f32.mrb[58].mxu1 }
 0x174   : > { %v11349_v33 = vpop.f32.mrb[59].mxu0  ;;  %v11377_v47 = vpop.f32.mrb[59].mxu1 }
 0x175   : > { %v16139_v49 = vadd.f32 %v11347_v19, %v1362_v17  ;;  %v1524_v34 = vadd.f32 %v11375_v22, %v16059_v29  ;;  %v11350_v42 = vadd.f32 %v11349_v33, %v11348_v41  ;;  %v11378_v1 = vadd.f32 %v11377_v47, %v11376_v27 }
 0x177   : > { %v1602_v2 = vmax.f32 %v1524_v34, 0.0  ;;  %v16142_v37 = vadd.f32 %v11350_v42, %v1365_v6  ;;  %v1527_v44 = vadd.f32 %v11378_v1, %v16061_v35 }
 0x179   : > { %v1644_v30 = vand.u32 4294901760, %v1602_v2  ;;  %v1603_v62 = vmax.f32 %v1527_v44, 0.0  ;;  %v11351_v60 = vpop.f32.mrb[60].mxu0  ;;  %v11379_v63 = vpop.f32.mrb[60].mxu1 }
 0x17a   : > { %v11352_v0 = vpop.f32.mrb[61].mxu0  ;;  %v11380_v7 = vpop.f32.mrb[61].mxu1 }
 0x17b   : > { %v1790_v52 = vsub.f32 %v1602_v2, %v1644_v30  ;;  %v1647_v5 = vand.u32 4294901760, %v1603_v62  ;;  %v11353_v10 = vadd.f32 %v11352_v0, %v11351_v60  ;;  %v11381_v17 = vadd.f32 %v11380_v7, %v11379_v63  ;;  %v11354_v12 = vpop.f32.mrb[62].mxu0  ;;  %v11382_v50 = vpop.f32.mrb[62].mxu1 }
 0x17c   : > { %v11355_v29 = vpop.f32.mrb[63].mxu0  ;;  %v11383_v3 = vpop.f32.mrb[63].mxu1 }
 0x17d   : > { %v1791_v13 = vand.u32 4294901760, %v1790_v52  ;;  %v16145_v55 = vpack.c.bf16 %v1647_v5, %v1644_v30  ;;  %v1797_v6 = vsub.f32 %v1603_v62, %v1647_v5  ;;  %v16147_v18 = vadd.f32 %v11353_v10, %v1370_v20 }
 0x17e   : > { %v1532_v35 = vadd.f32 %v11381_v17, %v16065_v51  ;;  %v11356_v54 = vadd.f32 %v11355_v29, %v11354_v12  ;;  %v11384_v32 = vadd.f32 %v11383_v3, %v11382_v50 }
 0x17f   : > { %20108 = vst [vmem:[#allocation4_spill] sm:$0xff] %v16145_v55  ;;  %v1792_v53 = vsub.f32 %v1790_v52, %v1791_v13  ;;  %v1798_v15 = vand.u32 4294901760, %v1797_v6  ;;  %13751 = vmatpush1.bf16.msra.mxu0 %v16145_v55  ;;  %13931 = vmatpush1.bf16.msra.mxu1 %v16145_v55  ;;  %v16152_v28 = vpack.c.bf16 %v1797_v6, %v1790_v52 }
 0x180   : > { %v1604_v38 = vmax.f32 %v1532_v35, 0.0  ;;  %v16154_v39 = vadd.f32 %v11356_v54, %v1373_v23  ;;  %v1535_v59 = vadd.f32 %v11384_v32, %v16070_v57  ;;  %13752 = vmatprep.subr.bf16.mxu0 %v19763_v48  ;;  %13932 = vmatprep.subr.bf16.mxu1 %v19763_v48 }
 0x181   : > { %v1799_v51 = vsub.f32 %v1797_v6, %v1798_v15  ;;  %v11385_v20 = vpop.f32.mrb[64].mxu1  ;;  %v16159_v40 = vpack.c.bf16 %v1798_v15, %v1791_v13  ;;  %v1793_v47 = vand.u32 4294901760, %v1792_v53 }
 0x182   : > { %v1650_v19 = vand.u32 4294901760, %v1604_v38  ;;  %v1605_v22 = vmax.f32 %v1535_v59, 0.0  ;;  %v11386_v41 = vpop.f32.mrb[65].mxu1 }
 0x183   : > { %20109 = vst [vmem:[#allocation5_spill] sm:$0xff] %v16159_v40  ;;  %v11387_v27 = vadd.f32 %v11386_v41, %v11385_v20  ;;  %v11388_v33 = vpop.f32.mrb[66].mxu1  ;;  %v1800_v34 = vand.u32 4294901760, %v1799_v51 }
 0x184   : > { %v1804_v42 = vsub.f32 %v1604_v38, %v1650_v19  ;;  %v1653_v23 = vand.u32 4294901760, %v1605_v22  ;;  %v11389_v1 = vpop.f32.mrb[67].mxu1 }
 0x185   : > { %v1540_v57 = vadd.f32 %v11387_v27, %v16092_v21  ;;  %v11390_v2 = vadd.f32 %v11389_v1, %v11388_v33  ;;  %v16162_v44 = vpack.c.bf16 %v1800_v34, %v1793_v47 }
 0x186   : > { %v1805_v30 = vand.u32 4294901760, %v1804_v42  ;;  %v16164_v62 = vpack.c.bf16 %v1653_v23, %v1650_v19  ;;  %v1811_v60 = vsub.f32 %v1605_v22, %v1653_v23 }
 0x187   : > { %v1606_v63 = vmax.f32 %v1540_v57, 0.0  ;;  %v1543_v0 = vadd.f32 %v11390_v2, %v16098_v31 }
 0x188   : > { %20110 = vst [vmem:[#allocation6_spill] sm:$0xff] %v16164_v62  ;;  %v1806_v7 = vsub.f32 %v1804_v42, %v1805_v30  ;;  %v1812_v52 = vand.u32 4294901760, %v1811_v60  ;;  %13754 = vmatpush1.bf16.msra.mxu0 %v16164_v62  ;;  %13934 = vmatpush1.bf16.msra.mxu1 %v16164_v62  ;;  %v16169_v5 = vpack.c.bf16 %v1811_v60, %v1804_v42 }
 0x189   : > { %v1656_v10 = vand.u32 4294901760, %v1606_v63  ;;  %v1607_v21 = vmax.f32 %v1543_v0, 0.0  ;;  %v11391_v17 = vpop.f32.mrb[68].mxu1  ;;  %13755 = vmatprep.subr.bf16.mxu0 %v19763_v48  ;;  %13935 = vmatprep.subr.bf16.mxu1 %v19763_v48 }
 0x18a   : > { %v1813_v12 = vsub.f32 %v1811_v60, %v1812_v52  ;;  %v11392_v50 = vpop.f32.mrb[69].mxu1  ;;  %v16173_v29 = vpack.c.bf16 %v1812_v52, %v1805_v30  ;;  %v1807_v54 = vand.u32 4294901760, %v1806_v7 }
 0x18b   : > { %v1818_v31 = vsub.f32 %v1606_v63, %v1656_v10  ;;  %v1659_v3 = vand.u32 4294901760, %v1607_v21  ;;  %v11393_v13 = vadd.f32 %v11392_v50, %v11391_v17  ;;  %v11394_v6 = vpop.f32.mrb[70].mxu1 }
 0x18c   : > { %20111 = vst [vmem:[#allocation7_spill] sm:$0xff] %v16173_v29  ;;  %v11395_v35 = vpop.f32.mrb[71].mxu1  ;;  %v1814_v32 = vand.u32 4294901760, %v1813_v12 }
 0x18d   : > { %v1819_v53 = vand.u32 4294901760, %v1818_v31  ;;  %v16175_v15 = vpack.c.bf16 %v1659_v3, %v1656_v10  ;;  %v1825_v38 = vsub.f32 %v1607_v21, %v1659_v3  ;;  %v1548_v59 = vadd.f32 %v11393_v13, %v16107_v56 }
 0x18e   : > { %v11396_v51 = vadd.f32 %v11395_v35, %v11394_v6  ;;  %v16178_v20 = vpack.c.bf16 %v1814_v32, %v1807_v54  ;;  %v2517_v32 = vld [vmem:[%s19753_s4] sm:$0xff] }
 0x18f   : > { %20112 = vst [vmem:[#allocation8_spill] sm:$0xff] %v16175_v15  ;;  %v1820_v19 = vsub.f32 %v1818_v31, %v1819_v53  ;;  %v1826_v22 = vand.u32 4294901760, %v1825_v38  ;;  %v1608_v41 = vmax.f32 %v1548_v59, 0.0  ;;  %13757 = vmatpush1.bf16.msra.mxu0 %v16175_v15  ;;  %13937 = vmatpush1.bf16.msra.mxu1 %v16175_v15  ;;  %v16182_v27 = vpack.c.bf16 %v1825_v38, %v1818_v31 }
 0x190   : > { %v1551_v33 = vadd.f32 %v11396_v51, %v16109_v58  ;;  %13758 = vmatprep.subr.bf16.mxu0 %v19763_v48  ;;  %13938 = vmatprep.subr.bf16.mxu1 %v19763_v48 }
 0x191   : > { %v1827_v47 = vsub.f32 %v1825_v38, %v1826_v22  ;;  %v1662_v56 = vand.u32 4294901760, %v1608_v41  ;;  %v11397_v34 = vpop.f32.mrb[72].mxu1  ;;  %v16187_v42 = vpack.c.bf16 %v1826_v22, %v1819_v53  ;;  %v1821_v60 = vand.u32 4294901760, %v1820_v19 }
 0x192   : > { %v1609_v23 = vmax.f32 %v1551_v33, 0.0  ;;  %v11398_v1 = vpop.f32.mrb[73].mxu1  ;;  %v2520_v33 = vld [vmem:[%s19753_s4 + $0x18] sm:$0xff] }
 0x193   : > { %20113 = vst [vmem:[#allocation9_spill] sm:$0xff] %v16187_v42  ;;  %v1832_v57 = vsub.f32 %v1608_v41, %v1662_v56  ;;  %v11399_v2 = vadd.f32 %v11398_v1, %v11397_v34  ;;  %v11400_v30 = vpop.f32.mrb[74].mxu1  ;;  %v1828_v63 = vand.u32 4294901760, %v1827_v47  ;;  %v1622_v41 = vld [vmem:[%s19752_s3] sm:$0xff] }
 0x194   : > { %v1665_v0 = vand.u32 4294901760, %v1609_v23  ;;  %v11401_v7 = vpop.f32.mrb[75].mxu1 }
 0x195   : > { %v1833_v52 = vand.u32 4294901760, %v1832_v57  ;;  %v1556_v58 = vadd.f32 %v11399_v2, %v16115_v46  ;;  %v11402_v10 = vadd.f32 %v11401_v7, %v11400_v30  ;;  %v16190_v21 = vpack.c.bf16 %v1828_v63, %v1821_v60 }
 0x196   : > { %v16192_v17 = vpack.c.bf16 %v1665_v0, %v1662_v56  ;;  %v1839_v12 = vsub.f32 %v1609_v23, %v1665_v0  ;;  %v16212_v56 = vand.u32 4294901760, %v2517_v32  ;;  %v16217_v63 = vand.u32 4294901760, %v1622_v41 }
 0x197   : > { %v1610_v50 = vmax.f32 %v1556_v58, 0.0  ;;  %v1559_v31 = vadd.f32 %v11402_v10, %v16117_v25  ;;  %v1834_v3 = vsub.f32 %v1832_v57, %v1833_v52  ;;  %v2545_v0 = vsel %vm1630_vm0, %v2520_v33, 0 }
 0x198   : > { %20114 = vst [vmem:[#allocation10_spill] sm:$0xff] %v16192_v17  ;;  %v1840_v13 = vand.u32 4294901760, %v1839_v12  ;;  %13760 = vmatpush1.bf16.msra.mxu0 %v16192_v17  ;;  %13940 = vmatpush1.bf16.msra.mxu1 %v16192_v17  ;;  %v16197_v6 = vpack.c.bf16 %v1839_v12, %v1832_v57 }
 0x199   : > { %v1668_v35 = vand.u32 4294901760, %v1610_v50  ;;  %v1611_v54 = vmax.f32 %v1559_v31, 0.0  ;;  %v11403_v46 = vpop.f32.mrb[76].mxu1  ;;  %13761 = vmatprep.subr.bf16.mxu0 %v19763_v48  ;;  %13941 = vmatprep.subr.bf16.mxu1 %v19763_v48  ;;  %v1835_v34 = vand.u32 4294901760, %v1834_v3  ;;  %v16233_v31 = vsub.f32 %v2517_v32, %v16212_v56 }
 0x19a   : > { %v1841_v25 = vsub.f32 %v1839_v12, %v1840_v13  ;;  %v11404_v53 = vpop.f32.mrb[77].mxu1  ;;  %v16204_v38 = vpack.c.bf16 %v1840_v13, %v1833_v52  ;;  %v2519_v12 = vld [vmem:[%s19753_s4 + $0x10] sm:$0xff] }
 0x19b   : > { %v1846_v59 = vsub.f32 %v1610_v50, %v1668_v35  ;;  %v1671_v51 = vand.u32 4294901760, %v1611_v54  ;;  %v11405_v19 = vadd.f32 %v11404_v53, %v11403_v46  ;;  %v11406_v22 = vpop.f32.mrb[78].mxu1  ;;  %20118 = vst [vmem:[#allocation14_spill] sm:$0xff] %v16233_v31 }
 0x19c   : > { %20115 = vst [vmem:[#allocation11_spill] sm:$0xff] %v16204_v38  ;;  %v11407_v47 = vpop.f32.mrb[79].mxu1  ;;  %v1842_v23 = vand.u32 4294901760, %v1841_v25 }
 0x19d   : > { %v1847_v1 = vand.u32 4294901760, %v1846_v59  ;;  %v16214_v57 = vpack.c.bf16 %v1671_v51, %v1668_v35  ;;  %v1853_v2 = vsub.f32 %v1611_v54, %v1671_v51  ;;  %v1564_v30 = vadd.f32 %v11405_v19, %v16123_v43  ;;  %v2522_v54 = vld [vmem:[%s19753_s4 + $0x28] sm:$0xff] }
 0x19e   : > { %v11408_v60 = vadd.f32 %v11407_v47, %v11406_v22  ;;  %v16220_v7 = vpack.c.bf16 %v1842_v23, %v1835_v34  ;;  %v16245_v51 = vand.u32 4294901760, %v2519_v12 }
 0x19f   : > { %20116 = vst [vmem:[#allocation12_spill] sm:$0xff] %v16214_v57  ;;  %v1848_v52 = vsub.f32 %v1846_v59, %v1847_v1  ;;  %v1854_v58 = vand.u32 4294901760, %v1853_v2  ;;  %v1612_v10 = vmax.f32 %v1564_v30, 0.0  ;;  %13763 = vmatpush1.bf16.msra.mxu0 %v16214_v57  ;;  %13943 = vmatpush1.bf16.msra.mxu1 %v16214_v57  ;;  %v16227_v50 = vpack.c.bf16 %v1853_v2, %v1846_v59 }
 0x1a0   : > { %v1567_v43 = vadd.f32 %v11408_v60, %v16125_v45  ;;  %13764 = vmatprep.subr.bf16.mxu0 %v19763_v48  ;;  %13944 = vmatprep.subr.bf16.mxu1 %v19763_v48  ;;  %v16241_v45 = vsub.f32 %v1622_v41, %v16217_v63  ;;  %v16243_v59 = vand.u32 4294901760, %v2545_v0 }
 0x1a1   : > { %20117 = vst [vmem:[#allocation13_spill] sm:$0xff] %v16227_v50  ;;  %v1855_v3 = vsub.f32 %v1853_v2, %v1854_v58  ;;  %v1674_v13 = vand.u32 4294901760, %v1612_v10  ;;  %v11409_v35 = vpop.f32.mrb[80].mxu1  ;;  %v16238_v46 = vpack.c.bf16 %v1854_v58, %v1847_v1  ;;  %v1849_v33 = vand.u32 4294901760, %v1848_v52 }
 0x1a2   : > { %v1613_v25 = vmax.f32 %v1567_v43, 0.0  ;;  %v11410_v53 = vpop.f32.mrb[81].mxu1  ;;  %20120 = vst [vmem:[#allocation16_spill] sm:$0xff] %v16241_v45  ;;  %v19765_v2 = vand.u32 4294901760, %v16233_v31  ;;  %v2548_v1 = vsel %vm1630_vm0, %v2522_v54, 0 }
 0x1a3   : > { %20119 = vst [vmem:[#allocation15_spill] sm:$0xff] %v16238_v46  ;;  %v1860_v32 = vsub.f32 %v1612_v10, %v1674_v13  ;;  %v11411_v19 = vadd.f32 %v11410_v53, %v11409_v35  ;;  %v11412_v22 = vpop.f32.mrb[82].mxu1  ;;  %v1856_v47 = vand.u32 4294901760, %v1855_v3  ;;  %v19767_v10 = vand.u32 4294901760, %v16241_v45 }
 0x1a4   : > { %v1677_v34 = vand.u32 4294901760, %v1613_v25  ;;  %v11413_v23 = vpop.f32.mrb[83].mxu1  ;;  %v16257_v3 = vsub.f32 %v2545_v0, %v16243_v59  ;;  %v16260_v53 = vsub.f32 %v2519_v12, %v16245_v51  ;;  %v16276_v12 = vsub.f32 %v16233_v31, %v19765_v2 }
 0x1a5   : > { %v1861_v30 = vand.u32 4294901760, %v1860_v32  ;;  %v1572_v60 = vadd.f32 %v11411_v19, %v16128_v11  ;;  %v11414_v41 = vadd.f32 %v11413_v23, %v11412_v22  ;;  %v16250_v58 = vpack.c.bf16 %v1856_v47, %v1849_v33  ;;  %v2521_v11 = vld [vmem:[%s19753_s4 + $0x20] sm:$0xff] }
 0x1a6   : > { %v16252_v43 = vpack.c.bf16 %v1677_v34, %v1674_v13  ;;  %v1867_v8 = vsub.f32 %v1613_v25, %v1677_v34  ;;  %20122 = vst [vmem:[#allocation18_spill] sm:$0xff] %v16257_v3  ;;  %20123 = vst [vmem:[#allocation19_spill] sm:$0xff] %v16260_v53  ;;  %v16267_v13 = vand.u32 4294901760, %v2548_v1  ;;  %v16281_v34 = vsub.f32 %v16241_v45, %v19767_v10 }
 0x1a7   : > { %v1614_v35 = vmax.f32 %v1572_v60, 0.0  ;;  %v1575_v52 = vadd.f32 %v11414_v41, %v16131_v36  ;;  %v1862_v54 = vsub.f32 %v1860_v32, %v1861_v30 }
 0x1a8   : > { %20121 = vst [vmem:[#allocation17_spill] sm:$0xff] %v16252_v43  ;;  %v1868_v19 = vand.u32 4294901760, %v1867_v8  ;;  %13766 = vmatpush1.bf16.msra.mxu0 %v16252_v43  ;;  %13946 = vmatpush1.bf16.msra.mxu1 %v16252_v43  ;;  %v16269_v25 = vpack.c.bf16 %v1867_v8, %v1860_v32  ;;  %v16283_v32 = vand.u32 4294901760, %v2521_v11  ;;  %v16293_v10 = vsub.f32 %v2548_v1, %v16267_v13 }
 0x1a9   : > { %v1680_v36 = vand.u32 4294901760, %v1614_v35  ;;  %v1615_v0 = vmax.f32 %v1575_v52, 0.0  ;;  %v11415_v22 = vpop.f32.mrb[84].mxu1  ;;  %13767 = vmatprep.subr.bf16.mxu0 %v19763_v48  ;;  %13947 = vmatprep.subr.bf16.mxu1 %v19763_v48  ;;  %v1863_v38 = vand.u32 4294901760, %v1862_v54 }
 0x1aa   : > { %20124 = vst [vmem:[#allocation20_spill] sm:$0xff] %v16269_v25  ;;  %v1869_v33 = vsub.f32 %v1867_v8, %v1868_v19  ;;  %v11416_v47 = vpop.f32.mrb[85].mxu1  ;;  %20125 = vst [vmem:[#allocation21_spill] sm:$0xff] %v16283_v32  ;;  %v16285_v23 = vpack.c.bf16 %v1868_v19, %v1861_v30  ;;  %v2524_v8 = vld [vmem:[%s19753_s4 + $0x38] sm:$0xff]  ;;  %v16299_v48 = vsub.f32 %v2521_v11, %v16283_v32 }
 0x1ab   : > { %v1874_v60 = vsub.f32 %v1614_v35, %v1680_v36  ;;  %v1683_v41 = vand.u32 4294901760, %v1615_v0  ;;  %v11417_v52 = vadd.f32 %v11416_v47, %v11415_v22  ;;  %v11418_v26 = vpop.f32.mrb[86].mxu1  ;;  %20127 = vst [vmem:[#allocation23_spill] sm:$0xff] %v16293_v10 }
 0x1ac   : > { %20126 = vst [vmem:[#allocation22_spill] sm:$0xff] %v16285_v23  ;;  %v11419_v2 = vpop.f32.mrb[87].mxu1  ;;  %v1870_v42 = vand.u32 4294901760, %v1869_v33  ;;  %20129 = vst [vmem:[#allocation25_spill] sm:$0xff] %v16299_v48  ;;  %v2551_v23 = vsel %vm1630_vm0, %v2524_v8, 0 }
 0x1ad   : > { %v1875_v30 = vand.u32 4294901760, %v1874_v60  ;;  %v16295_v19 = vpack.c.bf16 %v1683_v41, %v1680_v36  ;;  %v1881_v35 = vsub.f32 %v1615_v0, %v1683_v41  ;;  %v1580_v22 = vadd.f32 %v11417_v52, %v16134_v14  ;;  %v2523_v41 = vld [vmem:[%s19753_s4 + $0x30] sm:$0xff]  ;;  %v1625_v52 = vld [vmem:[%s19752_s3 + $0x18] sm:$0xff] }
 0x1ae   : > { %v11420_v47 = vadd.f32 %v11419_v2, %v11418_v26  ;;  %v16302_v29 = vpack.c.bf16 %v1870_v42, %v1863_v38  ;;  %v20131_v14 = vmov 0.0|0.0   ;;  %v20132_v38 = vand.u32 4294901760, %v16257_v3 }
 0x1af   : > { %20128 = vst [vmem:[#allocation24_spill] sm:$0xff] %v16295_v19  ;;  %v1876_v46 = vsub.f32 %v1874_v60, %v1875_v30  ;;  %v1882_v40 = vand.u32 4294901760, %v1881_v35  ;;  %v1616_v1 = vmax.f32 %v1580_v22, 0.0  ;;  %13769 = vmatpush1.bf16.msra.mxu0 %v16295_v19  ;;  %13949 = vmatpush1.bf16.msra.mxu1 %v16295_v19  ;;  %v16306_v54 = vpack.c.bf16 %v1881_v35, %v1874_v60 }
 0x1b0   : > { %v1583_v36 = vadd.f32 %v11420_v47, %v16137_v24  ;;  %13770 = vmatprep.subr.bf16.mxu0 %v20131_v14  ;;  %13950 = vmatprep.subr.bf16.mxu1 %v20131_v14  ;;  %v16316_v2 = vsub.f32 %v16257_v3, %v20132_v38  ;;  %v20133_v60 = vand.u32 4294901760, %v16260_v53  ;;  %v16333_v42 = vand.u32 4294901760, %v2551_v23 }
 0x1b1   : > { %20130 = vst [vmem:[#allocation26_spill] sm:$0xff] %v16306_v54  ;;  %v1883_v11 = vsub.f32 %v1881_v35, %v1882_v40  ;;  %v1686_v0 = vand.u32 4294901760, %v1616_v1  ;;  %v11421_v33 = vpop.f32.mrb[88].mxu1  ;;  %v16329_v8 = vpack.c.bf16 %v1882_v40, %v1875_v30  ;;  %v1877_v43 = vand.u32 4294901760, %v1876_v46 }
 0x1b2   : > { %v16321_v24 = vsub.f32 %v16260_v53, %v20133_v60  ;;  %v1617_v22 = vmax.f32 %v1583_v36, 0.0  ;;  %v11422_v47 = vpop.f32.mrb[89].mxu1  ;;  %20135 = vst [vmem:[#allocation28_spill] sm:$0xff] %v16333_v42  ;;  %v16336_v9 = vand.u32 4294901760, %v2523_v41  ;;  %v1635_v40 = vsel %vm1630_vm0, %v1625_v52, 0 }
 0x1b3   : > { %20134 = vst [vmem:[#allocation27_spill] sm:$0xff] %v16329_v8  ;;  %v1888_v60 = vsub.f32 %v1616_v1, %v1686_v0  ;;  %v11423_v26 = vadd.f32 %v11422_v47, %v11421_v33  ;;  %v11424_v19 = vpop.f32.mrb[90].mxu1  ;;  %v1884_v53 = vand.u32 4294901760, %v1883_v11  ;;  %v1624_v1 = vld [vmem:[%s19752_s3 + $0x10] sm:$0xff]  ;;  %v20138_v47 = vand.u32 4294901760, %v16293_v10 }
 0x1b4   : > { %v1689_v3 = vand.u32 4294901760, %v1617_v22  ;;  %v11425_v57 = vpop.f32.mrb[91].mxu1  ;;  %20136 = vst [vmem:[#allocation29_spill] sm:$0xff] %v16336_v9 }
 0x1b5   : > { %v1889_v30 = vand.u32 4294901760, %v1888_v60  ;;  %v1588_v36 = vadd.f32 %v11423_v26, %v16139_v49  ;;  %v11426_v35 = vadd.f32 %v11425_v57, %v11424_v19  ;;  %v16340_v38 = vpack.c.bf16 %v1884_v53, %v1877_v43  ;;  %v1627_v49 = vld [vmem:[%s19752_s3 + $0x28] sm:$0xff] }
 0x1b6   : > { %v16345_v46 = vpack.c.bf16 %v1689_v3, %v1686_v0  ;;  %v1895_v11 = vsub.f32 %v1617_v22, %v1689_v3  ;;  %v16351_v31 = vsub.f32 %v16293_v10, %v20138_v47  ;;  %v20139_v53 = vand.u32 4294901760, %v16299_v48  ;;  %v2526_v3 = vld [vmem:[%s19753_s4 + $0x48] sm:$0xff] }
 0x1b7   : > { %v1618_v57 = vmax.f32 %v1588_v36, 0.0  ;;  %v1591_v43 = vadd.f32 %v11426_v35, %v16142_v37  ;;  %v16365_v26 = vand.u32 4294901760, %v1635_v40  ;;  %v1890_v0 = vsub.f32 %v1888_v60, %v1889_v30 }
 0x1b8   : > { %20137 = vst [vmem:[#allocation30_spill] sm:$0xff] %v16345_v46  ;;  %v16360_v19 = vsub.f32 %v16299_v48, %v20139_v53  ;;  %v1896_v52 = vand.u32 4294901760, %v1895_v11  ;;  %13772 = vmatpush1.bf16.msra.mxu0 %v16345_v46  ;;  %13952 = vmatpush1.bf16.msra.mxu1 %v16345_v46  ;;  %v16369_v22 = vand.u32 4294901760, %v1624_v1  ;;  %v16371_v37 = vpack.c.bf16 %v1895_v11, %v1888_v60 }
 0x1b9   : > { %v1692_v35 = vand.u32 4294901760, %v1618_v57  ;;  %v1619_v36 = vmax.f32 %v1591_v43, 0.0  ;;  %v11427_v47 = vpop.f32.mrb[92].mxu1  ;;  %13773 = vmatprep.subr.bf16.mxu0 %v20131_v14  ;;  %13953 = vmatprep.subr.bf16.mxu1 %v20131_v14  ;;  %v16376_v53 = vsub.f32 %v2551_v23, %v16333_v42  ;;  %v1638_v33 = vsel %vm1630_vm0, %v1627_v49, 0  ;;  %v1626_v23 = vld [vmem:[%s19752_s3 + $0x20] sm:$0xff] }
 0x1ba   : > { %20140 = vst [vmem:[#allocation31_spill] sm:$0xff] %v16371_v37  ;;  %v1897_v8 = vsub.f32 %v1895_v11, %v1896_v52  ;;  %v11428_v48 = vpop.f32.mrb[93].mxu1  ;;  %v16380_v46 = vsub.f32 %v2523_v41, %v16336_v9  ;;  %v16383_v60 = vsel %vm1630_vm0, %v2526_v3, 0  ;;  %v16385_v10 = vpack.c.bf16 %v1896_v52, %v1889_v30  ;;  %v1629_v41 = vld [vmem:[%s19752_s3 + $0x38] sm:$0xff] }
 0x1bb   : > { %v1902_v43 = vsub.f32 %v1618_v57, %v1692_v35  ;;  %v1695_v17 = vand.u32 4294901760, %v1619_v36  ;;  %v11429_v15 = vadd.f32 %v11428_v48, %v11427_v47  ;;  %v11430_v62 = vpop.f32.mrb[94].mxu1  ;;  %v16388_v55 = vsub.f32 %v1635_v40, %v16365_v26 }
 0x1bc   : > { %20141 = vst [vmem:[#allocation32_spill] sm:$0xff] %v16385_v10  ;;  %v11431_v11 = vpop.f32.mrb[95].mxu1  ;;  %v16397_v49 = vsub.f32 %v1624_v1, %v16369_v22  ;;  %v1891_v30 = vand.u32 4294901760, %v1890_v0  ;;  %v1898_v57 = vand.u32 4294901760, %v1897_v8  ;;  %v16399_v3 = vand.u32 4294901760, %v1638_v33  ;;  %v2525_v10 = vld [vmem:[%s19753_s4 + $0x40] sm:$0xff] }
 0x1bd   : > { %20142 = vst [vmem:[#allocation33_spill] sm:$0xff] %v16388_v55  ;;  %v1903_v48 = vand.u32 4294901760, %v1902_v43  ;;  %v16401_v52 = vpack.c.bf16 %v1695_v17, %v1692_v35  ;;  %v1909_v40 = vsub.f32 %v1619_v36, %v1695_v17  ;;  %v1596_v47 = vadd.f32 %v11429_v15, %v16147_v18  ;;  %v1628_v36 = vld [vmem:[%s19752_s3 + $0x30] sm:$0xff] }
 0x1be   : > { %20143 = vst [vmem:[#allocation34_spill] sm:$0xff] %v16397_v49  ;;  %v11432_v45 = vadd.f32 %v11431_v11, %v11430_v62  ;;  %v16407_v37 = vpack.c.bf16 %v1898_v57, %v1891_v30  ;;  %v16409_v54 = vand.u32 4294901760, %v1626_v23  ;;  %v1641_v1 = vsel %vm1630_vm0, %v1629_v41, 0 }
 0x1bf   : > { %20144 = vst [vmem:[#allocation35_spill] sm:$0xff] %v16401_v52  ;;  %v1904_v8 = vsub.f32 %v1902_v43, %v1903_v48  ;;  %v1910_v0 = vand.u32 4294901760, %v1909_v40  ;;  %v1620_v25 = vmax.f32 %v1596_v47, 0.0  ;;  %13775 = vmatpush1.bf16.msra.mxu0 %v16401_v52  ;;  %13955 = vmatpush1.bf16.msra.mxu1 %v16401_v52  ;;  %v16414_v17 = vpack.c.bf16 %v1909_v40, %v1902_v43 }
 0x1c0   : > { %v1599_v18 = vadd.f32 %v11432_v45, %v16154_v39  ;;  %13776 = vmatprep.subr.bf16.mxu0 %v20131_v14  ;;  %13956 = vmatprep.subr.bf16.mxu1 %v20131_v14  ;;  %v16420_v15 = vand.u32 4294901760, %v2525_v10  ;;  %v2528_v45 = vld [vmem:[%s19753_s4 + $0x58] sm:$0xff]  ;;  %v16433_v57 = vsub.f32 %v1638_v33, %v16399_v3  ;;  %v16436_v47 = vsub.f32 %v1626_v23, %v16409_v54 }
 0x1c1   : > { %20145 = vst [vmem:[#allocation36_spill] sm:$0xff] %v16414_v17  ;;  %v1911_v41 = vsub.f32 %v1909_v40, %v1910_v0  ;;  %v1698_v11 = vand.u32 4294901760, %v1620_v25  ;;  %v16427_v30 = vpack.c.bf16 %v1910_v0, %v1903_v48  ;;  %v16438_v62 = vand.u32 4294901760, %v1641_v1  ;;  %v2530_v0 = vld [vmem:[%s19753_s4 + $0x68] sm:$0xff] }
 0x1c2   : > { %20146 = vst [vmem:[#allocation37_spill] sm:$0xff] %v16420_v15  ;;  %v1621_v39 = vmax.f32 %v1599_v18, 0.0  ;;  %v1905_v40 = vand.u32 4294901760, %v1904_v8  ;;  %v16440_v17 = vand.u32 4294901760, %v1628_v36  ;;  %v16445_v43 = vand.u32 4294901760, %v16383_v60 }
 0x1c3   : > { %20147 = vst [vmem:[#allocation38_spill] sm:$0xff] %v16427_v30  ;;  %v1916_v35 = vsub.f32 %v1620_v25, %v1698_v11  ;;  %v1912_v52 = vand.u32 4294901760, %v1911_v41  ;;  %v2557_v30 = vsel %vm1630_vm0, %v2528_v45, 0  ;;  %v20149_v23 = vand.u32 4294901760, %v16388_v55 }
 0x1c4   : > { %v1701_v48 = vand.u32 4294901760, %v1621_v39  ;;  %20148 = vst [vmem:[#allocation39_spill] sm:$0xff] %v16445_v43  ;;  %v16460_v42 = vsub.f32 %v1641_v1, %v16438_v62  ;;  %v20151_v50 = vand.u32 4294901760, %v16397_v49  ;;  %v16474_v1 = vsub.f32 %v16383_v60, %v16445_v43 }
 0x1c5   : > { %v1917_v33 = vand.u32 4294901760, %v1916_v35  ;;  %v1745_v9 = vsub.f32 %v16388_v55, %v20149_v23  ;;  %v16451_v25 = vpack.c.bf16 %v1912_v52, %v1905_v40  ;;  %v16486_v45 = vand.u32 4294901760, %v2557_v30 }
 0x1c6   : > { %v16453_v8 = vpack.c.bf16 %v1701_v48, %v1698_v11  ;;  %v1923_v41 = vsub.f32 %v1621_v39, %v1701_v48  ;;  %v1751_v23 = vsub.f32 %v16397_v49, %v20151_v50  ;;  %v16468_v11 = vsub.f32 %v1628_v36, %v16440_v17  ;;  %v2527_v48 = vld [vmem:[%s19753_s4 + $0x50] sm:$0xff] }
 0x1c7   : > { %v1918_v39 = vsub.f32 %v1916_v35, %v1917_v33  ;;  %v16484_v36 = vsub.f32 %v2525_v10, %v16420_v15  ;;  %20153 = vst [vmem:[#allocation42_spill] sm:$0xff] %v16486_v45  ;;  %v2560_v52 = vsel %vm1630_vm0, %v2530_v0, 0  ;;  %v1746_v18 = vand.u32 4294901760, %v1745_v9 }
 0x1c8   : > { %20150 = vst [vmem:[#allocation40_spill] sm:$0xff] %v16453_v8  ;;  %v1924_v40 = vand.u32 4294901760, %v1923_v41  ;;  %13778 = vmatpush1.bf16.msra.mxu0 %v16453_v8  ;;  %13958 = vmatpush1.bf16.msra.mxu1 %v16453_v8  ;;  %v16479_v50 = vpack.c.bf16 %v1923_v41, %v1916_v35  ;;  %v2532_v8 = vld [vmem:[%s19753_s4 + $0x78] sm:$0xff]  ;;  %v20154_v35 = vand.u32 4294901760, %v16433_v57  ;;  %v19830_v55 = vand.u32 4294901760, %v16460_v42 }
 0x1c9   : > { %13779 = vmatprep.subr.bf16.mxu0 %v20131_v14  ;;  %13959 = vmatprep.subr.bf16.mxu1 %v20131_v14  ;;  %v20156_v10 = vand.u32 4294901760, %v16276_v12  ;;  %v20157_v15 = vand.u32 4294901760, %v16281_v34  ;;  %v16502_v9 = vand.u32 4294901760, %v2527_v48  ;;  %v1752_v0 = vand.u32 4294901760, %v1751_v23  ;;  %v2529_v34 = vld [vmem:[%s19753_s4 + $0x60] sm:$0xff] }
 0x1ca   : > { %20152 = vst [vmem:[#allocation41_spill] sm:$0xff] %v16479_v50  ;;  %v1925_v60 = vsub.f32 %v1923_v41, %v1924_v40  ;;  %v1760_v49 = vsub.f32 %v16433_v57, %v20154_v35  ;;  %v16496_v50 = vpack.c.bf16 %v1924_v40, %v1917_v33  ;;  %v20159_v41 = vand.u32 4294901760, %v16436_v47 }
 0x1cb   : > { %2672 = vmatmul.mubr.f32.vlgmr.msra.gmra.mrb[96].mxu1 %v20156_v10  ;;  %1738 = vmatmul.mubr.f32.vlgmr.msra.gmra.mrb[64].mxu0 %v20157_v15  ;;  %20158 = vst [vmem:[#allocation44_spill] sm:$0xff] %v16502_v9  ;;  %v20160_v33 = vand.u32 4294901760, %v16376_v53  ;;  %v16513_v40 = vand.u32 4294901760, %v2560_v52  ;;  %v1919_v15 = vand.u32 4294901760, %v1918_v39  ;;  %v20162_v35 = vand.u32 4294901760, %v16316_v2 }
 0x1cc   : > { %20155 = vst [vmem:[#allocation43_spill] sm:$0xff] %v16496_v50  ;;  %v1766_v43 = vsub.f32 %v16436_v47, %v20159_v41  ;;  %13781 = vmatpush1.bf16.msra.mxu0 %v16162_v44  ;;  %13961 = vmatpush1.bf16.msra.mxu1 %v16162_v44  ;;  %v1926_v23 = vand.u32 4294901760, %v1925_v60  ;;  %v20163_v10 = vand.u32 4294901760, %v16380_v46  ;;  %v2563_v32 = vsel %vm1630_vm0, %v2532_v8, 0  ;;  %v2531_v8 = vld [vmem:[%s19753_s4 + $0x70] sm:$0xff] }
 0x1cd   : > { %v2709_v12 = vsub.f32 %v16376_v53, %v20160_v33  ;;  %20161 = vst [vmem:[#allocation45_spill] sm:$0xff] %v16513_v40  ;;  %2681 = vmatprep.mubr.f32.mxu1 %v20162_v35  ;;  %13782 = vmatprep.subr.bf16.mxu0 %v20131_v14  ;;  %v16526_v33 = vsub.f32 %v2557_v30, %v16486_v45  ;;  %v1761_v2 = vand.u32 4294901760, %v1760_v49  ;;  %v16541_v41 = vand.u32 4294901760, %v2529_v34  ;;  %v2534_v49 = vld [vmem:[%s19753_s4 + $0x88] sm:$0xff] }
 0x1ce   : > { %v2715_v44 = vsub.f32 %v16380_v46, %v20163_v10  ;;  %13962 = vmatprep.subr.bf16.mxu1 %v20131_v14  ;;  %1747 = vmatprep.mubr.f32.mxu0 %v1746_v18  ;;  %v1775_v60 = vsub.f32 %v16460_v42, %v19830_v55  ;;  %v16534_v35 = vpack.c.bf16 %v1926_v23, %v1919_v15  ;;  %v20165_v10 = vand.u32 4294901760, %v16321_v24 }
 0x1cf   : > { %20164 = vst [vmem:[#allocation46_spill] sm:$0xff] %v16526_v33  ;;  %v16539_v30 = vsub.f32 %v2527_v48, %v16502_v9  ;;  %20167 = vst [vmem:[#allocation48_spill] sm:$0xff] %v16541_v41  ;;  %1753 = vmatmul.mubr.f32.gmra.mrb[66].mxu0 %v1752_v0  ;;  %v1767_v18 = vand.u32 4294901760, %v1766_v43  ;;  %v20168_v15 = vand.u32 4294901760, %v16468_v11  ;;  %v16555_v48 = vsub.f32 %v2560_v52, %v16513_v40 }
 0x1d0   : > { %2687 = vmatmul.mubr.f32.gmra.mrb[98].mxu1 %v20165_v10  ;;  %13784 = vmatpush1.bf16.msra.mxu0 %v16178_v20  ;;  %v16557_v23 = vand.u32 4294901760, %v2563_v32  ;;  %v20171_v0 = vand.u32 4294901760, %v16351_v31  ;;  %v2710_v10 = vand.u32 4294901760, %v2709_v12  ;;  %v20172_v43 = vand.u32 4294901760, %v16474_v1 }
 0x1d1   : > { %20166 = vst [vmem:[#allocation47_spill] sm:$0xff] %v16539_v30  ;;  %v1781_v24 = vsub.f32 %v16468_v11, %v20168_v15  ;;  %13964 = vmatpush1.bf16.msra.mxu1 %v16178_v20  ;;  %20169 = vst [vmem:[#allocation49_spill] sm:$0xff] %v16555_v48  ;;  %13785 = vmatprep.subr.bf16.mxu0 %v20131_v14  ;;  %v2716_v20 = vand.u32 4294901760, %v2715_v44  ;;  %v16567_v39 = vand.u32 4294901760, %v2531_v8  ;;  %v2566_v52 = vsel %vm1630_vm0, %v2534_v49, 0  ;;  %v2536_v44 = vld [vmem:[%s19753_s4 + $0x98] sm:$0xff] }
 0x1d2   : > { %20170 = vst [vmem:[#allocation50_spill] sm:$0xff] %v16557_v23  ;;  %2696 = vmatprep.mubr.f32.mxu1 %v20171_v0  ;;  %v2724_v55 = vsub.f32 %v16474_v1, %v20172_v43  ;;  %13965 = vmatprep.subr.bf16.mxu1 %v20131_v14  ;;  %v1776_v50 = vand.u32 4294901760, %v1775_v60  ;;  %v20174_v31 = vand.u32 4294901760, %v16360_v19  ;;  %v20175_v12 = vand.u32 4294901760, %v16484_v36 }
 0x1d3   : > { %20173 = vst [vmem:[#allocation51_spill] sm:$0xff] %v16567_v39  ;;  %1762 = vmatprep.mubr.f32.mxu0 %v1761_v2  ;;  %v19832_v43 = vand.u32 4294901760, %v16539_v30  ;;  %v16577_v15 = vsub.f32 %v2529_v34, %v16541_v41  ;;  %v1782_v49 = vand.u32 4294901760, %v1781_v24  ;;  %v16586_v2 = vsub.f32 %v2563_v32, %v16557_v23  ;;  %v2533_v34 = vld [vmem:[%s19753_s4 + $0x80] sm:$0xff] }
 0x1d4   : > { %2702 = vmatmul.mubr.f32.gmra.mrb[100].mxu1 %v20174_v31  ;;  %v2730_v0 = vsub.f32 %v16484_v36, %v20175_v12  ;;  %1768 = vmatmul.mubr.f32.gmra.mrb[68].mxu0 %v1767_v18  ;;  %v2725_v60 = vand.u32 4294901760, %v2724_v55  ;;  %v20178_v18 = vand.u32 4294901760, %v16526_v33  ;;  %v16595_v31 = vand.u32 4294901760, %v2566_v52 }
 0x1d5   : > { %20176 = vst [vmem:[#allocation52_spill] sm:$0xff] %v16577_v15  ;;  %13787 = vmatpush1.bf16.msra.mxu0 %v16190_v21  ;;  %13967 = vmatpush1.bf16.msra.mxu1 %v16190_v21  ;;  %20177 = vst [vmem:[#allocation53_spill] sm:$0xff] %v16586_v2  ;;  %v16599_v21 = vsub.f32 %v2531_v8, %v16567_v39  ;;  %v2569_v32 = vsel %vm1630_vm0, %v2536_v44, 0  ;;  %v2745_v55 = vsub.f32 %v16539_v30, %v19832_v43 }
 0x1d6   : > { %2711 = vmatprep.mubr.f32.mxu1 %v2710_v10  ;;  %13788 = vmatprep.subr.bf16.mxu0 %v20131_v14  ;;  %v2739_v24 = vsub.f32 %v16526_v33, %v20178_v18  ;;  %20179 = vst [vmem:[#allocation54_spill] sm:$0xff] %v16595_v31  ;;  %v2731_v12 = vand.u32 4294901760, %v2730_v0  ;;  %v19837_v10 = vand.u32 4294901760, %v16577_v15  ;;  %v16606_v19 = vand.u32 4294901760, %v2533_v34  ;;  %v2538_v18 = vld [vmem:[%s19753_s4 + $0xa8] sm:$0xff]  ;;  %v2535_v0 = vld [vmem:[%s19753_s4 + $0x90] sm:$0xff] }
 0x1d7   : > { %13968 = vmatprep.subr.bf16.mxu1 %v20131_v14  ;;  %20180 = vst [vmem:[#allocation55_spill] sm:$0xff] %v16599_v21  ;;  %1777 = vmatprep.mubr.f32.mxu0 %v1776_v50  ;;  %v20182_v50 = vand.u32 4294901760, %v16555_v48  ;;  %v16624_v43 = vand.u32 4294901760, %v2569_v32 }
 0x1d8   : > { %2717 = vmatmul.mubr.f32.gmra.mrb[102].mxu1 %v2716_v20  ;;  %20181 = vst [vmem:[#allocation56_spill] sm:$0xff] %v16606_v19  ;;  %1783 = vmatmul.mubr.f32.gmra.mrb[70].mxu0 %v1782_v49  ;;  %v2740_v44 = vand.u32 4294901760, %v2739_v24  ;;  %v16622_v49 = vsub.f32 %v2566_v52, %v16595_v31  ;;  %v2746_v20 = vand.u32 4294901760, %v2745_v55  ;;  %v2760_v52 = vsub.f32 %v16577_v15, %v19837_v10 }
 0x1d9   : > { %13790 = vmatpush1.bf16.msra.mxu0 %v16220_v7  ;;  %13970 = vmatpush1.bf16.msra.mxu1 %v16220_v7  ;;  %v2754_v8 = vsub.f32 %v16555_v48, %v20182_v50  ;;  %20183 = vst [vmem:[#allocation57_spill] sm:$0xff] %v16624_v43  ;;  %v2572_v50 = vsel %vm1630_vm0, %v2538_v18, 0  ;;  %v16637_v24 = vsub.f32 %v2533_v34, %v16606_v19  ;;  %v16639_v48 = vand.u32 4294901760, %v2535_v0 }
 0x1da   : > { %2726 = vmatprep.mubr.f32.mxu1 %v2725_v60  ;;  %13791 = vmatprep.subr.bf16.mxu0 %v20131_v14  ;;  %v2540_v60 = vld [vmem:[%s19753_s4 + $0xb8] sm:$0xff]  ;;  %v20185_v7 = vand.u32 4294901760, %v16586_v2  ;;  %v16652_v55 = vsub.f32 %v2569_v32, %v16624_v43  ;;  %v16654_v10 = vand.u32 4294901760, %v2572_v50 }
 0x1db   : > { %13971 = vmatprep.subr.bf16.mxu1 %v20131_v14  ;;  %1953 = vmatprep.mubr.f32.mxu0 %v16081_v4  ;;  %20184 = vst [vmem:[#allocation58_spill] sm:$0xff] %v16639_v48  ;;  %v2755_v18 = vand.u32 4294901760, %v2754_v8  ;;  %v20187_v8 = vand.u32 4294901760, %v16599_v21  ;;  %v16663_v15 = vsub.f32 %v2535_v0, %v16639_v48 }
 0x1dc   : > { %2732 = vmatmul.mubr.f32.gmra.mrb[104].mxu1 %v2731_v12  ;;  %v2769_v4 = vsub.f32 %v16586_v2, %v20185_v7  ;;  %v2537_v12 = vld [vmem:[%s19753_s4 + $0xa0] sm:$0xff]  ;;  %20186 = vst [vmem:[#allocation59_spill] sm:$0xff] %v16654_v10  ;;  %v2761_v2 = vand.u32 4294901760, %v2760_v52  ;;  %v20190_v52 = vand.u32 4294901760, %v16622_v49 }
 0x1dd   : > { %13793 = vmatpush1.bf16.msra.mxu0 %v16250_v58  ;;  %13973 = vmatpush1.bf16.msra.mxu1 %v16250_v58  ;;  %v2575_v58 = vsel %vm1630_vm0, %v2540_v60, 0  ;;  %v2775_v7 = vsub.f32 %v16599_v21, %v20187_v8  ;;  %v16665_v34 = vand.u32 4294901760, %v2537_v12  ;;  %v2539_v60 = vld [vmem:[%s19753_s4 + $0xb0] sm:$0xff]  ;;  %v19853_v8 = vand.u32 4294901760, %v16652_v55 }
 0x1de   : > { %2741 = vmatprep.mubr.f32.mxu1 %v2740_v44  ;;  %13794 = vmatprep.subr.bf16.mxu0 %v20131_v14  ;;  %v16669_v32 = vand.u32 4294901760, %v2575_v58  ;;  %v2784_v0 = vsub.f32 %v16622_v49, %v20190_v52  ;;  %v16680_v44 = vsub.f32 %v2572_v50, %v16654_v10  ;;  %v20191_v21 = vand.u32 4294901760, %v16637_v24 }
 0x1df   : > { %13974 = vmatprep.subr.bf16.mxu1 %v20131_v14  ;;  %20188 = vst [vmem:[#allocation60_spill] sm:$0xff] %v16665_v34  ;;  %v19852_v30 = vand.u32 4294901760, %v16663_v15  ;;  %v16690_v33 = vand.u32 4294901760, %v2539_v60 }
 0x1e0   : > { %2747 = vmatmul.mubr.f32.gmra.mrb[106].mxu1 %v2746_v20  ;;  %20189 = vst [vmem:[#allocation61_spill] sm:$0xff] %v16669_v32  ;;  %v2770_v20 = vand.u32 4294901760, %v2769_v4  ;;  %v16688_v4 = vsub.f32 %v2537_v12, %v16665_v34  ;;  %v16695_v50 = vsub.f32 %v2575_v58, %v16669_v32  ;;  %v19851_v12 = vand.u32 4294901760, %v16680_v44 }
 0x1e1   : > { %13796 = vmatpush1.bf16.msra.mxu0 %v16302_v29  ;;  %13976 = vmatpush1.bf16.msra.mxu1 %v16302_v29  ;;  %v2776_v29 = vand.u32 4294901760, %v2775_v7  ;;  %20192 = vst [vmem:[#allocation62_spill] sm:$0xff] %v16690_v33 }
 0x1e2   : > { %2756 = vmatprep.mubr.f32.mxu1 %v2755_v18  ;;  %13797 = vmatprep.subr.bf16.mxu0 %v20131_v14  ;;  %v2790_v18 = vsub.f32 %v16637_v24, %v20191_v21  ;;  %v2799_v21 = vsub.f32 %v16652_v55, %v19853_v8  ;;  %v19850_v58 = vand.u32 4294901760, %v16688_v4  ;;  %v19849_v52 = vand.u32 4294901760, %v16695_v50  ;;  %v20220_v8 = vld [vmem:[#allocation24_spill] sm:$0xff] }
 0x1e3   : > { %13977 = vmatprep.subr.bf16.mxu1 %v20131_v14 }
 0x1e4   : > { %2762 = vmatmul.mubr.f32.gmra.mrb[108].mxu1 %v2761_v2  ;;  %v2785_v2 = vand.u32 4294901760, %v2784_v0  ;;  %v2791_v7 = vand.u32 4294901760, %v2790_v18  ;;  %v2800_v0 = vand.u32 4294901760, %v2799_v21 }
 0x1e5   : > { %13799 = vmatpush1.bf16.msra.mxu0 %v16340_v38  ;;  %13979 = vmatpush1.bf16.msra.mxu1 %v16340_v38  ;;  %v2805_v38 = vsub.f32 %v16663_v15, %v19852_v30  ;;  %v20217_v30 = vld [vmem:[#allocation17_spill] sm:$0xff] }
 0x1e6   : > { %2771 = vmatprep.mubr.f32.mxu1 %v2770_v20  ;;  %13800 = vmatprep.subr.bf16.mxu0 %v20131_v14  ;;  %v16708_v20 = vsub.f32 %v2539_v60, %v16690_v33  ;;  %v2820_v60 = vsub.f32 %v16688_v4, %v19850_v58  ;;  %v20215_v58 = vld [vmem:[#allocation18_spill] sm:$0xff] }
 0x1e7   : > { %13980 = vmatprep.subr.bf16.mxu1 %v20131_v14  ;;  %v2806_v18 = vand.u32 4294901760, %v2805_v38 }
 0x1e8   : > { %2777 = vmatmul.mubr.f32.gmra.mrb[110].mxu1 %v2776_v29  ;;  %v2814_v29 = vsub.f32 %v16680_v44, %v19851_v12  ;;  %v20216_v12 = vld [vmem:[#allocation19_spill] sm:$0xff] }
 0x1e9   : > { %13802 = vmatpush1.bf16.msra.mxu0 %v16407_v37  ;;  %13982 = vmatpush1.bf16.msra.mxu1 %v16407_v37  ;;  %v19848_v37 = vand.u32 4294901760, %v16708_v20 }
 0x1ea   : > { %2786 = vmatprep.mubr.f32.mxu1 %v2785_v2  ;;  %13803 = vmatprep.subr.bf16.mxu0 %v20131_v14  ;;  %v2829_v2 = vsub.f32 %v16695_v50, %v19849_v52  ;;  %v2815_v21 = vand.u32 4294901760, %v2814_v29  ;;  %v20195_v29 = vld [vmem:[#allocation28_spill] sm:$0xff] }
 0x1eb   : > { %13983 = vmatprep.subr.bf16.mxu1 %v20131_v14  ;;  %v2835_v38 = vsub.f32 %v16708_v20, %v19848_v37  ;;  %v20213_v37 = vld [vmem:[#allocation14_spill] sm:$0xff]  ;;  %v20214_v52 = vld [vmem:[#allocation12_spill] sm:$0xff] }
 0x1ec   : > { %2792 = vmatmul.mubr.f32.gmra.mrb[112].mxu1 %v2791_v7  ;;  %v2821_v7 = vand.u32 4294901760, %v2820_v60  ;;  %v20198_v60 = vld [vmem:[#allocation39_spill] sm:$0xff] }
 0x1ed   : > { %13805 = vmatpush1.bf16.msra.mxu0 %v16451_v25  ;;  %13985 = vmatpush1.bf16.msra.mxu1 %v16451_v25  ;;  %v2830_v25 = vand.u32 4294901760, %v2829_v2  ;;  %v20200_v2 = vld [vmem:[#allocation26_spill] sm:$0xff] }
 0x1ee   : > { %2801 = vmatprep.mubr.f32.mxu1 %v2800_v0  ;;  %13806 = vmatprep.subr.bf16.mxu0 %v20131_v14  ;;  %v2836_v0 = vand.u32 4294901760, %v2835_v38  ;;  %v20204_v38 = vld [vmem:[#allocation16_spill] sm:$0xff] }
 0x1ef   : > { %13986 = vmatprep.subr.bf16.mxu1 %v20131_v14 }
 0x1f0   : > { %2807 = vmatmul.mubr.f32.gmra.mrb[114].mxu1 %v2806_v18  ;;  %v20197_v18 = vld [vmem:[#allocation20_spill] sm:$0xff] }
 0x1f1   : > { %13808 = vmatpush1.bf16.msra.mxu0 %v16534_v35  ;;  %13988 = vmatpush1.bf16.msra.mxu1 %v16534_v35  ;;  %v20194_v35 = vld [vmem:[#allocation13_spill] sm:$0xff] }
 0x1f2   : > { %2816 = vmatprep.mubr.f32.mxu1 %v2815_v21  ;;  %13809 = vmatprep.subr.bf16.mxu0 %v20131_v14  ;;  %v20202_v21 = vld [vmem:[#allocation36_spill] sm:$0xff] }
 0x1f3   : > { %13989 = vmatprep.subr.bf16.mxu1 %v20131_v14 }
 0x1f4   : > { %2822 = vmatmul.mubr.f32.gmra.mrb[116].mxu1 %v2821_v7  ;;  %1955 = vmatmul.mubr.f32.vlgmr.msra.gmra.mrb[64].mxu0 %v16217_v63  ;;  %v20203_v7 = vld [vmem:[#allocation41_spill] sm:$0xff] }
 0x1f5   : > { %13811 = vmatpush1.bf16.msra.mxu0 %v16152_v28  ;;  %2831 = vmatprep.mubr.f32.mxu1 %v2830_v25  ;;  %v20205_v25 = vld [vmem:[#allocation4_spill] sm:$0xff] }
 0x1f6   : > { %13812 = vmatprep.subr.bf16.mxu0 %v20131_v14  ;;  %1960 = vmatprep.mubr.f32.mxu0 %v16365_v26 }
 0x1f8   : > { %2837 = vmatmul.mubr.f32.gmra.mrb[118].mxu1 %v2836_v0  ;;  %1962 = vmatmul.mubr.f32.gmra.mrb[66].mxu0 %v16369_v22  ;;  %v20206_v0 = vld [vmem:[#allocation33_spill] sm:$0xff] }
 0x1f9   : > { %13814 = vmatpush1.bf16.msra.mxu0 %v16169_v5  ;;  %3007 = vmatprep.mubr.f32.mxu1 %v16076_v61 }
 0x1fa   : > { %13815 = vmatprep.subr.bf16.mxu0 %v20131_v14  ;;  %1967 = vmatprep.mubr.f32.mxu0 %v16399_v3 }
 0x1fc   : > { %3009 = vmatmul.mubr.f32.vlgmr.msra.gmra.mrb[96].mxu1 %v16212_v56  ;;  %1969 = vmatmul.mubr.f32.gmra.mrb[68].mxu0 %v16409_v54 }
 0x1fd   : > { %13991 = vmatpush1.bf16.msra.mxu1 %v16152_v28  ;;  %13817 = vmatpush1.bf16.msra.mxu0 %v16182_v27  ;;  %v20193_v28 = vld [vmem:[#allocation21_spill] sm:$0xff] }
 0x1fe   : > { %3014 = vmatprep.mubr.f32.mxu1 %v16243_v59  ;;  %13992 = vmatprep.subr.bf16.mxu1 %v20131_v14 }
 0x1ff   : > { %13818 = vmatprep.subr.bf16.mxu0 %v20131_v14  ;;  %1974 = vmatprep.mubr.f32.mxu0 %v16438_v62 }
 0x200   : > { %3016 = vmatmul.mubr.f32.gmra.mrb[98].mxu1 %v16245_v51  ;;  %1976 = vmatmul.mubr.f32.gmra.mrb[70].mxu0 %v16440_v17 }
 0x201   : > { %13994 = vmatpush1.bf16.msra.mxu1 %v16169_v5  ;;  %13820 = vmatpush1.bf16.msra.mxu0 %v16197_v6  ;;  %v20196_v5 = vld [vmem:[#allocation29_spill] sm:$0xff] }
 0x202   : > { %3021 = vmatprep.mubr.f32.mxu1 %v16267_v13  ;;  %13995 = vmatprep.subr.bf16.mxu1 %v20131_v14 }
 0x203   : > { %13821 = vmatprep.subr.bf16.mxu0 %v20131_v14  ;;  %2087 = vmatprep.mubr.f32.mxu0 %v16089_v16 }
 0x204   : > { %3023 = vmatmul.mubr.f32.gmra.mrb[100].mxu1 %v20193_v28 }
 0x205   : > { %13997 = vmatpush1.bf16.msra.mxu1 %v16182_v27  ;;  %13823 = vmatpush1.bf16.msra.mxu0 %v20194_v35  ;;  %v20199_v27 = vld [vmem:[#allocation37_spill] sm:$0xff] }
 0x206   : > { %3028 = vmatprep.mubr.f32.mxu1 %v20195_v29  ;;  %13998 = vmatprep.subr.bf16.mxu1 %v20131_v14 }
 0x207   : > { %13824 = vmatprep.subr.bf16.mxu0 %v20131_v14 }
 0x208   : > { %3030 = vmatmul.mubr.f32.gmra.mrb[102].mxu1 %v20196_v5 }
 0x209   : > { %14000 = vmatpush1.bf16.msra.mxu1 %v16197_v6  ;;  %13826 = vmatpush1.bf16.msra.mxu0 %v20197_v18  ;;  %v20201_v6 = vld [vmem:[#allocation31_spill] sm:$0xff] }
 0x20a   : > { %3035 = vmatprep.mubr.f32.mxu1 %v20198_v60  ;;  %14001 = vmatprep.subr.bf16.mxu1 %v20131_v14 }
 0x20b   : > { %13827 = vmatprep.subr.bf16.mxu0 %v20131_v14 }
 0x20c   : > { %3037 = vmatmul.mubr.f32.gmra.mrb[104].mxu1 %v20199_v27 }
 0x20d   : > { %14003 = vmatpush1.bf16.msra.mxu1 %v20194_v35  ;;  %13829 = vmatpush1.bf16.msra.mxu0 %v20200_v2  ;;  %v20207_v35 = vld [vmem:[#allocation34_spill] sm:$0xff] }
 0x20e   : > { %3042 = vmatprep.mubr.f32.mxu1 %v16486_v45  ;;  %14004 = vmatprep.subr.bf16.mxu1 %v20131_v14  ;;  %v20248_v45 = vand.u32 4294901760, %v20216_v12 }
 0x20f   : > { %13830 = vmatprep.subr.bf16.mxu0 %v20131_v14 }
 0x210   : > { %3044 = vmatmul.mubr.f32.gmra.mrb[106].mxu1 %v16502_v9  ;;  %v20233_v9 = vand.u32 4294901760, %v20207_v35 }
 0x211   : > { %14006 = vmatpush1.bf16.msra.mxu1 %v20197_v18  ;;  %13832 = vmatpush1.bf16.msra.mxu0 %v20201_v6  ;;  %v20208_v18 = vld [vmem:[#allocation6_spill] sm:$0xff] }
 0x212   : > { %3049 = vmatprep.mubr.f32.mxu1 %v16513_v40  ;;  %14007 = vmatprep.subr.bf16.mxu1 %v20131_v14  ;;  %v20232_v40 = vld [vmem:[#allocation55_spill] sm:$0xff] }
 0x213   : > { %13833 = vmatprep.subr.bf16.mxu0 %v20131_v14 }
 0x214   : > { %3051 = vmatmul.mubr.f32.gmra.mrb[108].mxu1 %v16541_v41  ;;  %v20231_v41 = vand.u32 4294901760, %v20206_v0 }
 0x215   : > { %14009 = vmatpush1.bf16.msra.mxu1 %v20200_v2  ;;  %13835 = vmatpush1.bf16.msra.mxu0 %v20202_v21  ;;  %v20209_v2 = vld [vmem:[#allocation8_spill] sm:$0xff] }
 0x216   : > { %3056 = vmatprep.mubr.f32.mxu1 %v16557_v23  ;;  %14010 = vmatprep.subr.bf16.mxu1 %v20131_v14  ;;  %v20230_v23 = vld [vmem:[#allocation53_spill] sm:$0xff] }
 0x217   : > { %13836 = vmatprep.subr.bf16.mxu0 %v20131_v14 }
 0x218   : > { %3058 = vmatmul.mubr.f32.gmra.mrb[110].mxu1 %v16567_v39  ;;  %v20229_v39 = vld [vmem:[#allocation5_spill] sm:$0xff] }
 0x219   : > { %14012 = vmatpush1.bf16.msra.mxu1 %v20201_v6  ;;  %13838 = vmatpush1.bf16.msra.mxu0 %v20203_v7  ;;  %v20210_v6 = vld [vmem:[#allocation10_spill] sm:$0xff] }
 0x21a   : > { %3063 = vmatprep.mubr.f32.mxu1 %v16595_v31  ;;  %14013 = vmatprep.subr.bf16.mxu1 %v20131_v14  ;;  %v20228_v31 = vand.u32 4294901760, %v20204_v38 }
 0x21b   : > { %13839 = vmatprep.subr.bf16.mxu0 %v20131_v14 }
 0x21c   : > { %3065 = vmatmul.mubr.f32.gmra.mrb[112].mxu1 %v16606_v19  ;;  %2090 = vmatmul.mubr.f32.vlgmr.msra.gmra.mrb[64].mxu0 %v20204_v38  ;;  %v20227_v19 = vld [vmem:[#allocation52_spill] sm:$0xff]  ;;  %v20235_v38 = vand.u32 4294901760, %v16433_v57 }
 0x21d   : > { %14015 = vmatpush1.bf16.msra.mxu1 %v20202_v21  ;;  %13841 = vmatpush1.bf16.msra.mxu0 %v20205_v25  ;;  %v20211_v21 = vld [vmem:[#allocation3_spill] sm:$0xff] }
 0x21e   : > { %3070 = vmatprep.mubr.f32.mxu1 %v16624_v43  ;;  %14016 = vmatprep.subr.bf16.mxu1 %v20131_v14  ;;  %v20226_v43 = vld [vmem:[#allocation49_spill] sm:$0xff] }
 0x21f   : > { %13842 = vmatprep.subr.bf16.mxu0 %v20131_v14  ;;  %2096 = vmatprep.mubr.f32.mxu0 %v20206_v0  ;;  %v20238_v0 = vand.u32 4294901760, %v16460_v42 }
 0x220   : > { %3072 = vmatmul.mubr.f32.gmra.mrb[114].mxu1 %v16639_v48  ;;  %2099 = vmatmul.mubr.f32.gmra.mrb[66].mxu0 %v20207_v35  ;;  %v20225_v48 = vld [vmem:[#allocation40_spill] sm:$0xff]  ;;  %v20241_v35 = vld [vmem:[#allocation2_spill] sm:$0xff] }
 0x221   : > { %14018 = vmatpush1.bf16.msra.mxu1 %v20203_v7  ;;  %13844 = vmatpush1.bf16.msra.mxu0 %v20208_v18  ;;  %v20212_v7 = vand.u32 4294901760, %v16089_v16  ;;  %v20218_v16 = vld [vmem:[#allocation23_spill] sm:$0xff] }
 0x222   : > { %3077 = vmatprep.mubr.f32.mxu1 %v16654_v10  ;;  %13845 = vmatprep.subr.bf16.mxu0 %v20131_v14  ;;  %v20224_v10 = vld [vmem:[#allocation47_spill] sm:$0xff] }
 0x223   : > { %14019 = vmatprep.subr.bf16.mxu1 %v20131_v14  ;;  %2105 = vmatprep.mubr.f32.mxu0 %v16433_v57  ;;  %v20239_v57 = vand.u32 4294901760, %v16468_v11 }
 0x224   : > { %3079 = vmatmul.mubr.f32.gmra.mrb[116].mxu1 %v16665_v34  ;;  %2108 = vmatmul.mubr.f32.gmra.mrb[68].mxu0 %v16436_v47  ;;  %v20223_v34 = vld [vmem:[#allocation46_spill] sm:$0xff] }
 0x225   : > { %13847 = vmatpush1.bf16.msra.mxu0 %v20209_v2  ;;  %3084 = vmatprep.mubr.f32.mxu1 %v16669_v32  ;;  %v20222_v32 = vld [vmem:[#allocation35_spill] sm:$0xff] }
 0x226   : > { %13848 = vmatprep.subr.bf16.mxu0 %v20131_v14  ;;  %2114 = vmatprep.mubr.f32.mxu0 %v16460_v42  ;;  %v20242_v42 = vld [vmem:[#allocation15_spill] sm:$0xff] }
 0x228   : > { %3086 = vmatmul.mubr.f32.gmra.mrb[118].mxu1 %v16690_v33  ;;  %2117 = vmatmul.mubr.f32.gmra.mrb[70].mxu0 %v16468_v11  ;;  %v20221_v33 = vld [vmem:[#allocation30_spill] sm:$0xff] }
 0x229   : > { %13850 = vmatpush1.bf16.msra.mxu0 %v20210_v6  ;;  %3197 = vmatprep.mubr.f32.mxu1 %v20211_v21  ;;  %v20243_v11 = vld [vmem:[#allocation22_spill] sm:$0xff] }
 0x22a   : > { %13851 = vmatprep.subr.bf16.mxu0 %v20131_v14  ;;  %2209 = vmatprep.mubr.f32.mxu0 %v20212_v7  ;;  %v20219_v7 = vld [vmem:[#allocation25_spill] sm:$0xff] }
 0x22c   : > { %3200 = vmatmul.mubr.f32.vlgmr.msra.gmra.mrb[96].mxu1 %v20213_v37 }
 0x22d   : > { %14021 = vmatpush1.bf16.msra.mxu1 %v20205_v25  ;;  %13853 = vmatpush1.bf16.msra.mxu0 %v20214_v52 }
 0x22e   : > { %3206 = vmatprep.mubr.f32.mxu1 %v20215_v58  ;;  %14022 = vmatprep.subr.bf16.mxu1 %v20131_v14 }
 0x22f   : > { %13854 = vmatprep.subr.bf16.mxu0 %v20131_v14 }
 0x230   : > { %3209 = vmatmul.mubr.f32.gmra.mrb[98].mxu1 %v20216_v12  ;;  %v20254_v12 = vand.u32 4294901760, %v16380_v46 }
 0x231   : > { %14024 = vmatpush1.bf16.msra.mxu1 %v20208_v18  ;;  %13856 = vmatpush1.bf16.msra.mxu0 %v20217_v30 }
 0x232   : > { %3215 = vmatprep.mubr.f32.mxu1 %v20218_v16  ;;  %14025 = vmatprep.subr.bf16.mxu1 %v20131_v14 }
 0x233   : > { %13857 = vmatprep.subr.bf16.mxu0 %v20131_v14 }
 0x234   : > { %3218 = vmatmul.mubr.f32.gmra.mrb[100].mxu1 %v20219_v7 }
 0x235   : > { %14027 = vmatpush1.bf16.msra.mxu1 %v20209_v2  ;;  %13859 = vmatpush1.bf16.msra.mxu0 %v20220_v8 }
 0x236   : > { %3224 = vmatprep.mubr.f32.mxu1 %v16376_v53  ;;  %14028 = vmatprep.subr.bf16.mxu1 %v20131_v14 }
 0x237   : > { %13860 = vmatprep.subr.bf16.mxu0 %v20131_v14 }
 0x238   : > { %3227 = vmatmul.mubr.f32.gmra.mrb[102].mxu1 %v16380_v46  ;;  %v20258_v46 = vand.u32 4294901760, %v20223_v34 }
 0x239   : > { %14030 = vmatpush1.bf16.msra.mxu1 %v20210_v6  ;;  %13862 = vmatpush1.bf16.msra.mxu0 %v20221_v33 }
 0x23a   : > { %3233 = vmatprep.mubr.f32.mxu1 %v16474_v1  ;;  %14031 = vmatprep.subr.bf16.mxu1 %v20131_v14 }
 0x23b   : > { %13863 = vmatprep.subr.bf16.mxu0 %v20131_v14 }
 0x23c   : > { %3236 = vmatmul.mubr.f32.gmra.mrb[104].mxu1 %v16484_v36 }
 0x23d   : > { %14033 = vmatpush1.bf16.msra.mxu1 %v20214_v52  ;;  %13865 = vmatpush1.bf16.msra.mxu0 %v20222_v32 }
 0x23e   : > { %3242 = vmatprep.mubr.f32.mxu1 %v20223_v34  ;;  %14034 = vmatprep.subr.bf16.mxu1 %v20131_v14  ;;  %v20261_v34 = vand.u32 4294901760, %v20227_v19 }
 0x23f   : > { %13866 = vmatprep.subr.bf16.mxu0 %v20131_v14 }
 0x240   : > { %3245 = vmatmul.mubr.f32.gmra.mrb[106].mxu1 %v20224_v10 }
 0x241   : > { %14036 = vmatpush1.bf16.msra.mxu1 %v20217_v30  ;;  %13868 = vmatpush1.bf16.msra.mxu0 %v20225_v48 }
 0x242   : > { %3251 = vmatprep.mubr.f32.mxu1 %v20226_v43  ;;  %14037 = vmatprep.subr.bf16.mxu1 %v20131_v14 }
 0x243   : > { %13869 = vmatprep.subr.bf16.mxu0 %v20131_v14 }
 0x244   : > { %3254 = vmatmul.mubr.f32.gmra.mrb[108].mxu1 %v20227_v19  ;;  %2213 = vmatmul.mubr.f32.vlgmr.msra.gmra.mrb[64].mxu0 %v20228_v31  ;;  %v20234_v31 = vld [vmem:[#allocation7_spill] sm:$0xff]  ;;  %v20264_v19 = vand.u32 4294901760, %v16622_v49 }
 0x245   : > { %14039 = vmatpush1.bf16.msra.mxu1 %v20220_v8  ;;  %13871 = vmatpush1.bf16.msra.mxu0 %v20229_v39 }
 0x246   : > { %3260 = vmatprep.mubr.f32.mxu1 %v20230_v23  ;;  %14040 = vmatprep.subr.bf16.mxu1 %v20131_v14 }
 0x247   : > { %13872 = vmatprep.subr.bf16.mxu0 %v20131_v14  ;;  %2220 = vmatprep.mubr.f32.mxu0 %v20231_v41  ;;  %v20236_v41 = vand.u32 4294901760, %v16436_v47  ;;  %v20240_v47 = vld [vmem:[#allocation11_spill] sm:$0xff] }
 0x248   : > { %3263 = vmatmul.mubr.f32.gmra.mrb[110].mxu1 %v20232_v40  ;;  %2224 = vmatmul.mubr.f32.gmra.mrb[66].mxu0 %v20233_v9  ;;  %v20237_v9 = vld [vmem:[#allocation9_spill] sm:$0xff] }
 0x249   : > { %14042 = vmatpush1.bf16.msra.mxu1 %v20221_v33  ;;  %13874 = vmatpush1.bf16.msra.mxu0 %v20234_v31 }
 0x24a   : > { %3269 = vmatprep.mubr.f32.mxu1 %v16622_v49  ;;  %14043 = vmatprep.subr.bf16.mxu1 %v20131_v14  ;;  %v20267_v49 = vand.u32 4294901760, %v16663_v15 }
 0x24b   : > { %13875 = vmatprep.subr.bf16.mxu0 %v20131_v14  ;;  %2231 = vmatprep.mubr.f32.mxu0 %v20235_v38  ;;  %v20244_v38 = vand.u32 4294901760, %v20211_v21  ;;  %v20249_v21 = vld [vmem:[#allocation32_spill] sm:$0xff] }
 0x24c   : > { %3272 = vmatmul.mubr.f32.gmra.mrb[112].mxu1 %v16637_v24  ;;  %2235 = vmatmul.mubr.f32.gmra.mrb[68].mxu0 %v20236_v41  ;;  %v20245_v41 = vand.u32 4294901760, %v20213_v37  ;;  %v20250_v37 = vand.u32 4294901760, %v20218_v16  ;;  %v20255_v16 = vld [vmem:[#allocation43_spill] sm:$0xff] }
 0x24d   : > { %14045 = vmatpush1.bf16.msra.mxu1 %v20222_v32  ;;  %13877 = vmatpush1.bf16.msra.mxu0 %v20237_v9 }
 0x24e   : > { %3278 = vmatprep.mubr.f32.mxu1 %v16652_v55  ;;  %14046 = vmatprep.subr.bf16.mxu1 %v20131_v14 }
 0x24f   : > { %13878 = vmatprep.subr.bf16.mxu0 %v20131_v14  ;;  %2242 = vmatprep.mubr.f32.mxu0 %v20238_v0  ;;  %v20246_v0 = vld [vmem:[#allocation27_spill] sm:$0xff] }
 0x250   : > { %3281 = vmatmul.mubr.f32.gmra.mrb[114].mxu1 %v16663_v15  ;;  %2246 = vmatmul.mubr.f32.gmra.mrb[70].mxu0 %v20239_v57  ;;  %v20247_v57 = vand.u32 4294901760, %v20215_v58  ;;  %v20252_v58 = vld [vmem:[#allocation38_spill] sm:$0xff]  ;;  %v20271_v15 = vand.u32 4294901760, %v16708_v20 }
 0x251   : > { %14048 = vmatpush1.bf16.msra.mxu1 %v20225_v48  ;;  %13880 = vmatpush1.bf16.msra.mxu0 %v20240_v47 }
 0x252   : > { %3287 = vmatprep.mubr.f32.mxu1 %v16680_v44  ;;  %13881 = vmatprep.subr.bf16.mxu0 %v20131_v14 }
 0x253   : > { %14049 = vmatprep.subr.bf16.mxu1 %v20131_v14  ;;  %2376 = vmatprep.mubr.f32.mxu0 %v20241_v35 }
 0x254   : > { %3290 = vmatmul.mubr.f32.gmra.mrb[116].mxu1 %v16688_v4 }
 0x255   : > { %13883 = vmatpush1.bf16.msra.mxu0 %v20242_v42  ;;  %3296 = vmatprep.mubr.f32.mxu1 %v16695_v50 }
 0x256   : > { %13884 = vmatprep.subr.bf16.mxu0 %v20131_v14 }
 0x258   : > { %3299 = vmatmul.mubr.f32.gmra.mrb[118].mxu1 %v16708_v20  ;;  %v20285_v20 = vld [vmem:[#allocation62_spill] sm:$0xff] }
 0x259   : > { %13886 = vmatpush1.bf16.msra.mxu0 %v20243_v11  ;;  %3391 = vmatprep.mubr.f32.mxu1 %v20244_v38 }
 0x25a   : > { %13887 = vmatprep.subr.bf16.mxu0 %v20131_v14 }
 0x25c   : > { %3395 = vmatmul.mubr.f32.vlgmr.msra.gmra.mrb[96].mxu1 %v20245_v41 }
 0x25d   : > { %14051 = vmatpush1.bf16.msra.mxu1 %v20229_v39  ;;  %13889 = vmatpush1.bf16.msra.mxu0 %v20246_v0  ;;  %v20251_v39 = vand.u32 4294901760, %v20219_v7  ;;  %v20256_v7 = vand.u32 4294901760, %v16474_v1  ;;  %v20259_v1 = vand.u32 4294901760, %v20224_v10  ;;  %v20262_v10 = vand.u32 4294901760, %v20230_v23 }
 0x25e   : > { %3402 = vmatprep.mubr.f32.mxu1 %v20247_v57  ;;  %14052 = vmatprep.subr.bf16.mxu1 %v20131_v14  ;;  %v20265_v23 = vand.u32 4294901760, %v16637_v24  ;;  %v20268_v24 = vand.u32 4294901760, %v16680_v44  ;;  %v20280_v44 = vld [vmem:[#allocation57_spill] sm:$0xff] }
 0x25f   : > { %13890 = vmatprep.subr.bf16.mxu0 %v20131_v14 }
 0x260   : > { %3406 = vmatmul.mubr.f32.gmra.mrb[98].mxu1 %v20248_v45  ;;  %v20253_v45 = vand.u32 4294901760, %v16376_v53  ;;  %v20257_v53 = vand.u32 4294901760, %v16484_v36  ;;  %v20260_v36 = vand.u32 4294901760, %v20226_v43  ;;  %v20263_v43 = vand.u32 4294901760, %v20232_v40 }
 0x261   : > { %14054 = vmatpush1.bf16.msra.mxu1 %v20234_v31  ;;  %13892 = vmatpush1.bf16.msra.mxu0 %v20249_v21  ;;  %v20266_v40 = vand.u32 4294901760, %v16652_v55  ;;  %v20269_v55 = vand.u32 4294901760, %v16688_v4  ;;  %v20270_v31 = vand.u32 4294901760, %v16695_v50  ;;  %v20282_v4 = vld [vmem:[#allocation59_spill] sm:$0xff]  ;;  %v20283_v50 = vld [vmem:[#allocation60_spill] sm:$0xff] }
 0x262   : > { %3413 = vmatprep.mubr.f32.mxu1 %v20250_v37  ;;  %14055 = vmatprep.subr.bf16.mxu1 %v20131_v14 }
 0x263   : > { %13893 = vmatprep.subr.bf16.mxu0 %v20131_v14 }
 0x264   : > { %3417 = vmatmul.mubr.f32.gmra.mrb[100].mxu1 %v20251_v39 }
 0x265   : > { %14057 = vmatpush1.bf16.msra.mxu1 %v20237_v9  ;;  %13895 = vmatpush1.bf16.msra.mxu0 %v20252_v58 }
 0x266   : > { %3424 = vmatprep.mubr.f32.mxu1 %v20253_v45  ;;  %14058 = vmatprep.subr.bf16.mxu1 %v20131_v14 }
 0x267   : > { %13896 = vmatprep.subr.bf16.mxu0 %v20131_v14 }
 0x268   : > { %3428 = vmatmul.mubr.f32.gmra.mrb[102].mxu1 %v20254_v12 }
 0x269   : > { %14060 = vmatpush1.bf16.msra.mxu1 %v20240_v47  ;;  %13898 = vmatpush1.bf16.msra.mxu0 %v20255_v16 }
 0x26a   : > { %3435 = vmatprep.mubr.f32.mxu1 %v20256_v7  ;;  %14061 = vmatprep.subr.bf16.mxu1 %v20131_v14 }
 0x26b   : > { %13899 = vmatprep.subr.bf16.mxu0 %v20131_v14 }
 0x26c   : > { %3439 = vmatmul.mubr.f32.gmra.mrb[104].mxu1 %v20257_v53  ;;  %2378 = vmatmul.mubr.f32.vlgmr.msra.gmra.mrb[64].mxu0 %v16217_v63 }
 0x26d   : > { %14063 = vmatpush1.bf16.msra.mxu1 %v20242_v42  ;;  %13901 = vmatpush1.bf16.msra.mxu0 %v20205_v25 }
 0x26e   : > { %3446 = vmatprep.mubr.f32.mxu1 %v20258_v46  ;;  %14064 = vmatprep.subr.bf16.mxu1 %v20131_v14 }
 0x26f   : > { %13902 = vmatprep.subr.bf16.mxu0 %v20131_v14  ;;  %2383 = vmatprep.mubr.f32.mxu0 %v16365_v26 }
 0x270   : > { %3450 = vmatmul.mubr.f32.gmra.mrb[106].mxu1 %v20259_v1  ;;  %2385 = vmatmul.mubr.f32.gmra.mrb[66].mxu0 %v16369_v22 }
 0x271   : > { %14066 = vmatpush1.bf16.msra.mxu1 %v20243_v11  ;;  %13904 = vmatpush1.bf16.msra.mxu0 %v20208_v18 }
 0x272   : > { %3457 = vmatprep.mubr.f32.mxu1 %v20260_v36  ;;  %14067 = vmatprep.subr.bf16.mxu1 %v20131_v14 }
 0x273   : > { %13905 = vmatprep.subr.bf16.mxu0 %v20131_v14  ;;  %2390 = vmatprep.mubr.f32.mxu0 %v16399_v3 }
 0x274   : > { %3461 = vmatmul.mubr.f32.gmra.mrb[108].mxu1 %v20261_v34  ;;  %2392 = vmatmul.mubr.f32.gmra.mrb[68].mxu0 %v16409_v54 }
 0x275   : > { %14069 = vmatpush1.bf16.msra.mxu1 %v20246_v0  ;;  %13907 = vmatpush1.bf16.msra.mxu0 %v20209_v2 }
 0x276   : > { %3468 = vmatprep.mubr.f32.mxu1 %v20262_v10  ;;  %14070 = vmatprep.subr.bf16.mxu1 %v20131_v14 }
 0x277   : > { %13908 = vmatprep.subr.bf16.mxu0 %v20131_v14  ;;  %2397 = vmatprep.mubr.f32.mxu0 %v16438_v62 }
 0x278   : > { %3472 = vmatmul.mubr.f32.gmra.mrb[110].mxu1 %v20263_v43  ;;  %2399 = vmatmul.mubr.f32.gmra.mrb[70].mxu0 %v16440_v17 }
 0x279   : > { %14072 = vmatpush1.bf16.msra.mxu1 %v20249_v21  ;;  %13910 = vmatpush1.bf16.msra.mxu0 %v20210_v6 }
 0x27a   : > { %3479 = vmatprep.mubr.f32.mxu1 %v20264_v19  ;;  %14073 = vmatprep.subr.bf16.mxu1 %v20131_v14 }
 0x27b   : > { %13911 = vmatprep.subr.bf16.mxu0 %v20131_v14  ;;  %2489 = vmatprep.mubr.f32.mxu0 %v20241_v35 }
 0x27c   : > { %3483 = vmatmul.mubr.f32.gmra.mrb[112].mxu1 %v20265_v23 }
 0x27d   : > { %14075 = vmatpush1.bf16.msra.mxu1 %v20252_v58  ;;  %13913 = vmatpush1.bf16.msra.mxu0 %v20214_v52 }
 0x27e   : > { %3490 = vmatprep.mubr.f32.mxu1 %v20266_v40  ;;  %14076 = vmatprep.subr.bf16.mxu1 %v20131_v14 }
 0x27f   : > { %13914 = vmatprep.subr.bf16.mxu0 %v20131_v14 }
 0x280   : > { %3494 = vmatmul.mubr.f32.gmra.mrb[114].mxu1 %v20267_v49 }
 0x281   : > { %14078 = vmatpush1.bf16.msra.mxu1 %v20255_v16  ;;  %13916 = vmatpush1.bf16.msra.mxu0 %v20217_v30 }
 0x282   : > { %3501 = vmatprep.mubr.f32.mxu1 %v20268_v24  ;;  %13917 = vmatprep.subr.bf16.mxu0 %v20131_v14 }
 0x283   : > { %14079 = vmatprep.subr.bf16.mxu1 %v20131_v14 }
 0x284   : > { %3505 = vmatmul.mubr.f32.gmra.mrb[116].mxu1 %v20269_v55 }
 0x285   : > { %13919 = vmatpush1.bf16.msra.mxu0 %v20220_v8  ;;  %3512 = vmatprep.mubr.f32.mxu1 %v20270_v31 }
 0x286   : > { %13920 = vmatprep.subr.bf16.mxu0 %v20131_v14 }
 0x288   : > { %3516 = vmatmul.mubr.f32.gmra.mrb[118].mxu1 %v20271_v15 }
 0x289   : > { %13922 = vmatpush1.bf16.msra.mxu0 %v20221_v33  ;;  %3646 = vmatprep.mubr.f32.mxu1 %v16076_v61 }
 0x28a   : > { %13923 = vmatprep.subr.bf16.mxu0 %v20131_v14 }
 0x28c   : > { %3648 = vmatmul.mubr.f32.vlgmr.msra.gmra.mrb[96].mxu1 %v16212_v56 }
 0x28d   : > { %14081 = vmatpush1.bf16.msra.mxu1 %v20205_v25  ;;  %13925 = vmatpush1.bf16.msra.mxu0 %v20222_v32 }
 0x28e   : > { %3653 = vmatprep.mubr.f32.mxu1 %v16243_v59  ;;  %14082 = vmatprep.subr.bf16.mxu1 %v20131_v14 }
 0x28f   : > { %13926 = vmatprep.subr.bf16.mxu0 %v20131_v14 }
 0x290   : > { %3655 = vmatmul.mubr.f32.gmra.mrb[98].mxu1 %v16245_v51 }
 0x291   : > { %14084 = vmatpush1.bf16.msra.mxu1 %v20208_v18  ;;  %13928 = vmatpush1.bf16.msra.mxu0 %v20225_v48 }
 0x292   : > { %3660 = vmatprep.mubr.f32.mxu1 %v16267_v13  ;;  %14085 = vmatprep.subr.bf16.mxu1 %v20131_v14 }
 0x294   : > { %2491 = vmatmul.mubr.f32.vlgmr.msra.gmra.mrb[64].mxu0 %v16217_v63  ;;  %3662 = vmatmul.mubr.f32.gmra.mrb[100].mxu1 %v20193_v28  ;;  %v20272_v63 = vld [vmem:[#allocation42_spill] sm:$0xff] }
 0x295   : > { %14087 = vmatpush1.bf16.msra.mxu1 %v20209_v2  ;;  %2496 = vmatprep.mubr.f32.mxu0 %v16365_v26  ;;  %v20273_v26 = vld [vmem:[#allocation44_spill] sm:$0xff] }
 0x296   : > { %3667 = vmatprep.mubr.f32.mxu1 %v20195_v29  ;;  %14088 = vmatprep.subr.bf16.mxu1 %v20131_v14 }
 0x298   : > { %2498 = vmatmul.mubr.f32.gmra.mrb[66].mxu0 %v16369_v22  ;;  %3669 = vmatmul.mubr.f32.gmra.mrb[102].mxu1 %v20196_v5  ;;  %v20274_v22 = vld [vmem:[#allocation45_spill] sm:$0xff] }
 0x299   : > { %14090 = vmatpush1.bf16.msra.mxu1 %v20210_v6  ;;  %2503 = vmatprep.mubr.f32.mxu0 %v16399_v3  ;;  %v20276_v3 = vld [vmem:[#allocation50_spill] sm:$0xff] }
 0x29a   : > { %3674 = vmatprep.mubr.f32.mxu1 %v20198_v60  ;;  %14091 = vmatprep.subr.bf16.mxu1 %v20131_v14 }
 0x29c   : > { %2505 = vmatmul.mubr.f32.gmra.mrb[68].mxu0 %v16409_v54  ;;  %3676 = vmatmul.mubr.f32.gmra.mrb[104].mxu1 %v20199_v27  ;;  %v20275_v54 = vld [vmem:[#allocation48_spill] sm:$0xff] }
 0x29d   : > { %14093 = vmatpush1.bf16.msra.mxu1 %v20214_v52  ;;  %2510 = vmatprep.mubr.f32.mxu0 %v16438_v62  ;;  %v20277_v62 = vld [vmem:[#allocation51_spill] sm:$0xff] }
 0x29e   : > { %3681 = vmatprep.mubr.f32.mxu1 %v20272_v63  ;;  %14094 = vmatprep.subr.bf16.mxu1 %v20131_v14 }
 0x2a0   : > { %2512 = vmatmul.mubr.f32.gmra.mrb[70].mxu0 %v16440_v17  ;;  %3683 = vmatmul.mubr.f32.gmra.mrb[106].mxu1 %v20273_v26  ;;  %v20278_v17 = vld [vmem:[#allocation54_spill] sm:$0xff] }
 0x2a1   : > { %14096 = vmatpush1.bf16.msra.mxu1 %v20217_v30  ;;  %3688 = vmatprep.mubr.f32.mxu1 %v20274_v22  ;;  %v20279_v30 = vld [vmem:[#allocation56_spill] sm:$0xff] }
 0x2a2   : > { %14097 = vmatprep.subr.bf16.mxu1 %v20131_v14 }
 0x2a4   : > { %3690 = vmatmul.mubr.f32.gmra.mrb[108].mxu1 %v20275_v54 }
 0x2a5   : > { %14099 = vmatpush1.bf16.msra.mxu1 %v20220_v8  ;;  %3695 = vmatprep.mubr.f32.mxu1 %v20276_v3  ;;  %v20281_v8 = vld [vmem:[#allocation58_spill] sm:$0xff] }
 0x2a6   : > { %14100 = vmatprep.subr.bf16.mxu1 %v20131_v14 }
 0x2a8   : > { %3697 = vmatmul.mubr.f32.gmra.mrb[110].mxu1 %v20277_v62 }
 0x2a9   : > { %14102 = vmatpush1.bf16.msra.mxu1 %v20221_v33  ;;  %3702 = vmatprep.mubr.f32.mxu1 %v20278_v17  ;;  %v20284_v33 = vld [vmem:[#allocation61_spill] sm:$0xff] }
 0x2aa   : > { %14103 = vmatprep.subr.bf16.mxu1 %v20131_v14 }
 0x2ac   : > { %3704 = vmatmul.mubr.f32.gmra.mrb[112].mxu1 %v20279_v30 }
 0x2ad   : > { %14105 = vmatpush1.bf16.msra.mxu1 %v20222_v32  ;;  %3709 = vmatprep.mubr.f32.mxu1 %v20280_v44 }
 0x2ae   : > { %14106 = vmatprep.subr.bf16.mxu1 %v20131_v14 }
 0x2b0   : > { %3711 = vmatmul.mubr.f32.gmra.mrb[114].mxu1 %v20281_v8 }
 0x2b1   : > { %14108 = vmatpush1.bf16.msra.mxu1 %v20225_v48  ;;  %3716 = vmatprep.mubr.f32.mxu1 %v20282_v4 }
 0x2b4   : > { %3718 = vmatmul.mubr.f32.gmra.mrb[116].mxu1 %v20283_v50 }
 0x2b5   : > { %3723 = vmatprep.mubr.f32.mxu1 %v20284_v33 }
 0x2b8   : > { %3725 = vmatmul.mubr.f32.gmra.mrb[118].mxu1 %v20285_v20 }
 0x2b9   : > { %3815 = vmatprep.mubr.f32.mxu1 %v16076_v61 }
 0x2bc   : > { %3817 = vmatmul.mubr.f32.vlgmr.msra.gmra.mrb[96].mxu1 %v16212_v56 }
 0x2bd   : > { %3822 = vmatprep.mubr.f32.mxu1 %v16243_v59 }
 0x2c0   : > { %3824 = vmatmul.mubr.f32.gmra.mrb[98].mxu1 %v16245_v51 }
 0x2c1   : > { %3829 = vmatprep.mubr.f32.mxu1 %v16267_v13 }
 0x2c4   : > { %3831 = vmatmul.mubr.f32.gmra.mrb[100].mxu1 %v20193_v28 }
 0x2c5   : > { %3836 = vmatprep.mubr.f32.mxu1 %v20195_v29 }
 0x2c8   : > { %3838 = vmatmul.mubr.f32.gmra.mrb[102].mxu1 %v20196_v5 }
 0x2c9   : > { %3843 = vmatprep.mubr.f32.mxu1 %v20198_v60 }
 0x2cc   : > { %3845 = vmatmul.mubr.f32.gmra.mrb[104].mxu1 %v20199_v27 }
 0x2cd   : > { %3850 = vmatprep.mubr.f32.mxu1 %v20272_v63 }
 0x2d0   : > { %3852 = vmatmul.mubr.f32.gmra.mrb[106].mxu1 %v20273_v26 }
 0x2d1   : > { %3857 = vmatprep.mubr.f32.mxu1 %v20274_v22 }
 0x2d4   : > { %3859 = vmatmul.mubr.f32.gmra.mrb[108].mxu1 %v20275_v54 }
 0x2d5   : > { %3864 = vmatprep.mubr.f32.mxu1 %v20276_v3 }
 0x2d8   : > { %3866 = vmatmul.mubr.f32.gmra.mrb[110].mxu1 %v20277_v62 }
 0x2d9   : > { %3871 = vmatprep.mubr.f32.mxu1 %v20278_v17 }
 0x2dc   : > { %3873 = vmatmul.mubr.f32.gmra.mrb[112].mxu1 %v20279_v30 }
 0x2dd   : > { %3878 = vmatprep.mubr.f32.mxu1 %v20280_v44 }
 0x2e0   : > { %3880 = vmatmul.mubr.f32.gmra.mrb[114].mxu1 %v20281_v8 }
 0x2e1   : > { %3885 = vmatprep.mubr.f32.mxu1 %v20282_v4 }
 0x2e4   : > { %3887 = vmatmul.mubr.f32.gmra.mrb[116].mxu1 %v20283_v50 }
 0x2e5   : > { %3892 = vmatprep.mubr.f32.mxu1 %v20284_v33 }
 0x2e8   : > { %3894 = vmatmul.mubr.f32.gmra.mrb[118].mxu1 %v20285_v20 }
 0x367   : > { %v2492_v61 = vpop.f32.mrb[64].mxu0 }
 0x368   : > { %v3900_v56 = vand.u32 4294901760, %v2492_v61  ;;  %v2494_v59 = vpop.f32.mrb[65].mxu0 }
 0x36a   : > { %v4090_v51 = vsub.f32 %v2492_v61, %v3900_v56 }
 0x36b   : > { %v2499_v13 = vpop.f32.mrb[66].mxu0 }
 0x36c   : > { %v4091_v48 = vand.u32 4294901760, %v4090_v51  ;;  %v3903_v32 = vand.u32 4294901760, %v2499_v13  ;;  %v2501_v52 = vpop.f32.mrb[67].mxu0 }
 0x36e   : > { %v17085_v28 = vpack.c.bf16 %v3903_v32, %v3900_v56  ;;  %v4097_v29 = vsub.f32 %v2499_v13, %v3903_v32  ;;  %v4092_v60 = vsub.f32 %v4090_v51, %v4091_v48 }
 0x36f   : > { %v2506_v5 = vpop.f32.mrb[68].mxu0 }
 0x370   : > { %v4098_v27 = vand.u32 4294901760, %v4097_v29  ;;  %v3906_v25 = vand.u32 4294901760, %v2506_v5  ;;  %v2508_v18 = vpop.f32.mrb[69].mxu0  ;;  %14110 = vmatprep.subr.bf16.mxu0 %v17085_v28  ;;  %v17088_v2 = vpack.c.bf16 %v4097_v29, %v4090_v51  ;;  %v4093_v41 = vand.u32 4294901760, %v4092_v60 }
 0x371   : > { %14112 = vmatpush3.bf16.xpose.msra.mxu0 %v17085_v28 }
 0x372   : > { %v4099_v6 = vsub.f32 %v4097_v29, %v4098_v27  ;;  %v4104_v9 = vsub.f32 %v2506_v5, %v3906_v25  ;;  %v17091_v47 = vpack.c.bf16 %v4098_v27, %v4091_v48 }
 0x373   : > { %v2513_v35 = vpop.f32.mrb[70].mxu0 }
 0x374   : > { %v4105_v42 = vand.u32 4294901760, %v4104_v9  ;;  %v3909_v11 = vand.u32 4294901760, %v2513_v35  ;;  %v2515_v38 = vpop.f32.mrb[71].mxu0  ;;  %v4100_v0 = vand.u32 4294901760, %v4099_v6 }
 0x376   : > { %v17093_v57 = vpack.c.bf16 %v3909_v11, %v3906_v25  ;;  %v4111_v21 = vsub.f32 %v2513_v35, %v3909_v11  ;;  %v14117_v37 = vpack.c.bf16 %v4100_v0, %v4093_v41  ;;  %v4106_v39 = vsub.f32 %v4104_v9, %v4105_v42 }
 0x378   : > { %v4112_v58 = vand.u32 4294901760, %v4111_v21  ;;  %14114 = vmatprep.subr.bf16.mxu0 %v17093_v57  ;;  %v17096_v45 = vpack.c.bf16 %v4111_v21, %v4104_v9  ;;  %v4107_v7 = vand.u32 4294901760, %v4106_v39 }
 0x379   : > { %14116 = vmatpush3.bf16.xpose.msra.mxu0 %v17093_v57 }
 0x37a   : > { %v4113_v12 = vsub.f32 %v4111_v21, %v4112_v58  ;;  %14118 = vmatprep.subr.bf16.mxu0 %v14117_v37  ;;  %v17099_v16 = vpack.c.bf16 %v4112_v58, %v4105_v42 }
 0x37c   : > { %v4114_v53 = vand.u32 4294901760, %v4113_v12 }
 0x37e   : > { %v14121_v46 = vpack.c.bf16 %v4114_v53, %v4107_v7 }
 0x38f   : > { %v3818_v1 = vpop.f32.mrb[96].mxu1 }
 0x390   : > { %v17101_v36 = vand.u32 4294901760, %v3818_v1  ;;  %v3820_v34 = vpop.f32.mrb[97].mxu1  ;;  %v4857_v10 = vmul.f32 %v3818_v1, %v3818_v1 }
 0x392   : > { %v17104_v43 = vsub.f32 %v3818_v1, %v17101_v36  ;;  %4869 = vadd.xlane.f32.xlu0 %v4857_v10 }
 0x393   : > { %v3825_v19 = vpop.f32.mrb[98].mxu1 }
 0x394   : > { %v17106_v23 = vand.u32 4294901760, %v3825_v19  ;;  %v3827_v40 = vpop.f32.mrb[99].mxu1  ;;  %v4858_v49 = vmul.f32 %v3825_v19, %v3825_v19  ;;  %v3970_v24 = vand.u32 4294901760, %v17104_v43 }
 0x396   : > { %v17110_v55 = vsub.f32 %v3825_v19, %v17106_v23  ;;  %4871 = vadd.xlane.f32.xlu0 %v4858_v49  ;;  %v3971_v31 = vsub.f32 %v17104_v43, %v3970_v24 }
 0x397   : > { %v3832_v15 = vpop.f32.mrb[100].mxu1 }
 0x398   : > { %v3980_v63 = vand.u32 4294901760, %v17110_v55  ;;  %v17116_v26 = vand.u32 4294901760, %v3832_v15  ;;  %v3834_v22 = vpop.f32.mrb[101].mxu1  ;;  %v4859_v54 = vmul.f32 %v3832_v15, %v3832_v15  ;;  %v3972_v3 = vand.u32 4294901760, %v3971_v31 }
 0x39a   : > { %v3981_v62 = vsub.f32 %v17110_v55, %v3980_v63  ;;  %v17122_v17 = vsub.f32 %v3832_v15, %v17116_v26  ;;  %4873 = vadd.xlane.f32.xlu1 %v4859_v54  ;;  %12269 = vmatprep.mubr.f32.mxu0 %v3972_v3 }
 0x39b   : > { %v3839_v30 = vpop.f32.mrb[102].mxu1 }
 0x39c   : > { %v3982_v44 = vand.u32 4294901760, %v3981_v62  ;;  %v17124_v8 = vand.u32 4294901760, %v3839_v30  ;;  %v3841_v4 = vpop.f32.mrb[103].mxu1  ;;  %v4860_v50 = vmul.f32 %v3839_v30, %v3839_v30  ;;  %v3990_v33 = vand.u32 4294901760, %v17122_v17 }
 0x39e   : > { %v17128_v20 = vsub.f32 %v3839_v30, %v17124_v8  ;;  %4875 = vadd.xlane.f32.xlu1 %v4860_v50  ;;  %12270 = vmatmul.mubr.f32.vlgmr.msra.gmra.mrb[72].mxu0 %v3982_v44  ;;  %v3991_v61 = vsub.f32 %v17122_v17, %v3990_v33 }
 0x39f   : > { %14120 = vmatpush3.bf16.xpose.msra.mxu0 %v14117_v37  ;;  %v3846_v56 = vpop.f32.mrb[104].mxu1 }
 0x3a0   : > { %v17133_v59 = vand.u32 4294901760, %v3846_v56  ;;  %14122 = vmatprep.subr.bf16.mxu0 %v14121_v46  ;;  %v3848_v51 = vpop.f32.mrb[105].mxu1  ;;  %v4861_v13 = vmul.f32 %v3846_v56, %v3846_v56  ;;  %v3992_v48 = vand.u32 4294901760, %v3991_v61  ;;  %v4000_v32 = vand.u32 4294901760, %v17128_v20 }
 0x3a2   : > { %v17137_v52 = vsub.f32 %v3846_v56, %v17133_v59  ;;  %4877 = vadd.xlane.f32.xlu0 %v4861_v13  ;;  %12272 = vmatprep.mubr.f32.mxu0 %v3992_v48  ;;  %v4001_v29 = vsub.f32 %v17128_v20, %v4000_v32 }
 0x3a3   : > { %v3853_v5 = vpop.f32.mrb[106].mxu1 }
 0x3a4   : > { %v17142_v60 = vand.u32 4294901760, %v3853_v5  ;;  %v3855_v27 = vpop.f32.mrb[107].mxu1  ;;  %v4862_v25 = vmul.f32 %v3853_v5, %v3853_v5  ;;  %v4002_v18 = vand.u32 4294901760, %v4001_v29  ;;  %v4010_v6 = vand.u32 4294901760, %v17137_v52 }
 0x3a6   : > { %v17146_v9 = vsub.f32 %v3853_v5, %v17142_v60  ;;  %4879 = vadd.xlane.f32.xlu1 %v4862_v25  ;;  %12273 = vmatmul.mubr.f32.gmra.mrb[74].mxu0 %v4002_v18  ;;  %v4011_v35 = vsub.f32 %v17137_v52, %v4010_v6 }
 0x3a7   : > { %14124 = vmatpush3.bf16.xpose.msra.mxu0 %v14121_v46  ;;  %v3860_v42 = vpop.f32.mrb[108].mxu1 }
 0x3a8   : > { %v17151_v11 = vand.u32 4294901760, %v3860_v42  ;;  %14126 = vmatprep.subr.bf16.mxu0 %v17088_v2  ;;  %v3862_v38 = vpop.f32.mrb[109].mxu1  ;;  %v4863_v41 = vmul.f32 %v3860_v42, %v3860_v42  ;;  %v4012_v0 = vand.u32 4294901760, %v4011_v35  ;;  %v4020_v21 = vand.u32 4294901760, %v17146_v9 }
 0x3aa   : > { %v17156_v37 = vsub.f32 %v3860_v42, %v17151_v11  ;;  %4881 = vadd.xlane.f32.xlu0 %v4863_v41  ;;  %12275 = vmatprep.mubr.f32.mxu0 %v4012_v0  ;;  %v4021_v39 = vsub.f32 %v17146_v9, %v4020_v21 }
 0x3ab   : > { %v3867_v58 = vpop.f32.mrb[110].mxu1 }
 0x3ac   : > { %v17161_v12 = vand.u32 4294901760, %v3867_v58  ;;  %v3869_v7 = vpop.f32.mrb[111].mxu1  ;;  %v4864_v53 = vmul.f32 %v3867_v58, %v3867_v58  ;;  %v4022_v46 = vand.u32 4294901760, %v4021_v39  ;;  %v4030_v1 = vand.u32 4294901760, %v17156_v37 }
 0x3ae   : > { %v17165_v34 = vsub.f32 %v3867_v58, %v17161_v12  ;;  %4883 = vadd.xlane.f32.xlu1 %v4864_v53  ;;  %12276 = vmatmul.mubr.f32.gmra.mrb[76].mxu0 %v4022_v46  ;;  %v4031_v10 = vsub.f32 %v17156_v37, %v4030_v1 }
 0x3af   : > { %v3874_v19 = vpop.f32.mrb[112].mxu1 }
 0x3b0   : > { %v17170_v40 = vand.u32 4294901760, %v3874_v19  ;;  %v3876_v49 = vpop.f32.mrb[113].mxu1  ;;  %v4865_v31 = vmul.f32 %v3874_v19, %v3874_v19  ;;  %v4032_v15 = vand.u32 4294901760, %v4031_v10  ;;  %v4040_v22 = vand.u32 4294901760, %v17165_v34 }
 0x3b2   : > { %v17174_v54 = vsub.f32 %v3874_v19, %v17170_v40  ;;  %4885 = vadd.xlane.f32.xlu0 %v4865_v31  ;;  %12278 = vmatprep.mubr.f32.mxu0 %v4032_v15  ;;  %v4041_v3 = vsub.f32 %v17165_v34, %v4040_v22 }
 0x3b3   : > { %v3881_v62 = vpop.f32.mrb[114].mxu1 }
 0x3b4   : > { %v17179_v30 = vand.u32 4294901760, %v3881_v62  ;;  %v3883_v44 = vpop.f32.mrb[115].mxu1  ;;  %v4866_v4 = vmul.f32 %v3881_v62, %v3881_v62  ;;  %v4042_v50 = vand.u32 4294901760, %v4041_v3  ;;  %v4050_v61 = vand.u32 4294901760, %v17174_v54 }
 0x3b6   : > { %v17183_v56 = vsub.f32 %v3881_v62, %v17179_v30  ;;  %4887 = vadd.xlane.f32.xlu1 %v4866_v4  ;;  %12279 = vmatmul.mubr.f32.gmra.mrb[78].mxu0 %v4042_v50  ;;  %v4051_v51 = vsub.f32 %v17174_v54, %v4050_v61 }
 0x3b7   : > { %v3888_v13 = vpop.f32.mrb[116].mxu1 }
 0x3b8   : > { %v17188_v48 = vand.u32 4294901760, %v3888_v13  ;;  %v3890_v29 = vpop.f32.mrb[117].mxu1  ;;  %v4867_v5 = vmul.f32 %v3888_v13, %v3888_v13  ;;  %v4052_v27 = vand.u32 4294901760, %v4051_v51  ;;  %v4060_v25 = vand.u32 4294901760, %v17183_v56 }
 0x3ba   : > { %v17192_v18 = vsub.f32 %v3888_v13, %v17188_v48  ;;  %4889 = vadd.xlane.f32.xlu0 %v4867_v5  ;;  %12281 = vmatprep.mubr.f32.mxu0 %v4052_v27  ;;  %v4061_v35 = vsub.f32 %v17183_v56, %v4060_v25 }
 0x3bb   : > { %v3895_v42 = vpop.f32.mrb[118].mxu1 }
 0x3bc   : > { %v17197_v38 = vand.u32 4294901760, %v3895_v42  ;;  %v3897_v41 = vpop.f32.mrb[119].mxu1  ;;  %v4868_v0 = vmul.f32 %v3895_v42, %v3895_v42  ;;  %v4062_v39 = vand.u32 4294901760, %v4061_v35  ;;  %v4070_v58 = vand.u32 4294901760, %v17192_v18 }
 0x3be   : > { %v4079_v7 = vsub.f32 %v3895_v42, %v17197_v38  ;;  %4891 = vadd.xlane.f32.xlu1 %v4868_v0  ;;  %12282 = vmatmul.mubr.f32.gmra.mrb[80].mxu0 %v4062_v39  ;;  %v4071_v53 = vsub.f32 %v17192_v18, %v4070_v58 }
 0x3c0   : > { %v4072_v46 = vand.u32 4294901760, %v4071_v53  ;;  %v4080_v10 = vand.u32 4294901760, %v4079_v7 }
 0x3c2   : > { %12284 = vmatprep.mubr.f32.mxu0 %v4072_v46  ;;  %v4081_v19 = vsub.f32 %v4079_v7, %v4080_v10 }
 0x3c4   : > { %v4082_v49 = vand.u32 4294901760, %v4081_v19 }
 0x3c6   : > { %12285 = vmatmul.mubr.f32.gmra.mrb[82].mxu0 %v4082_v49 }
 0x3c7   : > { %12295 = vmatprep.mubr.f32.mxu0 %v17101_v36 }
 0x3ca   : > { %12296 = vmatmul.mubr.f32.vlgmr.msra.gmra.mrb[72].mxu0 %v17106_v23 }
 0x3cb   : > { %14128 = vmatpush3.bf16.xpose.msra.mxu0 %v17088_v2  ;;  %12298 = vmatprep.mubr.f32.mxu0 %v17116_v26 }
 0x3cc   : > { %14130 = vmatprep.subr.bf16.mxu0 %v17096_v45 }
 0x3ce   : > { %12299 = vmatmul.mubr.f32.gmra.mrb[74].mxu0 %v17124_v8 }
 0x3cf   : > { %12301 = vmatprep.mubr.f32.mxu0 %v17133_v59 }
 0x3d2   : > { %12302 = vmatmul.mubr.f32.gmra.mrb[76].mxu0 %v17142_v60 }
 0x3d3   : > { %14132 = vmatpush3.bf16.xpose.msra.mxu0 %v17096_v45  ;;  %12304 = vmatprep.mubr.f32.mxu0 %v17151_v11 }
 0x3d4   : > { %14134 = vmatprep.subr.bf16.mxu0 %v17085_v28 }
 0x3d6   : > { %12305 = vmatmul.mubr.f32.gmra.mrb[78].mxu0 %v17161_v12 }
 0x3d7   : > { %12307 = vmatprep.mubr.f32.mxu0 %v17170_v40 }
 0x3da   : > { %12308 = vmatmul.mubr.f32.gmra.mrb[80].mxu0 %v17179_v30 }
 0x3db   : > { %12310 = vmatprep.mubr.f32.mxu0 %v17188_v48 }
 0x3de   : > { %12311 = vmatmul.mubr.f32.gmra.mrb[82].mxu0 %v17197_v38 }
 0x3df   : > { %12321 = vmatprep.mubr.f32.mxu0 %v17104_v43  ;;  %v4918_v43 = vld [vmem:[%s19754_s5 + $0x8] sm:$0xff] }
 0x3e2   : > { %12322 = vmatmul.mubr.f32.vlgmr.msra.gmra.mrb[72].mxu0 %v17110_v55 }
 0x3e3   : > { %14136 = vmatpush3.bf16.xpose.msra.mxu0 %v17085_v28  ;;  %12324 = vmatprep.mubr.f32.mxu0 %v17122_v17  ;;  %v4921_v17 = vld [vmem:[%s19754_s5 + $0x20] sm:$0xff] }
 0x3e4   : > { %14138 = vmatprep.subr.bf16.mxu0 %v17093_v57 }
 0x3e6   : > { %12325 = vmatmul.mubr.f32.gmra.mrb[74].mxu0 %v17128_v20 }
 0x3e7   : > { %12327 = vmatprep.mubr.f32.mxu0 %v17137_v52 }
 0x3ea   : > { %12328 = vmatmul.mubr.f32.gmra.mrb[76].mxu0 %v17146_v9 }
 0x3eb   : > { %14140 = vmatpush3.bf16.xpose.msra.mxu0 %v17093_v57  ;;  %12330 = vmatprep.mubr.f32.mxu0 %v17156_v37 }
 0x3ec   : > { %14142 = vmatprep.subr.bf16.mxu0 %v17091_v47 }
 0x3ee   : > { %12331 = vmatmul.mubr.f32.gmra.mrb[78].mxu0 %v17165_v34 }
 0x3ef   : > { %12333 = vmatprep.mubr.f32.mxu0 %v17174_v54 }
 0x3f2   : > { %12334 = vmatmul.mubr.f32.gmra.mrb[80].mxu0 %v17183_v56 }
 0x3f3   : > { %12336 = vmatprep.mubr.f32.mxu0 %v17192_v18  ;;  %v4924_v18 = vld [vmem:[%s19754_s5 + $0x38] sm:$0xff] }
 0x3f6   : > { %12337 = vmatmul.mubr.f32.gmra.mrb[82].mxu0 %v4079_v7 }
 0x3f7   : > { %12347 = vmatprep.mubr.f32.mxu0 %v3970_v24  ;;  %v4946_v24 = vsel %vm20087_vm1, %v4918_v43, 0 }
 0x3fa   : > { %12348 = vmatmul.mubr.f32.vlgmr.msra.gmra.mrb[72].mxu0 %v3980_v63  ;;  %v4920_v63 = vld [vmem:[%s19754_s5 + $0x18] sm:$0xff] }
 0x3fb   : > { %14144 = vmatpush3.bf16.xpose.msra.mxu0 %v17091_v47  ;;  %12350 = vmatprep.mubr.f32.mxu0 %v3990_v33  ;;  %v4952_v20 = vsel %vm20087_vm1, %v4920_v63, 0 }
 0x3fc   : > { %14146 = vmatprep.subr.bf16.mxu0 %v17099_v16  ;;  %v17324_v52 = vand.u32 4294901760, %v4952_v20 }
 0x3fe   : > { %12351 = vmatmul.mubr.f32.gmra.mrb[74].mxu0 %v4000_v32  ;;  %20293 = vst [vmem:[#allocation26_spill] sm:$0xff] %v17324_v52 }
 0x3ff   : > { %12353 = vmatprep.mubr.f32.mxu0 %v4010_v6 }
 0x402   : > { %12354 = vmatmul.mubr.f32.gmra.mrb[76].mxu0 %v4020_v21 }
 0x403   : > { %14148 = vmatpush3.bf16.xpose.msra.mxu0 %v17099_v16  ;;  %12356 = vmatprep.mubr.f32.mxu0 %v4030_v1 }
 0x404   : > { %14150 = vmatprep.subr.bf16.mxu0 %v17085_v28 }
 0x406   : > { %12357 = vmatmul.mubr.f32.gmra.mrb[78].mxu0 %v4040_v22  ;;  %v17341_v22 = vsub.f32 %v4952_v20, %v17324_v52 }
 0x407   : > { %12359 = vmatprep.mubr.f32.mxu0 %v4050_v61 }
 0x408   : > { %20298 = vst [vmem:[#allocation4_spill] sm:$0xff] %v17341_v22  ;;  %v17363_v27 = vand.u32 4294901760, %v17341_v22 }
 0x40a   : > { %12360 = vmatmul.mubr.f32.gmra.mrb[80].mxu0 %v4060_v25  ;;  %20304 = vst [vmem:[#allocation3_spill] sm:$0xff] %v17363_v27 }
 0x40b   : > { %12362 = vmatprep.mubr.f32.mxu0 %v4070_v58 }
 0x40e   : > { %12363 = vmatmul.mubr.f32.gmra.mrb[82].mxu0 %v4080_v10 }
 0x40f   : > { %12373 = vmatprep.mubr.f32.mxu0 %v17101_v36 }
 0x412   : > { %12374 = vmatmul.mubr.f32.vlgmr.msra.gmra.mrb[72].mxu0 %v17106_v23 }
 0x413   : > { %14152 = vmatpush3.bf16.xpose.msra.mxu0 %v17085_v28  ;;  %12376 = vmatprep.mubr.f32.mxu0 %v17116_v26  ;;  %v4917_v28 = vld [vmem:[%s19754_s5] sm:$0xff] }
 0x414   : > { %14154 = vmatprep.subr.bf16.mxu0 %v17093_v57  ;;  %v4943_v2 = vsel %vm20087_vm1, %v4917_v28, 0  ;;  %v4964_v28 = vsel %vm20087_vm1, %v4924_v18, 0 }
 0x415   : > { %v17288_v47 = vand.u32 4294901760, %v4943_v2 }
 0x416   : > { %12377 = vmatmul.mubr.f32.gmra.mrb[74].mxu0 %v17124_v8 }
 0x417   : > { %12379 = vmatprep.mubr.f32.mxu0 %v17133_v59  ;;  %20286 = vst [vmem:[#allocation21_spill] sm:$0xff] %v17288_v47 }
 0x41a   : > { %12380 = vmatmul.mubr.f32.gmra.mrb[76].mxu0 %v17142_v60 }
 0x41b   : > { %14156 = vmatpush3.bf16.xpose.msra.mxu0 %v17093_v57  ;;  %12382 = vmatprep.mubr.f32.mxu0 %v17151_v11  ;;  %v17291_v57 = vsub.f32 %v4943_v2, %v17288_v47 }
 0x41d   : > { %20287 = vst [vmem:[#allocation13_spill] sm:$0xff] %v17291_v57  ;;  %v17294_v45 = vand.u32 4294901760, %v17291_v57 }
 0x41e   : > { %12383 = vmatmul.mubr.f32.gmra.mrb[78].mxu0 %v17161_v12 }
 0x41f   : > { %12385 = vmatprep.mubr.f32.mxu0 %v17170_v40  ;;  %20288 = vst [vmem:[#allocation28_spill] sm:$0xff] %v17294_v45  ;;  %v5058_v16 = vsub.f32 %v17291_v57, %v17294_v45 }
 0x422   : > { %12386 = vmatmul.mubr.f32.gmra.mrb[80].mxu0 %v17179_v30 }
 0x423   : > { %12388 = vmatprep.mubr.f32.mxu0 %v17188_v48 }
 0x426   : > { %12389 = vmatmul.mubr.f32.gmra.mrb[82].mxu0 %v17197_v38 }
 0x427   : > { %12399 = vmatprep.mubr.f32.mxu0 %v17101_v36  ;;  %v17298_v36 = vand.u32 4294901760, %v5058_v16  ;;  %v4874_v6 = vpop.xlane.xlu1 %4873 }
 0x429   : > { %20289 = vst [vmem:[#allocation29_spill] sm:$0xff] %v17298_v36  ;;  %12441 = vmatprep.mubr.f32.mxu1 %v17298_v36 }
 0x42a   : > { %12400 = vmatmul.mubr.f32.vlgmr.msra.gmra.mrb[72].mxu0 %v17106_v23  ;;  %v4919_v23 = vld [vmem:[%s19754_s5 + $0x10] sm:$0xff] }
 0x42b   : > { %12402 = vmatprep.mubr.f32.mxu0 %v17116_v26  ;;  %v4949_v55 = vsel %vm20087_vm1, %v4919_v23, 0  ;;  %v17312_v26 = vand.u32 4294901760, %v4946_v24  ;;  %v4876_v51 = vpop.xlane.xlu1 %4875 }
 0x42c   : > { %v17317_v33 = vand.u32 4294901760, %v4949_v55 }
 0x42d   : > { %20290 = vst [vmem:[#allocation20_spill] sm:$0xff] %v17312_v26  ;;  %v17322_v32 = vsub.f32 %v4946_v24, %v17312_v26 }
 0x42e   : > { %12403 = vmatmul.mubr.f32.gmra.mrb[74].mxu0 %v17124_v8  ;;  %v4870_v8 = vpop.xlane.xlu0 %4869  ;;  %20291 = vst [vmem:[#allocation39_spill] sm:$0xff] %v17317_v33 }
 0x42f   : > { %12405 = vmatprep.mubr.f32.mxu0 %v17133_v59  ;;  %v4955_v59 = vsel %vm20087_vm1, %v4921_v17, 0  ;;  %20292 = vst [vmem:[#allocation37_spill] sm:$0xff] %v17322_v32  ;;  %v17338_v15 = vand.u32 4294901760, %v17322_v32 }
 0x431   : > { %20297 = vst [vmem:[#allocation16_spill] sm:$0xff] %v17338_v15  ;;  %v5068_v5 = vsub.f32 %v17322_v32, %v17338_v15 }
 0x432   : > { %12406 = vmatmul.mubr.f32.gmra.mrb[76].mxu0 %v17142_v60  ;;  %v4922_v60 = vld [vmem:[%s19754_s5 + $0x28] sm:$0xff]  ;;  %v4872_v1 = vpop.xlane.xlu0 %4871 }
 0x433   : > { %12408 = vmatprep.mubr.f32.mxu0 %v17151_v11  ;;  %v17330_v11 = vsub.f32 %v4949_v55, %v17317_v33  ;;  %v4880_v46 = vpop.xlane.xlu1 %4879  ;;  %v17393_v23 = vand.u32 4294901760, %v5068_v5 }
 0x435   : > { %20294 = vst [vmem:[#allocation31_spill] sm:$0xff] %v17330_v11  ;;  %v17346_v62 = vand.u32 4294901760, %v17330_v11  ;;  %20310 = vst [vmem:[#allocation23_spill] sm:$0xff] %v17393_v23 }
 0x436   : > { %12409 = vmatmul.mubr.f32.gmra.mrb[78].mxu0 %v17161_v12  ;;  %v17332_v12 = vand.u32 4294901760, %v4955_v59  ;;  %v4878_v2 = vpop.xlane.xlu0 %4877 }
 0x437   : > { %12411 = vmatprep.mubr.f32.mxu0 %v17170_v40  ;;  %v4958_v40 = vsel %vm20087_vm1, %v4922_v60, 0  ;;  %20300 = vst [vmem:[#allocation34_spill] sm:$0xff] %v17346_v62  ;;  %v5078_v41 = vsub.f32 %v17330_v11, %v17346_v62  ;;  %v4926_v60 = vld [vmem:[%s19754_s5 + $0x48] sm:$0xff] }
 0x438   : > { %20295 = vst [vmem:[#allocation36_spill] sm:$0xff] %v17332_v12  ;;  %v17353_v61 = vsub.f32 %v4955_v59, %v17332_v12  ;;  %v17355_v56 = vand.u32 4294901760, %v4958_v40  ;;  %v4925_v59 = vld [vmem:[%s19754_s5 + $0x40] sm:$0xff] }
 0x439   : > { %v17404_v20 = vand.u32 4294901760, %v5078_v41 }
 0x43a   : > { %12412 = vmatmul.mubr.f32.gmra.mrb[80].mxu0 %v17179_v30  ;;  %v4923_v30 = vld [vmem:[%s19754_s5 + $0x30] sm:$0xff]  ;;  %20301 = vst [vmem:[#allocation6_spill] sm:$0xff] %v17353_v61  ;;  %20302 = vst [vmem:[#allocation8_spill] sm:$0xff] %v17355_v56  ;;  %v17377_v7 = vand.u32 4294901760, %v17353_v61  ;;  %v17380_v53 = vsub.f32 %v4958_v40, %v17355_v56 }
 0x43b   : > { %12414 = vmatprep.mubr.f32.mxu0 %v17188_v48  ;;  %v4961_v25 = vsel %vm20087_vm1, %v4923_v30, 0  ;;  %20313 = vst [vmem:[#allocation30_spill] sm:$0xff] %v17404_v20 }
 0x43c   : > { %20306 = vst [vmem:[#allocation12_spill] sm:$0xff] %v17377_v7  ;;  %20307 = vst [vmem:[#allocation18_spill] sm:$0xff] %v17380_v53  ;;  %v17384_v49 = vand.u32 4294901760, %v4961_v25 }
 0x43e   : > { %12415 = vmatmul.mubr.f32.gmra.mrb[82].mxu0 %v17197_v38  ;;  %20308 = vst [vmem:[#allocation19_spill] sm:$0xff] %v17384_v49 }
 0x4fd   : > { %v12401_v9 = vpop.f32.mrb[72].mxu0 }
 0x4fe   : > { %v4894_v21 = vmul.f32 2.0, %v12401_v9  ;;  %v4787_v37 = vpop.f32.mrb[73].mxu0 }
 0x4ff   : > { %v4893_v34 = vmul.f32 2.0, %v4787_v37  ;;  %v17414_v37 = vand.u32 4294901760, %v17380_v53 }
 0x500   : > { %v17335_v31 = vsub.f32 %v4894_v21, %v4872_v1  ;;  %v17416_v1 = vand.u32 4294901760, %v4964_v28 }
 0x501   : > { %v17343_v54 = vsub.f32 %v4893_v34, %v4870_v8  ;;  %v12404_v3 = vpop.f32.mrb[74].mxu0  ;;  %20314 = vst [vmem:[#allocation35_spill] sm:$0xff] %v17414_v37  ;;  %v4884_v34 = vpop.xlane.xlu1 %4883 }
 0x502   : > { %20296 = vst [vmem:[#allocation41_spill] sm:$0xff] %v17335_v31  ;;  %v4982_v44 = vand.u32 4294901760, %v17335_v31  ;;  %v4896_v4 = vmul.f32 2.0, %v12404_v3  ;;  %v4799_v50 = vpop.f32.mrb[75].mxu0  ;;  %20315 = vst [vmem:[#allocation46_spill] sm:$0xff] %v17416_v1 }
 0x503   : > { %20299 = vst [vmem:[#allocation33_spill] sm:$0xff] %v17343_v54  ;;  %v4979_v13 = vand.u32 4294901760, %v17343_v54  ;;  %v4895_v48 = vmul.f32 2.0, %v4799_v50 }
 0x504   : > { %v17358_v29 = vsub.f32 %v4896_v4, %v4876_v51  ;;  %v17391_v43 = vsub.f32 %v17335_v31, %v4982_v44  ;;  %v4882_v4 = vpop.xlane.xlu0 %4881 }
 0x505   : > { %v17369_v35 = vpack.c.bf16 %v4982_v44, %v4979_v13  ;;  %v17371_v42 = vsub.f32 %v4895_v48, %v4874_v6  ;;  %v12407_v38 = vpop.f32.mrb[76].mxu0  ;;  %v17402_v8 = vsub.f32 %v17343_v54, %v4979_v13  ;;  %v17423_v44 = vsub.f32 %v4961_v25, %v17384_v49 }
 0x506   : > { %20303 = vst [vmem:[#allocation10_spill] sm:$0xff] %v17358_v29  ;;  %v4988_v0 = vand.u32 4294901760, %v17358_v29  ;;  %v4898_v39 = vmul.f32 2.0, %v12407_v38  ;;  %v4811_v58 = vpop.f32.mrb[77].mxu0  ;;  %v19882_v51 = vand.u32 4294901760, %v17391_v43  ;;  %v17430_v13 = vsel %vm20087_vm1, %v4925_v59, 0  ;;  %v4888_v59 = vpop.xlane.xlu1 %4887 }
 0x507   : > { %20305 = vst [vmem:[#allocation14_spill] sm:$0xff] %v17371_v42  ;;  %v4985_v10 = vand.u32 4294901760, %v17371_v42  ;;  %v4897_v19 = vmul.f32 2.0, %v4811_v58  ;;  %14158 = vmatprep.subr.bf16.mxu1 %v17369_v35  ;;  %20316 = vst [vmem:[#allocation47_spill] sm:$0xff] %v17423_v44  ;;  %v17433_v48 = vsel %vm20087_vm1, %v4926_v60, 0  ;;  %v19890_v25 = vand.u32 4294901760, %v17402_v8 }
 0x508   : > { %v17387_v16 = vsub.f32 %v4898_v39, %v4880_v46  ;;  %14160 = vmatpush3.bf16.msra.mxu1 %v17369_v35  ;;  %v17441_v41 = vsub.f32 %v17358_v29, %v4988_v0  ;;  %v4927_v39 = vld [vmem:[%s19754_s5 + $0x50] sm:$0xff]  ;;  %v20330_v45 = vand.u32 4294901760, %v17402_v8 }
 0x509   : > { %v17397_v55 = vpack.c.bf16 %v4988_v0, %v4985_v10  ;;  %v17399_v63 = vsub.f32 %v4897_v19, %v4878_v2  ;;  %v12410_v17 = vpop.f32.mrb[78].mxu0  ;;  %v17448_v2 = vsub.f32 %v17371_v42, %v4985_v10  ;;  %v17456_v0 = vand.u32 4294901760, %v17423_v44 }
 0x50a   : > { %20309 = vst [vmem:[#allocation17_spill] sm:$0xff] %v17387_v16  ;;  %v4994_v6 = vand.u32 4294901760, %v17387_v16  ;;  %v4900_v9 = vmul.f32 2.0, %v12410_v17  ;;  %v4823_v21 = vpop.f32.mrb[79].mxu0  ;;  %v17451_v17 = vsub.f32 %v4964_v28, %v17416_v1  ;;  %v5186_v10 = vsub.f32 %v17391_v43, %v19882_v51  ;;  %v4892_v29 = vpop.xlane.xlu1 %4891 }
 0x50b   : > { %20311 = vst [vmem:[#allocation25_spill] sm:$0xff] %v17397_v55  ;;  %20312 = vst [vmem:[#allocation24_spill] sm:$0xff] %v17399_v63  ;;  %v4991_v40 = vand.u32 4294901760, %v17399_v63  ;;  %v4899_v3 = vmul.f32 2.0, %v4823_v21  ;;  %14162 = vmatprep.subr.bf16.mxu1 %v17397_v55  ;;  %v17459_v21 = vand.u32 4294901760, %v17430_v13  ;;  %v17468_v28 = vand.u32 4294901760, %v17433_v48 }
 0x50c   : > { %v17425_v50 = vsub.f32 %v4900_v9, %v4884_v34  ;;  %14164 = vmatpush3.bf16.msra.mxu1 %v17397_v55  ;;  %20320 = vst [vmem:[#allocation5_spill] sm:$0xff] %v17451_v17  ;;  %20321 = vst [vmem:[#allocation53_spill] sm:$0xff] %v17456_v0  ;;  %v4886_v34 = vpop.xlane.xlu0 %4885  ;;  %v5192_v42 = vand.u32 4294901760, %v17448_v2 }
 0x50d   : > { %v17435_v5 = vpack.c.bf16 %v4994_v6, %v4991_v40  ;;  %v17437_v18 = vsub.f32 %v4899_v3, %v4882_v4  ;;  %v12413_v38 = vpop.f32.mrb[80].mxu0  ;;  %20322 = vst [vmem:[#allocation55_spill] sm:$0xff] %v17459_v21  ;;  %20324 = vst [vmem:[#allocation9_spill] sm:$0xff] %v17468_v28  ;;  %v17471_v4 = vsel %vm20087_vm1, %v4927_v39, 0  ;;  %v17484_v39 = vsub.f32 %v17387_v16, %v4994_v6 }
 0x50e   : > { %20317 = vst [vmem:[#allocation40_spill] sm:$0xff] %v17425_v50  ;;  %v5000_v58 = vand.u32 4294901760, %v17425_v50  ;;  %v4902_v46 = vmul.f32 2.0, %v12413_v38  ;;  %v4835_v19 = vpop.f32.mrb[81].mxu0  ;;  %v17489_v54 = vsub.f32 %v17399_v63, %v4991_v40  ;;  %v5187_v6 = vand.u32 4294901760, %v5186_v10 }
 0x50f   : > { %20318 = vst [vmem:[#allocation49_spill] sm:$0xff] %v17435_v5  ;;  %20319 = vst [vmem:[#allocation52_spill] sm:$0xff] %v17437_v18  ;;  %v4997_v60 = vand.u32 4294901760, %v17437_v18  ;;  %v4901_v9 = vmul.f32 2.0, %v4835_v19  ;;  %14166 = vmatprep.subr.bf16.mxu1 %v17435_v5 }
 0x510   : > { %v17461_v3 = vsub.f32 %v4902_v46, %v4888_v59  ;;  %14168 = vmatpush3.bf16.msra.mxu1 %v17435_v5  ;;  %v5179_v46 = vsub.f32 %v17402_v8, %v19890_v25  ;;  %v5199_v59 = vand.u32 4294901760, %v17441_v41  ;;  %v17492_v25 = vsub.f32 %v17425_v50, %v5000_v58  ;;  %v4890_v31 = vpop.xlane.xlu0 %4889 }
 0x511   : > { %v17473_v38 = vpack.c.bf16 %v5000_v58, %v4997_v60  ;;  %v17475_v19 = vsub.f32 %v4901_v9, %v4886_v34  ;;  %v12416_v30 = vpop.f32.mrb[82].mxu0 }
 0x512   : > { %20323 = vst [vmem:[#allocation7_spill] sm:$0xff] %v17461_v3  ;;  %v5006_v24 = vand.u32 4294901760, %v17461_v3  ;;  %v4904_v51 = vmul.f32 2.0, %v12416_v30  ;;  %v4847_v14 = vpop.f32.mrb[83].mxu0  ;;  %v4928_v30 = vld [vmem:[%s19754_s5 + $0x58] sm:$0xff]  ;;  %v5180_v50 = vand.u32 4294901760, %v5179_v46  ;;  %v5200_v10 = vsub.f32 %v17441_v41, %v5199_v59 }
 0x513   : > { %20325 = vst [vmem:[#allocation11_spill] sm:$0xff] %v17473_v38  ;;  %20326 = vst [vmem:[#allocation2_spill] sm:$0xff] %v17475_v19  ;;  %v5003_v9 = vand.u32 4294901760, %v17475_v19  ;;  %v4903_v34 = vmul.f32 2.0, %v4847_v14  ;;  %14170 = vmatprep.subr.bf16.mxu1 %v17473_v38  ;;  %v17501_v14 = vsub.f32 %v17437_v18, %v4997_v60  ;;  %v4976_v60 = vsel %vm20087_vm1, %v4928_v30, 0 }
 0x514   : > { %v17497_v36 = vsub.f32 %v4904_v51, %v4892_v29  ;;  %14172 = vmatpush3.bf16.msra.mxu1 %v17473_v38  ;;  %v17504_v16 = vsub.f32 %v17461_v3, %v5006_v24  ;;  %v5193_v51 = vsub.f32 %v17448_v2, %v5192_v42  ;;  %v5227_v46 = vand.u32 4294901760, %v17492_v25 }
 0x515   : > { %v17506_v40 = vpack.c.bf16 %v5006_v24, %v5003_v9  ;;  %v17508_v58 = vsub.f32 %v4903_v34, %v4890_v31  ;;  %v17511_v63 = vsub.f32 %v17475_v19, %v5003_v9  ;;  %v5206_v24 = vand.u32 4294901760, %v17489_v54 }
 0x516   : > { %20327 = vst [vmem:[#allocation15_spill] sm:$0xff] %v17497_v36  ;;  %v5012_v29 = vand.u32 4294901760, %v17497_v36  ;;  %v5213_v31 = vand.u32 4294901760, %v17484_v39  ;;  %v5220_v9 = vand.u32 4294901760, %v17501_v14  ;;  %v5241_v19 = vand.u32 4294901760, %v17504_v16 }
 0x517   : > { %20328 = vst [vmem:[#allocation22_spill] sm:$0xff] %v17506_v40  ;;  %20329 = vst [vmem:[#allocation27_spill] sm:$0xff] %v17508_v58  ;;  %v5009_v18 = vand.u32 4294901760, %v17508_v58  ;;  %14174 = vmatprep.subr.bf16.mxu1 %v17506_v40  ;;  %v5234_v34 = vand.u32 4294901760, %v17511_v63  ;;  %v14181_v62 = vpack.c.bf16 %v5187_v6, %v5180_v50  ;;  %v20331_v38 = vand.u32 4294901760, %v17391_v43 }
 0x518   : > { %14176 = vmatpush3.bf16.msra.mxu1 %v17506_v40  ;;  %v17527_v30 = vsub.f32 %v17497_v36, %v5012_v29  ;;  %v5194_v5 = vand.u32 4294901760, %v5193_v51  ;;  %v5201_v55 = vand.u32 4294901760, %v5200_v10  ;;  %v17541_v32 = vpack.c.bf16 %v5199_v59, %v5192_v42 }
 0x519   : > { %v17529_v3 = vpack.c.bf16 %v5012_v29, %v5009_v18  ;;  %v17532_v15 = vsub.f32 %v17508_v58, %v5009_v18  ;;  %v17538_v40 = vpack.c.bf16 %v20331_v38, %v20330_v45  ;;  %v5207_v29 = vsub.f32 %v17489_v54, %v5206_v24 }
 0x51a   : > { %v5255_v11 = vand.u32 4294901760, %v17527_v30  ;;  %v5214_v50 = vsub.f32 %v17484_v39, %v5213_v31  ;;  %v17547_v6 = vpack.c.bf16 %v5213_v31, %v5206_v24  ;;  %v17552_v45 = vsub.f32 %v17430_v13, %v17459_v21 }
 0x51b   : > { %14178 = vmatprep.subr.bf16.mxu1 %v17529_v3  ;;  %v5248_v18 = vand.u32 4294901760, %v17532_v15  ;;  %v17555_v38 = vand.u32 4294901760, %v17471_v4  ;;  %v17557_v42 = vpack.c.bf16 %v5227_v46, %v5220_v9  ;;  %v17559_v59 = vpack.c.bf16 %v5241_v19, %v5234_v34 }
 0x51c   : > { %20332 = vst [vmem:[#allocation32_spill] sm:$0xff] %v17547_v6  ;;  %14180 = vmatpush3.bf16.msra.mxu1 %v17529_v3  ;;  %20333 = vst [vmem:[#allocation38_spill] sm:$0xff] %v17552_v45  ;;  %v20337_v51 = vsub.f32 %v17341_v22, %v17363_v27  ;;  %v17567_v24 = vand.u32 4294901760, %v17451_v17  ;;  %v5221_v13 = vsub.f32 %v17501_v14, %v5220_v9  ;;  %v5215_v6 = vand.u32 4294901760, %v5214_v50 }
 0x51d   : > { %20334 = vst [vmem:[#allocation43_spill] sm:$0xff] %v17555_v38  ;;  %20335 = vst [vmem:[#allocation42_spill] sm:$0xff] %v17557_v42  ;;  %14182 = vmatprep.subr.bf16.mxu1 %v14181_v62  ;;  %v17569_v31 = vpack.c.bf16 %v5255_v11, %v5248_v18  ;;  %v5228_v58 = vsub.f32 %v17492_v25, %v5227_v46  ;;  %v17575_v36 = vsub.f32 %v17433_v48, %v17468_v28 }
 0x51e   : > { %20336 = vst [vmem:[#allocation44_spill] sm:$0xff] %v17559_v59  ;;  %v17564_v10 = vand.u32 4294901760, %v20337_v51  ;;  %20339 = vst [vmem:[#allocation48_spill] sm:$0xff] %v17567_v24  ;;  %v17577_v59 = vand.u32 4294901760, %v4976_v60  ;;  %v14185_v42 = vpack.c.bf16 %v5201_v55, %v5194_v5  ;;  %v5208_v51 = vand.u32 4294901760, %v5207_v29 }
 0x51f   : > { %20340 = vst [vmem:[#allocation50_spill] sm:$0xff] %v17569_v31  ;;  %20341 = vst [vmem:[#allocation51_spill] sm:$0xff] %v17575_v36  ;;  %12442 = vmatmul.mubr.f32.vlgmr.msra.gmra.mrb[120].mxu1 %v17393_v23  ;;  %v5108_v27 = vsub.f32 %v17380_v53, %v17414_v37  ;;  %v20343_v46 = vsub.f32 %v17353_v61, %v17377_v7  ;;  %v5118_v48 = vsub.f32 %v17423_v44, %v17456_v0 }
 0x520   : > { %20338 = vst [vmem:[#allocation45_spill] sm:$0xff] %v17564_v10  ;;  %20342 = vst [vmem:[#allocation54_spill] sm:$0xff] %v17577_v59  ;;  %14184 = vmatpush3.bf16.msra.mxu1 %v14181_v62  ;;  %12444 = vmatprep.mubr.f32.mxu1 %v17404_v20  ;;  %v17591_v31 = vand.u32 4294901760, %v17552_v45  ;;  %v17595_v55 = vsub.f32 %v17471_v4, %v17555_v38  ;;  %v5128_v62 = vsub.f32 %v17451_v17, %v17567_v24 }
 0x521   : > { %v17586_v9 = vand.u32 4294901760, %v20343_v46  ;;  %14186 = vmatprep.subr.bf16.mxu1 %v14185_v42  ;;  %v5222_v5 = vand.u32 4294901760, %v5221_v13  ;;  %v5229_v29 = vand.u32 4294901760, %v5228_v58  ;;  %v17600_v50 = vand.u32 4294901760, %v17575_v36 }
 0x522   : > { %20345 = vst [vmem:[#allocation57_spill] sm:$0xff] %v17591_v31  ;;  %20346 = vst [vmem:[#allocation58_spill] sm:$0xff] %v17595_v55  ;;  %v17603_v46 = vsub.f32 %v4976_v60, %v17577_v59  ;;  %v14189_v20 = vpack.c.bf16 %v5215_v6, %v5208_v51  ;;  %v17606_v23 = vand.u32 4294901760, %v5108_v27  ;;  %v5235_v4 = vsub.f32 %v17511_v63, %v5234_v34 }
 0x523   : > { %20344 = vst [vmem:[#allocation56_spill] sm:$0xff] %v17586_v9  ;;  %20347 = vst [vmem:[#allocation59_spill] sm:$0xff] %v17600_v50  ;;  %12445 = vmatmul.mubr.f32.gmra.mrb[122].mxu1 %v17564_v10  ;;  %v5242_v0 = vsub.f32 %v17504_v16, %v5241_v19  ;;  %v17611_v13 = vand.u32 4294901760, %v5118_v48  ;;  %v5138_v58 = vsub.f32 %v17552_v45, %v17591_v31  ;;  %v17616_v60 = vand.u32 4294901760, %v17595_v55 }
 0x524   : > { %20348 = vst [vmem:[#allocation60_spill] sm:$0xff] %v17603_v46  ;;  %20349 = vst [vmem:[#allocation61_spill] sm:$0xff] %v17606_v23  ;;  %14188 = vmatpush3.bf16.msra.mxu1 %v14185_v42  ;;  %12447 = vmatprep.mubr.f32.mxu1 %v17586_v9  ;;  %v14193_v10 = vpack.c.bf16 %v5229_v29, %v5222_v5  ;;  %v17618_v6 = vand.u32 4294901760, %v5128_v62  ;;  %v5148_v27 = vsub.f32 %v17575_v36, %v17600_v50 }
 0x525   : > { %20350 = vst [vmem:[#allocation62_spill] sm:$0xff] %v17611_v13  ;;  %20351 = vst [vmem:[#allocation63_spill] sm:$0xff] %v17616_v60  ;;  %14190 = vmatprep.subr.bf16.mxu1 %v14189_v20  ;;  %v17623_v19 = vand.u32 4294901760, %v17603_v46  ;;  %v5236_v34 = vand.u32 4294901760, %v5235_v4  ;;  %v5243_v42 = vand.u32 4294901760, %v5242_v0  ;;  %v5249_v51 = vsub.f32 %v17532_v15, %v5248_v18 }
 0x526   : > { %20352 = vst [vmem:[#allocation64_spill] sm:$0xff] %v17618_v6  ;;  %v5256_v48 = vsub.f32 %v17527_v30, %v5255_v11  ;;  %v17629_v5 = vand.u32 4294901760, %v5138_v58  ;;  %v5158_v62 = vsub.f32 %v17595_v55, %v17616_v60  ;;  %v17633_v29 = vand.u32 4294901760, %v5148_v27 }
 0x527   : > { %20353 = vst [vmem:[#allocation65_spill] sm:$0xff] %v17623_v19  ;;  %12448 = vmatmul.mubr.f32.gmra.mrb[124].mxu1 %v17606_v23  ;;  %v14197_v23 = vpack.c.bf16 %v5243_v42, %v5236_v34  ;;  %v5250_v4 = vand.u32 4294901760, %v5249_v51  ;;  %v5168_v18 = vsub.f32 %v17603_v46, %v17623_v19  ;;  %v14205_v27 = vpack.c.bf16 %v17391_v43, %v17402_v8  ;;  %v20367_v34 = vld [vmem:[#allocation3_spill] sm:$0xff]  ;;  %v20368_v42 = vld [vmem:[#allocation32_spill] sm:$0xff]  ;;  %v20369_v51 = vld [vmem:[#allocation53_spill] sm:$0xff] }
 0x528   : > { %14192 = vmatpush3.bf16.msra.mxu1 %v14189_v20  ;;  %12450 = vmatprep.mubr.f32.mxu1 %v17611_v13  ;;  %20354 = vst [vmem:[#allocation66_spill] sm:$0xff] %v17629_v5  ;;  %20355 = vst [vmem:[#allocation67_spill] sm:$0xff] %v17633_v29  ;;  %v5257_v0 = vand.u32 4294901760, %v5256_v48  ;;  %v17639_v11 = vand.u32 4294901760, %v5158_v62  ;;  %v14217_v43 = vpack.c.bf16 %v17492_v25, %v17501_v14  ;;  %v20360_v25 = vld [vmem:[#allocation25_spill] sm:$0xff]  ;;  %v20365_v14 = vld [vmem:[#allocation16_spill] sm:$0xff] }
 0x529   : > { %14194 = vmatprep.subr.bf16.mxu1 %v14193_v10  ;;  %v17642_v58 = vand.u32 4294901760, %v5168_v18  ;;  %v14221_v8 = vpack.c.bf16 %v17504_v16, %v17511_v63  ;;  %v20358_v16 = vld [vmem:[#allocation37_spill] sm:$0xff]  ;;  %v20359_v63 = vld [vmem:[#allocation31_spill] sm:$0xff]  ;;  %v20370_v48 = vld [vmem:[#allocation42_spill] sm:$0xff] }
 0x52a   : > { %20356 = vst [vmem:[#allocation68_spill] sm:$0xff] %v17639_v11  ;;  %v14201_v20 = vpack.c.bf16 %v5257_v0, %v5250_v4 }
 0x52b   : > { %12451 = vmatmul.mubr.f32.gmra.mrb[126].mxu1 %v17618_v6  ;;  %20357 = vst [vmem:[#allocation69_spill] sm:$0xff] %v17642_v58 }
 0x52c   : > { %14196 = vmatpush3.bf16.msra.mxu1 %v14193_v10  ;;  %12453 = vmatprep.mubr.f32.mxu1 %v17629_v5  ;;  %v14209_v10 = vpack.c.bf16 %v17441_v41, %v17448_v2  ;;  %v20362_v41 = vld [vmem:[#allocation11_spill] sm:$0xff]  ;;  %v20363_v2 = vld [vmem:[#allocation22_spill] sm:$0xff] }
 0x52d   : > { %14198 = vmatprep.subr.bf16.mxu1 %v14197_v23  ;;  %v20415_v5 = vld [vmem:[#allocation7_spill] sm:$0xff] }
 0x52f   : > { %12454 = vmatmul.mubr.f32.gmra.mrb[128].mxu1 %v17633_v29 }
 0x530   : > { %14200 = vmatpush3.bf16.msra.mxu1 %v14197_v23  ;;  %12456 = vmatprep.mubr.f32.mxu1 %v17639_v11  ;;  %v14213_v23 = vpack.c.bf16 %v17484_v39, %v17489_v54  ;;  %v14225_v54 = vpack.c.bf16 %v17527_v30, %v17532_v15  ;;  %v20361_v15 = vld [vmem:[#allocation49_spill] sm:$0xff]  ;;  %v20364_v39 = vld [vmem:[#allocation28_spill] sm:$0xff]  ;;  %v20366_v30 = vld [vmem:[#allocation34_spill] sm:$0xff] }
 0x531   : > { %14202 = vmatprep.subr.bf16.mxu1 %v14201_v20 }
 0x533   : > { %12457 = vmatmul.mubr.f32.gmra.mrb[130].mxu1 %v17642_v58 }
 0x534   : > { %14204 = vmatpush3.bf16.msra.mxu1 %v14201_v20  ;;  %12483 = vmatprep.mubr.f32.mxu1 %v17288_v47 }
 0x535   : > { %14206 = vmatprep.subr.bf16.mxu1 %v14205_v27 }
 0x537   : > { %12484 = vmatmul.mubr.f32.vlgmr.msra.gmra.mrb[120].mxu1 %v17312_v26 }
 0x538   : > { %14208 = vmatpush3.bf16.msra.mxu1 %v14205_v27  ;;  %12486 = vmatprep.mubr.f32.mxu1 %v17317_v33 }
 0x539   : > { %14210 = vmatprep.subr.bf16.mxu1 %v14209_v10 }
 0x53b   : > { %12487 = vmatmul.mubr.f32.gmra.mrb[122].mxu1 %v17324_v52 }
 0x53c   : > { %14212 = vmatpush3.bf16.msra.mxu1 %v14209_v10  ;;  %12489 = vmatprep.mubr.f32.mxu1 %v17332_v12  ;;  %v4930_v10 = vld [vmem:[%s19755_s6 + $0x8] sm:$0xff] }
 0x53d   : > { %14214 = vmatprep.subr.bf16.mxu1 %v14213_v23 }
 0x53f   : > { %12490 = vmatmul.mubr.f32.gmra.mrb[124].mxu1 %v17355_v56 }
 0x540   : > { %14216 = vmatpush3.bf16.msra.mxu1 %v14213_v23  ;;  %12492 = vmatprep.mubr.f32.mxu1 %v17384_v49  ;;  %v4931_v23 = vld [vmem:[%s19755_s6 + $0x10] sm:$0xff] }
 0x541   : > { %14218 = vmatprep.subr.bf16.mxu1 %v14217_v43 }
 0x543   : > { %12493 = vmatmul.mubr.f32.gmra.mrb[126].mxu1 %v17416_v1 }
 0x544   : > { %14220 = vmatpush3.bf16.msra.mxu1 %v14217_v43  ;;  %12495 = vmatprep.mubr.f32.mxu1 %v17459_v21  ;;  %v6056_v43 = vsel %vm20087_vm1, %v4930_v10, 0 }
 0x545   : > { %14222 = vmatprep.subr.bf16.mxu1 %v14221_v8 }
 0x547   : > { %12496 = vmatmul.mubr.f32.gmra.mrb[128].mxu1 %v17468_v28 }
 0x548   : > { %14224 = vmatpush3.bf16.msra.mxu1 %v14221_v8  ;;  %12498 = vmatprep.mubr.f32.mxu1 %v17555_v38  ;;  %v4932_v8 = vld [vmem:[%s19755_s6 + $0x18] sm:$0xff] }
 0x549   : > { %14226 = vmatprep.subr.bf16.mxu1 %v14225_v54 }
 0x54b   : > { %12499 = vmatmul.mubr.f32.gmra.mrb[130].mxu1 %v17577_v59 }
 0x54c   : > { %14228 = vmatpush3.bf16.msra.mxu1 %v14225_v54  ;;  %12525 = vmatprep.mubr.f32.mxu1 %v17291_v57  ;;  %v6059_v54 = vsel %vm20087_vm1, %v4931_v23, 0 }
 0x54d   : > { %14230 = vmatprep.subr.bf16.mxu1 %v17369_v35 }
 0x54f   : > { %12526 = vmatmul.mubr.f32.vlgmr.msra.gmra.mrb[120].mxu1 %v20358_v16 }
 0x550   : > { %14232 = vmatpush3.bf16.msra.mxu1 %v17369_v35  ;;  %12528 = vmatprep.mubr.f32.mxu1 %v20359_v63  ;;  %v4936_v63 = vld [vmem:[%s19755_s6 + $0x38] sm:$0xff] }
 0x551   : > { %14234 = vmatprep.subr.bf16.mxu1 %v20360_v25 }
 0x553   : > { %12529 = vmatmul.mubr.f32.gmra.mrb[122].mxu1 %v17341_v22 }
 0x554   : > { %14236 = vmatpush3.bf16.msra.mxu1 %v20360_v25  ;;  %12531 = vmatprep.mubr.f32.mxu1 %v17353_v61 }
 0x555   : > { %14238 = vmatprep.subr.bf16.mxu1 %v20361_v15 }
 0x557   : > { %12532 = vmatmul.mubr.f32.gmra.mrb[124].mxu1 %v17380_v53 }
 0x558   : > { %14240 = vmatpush3.bf16.msra.mxu1 %v20361_v15  ;;  %12534 = vmatprep.mubr.f32.mxu1 %v17423_v44 }
 0x559   : > { %14242 = vmatprep.subr.bf16.mxu1 %v20362_v41 }
 0x55b   : > { %12535 = vmatmul.mubr.f32.gmra.mrb[126].mxu1 %v17451_v17  ;;  %v4935_v17 = vld [vmem:[%s19755_s6 + $0x30] sm:$0xff] }
 0x55c   : > { %14244 = vmatpush3.bf16.msra.mxu1 %v20362_v41  ;;  %12537 = vmatprep.mubr.f32.mxu1 %v17552_v45 }
 0x55d   : > { %14246 = vmatprep.subr.bf16.mxu1 %v20363_v2 }
 0x55f   : > { %12538 = vmatmul.mubr.f32.gmra.mrb[128].mxu1 %v17575_v36 }
 0x560   : > { %14248 = vmatpush3.bf16.msra.mxu1 %v20363_v2  ;;  %12540 = vmatprep.mubr.f32.mxu1 %v17595_v55 }
 0x561   : > { %14250 = vmatprep.subr.bf16.mxu1 %v17529_v3 }
 0x563   : > { %12541 = vmatmul.mubr.f32.gmra.mrb[130].mxu1 %v17603_v46 }
 0x564   : > { %14252 = vmatpush3.bf16.msra.mxu1 %v17529_v3  ;;  %12567 = vmatprep.mubr.f32.mxu1 %v20364_v39 }
 0x565   : > { %14254 = vmatprep.subr.bf16.mxu1 %v17538_v40 }
 0x567   : > { %12568 = vmatmul.mubr.f32.vlgmr.msra.gmra.mrb[120].mxu1 %v20365_v14 }
 0x568   : > { %14256 = vmatpush3.bf16.msra.mxu1 %v17538_v40  ;;  %12570 = vmatprep.mubr.f32.mxu1 %v20366_v30  ;;  %v20371_v40 = vld [vmem:[#allocation44_spill] sm:$0xff] }
 0x569   : > { %14258 = vmatprep.subr.bf16.mxu1 %v17541_v32 }
 0x56b   : > { %12571 = vmatmul.mubr.f32.gmra.mrb[122].mxu1 %v20367_v34 }
 0x56c   : > { %14260 = vmatpush3.bf16.msra.mxu1 %v17541_v32  ;;  %12573 = vmatprep.mubr.f32.mxu1 %v17377_v7  ;;  %v20372_v32 = vld [vmem:[#allocation50_spill] sm:$0xff] }
 0x56d   : > { %14262 = vmatprep.subr.bf16.mxu1 %v20368_v42  ;;  %v20391_v7 = vld [vmem:[#allocation14_spill] sm:$0xff] }
 0x56f   : > { %12574 = vmatmul.mubr.f32.gmra.mrb[124].mxu1 %v17414_v37 }
 0x570   : > { %14264 = vmatpush3.bf16.msra.mxu1 %v20368_v42  ;;  %12576 = vmatprep.mubr.f32.mxu1 %v20369_v51  ;;  %v20380_v42 = vld [vmem:[#allocation41_spill] sm:$0xff] }
 0x571   : > { %14266 = vmatprep.subr.bf16.mxu1 %v20370_v48 }
 0x573   : > { %12577 = vmatmul.mubr.f32.gmra.mrb[126].mxu1 %v17567_v24 }
 0x574   : > { %14268 = vmatpush3.bf16.msra.mxu1 %v20370_v48  ;;  %12579 = vmatprep.mubr.f32.mxu1 %v17591_v31 }
 0x575   : > { %14270 = vmatprep.subr.bf16.mxu1 %v20371_v40 }
 0x577   : > { %12580 = vmatmul.mubr.f32.gmra.mrb[128].mxu1 %v17600_v50  ;;  %v20387_v50 = vld [vmem:[#allocation10_spill] sm:$0xff] }
 0x578   : > { %14272 = vmatpush3.bf16.msra.mxu1 %v20371_v40  ;;  %12582 = vmatprep.mubr.f32.mxu1 %v17616_v60 }
 0x579   : > { %14274 = vmatprep.subr.bf16.mxu1 %v20372_v32 }
 0x57b   : > { %12583 = vmatmul.mubr.f32.gmra.mrb[130].mxu1 %v17623_v19 }
 0x57c   : > { %14276 = vmatpush3.bf16.msra.mxu1 %v20372_v32  ;;  %12609 = vmatprep.mubr.f32.mxu1 %v17288_v47 }
 0x57d   : > { %14278 = vmatprep.subr.bf16.mxu1 %v17369_v35 }
 0x57f   : > { %12610 = vmatmul.mubr.f32.vlgmr.msra.gmra.mrb[120].mxu1 %v17312_v26 }
 0x580   : > { %14280 = vmatpush3.bf16.msra.mxu1 %v17369_v35  ;;  %12612 = vmatprep.mubr.f32.mxu1 %v17317_v33  ;;  %v20373_v35 = vld [vmem:[#allocation29_spill] sm:$0xff] }
 0x581   : > { %14282 = vmatprep.subr.bf16.mxu1 %v20360_v25 }
 0x583   : > { %12613 = vmatmul.mubr.f32.gmra.mrb[122].mxu1 %v17324_v52 }
 0x584   : > { %14284 = vmatpush3.bf16.msra.mxu1 %v20360_v25  ;;  %12615 = vmatprep.mubr.f32.mxu1 %v17332_v12  ;;  %v17783_v25 = vand.u32 4294901760, %v6056_v43 }
 0x585   : > { %14286 = vmatprep.subr.bf16.mxu1 %v20361_v15 }
 0x586   : > { %20378 = vst [vmem:[#allocation32_spill] sm:$0xff] %v17783_v25  ;;  %v17792_v32 = vsub.f32 %v6056_v43, %v17783_v25 }
 0x587   : > { %12616 = vmatmul.mubr.f32.gmra.mrb[124].mxu1 %v17355_v56 }
 0x588   : > { %14288 = vmatpush3.bf16.msra.mxu1 %v20361_v15  ;;  %12618 = vmatprep.mubr.f32.mxu1 %v17384_v49  ;;  %v6062_v15 = vsel %vm20087_vm1, %v4932_v8, 0  ;;  %20382 = vst [vmem:[#allocation50_spill] sm:$0xff] %v17792_v32  ;;  %v4934_v8 = vld [vmem:[%s19755_s6 + $0x28] sm:$0xff]  ;;  %v17818_v24 = vand.u32 4294901760, %v17792_v32 }
 0x589   : > { %14290 = vmatprep.subr.bf16.mxu1 %v20362_v41  ;;  %v6068_v34 = vsel %vm20087_vm1, %v4934_v8, 0  ;;  %v20395_v8 = vld [vmem:[#allocation17_spill] sm:$0xff] }
 0x58a   : > { %20389 = vst [vmem:[#allocation73_spill] sm:$0xff] %v17818_v24  ;;  %v6178_v36 = vsub.f32 %v17792_v32, %v17818_v24  ;;  %v17865_v22 = vand.u32 4294901760, %v6068_v34 }
 0x58b   : > { %12619 = vmatmul.mubr.f32.gmra.mrb[126].mxu1 %v17416_v1 }
 0x58c   : > { %14292 = vmatpush3.bf16.msra.mxu1 %v20362_v41  ;;  %12621 = vmatprep.mubr.f32.mxu1 %v17459_v21  ;;  %v17786_v41 = vand.u32 4294901760, %v6059_v54  ;;  %20400 = vst [vmem:[#allocation81_spill] sm:$0xff] %v17865_v22 }
 0x58d   : > { %14294 = vmatprep.subr.bf16.mxu1 %v20363_v2 }
 0x58e   : > { %20379 = vst [vmem:[#allocation42_spill] sm:$0xff] %v17786_v41  ;;  %v17804_v23 = vsub.f32 %v6059_v54, %v17786_v41 }
 0x58f   : > { %12622 = vmatmul.mubr.f32.gmra.mrb[128].mxu1 %v17468_v28 }
 0x590   : > { %14296 = vmatpush3.bf16.msra.mxu1 %v20363_v2  ;;  %12624 = vmatprep.mubr.f32.mxu1 %v17555_v38  ;;  %20386 = vst [vmem:[#allocation71_spill] sm:$0xff] %v17804_v23  ;;  %v17835_v14 = vand.u32 4294901760, %v17804_v23 }
 0x591   : > { %14298 = vmatprep.subr.bf16.mxu1 %v17529_v3 }
 0x592   : > { %20393 = vst [vmem:[#allocation76_spill] sm:$0xff] %v17835_v14  ;;  %v6188_v57 = vsub.f32 %v17804_v23, %v17835_v14 }
 0x593   : > { %12625 = vmatmul.mubr.f32.gmra.mrb[130].mxu1 %v17577_v59 }
 0x594   : > { %14300 = vmatpush3.bf16.msra.mxu1 %v17529_v3  ;;  %12651 = vmatprep.mubr.f32.mxu1 %v17288_v47  ;;  %v4929_v3 = vld [vmem:[%s19755_s6] sm:$0xff]  ;;  %v20407_v47 = vld [vmem:[#allocation52_spill] sm:$0xff]  ;;  %v17904_v11 = vand.u32 4294901760, %v6188_v57 }
 0x595   : > { %v6053_v62 = vsel %vm20087_vm1, %v4929_v3, 0  ;;  %v4933_v3 = vld [vmem:[%s19755_s6 + $0x20] sm:$0xff] }
 0x596   : > { %v17759_v4 = vand.u32 4294901760, %v6053_v62  ;;  %v6065_v19 = vsel %vm20087_vm1, %v4933_v3, 0  ;;  %20409 = vst [vmem:[#allocation88_spill] sm:$0xff] %v17904_v11 }
 0x597   : > { %12652 = vmatmul.mubr.f32.vlgmr.msra.gmra.mrb[120].mxu1 %v17312_v26  ;;  %v17837_v39 = vand.u32 4294901760, %v6065_v19 }
 0x598   : > { %12654 = vmatprep.mubr.f32.mxu1 %v17317_v33  ;;  %20374 = vst [vmem:[#allocation25_spill] sm:$0xff] %v17759_v4  ;;  %v17762_v0 = vsub.f32 %v6053_v62, %v17759_v4  ;;  %v20384_v62 = vld [vmem:[#allocation33_spill] sm:$0xff] }
 0x599   : > { %20394 = vst [vmem:[#allocation77_spill] sm:$0xff] %v17837_v39 }
 0x59a   : > { %20375 = vst [vmem:[#allocation49_spill] sm:$0xff] %v17762_v0  ;;  %v17765_v18 = vand.u32 4294901760, %v17762_v0 }
 0x59b   : > { %12655 = vmatmul.mubr.f32.gmra.mrb[122].mxu1 %v17324_v52  ;;  %v6074_v52 = vsel %vm20087_vm1, %v4936_v63, 0 }
 0x59c   : > { %12657 = vmatprep.mubr.f32.mxu1 %v17332_v12  ;;  %20376 = vst [vmem:[#allocation11_spill] sm:$0xff] %v17765_v18  ;;  %v6168_v20 = vsub.f32 %v17762_v0, %v17765_v18  ;;  %v17890_v12 = vand.u32 4294901760, %v6178_v36  ;;  %v17907_v36 = vsub.f32 %v6068_v34, %v17865_v22 }
 0x59e   : > { %v17769_v27 = vand.u32 4294901760, %v6168_v20  ;;  %20405 = vst [vmem:[#allocation85_spill] sm:$0xff] %v17890_v12  ;;  %20410 = vst [vmem:[#allocation89_spill] sm:$0xff] %v17907_v36 }
 0x59f   : > { %12658 = vmatmul.mubr.f32.gmra.mrb[124].mxu1 %v17355_v56 }
 0x5a0   : > { %12660 = vmatprep.mubr.f32.mxu1 %v17384_v49  ;;  %20377 = vst [vmem:[#allocation22_spill] sm:$0xff] %v17769_v27  ;;  %12693 = vmatprep.mubr.f32.mxu0 %v17769_v27  ;;  %v20403_v49 = vld [vmem:[#allocation40_spill] sm:$0xff] }
 0x5a3   : > { %12661 = vmatmul.mubr.f32.gmra.mrb[126].mxu1 %v17416_v1 }
 0x5a4   : > { %12663 = vmatprep.mubr.f32.mxu1 %v17459_v21  ;;  %v6071_v21 = vsel %vm20087_vm1, %v4935_v17, 0 }
 0x5a5   : > { %v17909_v29 = vand.u32 4294901760, %v6071_v21 }
 0x5a7   : > { %12664 = vmatmul.mubr.f32.gmra.mrb[128].mxu1 %v17468_v28  ;;  %20411 = vst [vmem:[#allocation90_spill] sm:$0xff] %v17909_v29 }
 0x5a8   : > { %12666 = vmatprep.mubr.f32.mxu1 %v17555_v38 }
 0x5ab   : > { %12667 = vmatmul.mubr.f32.gmra.mrb[130].mxu1 %v17577_v59 }
 0x5ac   : > { %12945 = vmatprep.mubr.f32.mxu1 %v20373_v35  ;;  %v17794_v35 = vand.u32 4294901760, %v6062_v15 }
 0x5ae   : > { %20383 = vst [vmem:[#allocation29_spill] sm:$0xff] %v17794_v35  ;;  %v17821_v54 = vsub.f32 %v6062_v15, %v17794_v35 }
 0x5b0   : > { %20390 = vst [vmem:[#allocation74_spill] sm:$0xff] %v17821_v54  ;;  %v17852_v45 = vand.u32 4294901760, %v17821_v54 }
 0x5b2   : > { %20397 = vst [vmem:[#allocation79_spill] sm:$0xff] %v17852_v45 }
 0x66a   : > { %v12653_v2 = vpop.f32.mrb[120].mxu1 }
 0x66b   : > { %v17789_v48 = vmax.f32 %v20380_v42, %v12653_v2  ;;  %v5970_v40 = vpop.f32.mrb[121].mxu1 }
 0x66c   : > { %v17800_v20 = vmax.f32 %v20384_v62, %v5970_v40 }
 0x66d   : > { %20381 = vst [vmem:[#allocation44_spill] sm:$0xff] %v17789_v48  ;;  %v6092_v10 = vand.u32 4294901760, %v17789_v48 }
 0x66e   : > { %20385 = vst [vmem:[#allocation70_spill] sm:$0xff] %v17800_v20  ;;  %v6089_v43 = vand.u32 4294901760, %v17800_v20  ;;  %v12656_v2 = vpop.f32.mrb[122].mxu1 }
 0x66f   : > { %v17812_v60 = vsub.f32 %v17789_v48, %v6092_v10  ;;  %v17815_v40 = vmax.f32 %v20387_v50, %v12656_v2  ;;  %v5982_v31 = vpop.f32.mrb[123].mxu1  ;;  %v20426_v48 = vld [vmem:[#allocation27_spill] sm:$0xff] }
 0x670   : > { %v17823_v51 = vpack.c.bf16 %v6092_v10, %v6089_v43  ;;  %v17826_v37 = vsub.f32 %v17800_v20, %v6089_v43  ;;  %v17829_v3 = vmax.f32 %v20391_v7, %v5982_v31  ;;  %v17947_v7 = vand.u32 4294901760, %v17907_v36 }
 0x671   : > { %20388 = vst [vmem:[#allocation72_spill] sm:$0xff] %v17815_v40  ;;  %v6098_v2 = vand.u32 4294901760, %v17815_v40  ;;  %v6295_v30 = vand.u32 4294901760, %v17812_v60 }
 0x672   : > { %20392 = vst [vmem:[#allocation75_spill] sm:$0xff] %v17829_v3  ;;  %v6095_v15 = vand.u32 4294901760, %v17829_v3  ;;  %v12659_v10 = vpop.f32.mrb[124].mxu1  ;;  %14302 = vmatprep.subr.bf16.mxu0 %v17823_v51  ;;  %v6288_v43 = vand.u32 4294901760, %v17826_v37  ;;  %20420 = vst [vmem:[#allocation97_spill] sm:$0xff] %v17947_v7 }
 0x673   : > { %v17843_v31 = vsub.f32 %v17815_v40, %v6098_v2  ;;  %v17846_v46 = vmax.f32 %v20395_v8, %v12659_v10  ;;  %v5994_v55 = vpop.f32.mrb[125].mxu1  ;;  %14304 = vmatpush3.bf16.msra.mxu0 %v17823_v51  ;;  %v20398_v10 = vld [vmem:[#allocation24_spill] sm:$0xff] }
 0x674   : > { %v17857_v44 = vpack.c.bf16 %v6098_v2, %v6095_v15  ;;  %v17860_v53 = vsub.f32 %v17829_v3, %v6095_v15  ;;  %v17863_v61 = vmax.f32 %v20398_v10, %v5994_v55  ;;  %v17874_v2 = vsub.f32 %v6065_v19, %v17837_v39 }
 0x675   : > { %20396 = vst [vmem:[#allocation78_spill] sm:$0xff] %v17846_v46  ;;  %v6104_v16 = vand.u32 4294901760, %v17846_v46  ;;  %v17876_v59 = vpack.c.bf16 %v6295_v30, %v6288_v43  ;;  %v6309_v28 = vand.u32 4294901760, %v17843_v31 }
 0x676   : > { %20399 = vst [vmem:[#allocation80_spill] sm:$0xff] %v17863_v61  ;;  %20401 = vst [vmem:[#allocation82_spill] sm:$0xff] %v17874_v2  ;;  %v6101_v15 = vand.u32 4294901760, %v17863_v61  ;;  %v12662_v55 = vpop.f32.mrb[126].mxu1  ;;  %14306 = vmatprep.subr.bf16.mxu0 %v17857_v44  ;;  %v6302_v38 = vand.u32 4294901760, %v17860_v53 }
 0x677   : > { %20402 = vst [vmem:[#allocation83_spill] sm:$0xff] %v17876_v59  ;;  %v17884_v1 = vsub.f32 %v17846_v46, %v6104_v16  ;;  %v17887_v56 = vmax.f32 %v20403_v49, %v12662_v55  ;;  %v6006_v19 = vpop.f32.mrb[127].mxu1  ;;  %14308 = vmatpush3.bf16.msra.mxu0 %v17857_v44  ;;  %v6289_v46 = vsub.f32 %v17826_v37, %v6288_v43  ;;  %v20422_v43 = vld [vmem:[#allocation15_spill] sm:$0xff] }
 0x678   : > { %v17893_v33 = vpack.c.bf16 %v6104_v16, %v6101_v15  ;;  %v17896_v26 = vsub.f32 %v17863_v61, %v6101_v15  ;;  %v17899_v17 = vmax.f32 %v20407_v47, %v6006_v19  ;;  %v17914_v15 = vand.u32 4294901760, %v17874_v2  ;;  %v4937_v47 = vld [vmem:[%s19755_s6 + $0x40] sm:$0xff] }
 0x679   : > { %20404 = vst [vmem:[#allocation84_spill] sm:$0xff] %v17887_v56  ;;  %v6110_v55 = vand.u32 4294901760, %v17887_v56  ;;  %v17916_v19 = vand.u32 4294901760, %v6074_v52  ;;  %v17918_v58 = vpack.c.bf16 %v6309_v28, %v6302_v38  ;;  %v6323_v9 = vand.u32 4294901760, %v17884_v1 }
 0x67a   : > { %20406 = vst [vmem:[#allocation86_spill] sm:$0xff] %v17893_v33  ;;  %20408 = vst [vmem:[#allocation87_spill] sm:$0xff] %v17899_v17  ;;  %v6107_v16 = vand.u32 4294901760, %v17899_v17  ;;  %v12665_v63 = vpop.f32.mrb[128].mxu1  ;;  %14310 = vmatprep.subr.bf16.mxu0 %v17893_v33  ;;  %v6316_v13 = vand.u32 4294901760, %v17896_v26 }
 0x67b   : > { %20412 = vst [vmem:[#allocation91_spill] sm:$0xff] %v17914_v15  ;;  %20413 = vst [vmem:[#allocation92_spill] sm:$0xff] %v17916_v19  ;;  %v17921_v57 = vsub.f32 %v17887_v56, %v6110_v55  ;;  %v17924_v34 = vmax.f32 %v20415_v5, %v12665_v63  ;;  %v6018_v6 = vpop.f32.mrb[129].mxu1  ;;  %14312 = vmatpush3.bf16.msra.mxu0 %v17893_v33  ;;  %v20418_v56 = vld [vmem:[#allocation2_spill] sm:$0xff]  ;;  %v6296_v63 = vsub.f32 %v17812_v60, %v6295_v30  ;;  %v4938_v5 = vld [vmem:[%s19755_s6 + $0x48] sm:$0xff] }
 0x67c   : > { %20414 = vst [vmem:[#allocation93_spill] sm:$0xff] %v17918_v58  ;;  %v17932_v49 = vpack.c.bf16 %v6110_v55, %v6107_v16  ;;  %v17935_v10 = vsub.f32 %v17899_v17, %v6107_v16  ;;  %v17938_v8 = vmax.f32 %v20418_v56, %v6018_v6  ;;  %v17950_v55 = vsub.f32 %v6071_v21, %v17909_v29 }
 0x67d   : > { %20416 = vst [vmem:[#allocation94_spill] sm:$0xff] %v17924_v34  ;;  %v6116_v61 = vand.u32 4294901760, %v17924_v34  ;;  %v6337_v56 = vand.u32 4294901760, %v17921_v57  ;;  %v6077_v17 = vsel %vm20087_vm1, %v4937_v47, 0  ;;  %v6080_v21 = vsel %vm20087_vm1, %v4938_v5, 0  ;;  %v4939_v5 = vld [vmem:[%s19755_s6 + $0x50] sm:$0xff] }
 0x67e   : > { %20417 = vst [vmem:[#allocation95_spill] sm:$0xff] %v17932_v49  ;;  %20419 = vst [vmem:[#allocation96_spill] sm:$0xff] %v17938_v8  ;;  %v6113_v16 = vand.u32 4294901760, %v17938_v8  ;;  %v12668_v6 = vpop.f32.mrb[130].mxu1  ;;  %14314 = vmatprep.subr.bf16.mxu0 %v17932_v49  ;;  %v6330_v30 = vand.u32 4294901760, %v17935_v10  ;;  %v17965_v62 = vpack.c.bf16 %v6323_v9, %v6316_v13  ;;  %v6083_v24 = vsel %vm20087_vm1, %v4939_v5, 0 }
 0x67f   : > { %20421 = vst [vmem:[#allocation98_spill] sm:$0xff] %v17950_v55  ;;  %v17958_v50 = vsub.f32 %v17924_v34, %v6116_v61  ;;  %v17961_v3 = vmax.f32 %v20422_v43, %v12668_v6  ;;  %v6030_v40 = vpop.f32.mrb[131].mxu1  ;;  %14316 = vmatpush3.bf16.msra.mxu0 %v17932_v49  ;;  %v6297_v34 = vand.u32 4294901760, %v6296_v63  ;;  %v6290_v6 = vand.u32 4294901760, %v6289_v46  ;;  %v4940_v46 = vld [vmem:[%s19755_s6 + $0x58] sm:$0xff] }
 0x680   : > { %20424 = vst [vmem:[#allocation100_spill] sm:$0xff] %v17965_v62  ;;  %v17967_v42 = vpack.c.bf16 %v6116_v61, %v6113_v16  ;;  %v17970_v20 = vsub.f32 %v17938_v8, %v6113_v16  ;;  %v17973_v47 = vmax.f32 %v20426_v48, %v6030_v40  ;;  %v6310_v43 = vsub.f32 %v17843_v31, %v6309_v28 }
 0x681   : > { %20423 = vst [vmem:[#allocation99_spill] sm:$0xff] %v17961_v3  ;;  %v6122_v27 = vand.u32 4294901760, %v17961_v3  ;;  %v6351_v58 = vand.u32 4294901760, %v17958_v50  ;;  %v6303_v16 = vsub.f32 %v17860_v53, %v6302_v38  ;;  %v17988_v63 = vpack.c.bf16 %v6337_v56, %v6330_v30 }
 0x682   : > { %20425 = vst [vmem:[#allocation101_spill] sm:$0xff] %v17967_v42  ;;  %20427 = vst [vmem:[#allocation102_spill] sm:$0xff] %v17973_v47  ;;  %v6119_v61 = vand.u32 4294901760, %v17973_v47  ;;  %14318 = vmatprep.subr.bf16.mxu0 %v17967_v42  ;;  %v6344_v40 = vand.u32 4294901760, %v17970_v20  ;;  %v17995_v48 = vsub.f32 %v6074_v52, %v17916_v19  ;;  %v17997_v8 = vand.u32 4294901760, %v6077_v17 }
 0x683   : > { %20428 = vst [vmem:[#allocation103_spill] sm:$0xff] %v17988_v63  ;;  %v17991_v28 = vsub.f32 %v17961_v3, %v6122_v27  ;;  %14320 = vmatpush3.bf16.msra.mxu0 %v17967_v42  ;;  %v17999_v62 = vand.u32 4294901760, %v6080_v21  ;;  %v14325_v3 = vpack.c.bf16 %v6297_v34, %v6290_v6  ;;  %v6311_v59 = vand.u32 4294901760, %v6310_v43 }
 0x684   : > { %20429 = vst [vmem:[#allocation104_spill] sm:$0xff] %v17995_v48  ;;  %20430 = vst [vmem:[#allocation105_spill] sm:$0xff] %v17997_v8  ;;  %v18001_v38 = vpack.c.bf16 %v6122_v27, %v6119_v61  ;;  %v18004_v14 = vsub.f32 %v17973_v47, %v6119_v61  ;;  %v18007_v63 = vpack.c.bf16 %v6351_v58, %v6344_v40  ;;  %v6086_v52 = vsel %vm20087_vm1, %v4940_v46, 0 }
 0x685   : > { %20431 = vst [vmem:[#allocation106_spill] sm:$0xff] %v17999_v62  ;;  %v6365_v18 = vand.u32 4294901760, %v17991_v28  ;;  %v6304_v42 = vand.u32 4294901760, %v6303_v16  ;;  %v6317_v49 = vsub.f32 %v17896_v26, %v6316_v13  ;;  %v6324_v27 = vsub.f32 %v17884_v1, %v6323_v9 }
 0x686   : > { %20432 = vst [vmem:[#allocation107_spill] sm:$0xff] %v18001_v38  ;;  %20433 = vst [vmem:[#allocation108_spill] sm:$0xff] %v18007_v63  ;;  %14322 = vmatprep.subr.bf16.mxu0 %v18001_v38  ;;  %v6358_v61 = vand.u32 4294901760, %v18004_v14  ;;  %v6208_v5 = vsub.f32 %v17874_v2, %v17914_v15  ;;  %v18019_v34 = vand.u32 4294901760, %v17950_v55  ;;  %v18022_v43 = vsub.f32 %v6077_v17, %v17997_v8 }
 0x687   : > { %14324 = vmatpush3.bf16.msra.mxu0 %v18001_v38  ;;  %v18024_v6 = vand.u32 4294901760, %v6083_v24  ;;  %v20437_v13 = vsub.f32 %v17821_v54, %v17852_v45  ;;  %v18032_v16 = vand.u32 4294901760, %v17995_v48  ;;  %v6331_v47 = vsub.f32 %v17935_v10, %v6330_v30 }
 0x688   : > { %20434 = vst [vmem:[#allocation109_spill] sm:$0xff] %v18019_v34  ;;  %20435 = vst [vmem:[#allocation110_spill] sm:$0xff] %v18022_v43  ;;  %14326 = vmatprep.subr.bf16.mxu0 %v14325_v3  ;;  %v18034_v46 = vpack.c.bf16 %v6365_v18, %v6358_v61  ;;  %v6338_v63 = vsub.f32 %v17921_v57, %v6337_v56  ;;  %v18039_v17 = vsub.f32 %v6080_v21, %v17999_v62 }
 0x689   : > { %20436 = vst [vmem:[#allocation111_spill] sm:$0xff] %v18024_v6  ;;  %v18029_v9 = vand.u32 4294901760, %v20437_v13  ;;  %20439 = vst [vmem:[#allocation113_spill] sm:$0xff] %v18032_v16  ;;  %v18041_v15 = vand.u32 4294901760, %v6086_v52  ;;  %v14329_v38 = vpack.c.bf16 %v6311_v59, %v6304_v42  ;;  %v6318_v45 = vand.u32 4294901760, %v6317_v49 }
 0x68a   : > { %20440 = vst [vmem:[#allocation114_spill] sm:$0xff] %v18034_v46  ;;  %20441 = vst [vmem:[#allocation115_spill] sm:$0xff] %v18039_v17  ;;  %12694 = vmatmul.mubr.f32.vlgmr.msra.gmra.mrb[84].mxu0 %v17890_v12  ;;  %v6325_v13 = vand.u32 4294901760, %v6324_v27  ;;  %v6218_v33 = vsub.f32 %v17907_v36, %v17947_v7  ;;  %v18047_v46 = vand.u32 4294901760, %v6208_v5  ;;  %v6228_v56 = vsub.f32 %v17950_v55, %v18019_v34 }
 0x68b   : > { %20438 = vst [vmem:[#allocation112_spill] sm:$0xff] %v18029_v9  ;;  %20442 = vst [vmem:[#allocation116_spill] sm:$0xff] %v18041_v15  ;;  %14328 = vmatpush3.bf16.msra.mxu0 %v14325_v3  ;;  %12696 = vmatprep.mubr.f32.mxu0 %v17904_v11  ;;  %v18052_v30 = vand.u32 4294901760, %v18022_v43  ;;  %v18055_v21 = vsub.f32 %v6083_v24, %v18024_v6  ;;  %v6238_v49 = vsub.f32 %v17995_v48, %v18032_v16 }
 0x68c   : > { %14330 = vmatprep.subr.bf16.mxu0 %v14329_v38  ;;  %v6332_v59 = vand.u32 4294901760, %v6331_v47  ;;  %v6339_v42 = vand.u32 4294901760, %v6338_v63  ;;  %v18060_v3 = vand.u32 4294901760, %v18039_v17  ;;  %v18063_v27 = vsub.f32 %v6086_v52, %v18041_v15 }
 0x68d   : > { %20443 = vst [vmem:[#allocation117_spill] sm:$0xff] %v18052_v30  ;;  %20444 = vst [vmem:[#allocation118_spill] sm:$0xff] %v18055_v21  ;;  %v14333_v5 = vpack.c.bf16 %v6325_v13, %v6318_v45  ;;  %v18066_v11 = vand.u32 4294901760, %v6218_v33  ;;  %v6345_v24 = vsub.f32 %v17970_v20, %v6344_v40  ;;  %v6352_v12 = vsub.f32 %v17958_v50, %v6351_v58 }
 0x68e   : > { %20445 = vst [vmem:[#allocation119_spill] sm:$0xff] %v18060_v3  ;;  %20446 = vst [vmem:[#allocation120_spill] sm:$0xff] %v18063_v27  ;;  %12697 = vmatmul.mubr.f32.gmra.mrb[86].mxu0 %v18029_v9  ;;  %v18071_v47 = vand.u32 4294901760, %v6228_v56  ;;  %v6248_v63 = vsub.f32 %v18022_v43, %v18052_v30  ;;  %v18076_v52 = vand.u32 4294901760, %v18055_v21  ;;  %v14337_v9 = vpack.c.bf16 %v6339_v42, %v6332_v59 }
 0x68f   : > { %20447 = vst [vmem:[#allocation121_spill] sm:$0xff] %v18066_v11  ;;  %14332 = vmatpush3.bf16.msra.mxu0 %v14329_v38  ;;  %12699 = vmatprep.mubr.f32.mxu0 %v18047_v46  ;;  %v18078_v45 = vand.u32 4294901760, %v6238_v49  ;;  %v6258_v33 = vsub.f32 %v18039_v17, %v18060_v3  ;;  %v18083_v58 = vand.u32 4294901760, %v18063_v27  ;;  %v6346_v40 = vand.u32 4294901760, %v6345_v24 }
 0x690   : > { %20448 = vst [vmem:[#allocation122_spill] sm:$0xff] %v18076_v52  ;;  %14334 = vmatprep.subr.bf16.mxu0 %v14333_v5  ;;  %v6353_v38 = vand.u32 4294901760, %v6352_v12  ;;  %v6359_v13 = vsub.f32 %v18004_v14, %v6358_v61  ;;  %v6366_v56 = vsub.f32 %v17991_v28, %v6365_v18  ;;  %v18089_v59 = vand.u32 4294901760, %v6248_v63 }
 0x691   : > { %20449 = vst [vmem:[#allocation123_spill] sm:$0xff] %v18083_v58  ;;  %v6268_v49 = vsub.f32 %v18055_v21, %v18076_v52  ;;  %v18093_v42 = vand.u32 4294901760, %v6258_v33  ;;  %v6278_v61 = vsub.f32 %v18063_v27, %v18083_v58  ;;  %v14349_v33 = vpack.c.bf16 %v17812_v60, %v17826_v37  ;;  %v20454_v60 = vld [vmem:[#allocation101_spill] sm:$0xff] }
 0x692   : > { %12700 = vmatmul.mubr.f32.gmra.mrb[88].mxu0 %v18066_v11  ;;  %v14341_v11 = vpack.c.bf16 %v6353_v38, %v6346_v40  ;;  %v6360_v24 = vand.u32 4294901760, %v6359_v13  ;;  %v6367_v12 = vand.u32 4294901760, %v6366_v56  ;;  %v14361_v37 = vpack.c.bf16 %v17921_v57, %v17935_v10  ;;  %v20458_v10 = vld [vmem:[#allocation73_spill] sm:$0xff]  ;;  %v20459_v57 = vld [vmem:[#allocation76_spill] sm:$0xff]  ;;  %v20461_v40 = vld [vmem:[#allocation79_spill] sm:$0xff] }
 0x693   : > { %14336 = vmatpush3.bf16.msra.mxu0 %v14333_v5  ;;  %12702 = vmatprep.mubr.f32.mxu0 %v18071_v47  ;;  %v18099_v18 = vand.u32 4294901760, %v6268_v49  ;;  %v18102_v63 = vand.u32 4294901760, %v6278_v61  ;;  %v20462_v38 = vld [vmem:[#allocation91_spill] sm:$0xff]  ;;  %v20463_v13 = vld [vmem:[#allocation100_spill] sm:$0xff] }
 0x694   : > { %14338 = vmatprep.subr.bf16.mxu0 %v14337_v9  ;;  %v14345_v5 = vpack.c.bf16 %v6367_v12, %v6360_v24  ;;  %v20464_v56 = vld [vmem:[#allocation103_spill] sm:$0xff]  ;;  %v20465_v49 = vld [vmem:[#allocation108_spill] sm:$0xff]  ;;  %v20466_v24 = vld [vmem:[#allocation114_spill] sm:$0xff] }
 0x695   : > { %20450 = vst [vmem:[#allocation124_spill] sm:$0xff] %v18099_v18  ;;  %20451 = vst [vmem:[#allocation125_spill] sm:$0xff] %v18102_v63  ;;  %v20468_v12 = vld [vmem:[#allocation44_spill] sm:$0xff] }
 0x696   : > { %12703 = vmatmul.mubr.f32.gmra.mrb[90].mxu0 %v18078_v45 }
 0x697   : > { %14340 = vmatpush3.bf16.msra.mxu0 %v14337_v9  ;;  %12705 = vmatprep.mubr.f32.mxu0 %v18089_v59  ;;  %v14353_v9 = vpack.c.bf16 %v17843_v31, %v17860_v53  ;;  %v14365_v53 = vpack.c.bf16 %v17958_v50, %v17970_v20  ;;  %v20453_v50 = vld [vmem:[#allocation95_spill] sm:$0xff] }
 0x698   : > { %14342 = vmatprep.subr.bf16.mxu0 %v14341_v11  ;;  %v20456_v20 = vld [vmem:[#allocation11_spill] sm:$0xff] }
 0x699   : > { %v20457_v31 = vld [vmem:[#allocation83_spill] sm:$0xff] }
 0x69a   : > { %12706 = vmatmul.mubr.f32.gmra.mrb[92].mxu0 %v18093_v42 }
 0x69b   : > { %14344 = vmatpush3.bf16.msra.mxu0 %v14341_v11  ;;  %12708 = vmatprep.mubr.f32.mxu0 %v18099_v18  ;;  %v14357_v11 = vpack.c.bf16 %v17884_v1, %v17896_v26  ;;  %v14369_v26 = vpack.c.bf16 %v17991_v28, %v18004_v14  ;;  %v20452_v1 = vld [vmem:[#allocation86_spill] sm:$0xff]  ;;  %v20455_v14 = vld [vmem:[#allocation107_spill] sm:$0xff]  ;;  %v20460_v28 = vld [vmem:[#allocation93_spill] sm:$0xff] }
 0x69c   : > { %14346 = vmatprep.subr.bf16.mxu0 %v14345_v5 }
 0x69e   : > { %12709 = vmatmul.mubr.f32.gmra.mrb[94].mxu0 %v18102_v63 }
 0x69f   : > { %14348 = vmatpush3.bf16.msra.mxu0 %v14345_v5  ;;  %12735 = vmatprep.mubr.f32.mxu0 %v17759_v4 }
 0x6a0   : > { %14350 = vmatprep.subr.bf16.mxu0 %v14349_v33 }
 0x6a2   : > { %12736 = vmatmul.mubr.f32.vlgmr.msra.gmra.mrb[84].mxu0 %v17783_v25 }
 0x6a3   : > { %14352 = vmatpush3.bf16.msra.mxu0 %v14349_v33  ;;  %12738 = vmatprep.mubr.f32.mxu0 %v17786_v41  ;;  %v20470_v33 = vld [vmem:[#allocation70_spill] sm:$0xff] }
 0x6a4   : > { %14354 = vmatprep.subr.bf16.mxu0 %v14353_v9 }
 0x6a6   : > { %12739 = vmatmul.mubr.f32.gmra.mrb[86].mxu0 %v17794_v35 }
 0x6a7   : > { %14356 = vmatpush3.bf16.msra.mxu0 %v14353_v9  ;;  %12741 = vmatprep.mubr.f32.mxu0 %v17837_v39 }
 0x6a8   : > { %14358 = vmatprep.subr.bf16.mxu0 %v14357_v11 }
 0x6aa   : > { %12742 = vmatmul.mubr.f32.gmra.mrb[88].mxu0 %v17865_v22 }
 0x6ab   : > { %14360 = vmatpush3.bf16.msra.mxu0 %v14357_v11  ;;  %12744 = vmatprep.mubr.f32.mxu0 %v17909_v29  ;;  %v20472_v11 = vld [vmem:[#allocation41_spill] sm:$0xff] }
 0x6ac   : > { %14362 = vmatprep.subr.bf16.mxu0 %v14361_v37 }
 0x6ae   : > { %12745 = vmatmul.mubr.f32.gmra.mrb[90].mxu0 %v17916_v19 }
 0x6af   : > { %14364 = vmatpush3.bf16.msra.mxu0 %v14361_v37  ;;  %12747 = vmatprep.mubr.f32.mxu0 %v17997_v8 }
 0x6b0   : > { %14366 = vmatprep.subr.bf16.mxu0 %v14365_v53 }
 0x6b2   : > { %12748 = vmatmul.mubr.f32.gmra.mrb[92].mxu0 %v17999_v62 }
 0x6b3   : > { %14368 = vmatpush3.bf16.msra.mxu0 %v14365_v53  ;;  %12750 = vmatprep.mubr.f32.mxu0 %v18024_v6  ;;  %v20473_v53 = vld [vmem:[#allocation33_spill] sm:$0xff] }
 0x6b4   : > { %14370 = vmatprep.subr.bf16.mxu0 %v14369_v26 }
 0x6b6   : > { %12751 = vmatmul.mubr.f32.gmra.mrb[94].mxu0 %v18041_v15 }
 0x6b7   : > { %14372 = vmatpush3.bf16.msra.mxu0 %v14369_v26  ;;  %12777 = vmatprep.mubr.f32.mxu0 %v17762_v0 }
 0x6b8   : > { %14374 = vmatprep.subr.bf16.mxu0 %v17823_v51 }
 0x6ba   : > { %12778 = vmatmul.mubr.f32.vlgmr.msra.gmra.mrb[84].mxu0 %v17792_v32 }
 0x6bb   : > { %14376 = vmatpush3.bf16.msra.mxu0 %v17823_v51  ;;  %12780 = vmatprep.mubr.f32.mxu0 %v17804_v23 }
 0x6bc   : > { %14378 = vmatprep.subr.bf16.mxu0 %v17857_v44 }
 0x6be   : > { %12781 = vmatmul.mubr.f32.gmra.mrb[86].mxu0 %v17821_v54 }
 0x6bf   : > { %14380 = vmatpush3.bf16.msra.mxu0 %v17857_v44  ;;  %12783 = vmatprep.mubr.f32.mxu0 %v17874_v2 }
 0x6c0   : > { %14382 = vmatprep.subr.bf16.mxu0 %v20452_v1 }
 0x6c2   : > { %12784 = vmatmul.mubr.f32.gmra.mrb[88].mxu0 %v17907_v36 }
 0x6c3   : > { %14384 = vmatpush3.bf16.msra.mxu0 %v20452_v1  ;;  %12786 = vmatprep.mubr.f32.mxu0 %v17950_v55 }
 0x6c4   : > { %14386 = vmatprep.subr.bf16.mxu0 %v20453_v50 }
 0x6c6   : > { %12787 = vmatmul.mubr.f32.gmra.mrb[90].mxu0 %v17995_v48 }
 0x6c7   : > { %14388 = vmatpush3.bf16.msra.mxu0 %v20453_v50  ;;  %12789 = vmatprep.mubr.f32.mxu0 %v18022_v43 }
 0x6c8   : > { %14390 = vmatprep.subr.bf16.mxu0 %v20454_v60 }
 0x6ca   : > { %12790 = vmatmul.mubr.f32.gmra.mrb[92].mxu0 %v18039_v17 }
 0x6cb   : > { %14392 = vmatpush3.bf16.msra.mxu0 %v20454_v60  ;;  %12792 = vmatprep.mubr.f32.mxu0 %v18055_v21 }
 0x6cc   : > { %14394 = vmatprep.subr.bf16.mxu0 %v20455_v14 }
 0x6ce   : > { %12793 = vmatmul.mubr.f32.gmra.mrb[94].mxu0 %v18063_v27 }
 0x6cf   : > { %14396 = vmatpush3.bf16.msra.mxu0 %v20455_v14  ;;  %12819 = vmatprep.mubr.f32.mxu0 %v20456_v20 }
 0x6d0   : > { %14398 = vmatprep.subr.bf16.mxu0 %v20457_v31 }
 0x6d2   : > { %12820 = vmatmul.mubr.f32.vlgmr.msra.gmra.mrb[84].mxu0 %v20458_v10 }
 0x6d3   : > { %14400 = vmatpush3.bf16.msra.mxu0 %v20457_v31  ;;  %12822 = vmatprep.mubr.f32.mxu0 %v20459_v57 }
 0x6d4   : > { %14402 = vmatprep.subr.bf16.mxu0 %v20460_v28 }
 0x6d6   : > { %12823 = vmatmul.mubr.f32.gmra.mrb[86].mxu0 %v20461_v40 }
 0x6d7   : > { %14404 = vmatpush3.bf16.msra.mxu0 %v20460_v28  ;;  %12825 = vmatprep.mubr.f32.mxu0 %v20462_v38 }
 0x6d8   : > { %14406 = vmatprep.subr.bf16.mxu0 %v20463_v13 }
 0x6da   : > { %12826 = vmatmul.mubr.f32.gmra.mrb[88].mxu0 %v17947_v7 }
 0x6db   : > { %14408 = vmatpush3.bf16.msra.mxu0 %v20463_v13  ;;  %12828 = vmatprep.mubr.f32.mxu0 %v18019_v34  ;;  %v20476_v13 = vld [vmem:[#allocation75_spill] sm:$0xff] }
 0x6dc   : > { %14410 = vmatprep.subr.bf16.mxu0 %v20464_v56 }
 0x6de   : > { %12829 = vmatmul.mubr.f32.gmra.mrb[90].mxu0 %v18032_v16 }
 0x6df   : > { %14412 = vmatpush3.bf16.msra.mxu0 %v20464_v56  ;;  %12831 = vmatprep.mubr.f32.mxu0 %v18052_v30 }
 0x6e0   : > { %14414 = vmatprep.subr.bf16.mxu0 %v20465_v49 }
 0x6e2   : > { %12832 = vmatmul.mubr.f32.gmra.mrb[92].mxu0 %v18060_v3 }
 0x6e3   : > { %14416 = vmatpush3.bf16.msra.mxu0 %v20465_v49  ;;  %12834 = vmatprep.mubr.f32.mxu0 %v18076_v52  ;;  %v20478_v49 = vld [vmem:[#allocation10_spill] sm:$0xff] }
 0x6e4   : > { %14418 = vmatprep.subr.bf16.mxu0 %v20466_v24 }
 0x6e6   : > { %12835 = vmatmul.mubr.f32.gmra.mrb[94].mxu0 %v18083_v58 }
 0x6e7   : > { %14420 = vmatpush3.bf16.msra.mxu0 %v20466_v24  ;;  %12861 = vmatprep.mubr.f32.mxu0 %v17759_v4 }
 0x6e8   : > { %14422 = vmatprep.subr.bf16.mxu0 %v17823_v51 }
 0x6ea   : > { %12862 = vmatmul.mubr.f32.vlgmr.msra.gmra.mrb[84].mxu0 %v17783_v25 }
 0x6eb   : > { %14424 = vmatpush3.bf16.msra.mxu0 %v17823_v51  ;;  %12864 = vmatprep.mubr.f32.mxu0 %v17786_v41 }
 0x6ec   : > { %14426 = vmatprep.subr.bf16.mxu0 %v17857_v44 }
 0x6ee   : > { %12865 = vmatmul.mubr.f32.gmra.mrb[86].mxu0 %v17794_v35 }
 0x6ef   : > { %14428 = vmatpush3.bf16.msra.mxu0 %v17857_v44  ;;  %12867 = vmatprep.mubr.f32.mxu0 %v17837_v39  ;;  %v20467_v44 = vld [vmem:[#allocation22_spill] sm:$0xff] }
 0x6f0   : > { %14430 = vmatprep.subr.bf16.mxu0 %v20452_v1 }
 0x6f2   : > { %12868 = vmatmul.mubr.f32.gmra.mrb[88].mxu0 %v17865_v22 }
 0x6f3   : > { %14432 = vmatpush3.bf16.msra.mxu0 %v20452_v1  ;;  %12870 = vmatprep.mubr.f32.mxu0 %v17909_v29 }
 0x6f4   : > { %14434 = vmatprep.subr.bf16.mxu0 %v20453_v50 }
 0x6f6   : > { %12871 = vmatmul.mubr.f32.gmra.mrb[90].mxu0 %v17916_v19 }
 0x6f7   : > { %14436 = vmatpush3.bf16.msra.mxu0 %v20453_v50  ;;  %12873 = vmatprep.mubr.f32.mxu0 %v17997_v8 }
 0x6f8   : > { %14438 = vmatprep.subr.bf16.mxu0 %v20454_v60 }
 0x6fa   : > { %12874 = vmatmul.mubr.f32.gmra.mrb[92].mxu0 %v17999_v62 }
 0x6fb   : > { %14440 = vmatpush3.bf16.msra.mxu0 %v20454_v60  ;;  %12876 = vmatprep.mubr.f32.mxu0 %v18024_v6  ;;  %v20474_v60 = vld [vmem:[#allocation72_spill] sm:$0xff] }
 0x6fc   : > { %14442 = vmatprep.subr.bf16.mxu0 %v20455_v14 }
 0x6fe   : > { %12877 = vmatmul.mubr.f32.gmra.mrb[94].mxu0 %v18041_v15 }
 0x6ff   : > { %14444 = vmatpush3.bf16.msra.mxu0 %v20455_v14  ;;  %12903 = vmatprep.mubr.f32.mxu0 %v17759_v4  ;;  %v20506_v4 = vld [vmem:[#allocation45_spill] sm:$0xff] }
 0x702   : > { %12904 = vmatmul.mubr.f32.vlgmr.msra.gmra.mrb[84].mxu0 %v17783_v25 }
 0x703   : > { %12906 = vmatprep.mubr.f32.mxu0 %v17786_v41 }
 0x706   : > { %12907 = vmatmul.mubr.f32.gmra.mrb[86].mxu0 %v17794_v35 }
 0x707   : > { %12909 = vmatprep.mubr.f32.mxu0 %v17837_v39 }
 0x70a   : > { %12910 = vmatmul.mubr.f32.gmra.mrb[88].mxu0 %v17865_v22 }
 0x70b   : > { %12912 = vmatprep.mubr.f32.mxu0 %v17909_v29 }
 0x70e   : > { %12913 = vmatmul.mubr.f32.gmra.mrb[90].mxu0 %v17916_v19 }
 0x70f   : > { %12915 = vmatprep.mubr.f32.mxu0 %v17997_v8 }
 0x712   : > { %12916 = vmatmul.mubr.f32.gmra.mrb[92].mxu0 %v17999_v62 }
 0x713   : > { %12918 = vmatprep.mubr.f32.mxu0 %v18024_v6 }
 0x716   : > { %12919 = vmatmul.mubr.f32.gmra.mrb[94].mxu0 %v18041_v15 }
 0x717   : > { %13197 = vmatprep.mubr.f32.mxu0 %v20467_v44  ;;  %v20479_v44 = vld [vmem:[#allocation14_spill] sm:$0xff] }
 0x7d5   : > { %v12905_v51 = vpop.f32.mrb[84].mxu0 }
 0x7d6   : > { %v18216_v61 = vmax.f32 %v20468_v12, %v12905_v51  ;;  %v7080_v5 = vpop.f32.mrb[85].mxu0 }
 0x7d7   : > { %v18219_v9 = vmax.f32 %v20470_v33, %v7080_v5  ;;  %v20480_v33 = vld [vmem:[#allocation78_spill] sm:$0xff] }
 0x7d8   : > { %20469 = vst [vmem:[#allocation86_spill] sm:$0xff] %v18216_v61  ;;  %v7163_v37 = vsub.f32 %v20472_v11, %v18216_v61 }
 0x7d9   : > { %20471 = vst [vmem:[#allocation95_spill] sm:$0xff] %v18219_v9  ;;  %v7162_v26 = vsub.f32 %v20473_v53, %v18219_v9  ;;  %v12908_v1 = vpop.f32.mrb[86].mxu0  ;;  %v20482_v53 = vld [vmem:[#allocation80_spill] sm:$0xff] }
 0x7da   : > { %v7176_v50 = vmul.f32 1.442695, %v7163_v37  ;;  %v18226_v14 = vmax.f32 %v20474_v60, %v12908_v1  ;;  %v7092_v31 = vpop.f32.mrb[87].mxu0 }
 0x7db   : > { %v7174_v28 = vmul.f32 1.442695, %v7162_v26  ;;  %v18229_v56 = vmax.f32 %v20476_v13, %v7092_v31 }
 0x7dc   : > { %20475 = vst [vmem:[#allocation101_spill] sm:$0xff] %v18226_v14  ;;  %15524 = vpow2.f32 %v7176_v50  ;;  %v7165_v24 = vsub.f32 %v20478_v49, %v18226_v14  ;;  %v20484_v50 = vld [vmem:[#allocation17_spill] sm:$0xff]  ;;  %v20488_v14 = vld [vmem:[#allocation87_spill] sm:$0xff] }
 0x7dd   : > { %20477 = vst [vmem:[#allocation107_spill] sm:$0xff] %v18229_v56  ;;  %15526 = vpow2.f32 %v7174_v28  ;;  %v7164_v51 = vsub.f32 %v20479_v44, %v18229_v56  ;;  %v12911_v12 = vpop.f32.mrb[88].mxu0  ;;  %v20485_v28 = vld [vmem:[#allocation24_spill] sm:$0xff] }
 0x7de   : > { %v7180_v5 = vmul.f32 1.442695, %v7165_v24  ;;  %v18236_v37 = vmax.f32 %v20480_v33, %v12911_v12  ;;  %v7104_v1 = vpop.f32.mrb[89].mxu0  ;;  %v20486_v56 = vld [vmem:[#allocation84_spill] sm:$0xff] }
 0x7df   : > { %v7178_v60 = vmul.f32 1.442695, %v7164_v51  ;;  %v18239_v26 = vmax.f32 %v20482_v53, %v7104_v1  ;;  %v20490_v53 = vld [vmem:[#allocation40_spill] sm:$0xff] }
 0x7e0   : > { %20481 = vst [vmem:[#allocation83_spill] sm:$0xff] %v18236_v37  ;;  %15528 = vpow2.f32 %v7180_v5  ;;  %v7167_v31 = vsub.f32 %v20484_v50, %v18236_v37  ;;  %v20491_v1 = vld [vmem:[#allocation52_spill] sm:$0xff] }
 0x7e1   : > { %20483 = vst [vmem:[#allocation93_spill] sm:$0xff] %v18239_v26  ;;  %15530 = vpow2.f32 %v7178_v60  ;;  %v7166_v13 = vsub.f32 %v20485_v28, %v18239_v26  ;;  %v12914_v49 = vpop.f32.mrb[90].mxu0  ;;  %v20492_v26 = vld [vmem:[#allocation94_spill] sm:$0xff] }
 0x7e2   : > { %v7184_v44 = vmul.f32 1.442695, %v7167_v31  ;;  %v18246_v24 = vmax.f32 %v20486_v56, %v12914_v49  ;;  %v7116_v12 = vpop.f32.mrb[91].mxu0 }
 0x7e3   : > { %v7182_v33 = vmul.f32 1.442695, %v7166_v13  ;;  %v18249_v51 = vmax.f32 %v20488_v14, %v7116_v12  ;;  %v20494_v12 = vld [vmem:[#allocation96_spill] sm:$0xff] }
 0x7e4   : > { %20487 = vst [vmem:[#allocation100_spill] sm:$0xff] %v18246_v24  ;;  %15532 = vpow2.f32 %v7184_v44  ;;  %v7169_v5 = vsub.f32 %v20490_v53, %v18246_v24 }
 0x7e5   : > { %20489 = vst [vmem:[#allocation103_spill] sm:$0xff] %v18249_v51  ;;  %15534 = vpow2.f32 %v7182_v33  ;;  %v7168_v60 = vsub.f32 %v20491_v1, %v18249_v51  ;;  %v12917_v50 = vpop.f32.mrb[92].mxu0  ;;  %v20496_v33 = vld [vmem:[#allocation7_spill] sm:$0xff] }
 0x7e6   : > { %v18255_v28 = vpop.eup %15524  ;;  %v7188_v31 = vmul.f32 1.442695, %v7169_v5  ;;  %v18258_v56 = vmax.f32 %v20492_v26, %v12917_v50  ;;  %v7128_v49 = vpop.f32.mrb[93].mxu0  ;;  %v20497_v5 = vld [vmem:[#allocation2_spill] sm:$0xff] }
 0x7e7   : > { %v18260_v13 = vpop.eup %15526  ;;  %v7186_v14 = vmul.f32 1.442695, %v7168_v60  ;;  %v18263_v44 = vmax.f32 %v20494_v12, %v7128_v49  ;;  %v7202_v53 = vand.u32 4294901760, %v18255_v28  ;;  %v20498_v60 = vld [vmem:[#allocation99_spill] sm:$0xff] }
 0x7e8   : > { %20493 = vst [vmem:[#allocation108_spill] sm:$0xff] %v18258_v56  ;;  %15536 = vpow2.f32 %v7188_v31  ;;  %v7171_v1 = vsub.f32 %v20496_v33, %v18258_v56  ;;  %v7199_v51 = vand.u32 4294901760, %v18260_v13  ;;  %v20500_v33 = vld [vmem:[#allocation102_spill] sm:$0xff] }
 0x7e9   : > { %20495 = vst [vmem:[#allocation114_spill] sm:$0xff] %v18263_v44  ;;  %15538 = vpow2.f32 %v7186_v14  ;;  %v7170_v26 = vsub.f32 %v20497_v5, %v18263_v44  ;;  %v12920_v50 = vpop.f32.mrb[94].mxu0  ;;  %v18285_v5 = vsub.f32 %v18255_v28, %v7202_v53 }
 0x7ea   : > { %v18271_v24 = vpop.eup %15528  ;;  %v7192_v37 = vmul.f32 1.442695, %v7171_v1  ;;  %v18274_v11 = vmax.f32 %v20498_v60, %v12920_v50  ;;  %v7140_v49 = vpop.f32.mrb[95].mxu0  ;;  %v18276_v12 = vpack.c.bf16 %v7202_v53, %v7199_v51  ;;  %v20502_v1 = vld [vmem:[#allocation15_spill] sm:$0xff]  ;;  %v18292_v60 = vsub.f32 %v18260_v13, %v7199_v51 }
 0x7eb   : > { %v18278_v31 = vpop.eup %15530  ;;  %v7190_v9 = vmul.f32 1.442695, %v7170_v26  ;;  %v18281_v56 = vmax.f32 %v20500_v33, %v7140_v49  ;;  %v7208_v14 = vand.u32 4294901760, %v18271_v24  ;;  %v20503_v33 = vld [vmem:[#allocation27_spill] sm:$0xff]  ;;  %v7405_v58 = vand.u32 4294901760, %v18285_v5 }
 0x7ec   : > { %20499 = vst [vmem:[#allocation22_spill] sm:$0xff] %v18274_v11  ;;  %15540 = vpow2.f32 %v7192_v37  ;;  %v7173_v44 = vsub.f32 %v20502_v1, %v18274_v11  ;;  %14446 = vmatprep.subr.bf16.mxu1 %v18276_v12  ;;  %v7205_v50 = vand.u32 4294901760, %v18278_v31 }
 0x7ed   : > { %20501 = vst [vmem:[#allocation44_spill] sm:$0xff] %v18281_v56  ;;  %15542 = vpow2.f32 %v7190_v9  ;;  %v7172_v26 = vsub.f32 %v20503_v33, %v18281_v56  ;;  %14448 = vmatpush3.bf16.msra.mxu1 %v18276_v12  ;;  %v18298_v53 = vsub.f32 %v18271_v24, %v7208_v14  ;;  %v7398_v56 = vand.u32 4294901760, %v18292_v60 }
 0x7ee   : > { %v18300_v37 = vpop.eup %15532  ;;  %v7196_v49 = vmul.f32 1.442695, %v7173_v44  ;;  %v18302_v1 = vpack.c.bf16 %v7208_v14, %v7205_v50  ;;  %v18305_v11 = vsub.f32 %v18278_v31, %v7205_v50  ;;  %v7406_v10 = vsub.f32 %v18285_v5, %v7405_v58 }
 0x7ef   : > { %v18307_v61 = vpop.eup %15534  ;;  %v7194_v51 = vmul.f32 1.442695, %v7172_v26  ;;  %v7214_v9 = vand.u32 4294901760, %v18300_v37  ;;  %v7419_v14 = vand.u32 4294901760, %v18298_v53  ;;  %v18338_v7 = vpack.c.bf16 %v7405_v58, %v7398_v56 }
 0x7f0   : > { %15544 = vpow2.f32 %v7196_v49  ;;  %14450 = vmatprep.subr.bf16.mxu1 %v18302_v1  ;;  %v7211_v33 = vand.u32 4294901760, %v18307_v61  ;;  %v7412_v44 = vand.u32 4294901760, %v18305_v11  ;;  %v7399_v57 = vsub.f32 %v18292_v60, %v7398_v56 }
 0x7f1   : > { %15546 = vpow2.f32 %v7194_v51  ;;  %14452 = vmatpush3.bf16.msra.mxu1 %v18302_v1  ;;  %v18318_v50 = vsub.f32 %v18300_v37, %v7214_v9  ;;  %v7407_v36 = vand.u32 4294901760, %v7406_v10  ;;  %v7420_v32 = vsub.f32 %v18298_v53, %v7419_v14 }
 0x7f2   : > { %v18320_v26 = vpop.eup %15536  ;;  %v18322_v49 = vpack.c.bf16 %v7214_v9, %v7211_v33  ;;  %v18325_v52 = vsub.f32 %v18307_v61, %v7211_v33  ;;  %v18340_v33 = vpack.c.bf16 %v7419_v14, %v7412_v44  ;;  %v7400_v55 = vand.u32 4294901760, %v7399_v57 }
 0x7f3   : > { %v18327_v3 = vpop.eup %15538  ;;  %v7220_v51 = vand.u32 4294901760, %v18320_v26  ;;  %v7433_v30 = vand.u32 4294901760, %v18318_v50  ;;  %v7413_v57 = vsub.f32 %v18305_v11, %v7412_v44  ;;  %v7421_v8 = vand.u32 4294901760, %v7420_v32 }
 0x7f4   : > { %14454 = vmatprep.subr.bf16.mxu1 %v18322_v49  ;;  %v7217_v16 = vand.u32 4294901760, %v18327_v3  ;;  %v7426_v34 = vand.u32 4294901760, %v18325_v52  ;;  %v14469_v62 = vpack.c.bf16 %v7407_v36, %v7400_v55  ;;  %v20504_v55 = vld [vmem:[#allocation23_spill] sm:$0xff] }
 0x7f5   : > { %14456 = vmatpush3.bf16.msra.mxu1 %v18322_v49  ;;  %v18336_v9 = vsub.f32 %v18320_v26, %v7220_v51  ;;  %v7414_v44 = vand.u32 4294901760, %v7413_v57  ;;  %v7434_v39 = vsub.f32 %v18318_v50, %v7433_v30 }
 0x7f6   : > { %v18342_v38 = vpop.eup %15540  ;;  %v18344_v40 = vpack.c.bf16 %v7220_v51, %v7217_v16  ;;  %v18349_v20 = vsub.f32 %v18327_v3, %v7217_v16  ;;  %v18355_v43 = vpack.c.bf16 %v7433_v30, %v7426_v34  ;;  %v7427_v22 = vsub.f32 %v18325_v52, %v7426_v34  ;;  %v20505_v34 = vld [vmem:[#allocation30_spill] sm:$0xff] }
 0x7f7   : > { %v18351_v27 = vpop.eup %15542  ;;  %v7226_v21 = vand.u32 4294901760, %v18342_v38  ;;  %v7447_v17 = vand.u32 4294901760, %v18336_v9  ;;  %v7435_v57 = vand.u32 4294901760, %v7434_v39 }
 0x7f8   : > { %14458 = vmatprep.subr.bf16.mxu1 %v18344_v40  ;;  %v7223_v51 = vand.u32 4294901760, %v18351_v27  ;;  %v7440_v48 = vand.u32 4294901760, %v18349_v20  ;;  %v7428_v41 = vand.u32 4294901760, %v7427_v22  ;;  %v20508_v22 = vld [vmem:[#allocation61_spill] sm:$0xff] }
 0x7f9   : > { %14460 = vmatpush3.bf16.msra.mxu1 %v18344_v40  ;;  %v18362_v58 = vsub.f32 %v18342_v38, %v7226_v21  ;;  %v7448_v36 = vsub.f32 %v18336_v9, %v7447_v17 }
 0x7fa   : > { %v18364_v16 = vpop.eup %15544  ;;  %v18366_v56 = vpack.c.bf16 %v7226_v21, %v7223_v51  ;;  %v18369_v2 = vsub.f32 %v18351_v27, %v7223_v51  ;;  %v18376_v15 = vpack.c.bf16 %v7447_v17, %v7440_v48  ;;  %v7441_v32 = vsub.f32 %v18349_v20, %v7440_v48  ;;  %v20507_v17 = vld [vmem:[#allocation56_spill] sm:$0xff] }
 0x7fb   : > { %v18371_v54 = vpop.eup %15546  ;;  %v7232_v23 = vand.u32 4294901760, %v18364_v16  ;;  %v7461_v0 = vand.u32 4294901760, %v18362_v58  ;;  %v7449_v25 = vand.u32 4294901760, %v7448_v36  ;;  %v14477_v63 = vpack.c.bf16 %v7435_v57, %v7428_v41  ;;  %v20510_v41 = vld [vmem:[#allocation64_spill] sm:$0xff] }
 0x7fc   : > { %14462 = vmatprep.subr.bf16.mxu1 %v18366_v56  ;;  %v7229_v21 = vand.u32 4294901760, %v18371_v54  ;;  %v7454_v10 = vand.u32 4294901760, %v18369_v2  ;;  %v7442_v30 = vand.u32 4294901760, %v7441_v32  ;;  %v20516_v57 = vld [vmem:[#allocation20_spill] sm:$0xff] }
 0x7fd   : > { %14464 = vmatpush3.bf16.msra.mxu1 %v18366_v56  ;;  %v18384_v51 = vsub.f32 %v18364_v16, %v7232_v23  ;;  %v7462_v48 = vsub.f32 %v18362_v58, %v7461_v0 }
 0x7fe   : > { %v18386_v6 = vpack.c.bf16 %v7232_v23, %v7229_v21  ;;  %v18389_v14 = vsub.f32 %v18371_v54, %v7229_v21  ;;  %v18392_v29 = vpack.c.bf16 %v7461_v0, %v7454_v10  ;;  %v14473_v21 = vpack.c.bf16 %v7421_v8, %v7414_v44 }
 0x7ff   : > { %v7475_v19 = vand.u32 4294901760, %v18384_v51  ;;  %v7455_v18 = vsub.f32 %v18369_v2, %v7454_v10  ;;  %v14481_v8 = vpack.c.bf16 %v7449_v25, %v7442_v30  ;;  %v20512_v25 = vld [vmem:[#allocation67_spill] sm:$0xff] }
 0x800   : > { %14466 = vmatprep.subr.bf16.mxu1 %v18386_v6  ;;  %v7468_v35 = vand.u32 4294901760, %v18389_v14  ;;  %v20517_v30 = vld [vmem:[#allocation39_spill] sm:$0xff] }
 0x801   : > { %14468 = vmatpush3.bf16.msra.mxu1 %v18386_v6  ;;  %v7456_v39 = vand.u32 4294901760, %v7455_v18  ;;  %v7476_v32 = vsub.f32 %v18384_v51, %v7475_v19 }
 0x802   : > { %14470 = vmatprep.subr.bf16.mxu1 %v14469_v62  ;;  %v18399_v23 = vpack.c.bf16 %v7475_v19, %v7468_v35  ;;  %v7469_v44 = vsub.f32 %v18389_v14, %v7468_v35  ;;  %v20513_v35 = vld [vmem:[#allocation68_spill] sm:$0xff]  ;;  %v20514_v19 = vld [vmem:[#allocation69_spill] sm:$0xff] }
 0x803   : > { %v7477_v36 = vand.u32 4294901760, %v7476_v32  ;;  %v20533_v32 = vld [vmem:[#allocation47_spill] sm:$0xff] }
 0x804   : > { %12946 = vmatmul.mubr.f32.vlgmr.msra.gmra.mrb[132].mxu1 %v20504_v55  ;;  %v7470_v10 = vand.u32 4294901760, %v7469_v44  ;;  %v20511_v55 = vld [vmem:[#allocation66_spill] sm:$0xff] }
 0x805   : > { %14472 = vmatpush3.bf16.msra.mxu1 %v14469_v62  ;;  %12948 = vmatprep.mubr.f32.mxu1 %v20505_v34  ;;  %v7463_v62 = vand.u32 4294901760, %v7462_v48  ;;  %v14497_v34 = vpack.c.bf16 %v18298_v53, %v18305_v11  ;;  %v20518_v48 = vld [vmem:[#allocation26_spill] sm:$0xff]  ;;  %v20521_v11 = vld [vmem:[#allocation19_spill] sm:$0xff] }
 0x806   : > { %14474 = vmatprep.subr.bf16.mxu1 %v14473_v21  ;;  %v14489_v18 = vpack.c.bf16 %v7477_v36, %v7470_v10  ;;  %v20522_v53 = vld [vmem:[#allocation46_spill] sm:$0xff]  ;;  %v20538_v36 = vld [vmem:[#allocation60_spill] sm:$0xff] }
 0x807   : > { %v14485_v0 = vpack.c.bf16 %v7463_v62, %v7456_v39  ;;  %v14513_v39 = vpack.c.bf16 %v18384_v51, %v18389_v14  ;;  %v20527_v62 = vld [vmem:[#allocation13_spill] sm:$0xff]  ;;  %v20530_v51 = vld [vmem:[#allocation4_spill] sm:$0xff]  ;;  %v20531_v14 = vld [vmem:[#allocation6_spill] sm:$0xff] }
 0x808   : > { %12949 = vmatmul.mubr.f32.gmra.mrb[134].mxu1 %v20506_v4  ;;  %v20509_v4 = vld [vmem:[#allocation62_spill] sm:$0xff] }
 0x809   : > { %14476 = vmatpush3.bf16.msra.mxu1 %v14473_v21  ;;  %12951 = vmatprep.mubr.f32.mxu1 %v20507_v17  ;;  %v20515_v21 = vld [vmem:[#allocation21_spill] sm:$0xff]  ;;  %v14501_v17 = vpack.c.bf16 %v18318_v50, %v18325_v52  ;;  %v20523_v52 = vld [vmem:[#allocation55_spill] sm:$0xff]  ;;  %v20532_v44 = vld [vmem:[#allocation18_spill] sm:$0xff] }
 0x80a   : > { %14478 = vmatprep.subr.bf16.mxu1 %v14477_v63  ;;  %v20524_v50 = vld [vmem:[#allocation9_spill] sm:$0xff]  ;;  %v20537_v10 = vld [vmem:[#allocation58_spill] sm:$0xff] }
 0x80c   : > { %12952 = vmatmul.mubr.f32.gmra.mrb[136].mxu1 %v20508_v22  ;;  %v14509_v22 = vpack.c.bf16 %v18362_v58, %v18369_v2  ;;  %v20528_v2 = vld [vmem:[#allocation37_spill] sm:$0xff]  ;;  %v20529_v58 = vld [vmem:[#allocation31_spill] sm:$0xff] }
 0x80d   : > { %14480 = vmatpush3.bf16.msra.mxu1 %v14477_v63  ;;  %12954 = vmatprep.mubr.f32.mxu1 %v20509_v4  ;;  %v14493_v63 = vpack.c.bf16 %v18285_v5, %v18292_v60  ;;  %v20519_v5 = vld [vmem:[#allocation36_spill] sm:$0xff]  ;;  %v20534_v4 = vld [vmem:[#allocation5_spill] sm:$0xff] }
 0x80e   : > { %14482 = vmatprep.subr.bf16.mxu1 %v14481_v8  ;;  %v20520_v60 = vld [vmem:[#allocation8_spill] sm:$0xff] }
 0x810   : > { %12955 = vmatmul.mubr.f32.gmra.mrb[138].mxu1 %v20510_v41  ;;  %v20535_v41 = vld [vmem:[#allocation38_spill] sm:$0xff] }
 0x811   : > { %14484 = vmatpush3.bf16.msra.mxu1 %v14481_v8  ;;  %12957 = vmatprep.mubr.f32.mxu1 %v20511_v55  ;;  %v14505_v8 = vpack.c.bf16 %v18336_v9, %v18349_v20  ;;  %v20525_v20 = vld [vmem:[#allocation43_spill] sm:$0xff]  ;;  %v20526_v9 = vld [vmem:[#allocation54_spill] sm:$0xff]  ;;  %v20539_v55 = vld [vmem:[#allocation28_spill] sm:$0xff] }
 0x812   : > { %14486 = vmatprep.subr.bf16.mxu1 %v14485_v0 }
 0x814   : > { %12958 = vmatmul.mubr.f32.gmra.mrb[140].mxu1 %v20512_v25  ;;  %v20540_v25 = vld [vmem:[#allocation16_spill] sm:$0xff] }
 0x815   : > { %14488 = vmatpush3.bf16.msra.mxu1 %v14485_v0  ;;  %12960 = vmatprep.mubr.f32.mxu1 %v20513_v35  ;;  %v20536_v0 = vld [vmem:[#allocation51_spill] sm:$0xff] }
 0x816   : > { %14490 = vmatprep.subr.bf16.mxu1 %v14489_v18  ;;  %v20542_v35 = vld [vmem:[#allocation3_spill] sm:$0xff] }
 0x818   : > { %12961 = vmatmul.mubr.f32.gmra.mrb[142].mxu1 %v20514_v19  ;;  %v20543_v19 = vld [vmem:[#allocation12_spill] sm:$0xff] }
 0x819   : > { %14492 = vmatpush3.bf16.msra.mxu1 %v14489_v18  ;;  %12987 = vmatprep.mubr.f32.mxu1 %v20515_v21  ;;  %v20541_v18 = vld [vmem:[#allocation34_spill] sm:$0xff] }
 0x81a   : > { %14494 = vmatprep.subr.bf16.mxu1 %v14493_v63 }
 0x81c   : > { %12988 = vmatmul.mubr.f32.vlgmr.msra.gmra.mrb[132].mxu1 %v20516_v57 }
 0x81d   : > { %14496 = vmatpush3.bf16.msra.mxu1 %v14493_v63  ;;  %12990 = vmatprep.mubr.f32.mxu1 %v20517_v30  ;;  %v20544_v63 = vld [vmem:[#allocation35_spill] sm:$0xff] }
 0x81e   : > { %14498 = vmatprep.subr.bf16.mxu1 %v14497_v34 }
 0x820   : > { %12991 = vmatmul.mubr.f32.gmra.mrb[134].mxu1 %v20518_v48 }
 0x821   : > { %14500 = vmatpush3.bf16.msra.mxu1 %v14497_v34  ;;  %12993 = vmatprep.mubr.f32.mxu1 %v20519_v5  ;;  %v20545_v34 = vld [vmem:[#allocation53_spill] sm:$0xff] }
 0x822   : > { %14502 = vmatprep.subr.bf16.mxu1 %v14501_v17 }
 0x824   : > { %12994 = vmatmul.mubr.f32.gmra.mrb[136].mxu1 %v20520_v60 }
 0x825   : > { %14504 = vmatpush3.bf16.msra.mxu1 %v14501_v17  ;;  %12996 = vmatprep.mubr.f32.mxu1 %v20521_v11  ;;  %v20547_v17 = vld [vmem:[#allocation57_spill] sm:$0xff] }
 0x826   : > { %14506 = vmatprep.subr.bf16.mxu1 %v14505_v8 }
 0x828   : > { %12997 = vmatmul.mubr.f32.gmra.mrb[138].mxu1 %v20522_v53 }
 0x829   : > { %14508 = vmatpush3.bf16.msra.mxu1 %v14505_v8  ;;  %12999 = vmatprep.mubr.f32.mxu1 %v20523_v52  ;;  %v20549_v8 = vld [vmem:[#allocation63_spill] sm:$0xff] }
 0x82a   : > { %14510 = vmatprep.subr.bf16.mxu1 %v14509_v22 }
 0x82c   : > { %13000 = vmatmul.mubr.f32.gmra.mrb[140].mxu1 %v20524_v50 }
 0x82d   : > { %14512 = vmatpush3.bf16.msra.mxu1 %v14509_v22  ;;  %13002 = vmatprep.mubr.f32.mxu1 %v20525_v20 }
 0x82e   : > { %14514 = vmatprep.subr.bf16.mxu1 %v14513_v39 }
 0x830   : > { %13003 = vmatmul.mubr.f32.gmra.mrb[142].mxu1 %v20526_v9 }
 0x831   : > { %14516 = vmatpush3.bf16.msra.mxu1 %v14513_v39  ;;  %13029 = vmatprep.mubr.f32.mxu1 %v20527_v62 }
 0x832   : > { %14518 = vmatprep.subr.bf16.mxu1 %v18276_v12 }
 0x834   : > { %13030 = vmatmul.mubr.f32.vlgmr.msra.gmra.mrb[132].mxu1 %v20528_v2 }
 0x835   : > { %14520 = vmatpush3.bf16.msra.mxu1 %v18276_v12  ;;  %13032 = vmatprep.mubr.f32.mxu1 %v20529_v58 }
 0x836   : > { %14522 = vmatprep.subr.bf16.mxu1 %v18302_v1 }
 0x838   : > { %13033 = vmatmul.mubr.f32.gmra.mrb[134].mxu1 %v20530_v51 }
 0x839   : > { %14524 = vmatpush3.bf16.msra.mxu1 %v18302_v1  ;;  %13035 = vmatprep.mubr.f32.mxu1 %v20531_v14 }
 0x83a   : > { %14526 = vmatprep.subr.bf16.mxu1 %v18322_v49 }
 0x83c   : > { %13036 = vmatmul.mubr.f32.gmra.mrb[136].mxu1 %v20532_v44 }
 0x83d   : > { %14528 = vmatpush3.bf16.msra.mxu1 %v18322_v49  ;;  %13038 = vmatprep.mubr.f32.mxu1 %v20533_v32 }
 0x83e   : > { %14530 = vmatprep.subr.bf16.mxu1 %v18344_v40 }
 0x840   : > { %13039 = vmatmul.mubr.f32.gmra.mrb[138].mxu1 %v20534_v4 }
 0x841   : > { %14532 = vmatpush3.bf16.msra.mxu1 %v18344_v40  ;;  %13041 = vmatprep.mubr.f32.mxu1 %v20535_v41 }
 0x842   : > { %14534 = vmatprep.subr.bf16.mxu1 %v18366_v56 }
 0x844   : > { %13042 = vmatmul.mubr.f32.gmra.mrb[140].mxu1 %v20536_v0 }
 0x845   : > { %14536 = vmatpush3.bf16.msra.mxu1 %v18366_v56  ;;  %13044 = vmatprep.mubr.f32.mxu1 %v20537_v10 }
 0x846   : > { %14538 = vmatprep.subr.bf16.mxu1 %v18386_v6 }
 0x848   : > { %13045 = vmatmul.mubr.f32.gmra.mrb[142].mxu1 %v20538_v36 }
 0x849   : > { %14540 = vmatpush3.bf16.msra.mxu1 %v18386_v6  ;;  %13071 = vmatprep.mubr.f32.mxu1 %v20539_v55 }
 0x84a   : > { %14542 = vmatprep.subr.bf16.mxu1 %v18338_v7 }
 0x84c   : > { %13072 = vmatmul.mubr.f32.vlgmr.msra.gmra.mrb[132].mxu1 %v20540_v25 }
 0x84d   : > { %14544 = vmatpush3.bf16.msra.mxu1 %v18338_v7  ;;  %13074 = vmatprep.mubr.f32.mxu1 %v20541_v18  ;;  %v20546_v7 = vld [vmem:[#allocation48_spill] sm:$0xff] }
 0x84e   : > { %14546 = vmatprep.subr.bf16.mxu1 %v18340_v33 }
 0x850   : > { %13075 = vmatmul.mubr.f32.gmra.mrb[134].mxu1 %v20542_v35 }
 0x851   : > { %14548 = vmatpush3.bf16.msra.mxu1 %v18340_v33  ;;  %13077 = vmatprep.mubr.f32.mxu1 %v20543_v19  ;;  %v20548_v33 = vld [vmem:[#allocation59_spill] sm:$0xff] }
 0x852   : > { %14550 = vmatprep.subr.bf16.mxu1 %v18355_v43 }
 0x854   : > { %13078 = vmatmul.mubr.f32.gmra.mrb[136].mxu1 %v20544_v63 }
 0x855   : > { %14552 = vmatpush3.bf16.msra.mxu1 %v18355_v43  ;;  %13080 = vmatprep.mubr.f32.mxu1 %v20545_v34  ;;  %v20550_v43 = vld [vmem:[#allocation65_spill] sm:$0xff] }
 0x856   : > { %14554 = vmatprep.subr.bf16.mxu1 %v18376_v15 }
 0x858   : > { %13081 = vmatmul.mubr.f32.gmra.mrb[138].mxu1 %v20546_v7 }
 0x859   : > { %14556 = vmatpush3.bf16.msra.mxu1 %v18376_v15  ;;  %13083 = vmatprep.mubr.f32.mxu1 %v20547_v17 }
 0x85a   : > { %14558 = vmatprep.subr.bf16.mxu1 %v18392_v29 }
 0x85c   : > { %13084 = vmatmul.mubr.f32.gmra.mrb[140].mxu1 %v20548_v33 }
 0x85d   : > { %14560 = vmatpush3.bf16.msra.mxu1 %v18392_v29  ;;  %13086 = vmatprep.mubr.f32.mxu1 %v20549_v8  ;;  %v20551_v29 = vmov 0.0|0.0  }
 0x85e   : > { %14562 = vmatprep.subr.bf16.mxu1 %v18399_v23 }
 0x860   : > { %13087 = vmatmul.mubr.f32.gmra.mrb[142].mxu1 %v20550_v43 }
 0x861   : > { %14564 = vmatpush3.bf16.msra.mxu1 %v18399_v23  ;;  %13113 = vmatprep.mubr.f32.mxu1 %v20515_v21 }
 0x862   : > { %14566 = vmatprep.subr.bf16.mxu1 %v18276_v12 }
 0x864   : > { %13114 = vmatmul.mubr.f32.vlgmr.msra.gmra.mrb[132].mxu1 %v20516_v57 }
 0x865   : > { %14568 = vmatpush3.bf16.msra.mxu1 %v18276_v12  ;;  %13116 = vmatprep.mubr.f32.mxu1 %v20517_v30 }
 0x866   : > { %14570 = vmatprep.subr.bf16.mxu1 %v18302_v1 }
 0x868   : > { %13117 = vmatmul.mubr.f32.gmra.mrb[134].mxu1 %v20518_v48 }
 0x869   : > { %14572 = vmatpush3.bf16.msra.mxu1 %v18302_v1  ;;  %13119 = vmatprep.mubr.f32.mxu1 %v20519_v5 }
 0x86a   : > { %14574 = vmatprep.subr.bf16.mxu1 %v18322_v49 }
 0x86c   : > { %13120 = vmatmul.mubr.f32.gmra.mrb[136].mxu1 %v20520_v60 }
 0x86d   : > { %14576 = vmatpush3.bf16.msra.mxu1 %v18322_v49  ;;  %13122 = vmatprep.mubr.f32.mxu1 %v20521_v11 }
 0x86e   : > { %14578 = vmatprep.subr.bf16.mxu1 %v18344_v40 }
 0x870   : > { %13123 = vmatmul.mubr.f32.gmra.mrb[138].mxu1 %v20522_v53 }
 0x871   : > { %14580 = vmatpush3.bf16.msra.mxu1 %v18344_v40  ;;  %13125 = vmatprep.mubr.f32.mxu1 %v20523_v52 }
 0x872   : > { %14582 = vmatprep.subr.bf16.mxu1 %v18366_v56 }
 0x874   : > { %13126 = vmatmul.mubr.f32.gmra.mrb[140].mxu1 %v20524_v50 }
 0x875   : > { %14584 = vmatpush3.bf16.msra.mxu1 %v18366_v56  ;;  %13128 = vmatprep.mubr.f32.mxu1 %v20525_v20 }
 0x876   : > { %14586 = vmatprep.subr.bf16.mxu1 %v18386_v6 }
 0x878   : > { %13129 = vmatmul.mubr.f32.gmra.mrb[142].mxu1 %v20526_v9 }
 0x879   : > { %14588 = vmatpush3.bf16.msra.mxu1 %v18386_v6  ;;  %13155 = vmatprep.mubr.f32.mxu1 %v20515_v21 }
 0x87a   : > { %14733 = vmatprep.subr.bf16.mxu1 %v20551_v29 }
 0x87c   : > { %13156 = vmatmul.mubr.f32.vlgmr.msra.gmra.mrb[132].mxu1 %v20516_v57 }
 0x87d   : > { %13158 = vmatprep.mubr.f32.mxu1 %v20517_v30 }
 0x880   : > { %13159 = vmatmul.mubr.f32.gmra.mrb[134].mxu1 %v20518_v48 }
 0x881   : > { %13161 = vmatprep.mubr.f32.mxu1 %v20519_v5 }
 0x884   : > { %13162 = vmatmul.mubr.f32.gmra.mrb[136].mxu1 %v20520_v60 }
 0x885   : > { %13164 = vmatprep.mubr.f32.mxu1 %v20521_v11 }
 0x888   : > { %13165 = vmatmul.mubr.f32.gmra.mrb[138].mxu1 %v20522_v53 }
 0x889   : > { %13167 = vmatprep.mubr.f32.mxu1 %v20523_v52 }
 0x88c   : > { %13168 = vmatmul.mubr.f32.gmra.mrb[140].mxu1 %v20524_v50 }
 0x88d   : > { %13170 = vmatprep.mubr.f32.mxu1 %v20525_v20 }
 0x890   : > { %13171 = vmatmul.mubr.f32.gmra.mrb[142].mxu1 %v20526_v9 }
 0x94f   : > { %v13157_v15 = vpop.f32.mrb[132].mxu1 }
 0x950   : > { %v18528_v6 = vadd.f32 %v18255_v28, %v13157_v15  ;;  %v8190_v40 = vpop.f32.mrb[133].mxu1 }
 0x951   : > { %v18531_v12 = vadd.f32 %v18260_v13, %v8190_v40 }
 0x952   : > { %v8276_v1 = vand.u32 4294901760, %v18528_v6 }
 0x953   : > { %v8273_v49 = vand.u32 4294901760, %v18531_v12  ;;  %v13160_v56 = vpop.f32.mrb[134].mxu1 }
 0x954   : > { %v18536_v23 = vsub.f32 %v18528_v6, %v8276_v1  ;;  %v18539_v21 = vadd.f32 %v18271_v24, %v13160_v56  ;;  %v8202_v57 = vpop.f32.mrb[135].mxu1 }
 0x955   : > { %v18541_v30 = vpack.c.bf16 %v8276_v1, %v8273_v49  ;;  %v18544_v28 = vsub.f32 %v18531_v12, %v8273_v49  ;;  %v18547_v13 = vadd.f32 %v18278_v31, %v8202_v57 }
 0x956   : > { %v8282_v48 = vand.u32 4294901760, %v18539_v21  ;;  %v8479_v5 = vand.u32 4294901760, %v18536_v23 }
 0x957   : > { %v8279_v60 = vand.u32 4294901760, %v18547_v13  ;;  %v13163_v11 = vpop.f32.mrb[136].mxu1  ;;  %14590 = vmatprep.subr.bf16.mxu0 %v18541_v30  ;;  %v8472_v24 = vand.u32 4294901760, %v18544_v28 }
 0x958   : > { %v18555_v53 = vsub.f32 %v18539_v21, %v8282_v48  ;;  %v18558_v22 = vadd.f32 %v18300_v37, %v13163_v11  ;;  %v8214_v52 = vpop.f32.mrb[137].mxu1  ;;  %14592 = vmatpush3.bf16.msra.mxu0 %v18541_v30  ;;  %v8480_v34 = vsub.f32 %v18536_v23, %v8479_v5 }
 0x959   : > { %v18561_v31 = vpack.c.bf16 %v8282_v48, %v8279_v60  ;;  %v18564_v50 = vsub.f32 %v18547_v13, %v8279_v60  ;;  %v18567_v39 = vadd.f32 %v18307_v61, %v8214_v52  ;;  %v18570_v9 = vpack.c.bf16 %v8479_v5, %v8472_v24 }
 0x95a   : > { %v8288_v20 = vand.u32 4294901760, %v18558_v22  ;;  %v8493_v58 = vand.u32 4294901760, %v18555_v53  ;;  %v8473_v7 = vsub.f32 %v18544_v28, %v8472_v24  ;;  %v8481_v48 = vand.u32 4294901760, %v8480_v34 }
 0x95b   : > { %v8285_v62 = vand.u32 4294901760, %v18567_v39  ;;  %v13166_v2 = vpop.f32.mrb[138].mxu1  ;;  %14594 = vmatprep.subr.bf16.mxu0 %v18561_v31  ;;  %v8486_v37 = vand.u32 4294901760, %v18564_v50 }
 0x95c   : > { %v18577_v51 = vsub.f32 %v18558_v22, %v8288_v20  ;;  %v18580_v14 = vadd.f32 %v18320_v26, %v13166_v2  ;;  %v8226_v61 = vpop.f32.mrb[139].mxu1  ;;  %14596 = vmatpush3.bf16.msra.mxu0 %v18561_v31  ;;  %v8474_v60 = vand.u32 4294901760, %v8473_v7 }
 0x95d   : > { %v18583_v44 = vpack.c.bf16 %v8288_v20, %v8285_v62  ;;  %v18586_v32 = vsub.f32 %v18567_v39, %v8285_v62  ;;  %v18589_v4 = vadd.f32 %v18327_v3, %v8226_v61  ;;  %v18594_v26 = vpack.c.bf16 %v8493_v58, %v8486_v37 }
 0x95e   : > { %v8294_v41 = vand.u32 4294901760, %v18580_v14  ;;  %v8507_v18 = vand.u32 4294901760, %v18577_v51  ;;  %v8487_v52 = vsub.f32 %v18564_v50, %v8486_v37 }
 0x95f   : > { %v8291_v0 = vand.u32 4294901760, %v18589_v4  ;;  %v13169_v10 = vpop.f32.mrb[140].mxu1  ;;  %14598 = vmatprep.subr.bf16.mxu0 %v18583_v44  ;;  %v8500_v3 = vand.u32 4294901760, %v18586_v32 }
 0x960   : > { %v18597_v36 = vsub.f32 %v18580_v14, %v8294_v41  ;;  %v18600_v55 = vadd.f32 %v18342_v38, %v13169_v10  ;;  %v8238_v25 = vpop.f32.mrb[141].mxu1  ;;  %14600 = vmatpush3.bf16.msra.mxu0 %v18583_v44  ;;  %v8488_v10 = vand.u32 4294901760, %v8487_v52  ;;  %v8508_v34 = vsub.f32 %v18577_v51, %v8507_v18 }
 0x961   : > { %v18605_v35 = vpack.c.bf16 %v8294_v41, %v8291_v0  ;;  %v18608_v19 = vsub.f32 %v18589_v4, %v8291_v0  ;;  %v18611_v63 = vadd.f32 %v18351_v27, %v8238_v25  ;;  %v18627_v1 = vpack.c.bf16 %v8507_v18, %v8500_v3 }
 0x962   : > { %v8300_v38 = vand.u32 4294901760, %v18600_v55  ;;  %v8521_v43 = vand.u32 4294901760, %v18597_v36  ;;  %v14613_v41 = vpack.c.bf16 %v8481_v48, %v8474_v60  ;;  %v8501_v25 = vsub.f32 %v18586_v32, %v8500_v3  ;;  %v20554_v3 = vld [vmem:[#allocation88_spill] sm:$0xff] }
 0x963   : > { %v8297_v17 = vand.u32 4294901760, %v18611_v63  ;;  %v13172_v33 = vpop.f32.mrb[142].mxu1  ;;  %14602 = vmatprep.subr.bf16.mxu0 %v18605_v35  ;;  %v8514_v8 = vand.u32 4294901760, %v18608_v19  ;;  %v8509_v60 = vand.u32 4294901760, %v8508_v34 }
 0x964   : > { %v18621_v15 = vsub.f32 %v18600_v55, %v8300_v38  ;;  %v18624_v27 = vadd.f32 %v18364_v16, %v13172_v33  ;;  %v8250_v40 = vpop.f32.mrb[143].mxu1  ;;  %14604 = vmatpush3.bf16.msra.mxu0 %v18605_v35  ;;  %v8494_v16 = vsub.f32 %v18555_v53, %v8493_v58  ;;  %v8522_v33 = vsub.f32 %v18597_v36, %v8521_v43 }
 0x965   : > { %v18629_v49 = vpack.c.bf16 %v8300_v38, %v8297_v17  ;;  %v18632_v56 = vsub.f32 %v18611_v63, %v8297_v17  ;;  %v18635_v57 = vadd.f32 %v18371_v54, %v8250_v40  ;;  %v18644_v62 = vpack.c.bf16 %v8521_v43, %v8514_v8  ;;  %v20553_v40 = vld [vmem:[#allocation85_spill] sm:$0xff] }
 0x966   : > { %v8306_v5 = vand.u32 4294901760, %v18624_v27  ;;  %v8535_v11 = vand.u32 4294901760, %v18621_v15  ;;  %v8495_v0 = vand.u32 4294901760, %v8494_v16  ;;  %v8515_v17 = vsub.f32 %v18608_v19, %v8514_v8 }
 0x967   : > { %20552 = vst [vmem:[#allocation70_spill] sm:$0xff] %v18635_v57  ;;  %v8303_v24 = vand.u32 4294901760, %v18635_v57  ;;  %14606 = vmatprep.subr.bf16.mxu0 %v18629_v49  ;;  %v8528_v20 = vand.u32 4294901760, %v18632_v56  ;;  %v8523_v16 = vand.u32 4294901760, %v8522_v33  ;;  %v9412_v33 = vld [vmem:[%s19759_s10 + $0x28] sm:$0xff] }
 0x968   : > { %v18647_v54 = vsub.f32 %v18624_v27, %v8306_v5  ;;  %14608 = vmatpush3.bf16.msra.mxu0 %v18629_v49  ;;  %v14617_v48 = vpack.c.bf16 %v8495_v0, %v8488_v10  ;;  %v8516_v18 = vand.u32 4294901760, %v8515_v17  ;;  %v8536_v8 = vsub.f32 %v18621_v15, %v8535_v11  ;;  %v20556_v0 = vld [vmem:[#allocation121_spill] sm:$0xff] }
 0x969   : > { %v18650_v2 = vpack.c.bf16 %v8306_v5, %v8303_v24  ;;  %v18653_v58 = vsub.f32 %v18635_v57, %v8303_v24  ;;  %v18655_v61 = vpack.c.bf16 %v8535_v11, %v8528_v20  ;;  %v8502_v5 = vand.u32 4294901760, %v8501_v25  ;;  %v20555_v24 = vld [vmem:[#allocation112_spill] sm:$0xff] }
 0x96a   : > { %v8549_v37 = vand.u32 4294901760, %v18647_v54  ;;  %v8529_v57 = vsub.f32 %v18632_v56, %v8528_v20  ;;  %v14625_v43 = vpack.c.bf16 %v8523_v16, %v8516_v18  ;;  %v8537_v10 = vand.u32 4294901760, %v8536_v8  ;;  %v20565_v16 = vld [vmem:[#allocation90_spill] sm:$0xff] }
 0x96b   : > { %14610 = vmatprep.subr.bf16.mxu0 %v18650_v2  ;;  %v8542_v38 = vand.u32 4294901760, %v18653_v58  ;;  %v14621_v52 = vpack.c.bf16 %v8509_v60, %v8502_v5  ;;  %v9415_v5 = vld [vmem:[%s19759_s10 + $0x40] sm:$0xff]  ;;  %v14645_v60 = vpack.c.bf16 %v18577_v51, %v18586_v32  ;;  %v14649_v18 = vpack.c.bf16 %v18597_v36, %v18608_v19  ;;  %v20567_v32 = vld [vmem:[#allocation105_spill] sm:$0xff]  ;;  %v20569_v36 = vld [vmem:[#allocation111_spill] sm:$0xff] }
 0x96c   : > { %14612 = vmatpush3.bf16.msra.mxu0 %v18650_v2  ;;  %v8550_v34 = vsub.f32 %v18647_v54, %v8549_v37  ;;  %v14653_v51 = vpack.c.bf16 %v18621_v15, %v18632_v56  ;;  %v14657_v8 = vpack.c.bf16 %v18647_v54, %v18653_v58  ;;  %v20570_v19 = vld [vmem:[#allocation116_spill] sm:$0xff]  ;;  %v20572_v15 = vld [vmem:[#allocation50_spill] sm:$0xff]  ;;  %v20573_v56 = vld [vmem:[#allocation71_spill] sm:$0xff] }
 0x96d   : > { %14614 = vmatprep.subr.bf16.mxu0 %v14613_v41  ;;  %v18663_v7 = vpack.c.bf16 %v8549_v37, %v8542_v38  ;;  %v8543_v25 = vsub.f32 %v18653_v58, %v8542_v38  ;;  %v20557_v37 = vld [vmem:[#allocation124_spill] sm:$0xff]  ;;  %v20558_v38 = vld [vmem:[#allocation125_spill] sm:$0xff]  ;;  %v20574_v54 = vld [vmem:[#allocation74_spill] sm:$0xff] }
 0x96e   : > { %v8551_v17 = vand.u32 4294901760, %v8550_v34  ;;  %v20575_v58 = vld [vmem:[#allocation82_spill] sm:$0xff]  ;;  %v20580_v34 = vld [vmem:[#allocation115_spill] sm:$0xff] }
 0x96f   : > { %13198 = vmatmul.mubr.f32.vlgmr.msra.gmra.mrb[96].mxu0 %v20553_v40  ;;  %v8544_v20 = vand.u32 4294901760, %v8543_v25  ;;  %v20560_v40 = vld [vmem:[#allocation32_spill] sm:$0xff]  ;;  %v20579_v25 = vld [vmem:[#allocation110_spill] sm:$0xff] }
 0x970   : > { %14616 = vmatpush3.bf16.msra.mxu0 %v14613_v41  ;;  %13200 = vmatprep.mubr.f32.mxu0 %v20554_v3  ;;  %v8530_v41 = vand.u32 4294901760, %v8529_v57  ;;  %v15586_v57 = vmov 0   ;;  %v9416_v3 = vld [vmem:[%s19759_s10 + $0x48] sm:$0xff] }
 0x971   : > { %14618 = vmatprep.subr.bf16.mxu0 %v14617_v48  ;;  %15458 = vset.pattern.permute.xlu0 %v15586_v57 }
 0x972   : > { %v14629_v11 = vpack.c.bf16 %v8537_v10, %v8530_v41  ;;  %15459 = vset.pattern.permute.xlu1 %v15586_v57  ;;  %v20577_v41 = vld [vmem:[#allocation98_spill] sm:$0xff]  ;;  %v20578_v10 = vld [vmem:[#allocation104_spill] sm:$0xff] }
 0x973   : > { %13201 = vmatmul.mubr.f32.gmra.mrb[98].mxu0 %v20555_v24  ;;  %v20566_v24 = vld [vmem:[#allocation92_spill] sm:$0xff] }
 0x974   : > { %14620 = vmatpush3.bf16.msra.mxu0 %v14617_v48  ;;  %13203 = vmatprep.mubr.f32.mxu0 %v18047_v46  ;;  %v9407_v46 = vld [vmem:[%s19759_s10] sm:$0xff]  ;;  %v14641_v48 = vpack.c.bf16 %v18555_v53, %v18564_v50  ;;  %v20563_v53 = vld [vmem:[#allocation77_spill] sm:$0xff]  ;;  %v20585_v57 = vld [vmem:[#allocation76_spill] sm:$0xff] }
 0x975   : > { %14622 = vmatprep.subr.bf16.mxu0 %v14621_v52  ;;  %9439 = vperm.xlu0 %15458, %v9407_v46   ;;  %v20564_v50 = vld [vmem:[#allocation81_spill] sm:$0xff] }
 0x976   : > { %v20584_v46 = vld [vmem:[#allocation73_spill] sm:$0xff] }
 0x977   : > { %13204 = vmatmul.mubr.f32.gmra.mrb[100].mxu0 %v20556_v0  ;;  %v20576_v0 = vld [vmem:[#allocation89_spill] sm:$0xff] }
 0x978   : > { %14624 = vmatpush3.bf16.msra.mxu0 %v14621_v52  ;;  %13206 = vmatprep.mubr.f32.mxu0 %v18071_v47  ;;  %v14633_v47 = vpack.c.bf16 %v8551_v17, %v8544_v20  ;;  %v20568_v52 = vld [vmem:[#allocation106_spill] sm:$0xff]  ;;  %v20582_v20 = vld [vmem:[#allocation120_spill] sm:$0xff]  ;;  %v20583_v17 = vld [vmem:[#allocation11_spill] sm:$0xff] }
 0x979   : > { %14626 = vmatprep.subr.bf16.mxu0 %v14625_v43 }
 0x97b   : > { %13207 = vmatmul.mubr.f32.gmra.mrb[102].mxu0 %v18078_v45  ;;  %v9411_v45 = vld [vmem:[%s19759_s10 + $0x20] sm:$0xff] }
 0x97c   : > { %14628 = vmatpush3.bf16.msra.mxu0 %v14625_v43  ;;  %13209 = vmatprep.mubr.f32.mxu0 %v18089_v59  ;;  %v14637_v59 = vpack.c.bf16 %v18536_v23, %v18544_v28  ;;  %v20561_v23 = vld [vmem:[#allocation42_spill] sm:$0xff]  ;;  %v20562_v28 = vld [vmem:[#allocation29_spill] sm:$0xff] }
 0x97d   : > { %14630 = vmatprep.subr.bf16.mxu0 %v14629_v11  ;;  %9459 = vperm.xlu0 %15458, %v9411_v45   ;;  %v20571_v43 = vld [vmem:[#allocation49_spill] sm:$0xff]  ;;  %v20587_v45 = vld [vmem:[#allocation91_spill] sm:$0xff] }
 0x97f   : > { %13210 = vmatmul.mubr.f32.gmra.mrb[104].mxu0 %v18093_v42  ;;  %v20559_v42 = vld [vmem:[#allocation25_spill] sm:$0xff] }
 0x980   : > { %14632 = vmatpush3.bf16.msra.mxu0 %v14629_v11  ;;  %13212 = vmatprep.mubr.f32.mxu0 %v20557_v37  ;;  %v20581_v11 = vld [vmem:[#allocation118_spill] sm:$0xff]  ;;  %v20588_v37 = vld [vmem:[#allocation97_spill] sm:$0xff] }
 0x981   : > { %14634 = vmatprep.subr.bf16.mxu0 %v14633_v47  ;;  %9464 = vperm.xlu0 %15458, %v9412_v33   ;;  %v20593_v33 = vld [vmem:[#allocation122_spill] sm:$0xff] }
 0x983   : > { %13213 = vmatmul.mubr.f32.gmra.mrb[106].mxu0 %v20558_v38  ;;  %v20589_v38 = vld [vmem:[#allocation109_spill] sm:$0xff] }
 0x984   : > { %14636 = vmatpush3.bf16.msra.mxu0 %v14633_v47  ;;  %13239 = vmatprep.mubr.f32.mxu0 %v20559_v42  ;;  %v20586_v47 = vld [vmem:[#allocation79_spill] sm:$0xff] }
 0x985   : > { %14638 = vmatprep.subr.bf16.mxu0 %v14637_v59  ;;  %9479 = vperm.xlu0 %15458, %v9415_v5  }
 0x987   : > { %13240 = vmatmul.mubr.f32.vlgmr.msra.gmra.mrb[96].mxu0 %v20560_v40 }
 0x988   : > { %14640 = vmatpush3.bf16.msra.mxu0 %v14637_v59  ;;  %13242 = vmatprep.mubr.f32.mxu0 %v20561_v23  ;;  %v20591_v59 = vld [vmem:[#allocation117_spill] sm:$0xff] }
 0x989   : > { %14642 = vmatprep.subr.bf16.mxu0 %v14641_v48  ;;  %9484 = vperm.xlu0 %15458, %v9416_v3  }
 0x98b   : > { %13243 = vmatmul.mubr.f32.gmra.mrb[98].mxu0 %v20562_v28 }
 0x98c   : > { %14644 = vmatpush3.bf16.msra.mxu0 %v14641_v48  ;;  %13245 = vmatprep.mubr.f32.mxu0 %v20563_v53 }
 0x98d   : > { %14646 = vmatprep.subr.bf16.mxu0 %v14645_v60 }
 0x98f   : > { %13246 = vmatmul.mubr.f32.gmra.mrb[100].mxu0 %v20564_v50 }
 0x990   : > { %14648 = vmatpush3.bf16.msra.mxu0 %v14645_v60  ;;  %13248 = vmatprep.mubr.f32.mxu0 %v20565_v16 }
 0x991   : > { %14650 = vmatprep.subr.bf16.mxu0 %v14649_v18 }
 0x993   : > { %13249 = vmatmul.mubr.f32.gmra.mrb[102].mxu0 %v20566_v24 }
 0x994   : > { %14652 = vmatpush3.bf16.msra.mxu0 %v14649_v18  ;;  %13251 = vmatprep.mubr.f32.mxu0 %v20567_v32 }
 0x995   : > { %14654 = vmatprep.subr.bf16.mxu0 %v14653_v51 }
 0x997   : > { %13252 = vmatmul.mubr.f32.gmra.mrb[104].mxu0 %v20568_v52 }
 0x998   : > { %14656 = vmatpush3.bf16.msra.mxu0 %v14653_v51  ;;  %13254 = vmatprep.mubr.f32.mxu0 %v20569_v36 }
 0x999   : > { %14658 = vmatprep.subr.bf16.mxu0 %v14657_v8 }
 0x99b   : > { %13255 = vmatmul.mubr.f32.gmra.mrb[106].mxu0 %v20570_v19 }
 0x99c   : > { %14660 = vmatpush3.bf16.msra.mxu0 %v14657_v8  ;;  %13281 = vmatprep.mubr.f32.mxu0 %v20571_v43 }
 0x99d   : > { %14662 = vmatprep.subr.bf16.mxu0 %v18541_v30 }
 0x99f   : > { %13282 = vmatmul.mubr.f32.vlgmr.msra.gmra.mrb[96].mxu0 %v20572_v15  ;;  %v20598_v15 = vld [vmem:[#allocation33_spill] sm:$0xff] }
 0x9a0   : > { %14664 = vmatpush3.bf16.msra.mxu0 %v18541_v30  ;;  %13284 = vmatprep.mubr.f32.mxu0 %v20573_v56 }
 0x9a1   : > { %14666 = vmatprep.subr.bf16.mxu0 %v18561_v31 }
 0x9a3   : > { %13285 = vmatmul.mubr.f32.gmra.mrb[98].mxu0 %v20574_v54 }
 0x9a4   : > { %14668 = vmatpush3.bf16.msra.mxu0 %v18561_v31  ;;  %13287 = vmatprep.mubr.f32.mxu0 %v20575_v58 }
 0x9a5   : > { %14670 = vmatprep.subr.bf16.mxu0 %v18583_v44 }
 0x9a7   : > { %13288 = vmatmul.mubr.f32.gmra.mrb[100].mxu0 %v20576_v0  ;;  %v20599_v0 = vld [vmem:[#allocation101_spill] sm:$0xff] }
 0x9a8   : > { %14672 = vmatpush3.bf16.msra.mxu0 %v18583_v44  ;;  %13290 = vmatprep.mubr.f32.mxu0 %v20577_v41 }
 0x9a9   : > { %14674 = vmatprep.subr.bf16.mxu0 %v18605_v35 }
 0x9ab   : > { %13291 = vmatmul.mubr.f32.gmra.mrb[102].mxu0 %v20578_v10 }
 0x9ac   : > { %14676 = vmatpush3.bf16.msra.mxu0 %v18605_v35  ;;  %13293 = vmatprep.mubr.f32.mxu0 %v20579_v25 }
 0x9ad   : > { %14678 = vmatprep.subr.bf16.mxu0 %v18629_v49 }
 0x9af   : > { %13294 = vmatmul.mubr.f32.gmra.mrb[104].mxu0 %v20580_v34 }
 0x9b0   : > { %14680 = vmatpush3.bf16.msra.mxu0 %v18629_v49  ;;  %13296 = vmatprep.mubr.f32.mxu0 %v20581_v11 }
 0x9b1   : > { %14682 = vmatprep.subr.bf16.mxu0 %v18650_v2 }
 0x9b3   : > { %13297 = vmatmul.mubr.f32.gmra.mrb[106].mxu0 %v20582_v20  ;;  %v20600_v20 = vld [vmem:[#allocation107_spill] sm:$0xff] }
 0x9b4   : > { %14684 = vmatpush3.bf16.msra.mxu0 %v18650_v2  ;;  %13323 = vmatprep.mubr.f32.mxu0 %v20583_v17 }
 0x9b5   : > { %14686 = vmatprep.subr.bf16.mxu0 %v18570_v9 }
 0x9b7   : > { %13324 = vmatmul.mubr.f32.vlgmr.msra.gmra.mrb[96].mxu0 %v20584_v46 }
 0x9b8   : > { %14688 = vmatpush3.bf16.msra.mxu0 %v18570_v9  ;;  %13326 = vmatprep.mubr.f32.mxu0 %v20585_v57  ;;  %v20590_v9 = vld [vmem:[#allocation113_spill] sm:$0xff] }
 0x9b9   : > { %14690 = vmatprep.subr.bf16.mxu0 %v18594_v26 }
 0x9bb   : > { %13327 = vmatmul.mubr.f32.gmra.mrb[98].mxu0 %v20586_v47  ;;  %v20601_v47 = vld [vmem:[#allocation70_spill] sm:$0xff] }
 0x9bc   : > { %14692 = vmatpush3.bf16.msra.mxu0 %v18594_v26  ;;  %13329 = vmatprep.mubr.f32.mxu0 %v20587_v45  ;;  %v20592_v26 = vld [vmem:[#allocation119_spill] sm:$0xff] }
 0x9bd   : > { %14694 = vmatprep.subr.bf16.mxu0 %v18627_v1 }
 0x9bf   : > { %13330 = vmatmul.mubr.f32.gmra.mrb[100].mxu0 %v20588_v37 }
 0x9c0   : > { %14696 = vmatpush3.bf16.msra.mxu0 %v18627_v1  ;;  %13332 = vmatprep.mubr.f32.mxu0 %v20589_v38  ;;  %v20594_v1 = vld [vmem:[#allocation123_spill] sm:$0xff] }
 0x9c1   : > { %14698 = vmatprep.subr.bf16.mxu0 %v18644_v62 }
 0x9c3   : > { %13333 = vmatmul.mubr.f32.gmra.mrb[102].mxu0 %v20590_v9 }
 0x9c4   : > { %14700 = vmatpush3.bf16.msra.mxu0 %v18644_v62  ;;  %13335 = vmatprep.mubr.f32.mxu0 %v20591_v59  ;;  %v20603_v59 = vld [vmem:[#allocation14_spill] sm:$0xff] }
 0x9c5   : > { %14702 = vmatprep.subr.bf16.mxu0 %v18655_v61 }
 0x9c7   : > { %13336 = vmatmul.mubr.f32.gmra.mrb[104].mxu0 %v20592_v26 }
 0x9c8   : > { %14704 = vmatpush3.bf16.msra.mxu0 %v18655_v61  ;;  %13338 = vmatprep.mubr.f32.mxu0 %v20593_v33  ;;  %v18875_v33 = vld [vmem:[%s19757_s8 + $0x28] sm:$0xff] }
 0x9c9   : > { %14706 = vmatprep.subr.bf16.mxu0 %v18663_v7  ;;  %vm9424_vm6 = vcmp.gt.f32.partialorder %v18875_v33, 0.5 }
 0x9cb   : > { %13339 = vmatmul.mubr.f32.gmra.mrb[106].mxu0 %v20594_v1 }
 0x9cc   : > { %14708 = vmatpush3.bf16.msra.mxu0 %v18663_v7  ;;  %13365 = vmatprep.mubr.f32.mxu0 %v20559_v42 }
 0x9cd   : > { %14710 = vmatprep.subr.bf16.mxu0 %v18541_v30 }
 0x9cf   : > { %13366 = vmatmul.mubr.f32.vlgmr.msra.gmra.mrb[96].mxu0 %v20560_v40 }
 0x9d0   : > { %14712 = vmatpush3.bf16.msra.mxu0 %v18541_v30  ;;  %13368 = vmatprep.mubr.f32.mxu0 %v20561_v23 }
 0x9d1   : > { %14714 = vmatprep.subr.bf16.mxu0 %v18561_v31 }
 0x9d3   : > { %13369 = vmatmul.mubr.f32.gmra.mrb[98].mxu0 %v20562_v28 }
 0x9d4   : > { %14716 = vmatpush3.bf16.msra.mxu0 %v18561_v31  ;;  %13371 = vmatprep.mubr.f32.mxu0 %v20563_v53 }
 0x9d5   : > { %14718 = vmatprep.subr.bf16.mxu0 %v18583_v44 }
 0x9d7   : > { %13372 = vmatmul.mubr.f32.gmra.mrb[100].mxu0 %v20564_v50 }
 0x9d8   : > { %14720 = vmatpush3.bf16.msra.mxu0 %v18583_v44  ;;  %13374 = vmatprep.mubr.f32.mxu0 %v20565_v16 }
 0x9d9   : > { %14722 = vmatprep.subr.bf16.mxu0 %v18605_v35 }
 0x9db   : > { %13375 = vmatmul.mubr.f32.gmra.mrb[102].mxu0 %v20566_v24 }
 0x9dc   : > { %14724 = vmatpush3.bf16.msra.mxu0 %v18605_v35  ;;  %13377 = vmatprep.mubr.f32.mxu0 %v20567_v32 }
 0x9dd   : > { %14726 = vmatprep.subr.bf16.mxu0 %v18629_v49 }
 0x9df   : > { %13378 = vmatmul.mubr.f32.gmra.mrb[104].mxu0 %v20568_v52 }
 0x9e0   : > { %14728 = vmatpush3.bf16.msra.mxu0 %v18629_v49  ;;  %13380 = vmatprep.mubr.f32.mxu0 %v20569_v36 }
 0x9e1   : > { %14730 = vmatprep.subr.bf16.mxu0 %v18650_v2 }
 0x9e3   : > { %13381 = vmatmul.mubr.f32.gmra.mrb[106].mxu0 %v20570_v19 }
 0x9e4   : > { %14732 = vmatpush3.bf16.msra.mxu0 %v18650_v2  ;;  %13407 = vmatprep.mubr.f32.mxu0 %v20559_v42 }
 0x9e5   : > { %14841 = vmatprep.subr.bf16.mxu0 %v20551_v29 }
 0x9e7   : > { %13408 = vmatmul.mubr.f32.vlgmr.msra.gmra.mrb[96].mxu0 %v20560_v40 }
 0x9e8   : > { %13410 = vmatprep.mubr.f32.mxu0 %v20561_v23 }
 0x9eb   : > { %13411 = vmatmul.mubr.f32.gmra.mrb[98].mxu0 %v20562_v28 }
 0x9ec   : > { %13413 = vmatprep.mubr.f32.mxu0 %v20563_v53 }
 0x9ef   : > { %13414 = vmatmul.mubr.f32.gmra.mrb[100].mxu0 %v20564_v50 }
 0x9f0   : > { %13416 = vmatprep.mubr.f32.mxu0 %v20565_v16 }
 0x9f3   : > { %13417 = vmatmul.mubr.f32.gmra.mrb[102].mxu0 %v20566_v24  ;;  %v20596_v24 = vld [vmem:[#allocation95_spill] sm:$0xff] }
 0x9f4   : > { %13419 = vmatprep.mubr.f32.mxu0 %v20567_v32  ;;  %v18836_v32 = vld [vmem:[%s19757_s8 + $0x10] sm:$0xff] }
 0x9f5   : > { %vm20092_vm5 = vcmp.gt.f32.partialorder %v18836_v32, 0.5 }
 0x9f7   : > { %13420 = vmatmul.mubr.f32.gmra.mrb[104].mxu0 %v20568_v52 }
 0x9f8   : > { %13422 = vmatprep.mubr.f32.mxu0 %v20569_v36 }
 0x9fb   : > { %13423 = vmatmul.mubr.f32.gmra.mrb[106].mxu0 %v20570_v19  ;;  %v20597_v19 = vld [vmem:[#allocation41_spill] sm:$0xff] }
 0xaba   : > { %v13409_v30 = vpop.f32.mrb[96].mxu0 }
 0xabb   : > { %v9335_v31 = vadd.f32 %v13409_v30, %v18528_v6  ;;  %v9264_v44 = vpop.f32.mrb[97].mxu0  ;;  %v20604_v30 = vld [vmem:[#allocation83_spill] sm:$0xff] }
 0xabc   : > { %v9334_v35 = vadd.f32 %v9264_v44, %v18531_v12 }
 0xabd   : > { %15548 = vlog2.f32 %v9335_v31 }
 0xabe   : > { %15550 = vlog2.f32 %v9334_v35  ;;  %v13412_v49 = vpop.f32.mrb[98].mxu0  ;;  %v18886_v35 = vld [vmem:[%s19757_s8 + $0x20] sm:$0xff] }
 0xabf   : > { %v9337_v62 = vadd.f32 %v13412_v49, %v18539_v21  ;;  %v9276_v2 = vpop.f32.mrb[99].mxu0  ;;  %vm9423_vm7 = vcmp.gt.f32.partialorder %v18886_v35, 0.5 }
 0xac0   : > { %v9336_v61 = vadd.f32 %v9276_v2, %v18547_v13  ;;  %v18817_v13 = vld [vmem:[%s19757_s8 + $0x8] sm:$0xff]  ;;  %v20605_v2 = vld [vmem:[#allocation93_spill] sm:$0xff] }
 0xac1   : > { %15552 = vlog2.f32 %v9337_v62  ;;  %vm20090_vm2 = vcmp.gt.f32.partialorder %v18817_v13, 0.5 }
 0xac2   : > { %15554 = vlog2.f32 %v9336_v61  ;;  %v13415_v7 = vpop.f32.mrb[100].mxu0 }
 0xac3   : > { %v9339_v42 = vadd.f32 %v13415_v7, %v18558_v22  ;;  %v9288_v40 = vpop.f32.mrb[101].mxu0 }
 0xac4   : > { %v9338_v48 = vadd.f32 %v9288_v40, %v18567_v39  ;;  %v18822_v39 = vld [vmem:[%s19757_s8] sm:$0xff] }
 0xac5   : > { %15556 = vlog2.f32 %v9339_v42  ;;  %vm20088_vm3 = vcmp.gt.f32.partialorder %v18822_v39, 0.5 }
 0xac6   : > { %15558 = vlog2.f32 %v9338_v48  ;;  %v13418_v6 = vpop.f32.mrb[102].mxu0  ;;  %v20606_v48 = vld [vmem:[#allocation17_spill] sm:$0xff] }
 0xac7   : > { %v15549_v12 = vpop.eup %15548  ;;  %v9341_v5 = vadd.f32 %v13418_v6, %v18580_v14  ;;  %v9300_v23 = vpop.f32.mrb[103].mxu0  ;;  %v20595_v14 = vld [vmem:[#allocation86_spill] sm:$0xff] }
 0xac8   : > { %v15551_v28 = vpop.eup %15550  ;;  %v9349_v21 = vmul.f32 0.6931472, %v15549_v12  ;;  %v9340_v60 = vadd.f32 %v9300_v23, %v18589_v4  ;;  %v18828_v4 = vld [vmem:[%s19757_s8 + $0x18] sm:$0xff]  ;;  %v20607_v23 = vld [vmem:[#allocation24_spill] sm:$0xff] }
 0xac9   : > { %v9347_v22 = vmul.f32 0.6931472, %v15551_v28  ;;  %15560 = vlog2.f32 %v9341_v5  ;;  %vm9422_vm4 = vcmp.gt.f32.partialorder %v18828_v4, 0.5  ;;  %v18904_v12 = vld [vmem:[%s19757_s8 + $0x38] sm:$0xff] }
 0xaca   : > { %15562 = vlog2.f32 %v9340_v60  ;;  %v13421_v3 = vpop.f32.mrb[104].mxu0  ;;  %v9371_v53 = vadd.f32 %v9349_v21, %v20595_v14  ;;  %v18913_v21 = vld [vmem:[%s19757_s8 + $0x30] sm:$0xff]  ;;  %vm9426_vm8 = vcmp.gt.f32.partialorder %v18904_v12, 0.5 }
 0xacb   : > { %v15553_v50 = vpop.eup %15552  ;;  %v9343_v18 = vadd.f32 %v13421_v3, %v18600_v55  ;;  %v9312_v16 = vpop.f32.mrb[105].mxu0  ;;  %v9370_v51 = vadd.f32 %v9347_v22, %v20596_v24  ;;  %v20608_v22 = vld [vmem:[#allocation100_spill] sm:$0xff]  ;;  %vm9425_vm9 = vcmp.gt.f32.partialorder %v18913_v21, 0.5 }
 0xacc   : > { %v15555_v52 = vpop.eup %15554  ;;  %v9353_v8 = vmul.f32 0.6931472, %v15553_v50  ;;  %v9342_v36 = vadd.f32 %v9312_v16, %v18611_v63  ;;  %v18841_v43 = vsub.f32 %v20597_v19, %v9371_v53 }
 0xacd   : > { %v9351_v55 = vmul.f32 0.6931472, %v15555_v52  ;;  %15564 = vlog2.f32 %v9343_v18  ;;  %v18844_v56 = vsub.f32 %v20598_v15, %v9370_v51  ;;  %v20609_v18 = vld [vmem:[#allocation103_spill] sm:$0xff] }
 0xace   : > { %15566 = vlog2.f32 %v9342_v36  ;;  %v13424_v54 = vpop.f32.mrb[106].mxu0  ;;  %v18850_v58 = vsel %vm20090_vm2, %v18841_v43, -1e+30  ;;  %v9373_v41 = vadd.f32 %v9353_v8, %v20599_v0  ;;  %v20610_v8 = vld [vmem:[#allocation40_spill] sm:$0xff] }
 0xacf   : > { %v15557_v63 = vpop.eup %15556  ;;  %v9345_v10 = vadd.f32 %v13424_v54, %v18624_v27  ;;  %v9324_v25 = vpop.f32.mrb[107].mxu0  ;;  %v9608_v34 = vsel %vm1630_vm0, %v18850_v58, -inf  ;;  %v18860_v11 = vsel %vm20088_vm3, %v18844_v56, -1e+30  ;;  %v9372_v17 = vadd.f32 %v9351_v55, %v20600_v20  ;;  %v20602_v27 = vld [vmem:[#allocation10_spill] sm:$0xff]  ;;  %v20611_v55 = vld [vmem:[#allocation52_spill] sm:$0xff] }
 0xad0   : > { %v15559_v46 = vpop.eup %15558  ;;  %v9357_v57 = vmul.f32 0.6931472, %v15557_v63  ;;  %v9344_v45 = vadd.f32 %v9324_v25, %v20601_v47  ;;  %9609 = vmax.xlane.f32.xlu1 %v9608_v34  ;;  %v9605_v37 = vsel %vm1630_vm0, %v18860_v11, -inf  ;;  %v18867_v38 = vsub.f32 %v20602_v27, %v9373_v41  ;;  %v18943_v54 = vld [vmem:[%s19757_s8 + $0x48] sm:$0xff]  ;;  %v20612_v41 = vld [vmem:[#allocation108_spill] sm:$0xff]  ;;  %v18954_v25 = vld [vmem:[%s19757_s8 + $0x40] sm:$0xff] }
 0xad1   : > { %v9355_v9 = vmul.f32 0.6931472, %v15559_v46  ;;  %15568 = vlog2.f32 %v9345_v10  ;;  %9606 = vmax.xlane.f32.xlu0 %v9605_v37  ;;  %v18870_v26 = vsub.f32 %v20603_v59, %v9372_v17  ;;  %v20613_v17 = vld [vmem:[#allocation114_spill] sm:$0xff]  ;;  %v20614_v37 = vld [vmem:[#allocation7_spill] sm:$0xff]  ;;  %vm9428_vm10 = vcmp.gt.f32.partialorder %v18943_v54, 0.5 }
 0xad2   : > { %15570 = vlog2.f32 %v9344_v45  ;;  %v18880_v1 = vsel %vm9422_vm4, %v18867_v38, -1e+30  ;;  %v9375_v31 = vadd.f32 %v9357_v57, %v20604_v30  ;;  %v20615_v30 = vld [vmem:[#allocation2_spill] sm:$0xff]  ;;  %vm9427_vm11 = vcmp.gt.f32.partialorder %v18954_v25, 0.5 }
 0xad3   : > { %v15561_v44 = vpop.eup %15560  ;;  %v9614_v49 = vsel %vm1630_vm0, %v18880_v1, -inf  ;;  %v18893_v62 = vsel %vm20092_vm5, %v18870_v26, -1e+30  ;;  %v9374_v61 = vadd.f32 %v9355_v9, %v20605_v2  ;;  %v18972_v9 = vld [vmem:[%s19757_s8 + $0x58] sm:$0xff]  ;;  %v20616_v2 = vld [vmem:[#allocation22_spill] sm:$0xff] }
 0xad4   : > { %v15563_v7 = vpop.eup %15562  ;;  %v9361_v42 = vmul.f32 0.6931472, %v15561_v44  ;;  %v9611_v40 = vsel %vm1630_vm0, %v18893_v62, -inf  ;;  %v18899_v6 = vsub.f32 %v20606_v48, %v9375_v31  ;;  %v18981_v44 = vld [vmem:[%s19757_s8 + $0x50] sm:$0xff]  ;;  %vm20089_vm12 = vcmp.gt.f32.partialorder %v18972_v9, 0.5 }
 0xad5   : > { %v9359_v5 = vmul.f32 0.6931472, %v15563_v7  ;;  %9615 = vmax.xlane.f32.xlu0 %v9614_v49  ;;  %9612 = vmax.xlane.f32.xlu1 %v9611_v40  ;;  %v18908_v28 = vsub.f32 %v20607_v23, %v9374_v61  ;;  %v20617_v40 = vld [vmem:[#allocation44_spill] sm:$0xff]  ;;  %v20618_v23 = vld [vmem:[#allocation15_spill] sm:$0xff]  ;;  %vm20091_vm13 = vcmp.gt.f32.partialorder %v18981_v44, 0.5 }
 0xad6   : > { %v18919_v60 = vsel %vm9424_vm6, %v18899_v6, -1e+30  ;;  %v9377_v3 = vadd.f32 %v9361_v42, %v20608_v22 }
 0xad7   : > { %v15565_v14 = vpop.eup %15564  ;;  %v9620_v53 = vsel %vm1630_vm0, %v18919_v60, -inf  ;;  %v18927_v50 = vsel %vm9423_vm7, %v18908_v28, -1e+30  ;;  %v9376_v16 = vadd.f32 %v9359_v5, %v20609_v18 }
 0xad8   : > { %v15567_v24 = vpop.eup %15566  ;;  %v9365_v51 = vmul.f32 0.6931472, %v15565_v14  ;;  %v9617_v52 = vsel %vm1630_vm0, %v18927_v50, -inf  ;;  %v18934_v36 = vsub.f32 %v20610_v8, %v9377_v3  ;;  %v20619_v3 = vld [vmem:[#allocation27_spill] sm:$0xff]  ;;  %v19037_v8 = vld [vmem:[%s19759_s10 + $0x18] sm:$0xff] }
 0xad9   : > { %v9363_v19 = vmul.f32 0.6931472, %v15567_v24  ;;  %9621 = vmax.xlane.f32.xlu0 %v9620_v53  ;;  %9618 = vmax.xlane.f32.xlu1 %v9617_v52  ;;  %v18938_v15 = vsub.f32 %v20611_v55, %v9376_v16  ;;  %v19031_v52 = vld [vmem:[%s19759_s10 + $0x10] sm:$0xff]  ;;  %v19049_v55 = vld [vmem:[%s19759_s10 + $0x38] sm:$0xff] }
 0xada   : > { %v18948_v0 = vsel %vm9426_vm8, %v18934_v36, -1e+30  ;;  %v9379_v63 = vadd.f32 %v9365_v51, %v20612_v41  ;;  %v19025_v51 = vld [vmem:[%s19759_s10 + $0x8] sm:$0xff]  ;;  %v19055_v41 = vld [vmem:[%s19759_s10 + $0x50] sm:$0xff] }
 0xadb   : > { %v15569_v10 = vpop.eup %15568  ;;  %v9626_v34 = vsel %vm1630_vm0, %v18948_v0, -inf  ;;  %v18961_v20 = vsel %vm9425_vm9, %v18938_v15, -1e+30  ;;  %v9378_v46 = vadd.f32 %v9363_v19, %v20613_v17  ;;  %v19043_v19 = vld [vmem:[%s19759_s10 + $0x30] sm:$0xff]  ;;  %v20100_v17 = vmov 0.0  }
 0xadc   : > { %v15571_v57 = vpop.eup %15570  ;;  %v9369_v47 = vmul.f32 0.6931472, %v15569_v10  ;;  %v9623_v45 = vsel %vm1630_vm0, %v18961_v20, -inf  ;;  %v18967_v27 = vsub.f32 %v20614_v37, %v9379_v63  ;;  %v19061_v63 = vld [vmem:[%s19759_s10 + $0x58] sm:$0xff]  ;;  %v19067_v10 = vld [vmem:[%s19758_s9] ss:$0 sm:$0xff] }
 0xadd   : > { %v9367_v59 = vmul.f32 0.6931472, %v15571_v57  ;;  %9627 = vmax.xlane.f32.xlu1 %v9626_v34  ;;  %9624 = vmax.xlane.f32.xlu0 %v9623_v45  ;;  %v18976_v31 = vsub.f32 %v20615_v30, %v9378_v46  ;;  %v9440_v34 = vpop.permute.xlu0 %9439 }
 0xade   : > { %v18987_v49 = vsel %vm9428_vm10, %v18967_v27, -1e+30  ;;  %v9381_v61 = vadd.f32 %v9369_v47, %v20616_v2  ;;  %vm9497_vm14 = vcmp.eq.f32.partialorder %v19067_v10, %v9440_v34 }
 0xadf   : > { %v9632_v7 = vsel %vm1630_vm0, %v18987_v49, -inf  ;;  %v18995_v42 = vsel %vm9427_vm11, %v18976_v31, -1e+30  ;;  %v9380_v48 = vadd.f32 %v9367_v59, %v20617_v40  ;;  %vm9509_vm15 = vmand %vm20088_vm3, %vm9497_vm14 }
 0xae0   : > { %v9629_v5 = vsel %vm1630_vm0, %v18995_v42, -inf  ;;  %v19002_v22 = vsub.f32 %v20618_v23, %v9381_v61  ;;  %v9521_v46 = vsel %vm9509_vm15, 1.0, %v20100_v17 }
 0xae1   : > { %9633 = vmax.xlane.f32.xlu0 %v9632_v7  ;;  %9630 = vmax.xlane.f32.xlu1 %v9629_v5  ;;  %v19006_v14 = vsub.f32 %v20619_v3, %v9380_v48  ;;  %v9533_v57 = vmul.f32 %v9521_v46, %v18844_v56  ;;  %v9460_v37 = vpop.permute.xlu0 %9459 }
 0xae2   : > { %v19011_v53 = vsel %vm20089_vm12, %v19002_v22, -1e+30  ;;  %vm9501_vm1 = vcmp.eq.f32.partialorder %v19067_v10, %v9460_v37 }
 0xae3   : > { %v9638_v18 = vsel %vm1630_vm0, %v19011_v53, -inf  ;;  %v19018_v16 = vsel %vm20091_vm13, %v19006_v14, -1e+30  ;;  %v9545_v47 = vsel %vm1630_vm0, %v9533_v57, 0.0 }
 0xae4   : > { %v9635_v24 = vsel %vm1630_vm0, %v19018_v16, -inf }
 0xae5   : > { %9639 = vmax.xlane.f32.xlu1 %v9638_v18  ;;  %9636 = vmax.xlane.f32.xlu0 %v9635_v24  ;;  %v9465_v30 = vpop.permute.xlu0 %9464 }
 0xae9   : > { %v9480_v7 = vpop.permute.xlu0 %9479 }
 0xaed   : > { %v9485_v48 = vpop.permute.xlu0 %9484 }
 0xaf6   : > { %9444 = vperm.xlu1 %15459, %v19025_v51  }
 0xafa   : > { %9449 = vperm.xlu1 %15459, %v19031_v52  }
 0xafe   : > { %9454 = vperm.xlu1 %15459, %v19037_v8  }
 0xb02   : > { %9469 = vperm.xlu1 %15459, %v19043_v19  }
 0xb06   : > { %9474 = vperm.xlu1 %15459, %v19049_v55  }
 0xb0a   : > { %9489 = vperm.xlu1 %15459, %v19055_v41  }
 0xb0e   : > { %9494 = vperm.xlu1 %15459, %v19061_v63  }
 0xb32   : > { %9546 = vadd.xlane.f32.xlu1 %v9545_v47 }
 0xb5d   : > { %v19075_v45 = vpop.xlane.xlu1 %9609 }
 0xb5e   : > { %v19087_v56 = vpop.xlane.xlu0 %9606 }
 0xb62   : > { %v19077_v59 = vpop.xlane.xlu1 %9612  ;;  %v19096_v34 = vpop.xlane.xlu0 %9615 }
 0xb66   : > { %v19079_v2 = vpop.xlane.xlu1 %9618 }
 0xb6a   : > { %v19081_v61 = vpop.xlane.xlu1 %9627 }
 0xb6e   : > { %v19083_v40 = vpop.xlane.xlu1 %9630 }
 0xb72   : > { %v19085_v5 = vpop.xlane.xlu1 %9639 }
 0xb76   : > { %v9445_v23 = vpop.permute.xlu1 %9444 }
 0xb77   : > { %vm9498_vm14 = vcmp.eq.f32.partialorder %v19067_v10, %v9445_v23 }
 0xb78   : > { %vm9510_vm15 = vmand %vm20090_vm2, %vm9498_vm14  ;;  %vm9505_vm2 = vcmp.eq.f32.partialorder %v19067_v10, %v9480_v7 }
 0xb79   : > { %v9522_v3 = vsel %vm9510_vm15, 1.0, %v20100_v17  ;;  %vm9513_vm14 = vmand %vm9423_vm7, %vm9501_vm1  ;;  %vm9502_vm15 = vcmp.eq.f32.partialorder %v19067_v10, %v9465_v30 }
 0xb7a   : > { %v9450_v18 = vpop.permute.xlu1 %9449  ;;  %v9534_v24 = vmul.f32 %v9522_v3, %v18841_v43  ;;  %v9525_v23 = vsel %vm9513_vm14, 1.0, %v20100_v17  ;;  %vm9517_vm1 = vmand %vm9427_vm11, %vm9505_vm2  ;;  %vm9506_vm2 = vcmp.eq.f32.partialorder %v19067_v10, %v9485_v48 }
 0xb7b   : > { %vm9499_vm3 = vcmp.eq.f32.partialorder %v19067_v10, %v9450_v18 }
 0xb7c   : > { %vm9511_vm12 = vmand %vm20092_vm5, %vm9499_vm3  ;;  %v9548_v46 = vsel %vm1630_vm0, %v9534_v24, 0.0  ;;  %v9537_v24 = vmul.f32 %v9525_v23, %v18908_v28 }
 0xb7d   : > { %v9523_v57 = vsel %vm9511_vm12, 1.0, %v20100_v17  ;;  %9549 = vadd.xlane.f32.xlu0 %v9548_v46  ;;  %vm9514_vm12 = vmand %vm9424_vm6, %vm9502_vm15 }
 0xb7e   : > { %v9455_v43 = vpop.permute.xlu1 %9454  ;;  %v9535_v47 = vmul.f32 %v9523_v57, %v18870_v26  ;;  %v19117_v26 = vpop.xlane.xlu0 %9621  ;;  %v9526_v46 = vsel %vm9514_vm12, 1.0, %v20100_v17  ;;  %v9529_v57 = vsel %vm9517_vm1, 1.0, %v20100_v17  ;;  %v9557_v23 = vsel %vm1630_vm0, %v9537_v24, 0.0 }
 0xb7f   : > { %vm9500_vm13 = vcmp.eq.f32.partialorder %v19067_v10, %v9455_v43  ;;  %vm20620_vm1 = vcmp.gt.f32.partialorder %v18981_v44, 0.5 }
 0xb80   : > { %vm9512_vm3 = vmand %vm9422_vm4, %vm9500_vm13  ;;  %v9551_v37 = vsel %vm1630_vm0, %v9535_v47, 0.0 }
 0xb81   : > { %v9524_v3 = vsel %vm9512_vm3, 1.0, %v20100_v17  ;;  %9552 = vadd.xlane.f32.xlu0 %v9551_v37  ;;  %vm9645_vm3 = vcmp.eq.f32.partialorder %v18927_v50, %v19079_v2 }
 0xb82   : > { %v9470_v30 = vpop.permute.xlu1 %9469  ;;  %v9536_v7 = vmul.f32 %v9524_v3, %v18867_v38  ;;  %v9625_v38 = vpop.xlane.xlu0 %9624  ;;  %v9541_v3 = vmul.f32 %v9529_v57, %v18976_v31 }
 0xb83   : > { %vm9503_vm13 = vcmp.eq.f32.partialorder %v19067_v10, %v9470_v30  ;;  %v9538_v30 = vmul.f32 %v9526_v46, %v18899_v6 }
 0xb84   : > { %vm9515_vm5 = vmand %vm9425_vm9, %vm9503_vm13  ;;  %v9554_v18 = vsel %vm1630_vm0, %v9536_v7, 0.0  ;;  %v9569_v31 = vsel %vm1630_vm0, %v9541_v3, 0.0 }
 0xb85   : > { %v9527_v43 = vsel %vm9515_vm5, 1.0, %v20100_v17  ;;  %9555 = vadd.xlane.f32.xlu0 %v9554_v18  ;;  %vm9518_vm5 = vmand %vm9428_vm10, %vm9506_vm2  ;;  %v9560_v6 = vsel %vm1630_vm0, %v9538_v30, 0.0 }
 0xb86   : > { %v9475_v47 = vpop.permute.xlu1 %9474  ;;  %v9539_v37 = vmul.f32 %v9527_v43, %v18938_v15  ;;  %v9530_v18 = vsel %vm9518_vm5, 1.0, %v20100_v17  ;;  %vm19152_vm2 = vmand %vm9423_vm7, %vm9645_vm3  ;;  %v19156_v2 = vpop.xlane.xlu0 %9633  ;;  %vm20623_vm5 = vcmp.gt.f32.partialorder %v18972_v9, 0.5  ;;  %vm9642_vm7 = vcmp.eq.f32.partialorder %v18850_v58, %v19075_v45 }
 0xb87   : > { %vm9504_vm14 = vcmp.eq.f32.partialorder %v19067_v10, %v9475_v47  ;;  %v9542_v43 = vmul.f32 %v9530_v18, %v18967_v27 }
 0xb88   : > { %vm9516_vm15 = vmand %vm9426_vm8, %vm9504_vm14  ;;  %v9563_v28 = vsel %vm1630_vm0, %v9539_v37, 0.0  ;;  %vm9647_vm14 = vcmp.eq.f32.partialorder %v18961_v20, %v9625_v38 }
 0xb89   : > { %v9528_v7 = vsel %vm9516_vm15, 1.0, %v20100_v17  ;;  %9564 = vadd.xlane.f32.xlu1 %v9563_v28  ;;  %9558 = vadd.xlane.f32.xlu0 %v9557_v23  ;;  %vm9659_vm3 = vmand %vm9425_vm9, %vm9647_vm14  ;;  %v9572_v27 = vsel %vm1630_vm0, %v9542_v43, 0.0  ;;  %vm9641_vm9 = vcmp.eq.f32.partialorder %v18860_v11, %v19087_v56 }
 0xb8a   : > { %v9490_v15 = vpop.permute.xlu1 %9489  ;;  %v9540_v48 = vmul.f32 %v9528_v7, %v18934_v36  ;;  %v9637_v20 = vpop.xlane.xlu0 %9636  ;;  %v9671_v58 = vsel %vm9659_vm3, %v19067_v10, 4.0  ;;  %vm9644_vm3 = vcmp.eq.f32.partialorder %v18880_v1, %v19096_v34 }
 0xb8b   : > { %vm9507_vm12 = vcmp.eq.f32.partialorder %v19067_v10, %v9490_v15  ;;  %vm9651_vm14 = vcmp.eq.f32.partialorder %v19018_v16, %v9637_v20 }
 0xb8c   : > { %vm9519_vm13 = vmand %vm20620_vm1, %vm9507_vm12  ;;  %v9566_v36 = vsel %vm1630_vm0, %v9540_v48, 0.0  ;;  %vm9649_vm1 = vcmp.eq.f32.partialorder %v18995_v42, %v19083_v40 }
 0xb8d   : > { %v9531_v24 = vsel %vm9519_vm13, 1.0, %v20100_v17  ;;  %9570 = vadd.xlane.f32.xlu1 %v9569_v31  ;;  %9561 = vadd.xlane.f32.xlu0 %v9560_v6  ;;  %vm20624_vm13 = vcmp.gt.f32.partialorder %v18817_v13, 0.5  ;;  %v9695_v13 = vsel %vm1630_vm0, %v9671_v58, inf }
 0xb8e   : > { %v9495_v46 = vpop.permute.xlu1 %9494  ;;  %v9543_v57 = vmul.f32 %v9531_v24, %v19006_v14  ;;  %v9669_v14 = vsel %vm19152_vm2, %v19067_v10, 4.0  ;;  %vm9661_vm2 = vmand %vm9427_vm11, %vm9649_vm1  ;;  %vm20630_vm11 = vcmp.gt.f32.partialorder %v18981_v44, 0.5 }
 0xb8f   : > { %vm9508_vm15 = vcmp.eq.f32.partialorder %v19067_v10, %v9495_v46  ;;  %v9689_v37 = vsel %vm1630_vm0, %v9669_v14, inf  ;;  %v9673_v25 = vsel %vm9661_vm2, %v19067_v10, 4.0  ;;  %vm9656_vm1 = vmand %vm9422_vm4, %vm9644_vm3  ;;  %vm9646_vm2 = vcmp.eq.f32.partialorder %v18919_v60, %v19117_v26 }
 0xb90   : > { %vm9520_vm12 = vmand %vm20623_vm5, %vm9508_vm15  ;;  %v9575_v35 = vsel %vm1630_vm0, %v9543_v57, 0.0  ;;  %vm20627_vm5 = vcmp.gt.f32.partialorder %v18822_v39, 0.5  ;;  %v9668_v40 = vsel %vm9656_vm1, %v19067_v10, 4.0  ;;  %vm15588_vm3 = vmmov 0  }
 0xb91   : > { %v9532_v47 = vsel %vm9520_vm12, 1.0, %v20100_v17  ;;  %9567 = vadd.xlane.f32.xlu0 %v9566_v36  ;;  %9576 = vadd.xlane.f32.xlu1 %v9575_v35  ;;  %vm19181_vm15 = vmand %vm20624_vm13, %vm9642_vm7  ;;  %vm9643_vm13 = vcmp.eq.f32.partialorder %v18893_v62, %v19077_v59  ;;  %v9686_v4 = vsel %vm1630_vm0, %v9668_v40, inf }
 0xb92   : > { %v9544_v38 = vmul.f32 %v9532_v47, %v19002_v22  ;;  %vm19195_vm12 = vmand %vm20627_vm5, %vm9641_vm9  ;;  %v9666_v11 = vsel %vm19181_vm15, %v19067_v10, 4.0  ;;  %v9701_v22 = vsel %vm1630_vm0, %v9673_v25, inf  ;;  %vm20631_vm15 = vcmp.gt.f32.partialorder %v18836_v32, 0.5  ;;  %13449 = vmatprep.mubr.msk.f32.mxu1 %vm15588_vm3, %v20100_v17  ;;  %13611 = vmatprep.mubr.msk.f32.mxu0 %vm15588_vm3, %v20100_v17 }
 0xb93   : > { %vm9663_vm7 = vmand %vm20630_vm11, %vm9651_vm14  ;;  %v9680_v39 = vsel %vm1630_vm0, %v9666_v11, inf  ;;  %v9665_v16 = vsel %vm19195_vm12, %v19067_v10, 4.0  ;;  %vm9648_vm14 = vcmp.eq.f32.partialorder %v18948_v0, %v19081_v61  ;;  %vm9650_vm12 = vcmp.eq.f32.partialorder %v18987_v49, %v19156_v2  ;;  %v9749_v2 = vld [vmem:[%s19756_s7] sm:$0xff] }
 0xb94   : > { %v9578_v21 = vsel %vm1630_vm0, %v9544_v38, 0.0  ;;  %v9675_v45 = vsel %vm9663_vm7, %v19067_v10, 4.0  ;;  %v9677_v1 = vsel %vm1630_vm0, %v9665_v16, inf  ;;  %vm9655_vm9 = vmand %vm20631_vm15, %vm9643_vm13  ;;  %vm9652_vm11 = vcmp.eq.f32.partialorder %v19011_v53, %v19085_v5 }
 0xb95   : > { %9573 = vadd.xlane.f32.xlu0 %v9572_v27  ;;  %9690 = vmin.xlane.f32.xlu1 %v9689_v37  ;;  %v9707_v44 = vsel %vm1630_vm0, %v9675_v45, inf  ;;  %v9667_v56 = vsel %vm9655_vm9, %v19067_v10, 4.0  ;;  %vm9658_vm4 = vmand %vm9424_vm6, %vm9646_vm2 }
 0xb96   : > { %v9683_v62 = vsel %vm1630_vm0, %v9667_v56, inf  ;;  %v9670_v32 = vsel %vm9658_vm4, %v19067_v10, 4.0  ;;  %vm9660_vm5 = vmand %vm9426_vm8, %vm9648_vm14  ;;  %vm20632_vm8 = vcmp.gt.f32.partialorder %v18972_v9, 0.5 }
 0xb97   : > { %v9692_v60 = vsel %vm1630_vm0, %v9670_v32, inf  ;;  %v9672_v33 = vsel %vm9660_vm5, %v19067_v10, 4.0  ;;  %vm9662_vm6 = vmand %vm9428_vm10, %vm9650_vm12 }
 0xb98   : > { %v9698_v0 = vsel %vm1630_vm0, %v9672_v33, inf  ;;  %v9674_v12 = vsel %vm9662_vm6, %v19067_v10, 4.0  ;;  %vm9664_vm7 = vmand %vm20632_vm8, %vm9652_vm11 }
 0xb99   : > { %9579 = vadd.xlane.f32.xlu0 %v9578_v21  ;;  %9696 = vmin.xlane.f32.xlu1 %v9695_v13  ;;  %v9704_v49 = vsel %vm1630_vm0, %v9674_v12, inf  ;;  %v9676_v59 = vsel %vm9664_vm7, %v19067_v10, 4.0 }
 0xb9a   : > { %v9710_v61 = vsel %vm1630_vm0, %v9676_v59, inf  ;;  %vm20633_vm0 = vcmask 785408  }
 0xb9b   : > { %v9751_v43 = vsel %vm20633_vm0, %v9749_v2, 0 }
 0xb9c   : > { %v19275_v28 = vand.u32 4294901760, %v9751_v43 }
 0xb9d   : > { %9681 = vmin.xlane.f32.xlu0 %v9680_v39  ;;  %9702 = vmin.xlane.f32.xlu1 %v9701_v22 }
 0xba1   : > { %9678 = vmin.xlane.f32.xlu0 %v9677_v1  ;;  %9708 = vmin.xlane.f32.xlu1 %v9707_v44  ;;  %v19289_v1 = vsub.f32 %v9751_v43, %v19275_v28 }
 0xba5   : > { %9687 = vmin.xlane.f32.xlu0 %v9686_v4 }
 0xba9   : > { %9684 = vmin.xlane.f32.xlu0 %v9683_v62 }
 0xbad   : > { %9693 = vmin.xlane.f32.xlu0 %v9692_v60 }
 0xbb1   : > { %9699 = vmin.xlane.f32.xlu0 %v9698_v0 }
 0xbb5   : > { %9705 = vmin.xlane.f32.xlu0 %v9704_v49 }
 0xbb9   : > { %9711 = vmin.xlane.f32.xlu0 %v9710_v61 }
 0xbbf   : > { %v9547_v54 = vpop.xlane.xlu1 %9546 }
 0xbc0   : > { %v9581_v53 = vsub.f32 0.0, %v9547_v54  ;;  %v19303_v54 = vand.u32 4294901760, %v19289_v1 }
 0xbc2   : > { %v9754_v34 = vand.u32 4294901760, %v9581_v53 }
 0xbc4   : > { %v19285_v16 = vsub.f32 %v9581_v53, %v9754_v34 }
 0xbc6   : > { %v20094_v59 = vand.u32 4294901760, %v19285_v16 }
 0xc0a   : > { %v9550_v5 = vpop.xlane.xlu0 %9549 }
 0xc0b   : > { %v9582_v9 = vsub.f32 0.0, %v9550_v5 }
 0xc0d   : > { %v9757_v26 = vand.u32 4294901760, %v9582_v9 }
 0xc0e   : > { %v9553_v23 = vpop.xlane.xlu0 %9552 }
 0xc0f   : > { %v19253_v3 = vpack.c.bf16 %v9757_v26, %v9754_v34  ;;  %v9583_v10 = vsub.f32 0.0, %v9553_v23  ;;  %v19277_v58 = vsub.f32 %v9582_v9, %v9757_v26 }
 0xc11   : > { %14735 = vmatpush3.bf16.msra.mxu1 %v19253_v3  ;;  %v9760_v30 = vand.u32 4294901760, %v9583_v10  ;;  %v20093_v56 = vand.u32 4294901760, %v19277_v58 }
 0xc12   : > { %v9556_v7 = vpop.xlane.xlu0 %9555  ;;  %14736 = vmatprep.subr.bf16.mxu1 %v20551_v29 }
 0xc13   : > { %v9584_v15 = vsub.f32 0.0, %v9556_v7  ;;  %v19257_v6 = vsub.f32 %v9583_v10, %v9760_v30  ;;  %v9851_v34 = vsub.f32 %v19277_v58, %v20093_v56 }
 0xc15   : > { %v9763_v31 = vand.u32 4294901760, %v9584_v15  ;;  %v9857_v36 = vand.u32 4294901760, %v19257_v6  ;;  %v9852_v43 = vand.u32 4294901760, %v9851_v34 }
 0xc16   : > { %v9565_v48 = vpop.xlane.xlu1 %9564  ;;  %v9559_v18 = vpop.xlane.xlu0 %9558 }
 0xc17   : > { %v19259_v24 = vpack.c.bf16 %v9763_v31, %v9760_v30  ;;  %v19261_v50 = vsub.f32 %v9584_v15, %v9763_v31  ;;  %v9585_v46 = vsub.f32 0.0, %v9559_v18  ;;  %v9587_v47 = vsub.f32 0.0, %v9565_v48 }
 0xc18   : > { %v9844_v31 = vsub.f32 %v19285_v16, %v20094_v59  ;;  %v9833_v18 = vsub.f32 %v19289_v1, %v19303_v54 }
 0xc19   : > { %v9864_v57 = vand.u32 4294901760, %v19261_v50  ;;  %14738 = vmatpush3.bf16.msra.mxu1 %v19259_v24  ;;  %v9766_v27 = vand.u32 4294901760, %v9585_v46  ;;  %v9772_v13 = vand.u32 4294901760, %v9587_v47 }
 0xc1a   : > { %v9562_v35 = vpop.xlane.xlu0 %9561  ;;  %14739 = vmatprep.subr.bf16.mxu1 %v20551_v29  ;;  %v9571_v14 = vpop.xlane.xlu1 %9570 }
 0xc1b   : > { %v9586_v20 = vsub.f32 0.0, %v9562_v35  ;;  %v19273_v37 = vpack.c.bf16 %v9864_v57, %v9857_v36  ;;  %v9589_v42 = vsub.f32 0.0, %v9571_v14  ;;  %v19283_v39 = vsub.f32 %v9585_v46, %v9766_v27 }
 0xc1c   : > { %v19294_v62 = vsub.f32 %v9587_v47, %v9772_v13  ;;  %v9865_v47 = vsub.f32 %v19261_v50, %v9864_v57 }
 0xc1d   : > { %v9769_v38 = vand.u32 4294901760, %v9586_v20  ;;  %v9778_v32 = vand.u32 4294901760, %v9589_v42  ;;  %v9871_v33 = vand.u32 4294901760, %v19283_v39 }
 0xc1e   : > { %v9568_v21 = vpop.xlane.xlu0 %9567  ;;  %v9577_v45 = vpop.xlane.xlu1 %9576  ;;  %v9885_v30 = vand.u32 4294901760, %v19294_v62 }
 0xc1f   : > { %v19279_v11 = vpack.c.bf16 %v9769_v38, %v9766_v27  ;;  %v19281_v25 = vsub.f32 %v9586_v20, %v9769_v38  ;;  %v9588_v22 = vsub.f32 0.0, %v9568_v21  ;;  %v9591_v49 = vsub.f32 0.0, %v9577_v45 }
 0xc20   : > { %v19318_v7 = vsub.f32 %v9589_v42, %v9778_v32  ;;  %v9858_v42 = vsub.f32 %v19257_v6, %v9857_v36  ;;  %v15572_v36 = vld [vmem:[%s19759_s10] sm:$0xff] }
 0xc21   : > { %14741 = vmatpush3.bf16.msra.mxu1 %v19279_v11  ;;  %v9878_v44 = vand.u32 4294901760, %v19281_v25  ;;  %v9775_v40 = vand.u32 4294901760, %v9588_v22  ;;  %v9784_v15 = vand.u32 4294901760, %v9591_v49 }
 0xc22   : > { %v9574_v4 = vpop.xlane.xlu0 %9573  ;;  %14742 = vmatprep.subr.bf16.mxu1 %v20551_v29  ;;  %v19332_v14 = vpop.xlane.xlu1 %9690  ;;  %v9899_v38 = vand.u32 4294901760, %v19318_v7 }
 0xc23   : > { %v9590_v60 = vsub.f32 0.0, %v9574_v4  ;;  %v19297_v0 = vpack.c.bf16 %v9775_v40, %v9772_v13  ;;  %v19299_v12 = vsub.f32 %v9588_v22, %v9775_v40  ;;  %v19307_v9 = vpack.c.bf16 %v9878_v44, %v9871_v33 }
 0xc24   : > { %v19340_v21 = vsub.f32 %v9591_v49, %v9784_v15  ;;  %v9845_v13 = vand.u32 4294901760, %v9844_v31  ;;  %v19349_v22 = vand.u32 4294901760, %v9833_v18  ;;  %v9879_v49 = vsub.f32 %v19281_v25, %v9878_v44 }
 0xc25   : > { %v9781_v61 = vand.u32 4294901760, %v9590_v60  ;;  %v9892_v53 = vand.u32 4294901760, %v19299_v12  ;;  %14744 = vmatpush3.bf16.msra.mxu1 %v19297_v0  ;;  %v20098_v44 = vmov 1.0|1.0   ;;  %v9872_v18 = vsub.f32 %v19283_v39, %v9871_v33 }
 0xc26   : > { %v9580_v5 = vpop.xlane.xlu0 %9579  ;;  %14745 = vmatprep.subr.bf16.mxu1 %v20551_v29  ;;  %v19372_v31 = vpop.xlane.xlu1 %9696 }
 0xc27   : > { %v19312_v26 = vpack.c.bf16 %v9781_v61, %v9778_v32  ;;  %v19314_v23 = vsub.f32 %v9590_v60, %v9781_v61  ;;  %v9592_v10 = vsub.f32 0.0, %v9580_v5  ;;  %v19329_v35 = vpack.c.bf16 %v9892_v53, %v9885_v30 }
 0xc28   : > { %v9866_v32 = vand.u32 4294901760, %v9865_v47  ;;  %v14752_v60 = vpack.c.bf16 %v9852_v43, %v9845_v13  ;;  %v9913_v61 = vand.u32 4294901760, %v19340_v21  ;;  %v15573_v43 = vld [vmem:[%s19759_s10 + $0x20] sm:$0xff]  ;;  %v9880_v13 = vand.u32 4294901760, %v9879_v49 }
 0xc29   : > { %v9787_v48 = vand.u32 4294901760, %v9592_v10  ;;  %v9906_v2 = vand.u32 4294901760, %v19314_v23  ;;  %14747 = vmatpush3.bf16.msra.mxu1 %v19312_v26  ;;  %vm9717_vm15 = vcmp.eq.f32.partialorder %v19332_v14, %v15573_v43  ;;  %vm9719_vm2 = vcmp.eq.f32.partialorder %v19372_v31, %v19043_v19 }
 0xc2a   : > { %v9682_v46 = vpop.xlane.xlu0 %9681  ;;  %14748 = vmatprep.subr.bf16.mxu1 %v20551_v29  ;;  %v9914_v14 = vsub.f32 %v19340_v21, %v9913_v61 }
 0xc2b   : > { %v19334_v20 = vpack.c.bf16 %v9787_v48, %v9784_v15  ;;  %v19336_v27 = vsub.f32 %v9592_v10, %v9787_v48  ;;  %vm9714_vm10 = vcmp.eq.f32.partialorder %v9682_v46, %v19025_v51  ;;  %v19355_v4 = vpack.c.bf16 %v9906_v2, %v9899_v38 }
 0xc2c   : > { %v11079_v57 = vsel %vm9714_vm10, 1.0, %v20100_v17  ;;  %v9859_v15 = vand.u32 4294901760, %v9858_v42  ;;  %v9893_v42 = vsub.f32 %v19299_v12, %v9892_v53  ;;  %v11082_v53 = vsel %vm9717_vm15, 1.0, %v20100_v17 }
 0xc2d   : > { %v9920_v45 = vand.u32 4294901760, %v19336_v27  ;;  %14750 = vmatpush3.bf16.msra.mxu1 %v19334_v20  ;;  %v19363_v5 = vsub.f32 %v11079_v57, %v11079_v57 }
 0xc2e   : > { %v9679_v40 = vpop.xlane.xlu0 %9678  ;;  %14751 = vmatprep.subr.bf16.mxu1 %v20551_v29  ;;  %v14755_v33 = vpack.c.bf16 %v9866_v32, %v9859_v15 }
 0xc2f   : > { %vm9713_vm1 = vcmp.eq.f32.partialorder %v9679_v40, %v15572_v36  ;;  %v19386_v46 = vpack.c.bf16 %v9920_v45, %v9913_v61  ;;  %v20095_v57 = vand.u32 4294901760, %v19363_v5  ;;  %v9886_v36 = vsub.f32 %v19294_v62, %v9885_v30 }
 0xc30   : > { %v11078_v34 = vsel %vm9713_vm1, 1.0, %v20100_v17  ;;  %vm19368_vm13 = vmpackc.low %vm9714_vm10, %vm9713_vm1  ;;  %13450 = vmatmul.mubr.f32.vlgmr.msra.gmra.mrb[144].mxu1 %v19349_v22  ;;  %v9894_v30 = vand.u32 4294901760, %v9893_v42  ;;  %v9900_v42 = vsub.f32 %v19318_v7, %v9899_v38  ;;  %v9921_v38 = vsub.f32 %v19336_v27, %v9920_v45 }
 0xc31   : > { %v19374_v48 = vsub.f32 %v11078_v34, %v11078_v34  ;;  %14843 = vmatpush3.bf16.msk.msra.mxu0 %vm19368_vm13, %v20098_v44  ;;  %14753 = vmatpush3.bf16.msra.mxu1 %v14752_v60  ;;  %20636 = vst [vmem:[#allocation72_spill] sm:$0xff] %v19386_v46  ;;  %v9873_v60 = vand.u32 4294901760, %v9872_v18  ;;  %v19416_v34 = vpop.xlane.xlu1 %9702  ;;  %v9907_v18 = vsub.f32 %v19314_v23, %v9906_v2 }
 0xc32   : > { %v9688_v51 = vpop.xlane.xlu0 %9687  ;;  %14844 = vmatprep.subr.bf16.mxu0 %v20551_v29  ;;  %14754 = vmatprep.subr.bf16.mxu1 %v20551_v29  ;;  %v9901_v45 = vand.u32 4294901760, %v9900_v42  ;;  %v9922_v61 = vand.u32 4294901760, %v9921_v38 }
 0xc33   : > { %v20096_v47 = vand.u32 4294901760, %v19374_v48  ;;  %13476 = vmatprep.mubr.msk.f32.mxu1 %vm15588_vm3, %v20100_v17  ;;  %vm9716_vm9 = vcmp.eq.f32.partialorder %v9688_v51, %v19037_v8  ;;  %v14758_v59 = vpack.c.bf16 %v9880_v13, %v9873_v60  ;;  %v11084_v8 = vsel %vm9719_vm2, 1.0, %v20100_v17 }
 0xc34   : > { %v11081_v40 = vsel %vm9716_vm9, 1.0, %v20100_v17  ;;  %v19473_v43 = vsub.f32 %v11084_v8, %v11084_v8 }
 0xc35   : > { %14756 = vmatpush3.bf16.msra.mxu1 %v14755_v33  ;;  %v19409_v49 = vpack.c.bf16 %v20095_v57, %v20096_v47  ;;  %v19418_v15 = vsub.f32 %v11081_v40, %v11081_v40  ;;  %v9709_v57 = vpop.xlane.xlu1 %9708 }
 0xc36   : > { %v9685_v32 = vpop.xlane.xlu0 %9684  ;;  %14757 = vmatprep.subr.bf16.mxu1 %v20551_v29  ;;  %vm9723_vm8 = vcmp.eq.f32.partialorder %v9709_v57, %v19055_v41  ;;  %v10476_v19 = vand.u32 4294901760, %v19473_v43 }
 0xc37   : > { %20637 = vst [vmem:[#allocation75_spill] sm:$0xff] %v19409_v49  ;;  %vm9715_vm4 = vcmp.eq.f32.partialorder %v9685_v32, %v19031_v52  ;;  %v9887_v52 = vand.u32 4294901760, %v9886_v36  ;;  %v19438_v32 = vsub.f32 %v11082_v53, %v11082_v53  ;;  %v20097_v51 = vand.u32 4294901760, %v19418_v15  ;;  %v15574_v36 = vld [vmem:[%s19759_s10 + $0x28] sm:$0xff] }
 0xc38   : > { %v11080_v33 = vsel %vm9715_vm4, 1.0, %v20100_v17  ;;  %vm19428_vm14 = vmpackc.low %vm9716_vm9, %vm9715_vm4 }
 0xc39   : > { %v19432_v40 = vsub.f32 %v11080_v33, %v11080_v33  ;;  %14846 = vmatpush3.bf16.msk.msra.mxu0 %vm19428_vm14, %v20098_v44  ;;  %14759 = vmatpush3.bf16.msra.mxu1 %v14758_v59  ;;  %v9908_v59 = vand.u32 4294901760, %v9907_v18  ;;  %v14761_v33 = vpack.c.bf16 %v9894_v30, %v9887_v52  ;;  %v15575_v30 = vld [vmem:[%s19759_s10 + $0x40] sm:$0xff] }
 0xc3a   : > { %v9694_v2 = vpop.xlane.xlu0 %9693  ;;  %14847 = vmatprep.subr.bf16.mxu0 %v20551_v29  ;;  %14760 = vmatprep.subr.bf16.mxu1 %v20551_v29  ;;  %vm9721_vm6 = vcmp.eq.f32.partialorder %v19416_v34, %v15575_v30 }
 0xc3b   : > { %v10448_v13 = vand.u32 4294901760, %v19432_v40  ;;  %vm9718_vm5 = vcmp.eq.f32.partialorder %v9694_v2, %v15574_v36  ;;  %v10462_v2 = vand.u32 4294901760, %v19438_v32 }
 0xc3c   : > { %v11083_v60 = vsel %vm9718_vm5, 1.0, %v20100_v17  ;;  %vm19457_vm12 = vmpackc.low %vm9718_vm5, %vm9717_vm15 }
 0xc3d   : > { %v19461_v47 = vsub.f32 %v11083_v60, %v11083_v60  ;;  %14849 = vmatpush3.bf16.msk.msra.mxu0 %vm19457_vm12, %v20098_v44  ;;  %v19468_v18 = vpack.c.bf16 %v20097_v51, %v10448_v13  ;;  %14762 = vmatpush3.bf16.msra.mxu1 %v14761_v33  ;;  %v14764_v60 = vpack.c.bf16 %v9908_v59, %v9901_v45  ;;  %v11086_v33 = vsel %vm9721_vm6, 1.0, %v20100_v17 }
 0xc3e   : > { %v9700_v52 = vpop.xlane.xlu0 %9699  ;;  %14850 = vmatprep.subr.bf16.mxu0 %v20551_v29  ;;  %14763 = vmatprep.subr.bf16.mxu1 %v20551_v29  ;;  %v20646_v59 = vand.u32 4294901760, %v19374_v48 }
 0xc3f   : > { %20642 = vst [vmem:[#allocation78_spill] sm:$0xff] %v19468_v18  ;;  %v10469_v42 = vand.u32 4294901760, %v19461_v47  ;;  %vm9720_vm11 = vcmp.eq.f32.partialorder %v9700_v52, %v19049_v55  ;;  %v9915_v52 = vand.u32 4294901760, %v9914_v14  ;;  %v15576_v14 = vld [vmem:[%s19759_s10 + $0x48] sm:$0xff]  ;;  %v20650_v18 = vand.u32 4294901760, %v19363_v5 }
 0xc40   : > { %v11085_v8 = vsel %vm9720_vm11, 1.0, %v20100_v17  ;;  %vm19489_vm7 = vmpackc.low %vm9720_vm11, %vm9719_vm2  ;;  %v10435_v45 = vsub.f32 %v19374_v48, %v20646_v59  ;;  %v20647_v59 = vmov 0 }
 0xc41   : > { %v19496_v55 = vsub.f32 %v11085_v8, %v11085_v8  ;;  %14852 = vmatpush3.bf16.msk.msra.mxu0 %vm19489_vm7, %v20098_v44  ;;  %v19501_v38 = vpack.c.bf16 %v10469_v42, %v10462_v2  ;;  %14765 = vmatpush3.bf16.msra.mxu1 %v14764_v60  ;;  %v11088_v8 = vsel %vm9723_vm8, 1.0, %v20100_v17  ;;  %v19516_v60 = vsub.f32 %v11086_v33, %v11086_v33 }
 0xc42   : > { %v9706_v31 = vpop.xlane.xlu0 %9705  ;;  %14853 = vmatprep.subr.bf16.mxu0 %v20551_v29  ;;  %14766 = vmatprep.subr.bf16.mxu1 %v20551_v29  ;;  %v10442_v49 = vsub.f32 %v19363_v5, %v20650_v18  ;;  %v10436_v30 = vand.u32 4294901760, %v10435_v45  ;;  %v20656_v45 = vand.u32 4294901760, %v19418_v15 }
 0xc43   : > { %20645 = vst [vmem:[#allocation80_spill] sm:$0xff] %v19501_v38  ;;  %v10483_v51 = vand.u32 4294901760, %v19496_v55  ;;  %vm9722_vm0 = vcmp.eq.f32.partialorder %v9706_v31, %v15576_v14  ;;  %v14767_v38 = vpack.c.bf16 %v9922_v61, %v9915_v52  ;;  %v20651_v31 = vmov 1.0|1.0  }
 0xc44   : > { %v11087_v44 = vsel %vm9722_vm0, 1.0, %v20100_v17  ;;  %vm19521_vm10 = vmpackc.low %vm9722_vm0, %vm9721_vm6  ;;  %v19535_v14 = vsub.f32 %v11088_v8, %v11088_v8  ;;  %v10449_v61 = vsub.f32 %v19432_v40, %v10448_v13  ;;  %v10490_v18 = vand.u32 4294901760, %v19516_v60 }
 0xc45   : > { %v20648_v59 = vsel %vm19521_vm10, 4294967295, %v20647_v59  ;;  %v19528_v46 = vsub.f32 %v11087_v44, %v11087_v44  ;;  %14855 = vmatpush3.bf16.msk.msra.mxu0 %vm19521_vm10, %v20651_v31  ;;  %v19533_v33 = vpack.c.bf16 %v10483_v51, %v10476_v19  ;;  %14768 = vmatpush3.bf16.msra.mxu1 %v14767_v38  ;;  %v14770_v44 = vpack.c.bf16 %v19277_v58, %v19285_v16 }
 0xc46   : > { %20649 = vst [vmem:[#allocation84_spill] sm:$0xff] %v20648_v59  ;;  %v9712_v34 = vpop.xlane.xlu0 %9711  ;;  %14856 = vmatprep.subr.bf16.mxu0 %v20551_v29  ;;  %14769 = vmatprep.subr.bf16.mxu1 %v20551_v29  ;;  %v20653_v38 = vmov 0  ;;  %v10443_v13 = vand.u32 4294901760, %v10442_v49  ;;  %v10450_v57 = vand.u32 4294901760, %v10449_v61  ;;  %v10470_v49 = vsub.f32 %v19461_v47, %v10469_v42 }
 0xc47   : > { %20652 = vst [vmem:[#allocation87_spill] sm:$0xff] %v19533_v33  ;;  %v10497_v52 = vand.u32 4294901760, %v19528_v46  ;;  %vm9724_vm1 = vcmp.eq.f32.partialorder %v9712_v34, %v19061_v63  ;;  %v10456_v63 = vsub.f32 %v19418_v15, %v20656_v45  ;;  %v20657_v33 = vmov 0.0  }
 0xc48   : > { %v11089_v8 = vsel %vm9724_vm1, 1.0, %v20100_v17  ;;  %vm19548_vm15 = vmpackc.low %vm9724_vm1, %vm9723_vm8  ;;  %13477 = vmatmul.mubr.f32.vlgmr.msra.gmra.mrb[144].mxu1 %v19275_v28  ;;  %v10504_v17 = vand.u32 4294901760, %v19535_v14  ;;  %v10484_v61 = vsub.f32 %v19496_v55, %v10483_v51  ;;  %v14779_v51 = vpack.c.bf16 %v19299_v12, %v19294_v62 }
 0xc49   : > { %v20654_v38 = vsel %vm19548_vm15, 4294967295, %v20653_v38  ;;  %v19555_v34 = vsub.f32 %v11089_v8, %v11089_v8  ;;  %14858 = vmatpush3.bf16.msk.msra.mxu0 %vm19548_vm15, %v20651_v31  ;;  %14771 = vmatpush3.bf16.msra.mxu1 %v14770_v44  ;;  %v19563_v41 = vpack.c.bf16 %v10497_v52, %v10490_v18  ;;  %v14860_v8 = vpack.c.bf16 %v10443_v13, %v10436_v30 }
 0xc4a   : > { %20655 = vst [vmem:[#allocation94_spill] sm:$0xff] %v20654_v38  ;;  %14859 = vmatprep.subr.bf16.mxu0 %v20551_v29  ;;  %14772 = vmatprep.subr.bf16.mxu1 %v20551_v29  ;;  %v14773_v38 = vpack.c.bf16 %v19261_v50, %v19257_v6  ;;  %v10463_v44 = vsub.f32 %v19438_v32, %v10462_v2  ;;  %v10457_v59 = vand.u32 4294901760, %v10456_v63  ;;  %v10471_v30 = vand.u32 4294901760, %v10470_v49 }
 0xc4b   : > { %v10511_v45 = vand.u32 4294901760, %v19555_v34  ;;  %13503 = vmatprep.mubr.msk.f32.mxu1 %vm15588_vm3, %v20657_v33  ;;  %v14776_v50 = vpack.c.bf16 %v19281_v25, %v19283_v39  ;;  %v10477_v2 = vsub.f32 %v19473_v43, %v10476_v19  ;;  %v10485_v13 = vand.u32 4294901760, %v10484_v61 }
 0xc4c   : > { %13612 = vmatmul.mubr.f32.vlgmr.msra.gmra.mrb[108].mxu0 %v19349_v22  ;;  %v14863_v6 = vpack.c.bf16 %v10457_v59, %v10450_v57  ;;  %v10464_v22 = vand.u32 4294901760, %v10463_v44  ;;  %v10491_v57 = vsub.f32 %v19516_v60, %v10490_v18  ;;  %v14785_v18 = vpack.c.bf16 %v19336_v27, %v19340_v21 }
 0xc4d   : > { %14861 = vmatpush3.bf16.msra.mxu0 %v14860_v8  ;;  %13638 = vmatprep.mubr.msk.f32.mxu0 %vm15588_vm3, %v20657_v33  ;;  %v19576_v42 = vpack.c.bf16 %v10511_v45, %v10504_v17  ;;  %v10478_v59 = vand.u32 4294901760, %v10477_v2  ;;  %v10512_v39 = vsub.f32 %v19555_v34, %v10511_v45  ;;  %v10505_v8 = vsub.f32 %v19535_v14, %v10504_v17 }
 0xc4e   : > { %14774 = vmatpush3.bf16.msra.mxu1 %v14773_v38  ;;  %14862 = vmatprep.subr.bf16.mxu0 %v20551_v29  ;;  %v10498_v38 = vsub.f32 %v19528_v46, %v10497_v52  ;;  %v14866_v63 = vpack.c.bf16 %v10471_v30, %v10464_v22  ;;  %v14782_v52 = vpack.c.bf16 %v19314_v23, %v19318_v7  ;;  %v10492_v49 = vand.u32 4294901760, %v10491_v57 }
 0xc4f   : > { %14775 = vmatprep.subr.bf16.mxu1 %v20551_v29  ;;  %v14869_v19 = vpack.c.bf16 %v10485_v13, %v10478_v59  ;;  %v10513_v62 = vand.u32 4294901760, %v10512_v39  ;;  %v10506_v45 = vand.u32 4294901760, %v10505_v8  ;;  %v14878_v17 = vpack.c.bf16 %v19363_v5, %v19374_v48 }
 0xc50   : > { %v10499_v25 = vand.u32 4294901760, %v10498_v38  ;;  %v14881_v7 = vpack.c.bf16 %v19418_v15, %v19432_v40  ;;  %v14884_v27 = vpack.c.bf16 %v19461_v47, %v19438_v32  ;;  %v14887_v21 = vpack.c.bf16 %v19496_v55, %v19473_v43 }
 0xc51   : > { %14864 = vmatpush3.bf16.msra.mxu0 %v14863_v6  ;;  %v14875_v23 = vpack.c.bf16 %v10513_v62, %v10506_v45  ;;  %v14890_v5 = vpack.c.bf16 %v19528_v46, %v19516_v60  ;;  %v14893_v48 = vpack.c.bf16 %v19555_v34, %v19535_v14  ;;  %v20658_v47 = vand.u32 4294901760, %v19285_v16 }
 0xc52   : > { %14777 = vmatpush3.bf16.msra.mxu1 %v14776_v50  ;;  %14865 = vmatprep.subr.bf16.mxu0 %v20551_v29  ;;  %v14872_v12 = vpack.c.bf16 %v10499_v25, %v10492_v49  ;;  %v20659_v15 = vand.u32 4294901760, %v19277_v58  ;;  %v20661_v58 = vld [vmem:[#allocation72_spill] sm:$0xff] }
 0xc53   : > { %14778 = vmatprep.subr.bf16.mxu1 %v20551_v29 }
 0xc54   : > { %v14806_v40 = vpack.c.bf16 %v20659_v15, %v20658_v47 }
 0xc55   : > { %14867 = vmatpush3.bf16.msra.mxu0 %v14866_v63 }
 0xc56   : > { %14780 = vmatpush3.bf16.msra.mxu1 %v14779_v51  ;;  %14868 = vmatprep.subr.bf16.mxu0 %v20551_v29 }
 0xc57   : > { %14781 = vmatprep.subr.bf16.mxu1 %v20551_v29 }
 0xc59   : > { %14870 = vmatpush3.bf16.msra.mxu0 %v14869_v19 }
 0xc5a   : > { %14783 = vmatpush3.bf16.msra.mxu1 %v14782_v52  ;;  %14871 = vmatprep.subr.bf16.mxu0 %v20551_v29 }
 0xc5b   : > { %14784 = vmatprep.subr.bf16.mxu1 %v20551_v29 }
 0xc5d   : > { %14873 = vmatpush3.bf16.msra.mxu0 %v14872_v12 }
 0xc5e   : > { %14786 = vmatpush3.bf16.msra.mxu1 %v14785_v18  ;;  %14874 = vmatprep.subr.bf16.mxu0 %v20551_v29 }
 0xc5f   : > { %14787 = vmatprep.subr.bf16.mxu1 %v20551_v29 }
 0xc61   : > { %13504 = vmatmul.mubr.f32.vlgmr.msra.gmra.mrb[144].mxu1 %v19289_v1  ;;  %14876 = vmatpush3.bf16.msra.mxu0 %v14875_v23 }
 0xc62   : > { %14789 = vmatpush3.bf16.msra.mxu1 %v19253_v3  ;;  %14877 = vmatprep.subr.bf16.mxu0 %v20551_v29 }
 0xc63   : > { %14790 = vmatprep.subr.bf16.mxu1 %v20551_v29  ;;  %13530 = vmatprep.mubr.msk.f32.mxu1 %vm15588_vm3, %v20657_v33 }
 0xc64   : > { %13639 = vmatmul.mubr.f32.vlgmr.msra.gmra.mrb[108].mxu0 %v19275_v28 }
 0xc65   : > { %14879 = vmatpush3.bf16.msra.mxu0 %v14878_v17  ;;  %13665 = vmatprep.mubr.msk.f32.mxu0 %vm15588_vm3, %v20657_v33 }
 0xc66   : > { %14792 = vmatpush3.bf16.msra.mxu1 %v19259_v24  ;;  %14880 = vmatprep.subr.bf16.mxu0 %v20551_v29 }
 0xc67   : > { %14793 = vmatprep.subr.bf16.mxu1 %v20551_v29 }
 0xc69   : > { %14882 = vmatpush3.bf16.msra.mxu0 %v14881_v7 }
 0xc6a   : > { %14795 = vmatpush3.bf16.msra.mxu1 %v19279_v11  ;;  %14883 = vmatprep.subr.bf16.mxu0 %v20551_v29 }
 0xc6b   : > { %14796 = vmatprep.subr.bf16.mxu1 %v20551_v29 }
 0xc6d   : > { %14885 = vmatpush3.bf16.msra.mxu0 %v14884_v27 }
 0xc6e   : > { %14798 = vmatpush3.bf16.msra.mxu1 %v19297_v0  ;;  %14886 = vmatprep.subr.bf16.mxu0 %v20551_v29 }
 0xc6f   : > { %14799 = vmatprep.subr.bf16.mxu1 %v20551_v29 }
 0xc71   : > { %14888 = vmatpush3.bf16.msra.mxu0 %v14887_v21 }
 0xc72   : > { %14801 = vmatpush3.bf16.msra.mxu1 %v19312_v26  ;;  %14889 = vmatprep.subr.bf16.mxu0 %v20551_v29 }
 0xc73   : > { %14802 = vmatprep.subr.bf16.mxu1 %v20551_v29 }
 0xc75   : > { %14891 = vmatpush3.bf16.msra.mxu0 %v14890_v5 }
 0xc76   : > { %14804 = vmatpush3.bf16.msra.mxu1 %v19334_v20  ;;  %14892 = vmatprep.subr.bf16.mxu0 %v20551_v29 }
 0xc77   : > { %14805 = vmatprep.subr.bf16.mxu1 %v20551_v29 }
 0xc79   : > { %13531 = vmatmul.mubr.f32.vlgmr.msra.gmra.mrb[144].mxu1 %v19303_v54  ;;  %14894 = vmatpush3.bf16.msra.mxu0 %v14893_v48 }
 0xc7a   : > { %14807 = vmatpush3.bf16.msra.mxu1 %v14806_v40  ;;  %14895 = vmatprep.subr.bf16.mxu0 %v20551_v29 }
 0xc7b   : > { %14808 = vmatprep.subr.bf16.mxu1 %v20551_v29  ;;  %13557 = vmatprep.mubr.msk.f32.mxu1 %vm15588_vm3, %v20657_v33 }
 0xc7c   : > { %13666 = vmatmul.mubr.f32.vlgmr.msra.gmra.mrb[108].mxu0 %v19289_v1  ;;  %v20663_v1 = vld [vmem:[#allocation75_spill] sm:$0xff] }
 0xc7d   : > { %14897 = vmatpush3.bf16.msk.msra.mxu0 %vm19368_vm13, %v20651_v31  ;;  %13692 = vmatprep.mubr.msk.f32.mxu0 %vm15588_vm3, %v20657_v33 }
 0xc7e   : > { %14810 = vmatpush3.bf16.msra.mxu1 %v19273_v37  ;;  %14898 = vmatprep.subr.bf16.mxu0 %v20551_v29 }
 0xc7f   : > { %14811 = vmatprep.subr.bf16.mxu1 %v20551_v29 }
 0xc81   : > { %14900 = vmatpush3.bf16.msk.msra.mxu0 %vm19428_vm14, %v20651_v31 }
 0xc82   : > { %14813 = vmatpush3.bf16.msra.mxu1 %v19307_v9  ;;  %14901 = vmatprep.subr.bf16.mxu0 %v20551_v29 }
 0xc83   : > { %14814 = vmatprep.subr.bf16.mxu1 %v20551_v29 }
 0xc85   : > { %14903 = vmatpush3.bf16.msk.msra.mxu0 %vm19457_vm12, %v20651_v31 }
 0xc86   : > { %14816 = vmatpush3.bf16.msra.mxu1 %v19329_v35  ;;  %14904 = vmatprep.subr.bf16.mxu0 %v20551_v29 }
 0xc87   : > { %14817 = vmatprep.subr.bf16.mxu1 %v20551_v29 }
 0xc89   : > { %14906 = vmatpush3.bf16.msk.msra.mxu0 %vm19489_vm7, %v20651_v31 }
 0xc8a   : > { %14819 = vmatpush3.bf16.msra.mxu1 %v19355_v4  ;;  %14907 = vmatprep.subr.bf16.mxu0 %v20551_v29 }
 0xc8b   : > { %14820 = vmatprep.subr.bf16.mxu1 %v20551_v29 }
 0xc8d   : > { %14909 = vmatpush3.bf16.msk.msra.mxu0 %vm19521_vm10, %v20651_v31 }
 0xc8e   : > { %14822 = vmatpush3.bf16.msra.mxu1 %v20661_v58  ;;  %14910 = vmatprep.subr.bf16.mxu0 %v20551_v29 }
 0xc8f   : > { %14823 = vmatprep.subr.bf16.mxu1 %v20551_v29 }
 0xc91   : > { %13558 = vmatmul.mubr.f32.vlgmr.msra.gmra.mrb[144].mxu1 %v19275_v28  ;;  %14912 = vmatpush3.bf16.msk.msra.mxu0 %vm19548_vm15, %v20651_v31 }
 0xc92   : > { %14825 = vmatpush3.bf16.msra.mxu1 %v19253_v3  ;;  %14913 = vmatprep.subr.bf16.mxu0 %v20551_v29  ;;  %v20664_v3 = vld [vmem:[#allocation78_spill] sm:$0xff] }
 0xc93   : > { %14826 = vmatprep.subr.bf16.mxu1 %v20551_v29  ;;  %13584 = vmatprep.mubr.msk.f32.mxu1 %vm15588_vm3, %v20657_v33 }
 0xc94   : > { %13693 = vmatmul.mubr.f32.vlgmr.msra.gmra.mrb[108].mxu0 %v19303_v54  ;;  %v20665_v54 = vld [vmem:[#allocation80_spill] sm:$0xff] }
 0xc95   : > { %14915 = vmatpush3.bf16.msra.mxu0 %v20663_v1  ;;  %13719 = vmatprep.mubr.msk.f32.mxu0 %vm15588_vm3, %v20657_v33 }
 0xc96   : > { %14828 = vmatpush3.bf16.msra.mxu1 %v19259_v24  ;;  %14916 = vmatprep.subr.bf16.mxu0 %v20551_v29  ;;  %v20666_v24 = vld [vmem:[#allocation87_spill] sm:$0xff] }
 0xc97   : > { %14829 = vmatprep.subr.bf16.mxu1 %v20551_v29 }
 0xc99   : > { %14918 = vmatpush3.bf16.msra.mxu0 %v20664_v3 }
 0xc9a   : > { %14831 = vmatpush3.bf16.msra.mxu1 %v19279_v11  ;;  %14919 = vmatprep.subr.bf16.mxu0 %v20551_v29 }
 0xc9b   : > { %14832 = vmatprep.subr.bf16.mxu1 %v20551_v29 }
 0xc9d   : > { %14921 = vmatpush3.bf16.msra.mxu0 %v20665_v54 }
 0xc9e   : > { %14834 = vmatpush3.bf16.msra.mxu1 %v19297_v0  ;;  %14922 = vmatprep.subr.bf16.mxu0 %v20551_v29 }
 0xc9f   : > { %14835 = vmatprep.subr.bf16.mxu1 %v20551_v29 }
 0xca1   : > { %14924 = vmatpush3.bf16.msra.mxu0 %v20666_v24 }
 0xca2   : > { %14837 = vmatpush3.bf16.msra.mxu1 %v19312_v26  ;;  %14925 = vmatprep.subr.bf16.mxu0 %v20551_v29 }
 0xca3   : > { %14838 = vmatprep.subr.bf16.mxu1 %v20551_v29 }
 0xca5   : > { %14927 = vmatpush3.bf16.msra.mxu0 %v19563_v41 }
 0xca6   : > { %14840 = vmatpush3.bf16.msra.mxu1 %v19334_v20  ;;  %14928 = vmatprep.subr.bf16.mxu0 %v20551_v29  ;;  %v10934_v20 = vlaneseq }
 0xca8   : > { %v10935_v4 = vand.u32 127, %v10934_v20 }
 0xca9   : > { %13585 = vmatmul.mubr.f32.vlgmr.msra.gmra.mrb[144].mxu1 %v19275_v28  ;;  %14930 = vmatpush3.bf16.msra.mxu0 %v19576_v42 }
 0xcaa   : > { %14931 = vmatprep.subr.bf16.mxu0 %v20551_v29 }
 0xcac   : > { %13720 = vmatmul.mubr.f32.vlgmr.msra.gmra.mrb[108].mxu0 %v19275_v28 }
 0xcad   : > { %14933 = vmatpush3.bf16.msk.msra.mxu0 %vm19368_vm13, %v20651_v31  ;;  %13746 = vmatprep.mubr.msk.f32.mxu0 %vm15588_vm3, %v20657_v33  ;;  %vm10937_vm3 = vcmp.eq.s32.totalorder %v10935_v4, 1  ;;  %vm10936_vm13 = vcmp.eq.s32.totalorder %v10935_v4, 0 }
 0xcae   : > { %14934 = vmatprep.subr.bf16.mxu0 %v20551_v29 }
 0xcb1   : > { %14936 = vmatpush3.bf16.msk.msra.mxu0 %vm19428_vm14, %v20651_v31 }
 0xcb2   : > { %14937 = vmatprep.subr.bf16.mxu0 %v20551_v29 }
 0xcb5   : > { %14939 = vmatpush3.bf16.msk.msra.mxu0 %vm19457_vm12, %v20651_v31 }
 0xcb6   : > { %14940 = vmatprep.subr.bf16.mxu0 %v20551_v29 }
 0xcb9   : > { %14942 = vmatpush3.bf16.msk.msra.mxu0 %vm19489_vm7, %v20651_v31 }
 0xcba   : > { %14943 = vmatprep.subr.bf16.mxu0 %v20551_v29 }
 0xcbd   : > { %14945 = vmatpush3.bf16.msk.msra.mxu0 %vm19521_vm10, %v20651_v31 }
 0xcbe   : > { %14946 = vmatprep.subr.bf16.mxu0 %v20551_v29 }
 0xcc1   : > { %14948 = vmatpush3.bf16.msk.msra.mxu0 %vm19548_vm15, %v20651_v31 }
 0xcc4   : > { %13747 = vmatmul.mubr.f32.vlgmr.msra.gmra.mrb[108].mxu0 %v19275_v28 }
 0xd7c   : > { %v10338_v11 = vpop.f32.mrb[144].mxu1 }
 0xd7d   : > { %v10343_v56 = vmul.f32 0.083333336, %v10338_v11  ;;  %v13586_v0 = vpop.f32.mrb[145].mxu1 }
 0xd7f   : > { %10946 = vperm.xlu0 %15458, %v10343_v56  }
 0xd97   : > { %v10929_v9 = vpop.f32.mrb[108].mxu0 }
 0xd98   : > { %v10933_v26 = vmul.f32 0.083333336, %v10929_v9  ;;  %v13748_v35 = vpop.f32.mrb[109].mxu0 }
 0xd9a   : > { %10940 = vperm.xlu1 %15459, %v10933_v26  }
 0xdfe   : > { %v10947_v28 = vpop.permute.xlu0 %10946 }
 0xe19   : > { %v10941_v29 = vpop.permute.xlu1 %10940 }
 0xe1a   : > { %v10943_v10 = vsel %vm10937_vm3, %v10941_v29, 0.0 }
 0xe1b   : > { %v10949_v46 = vsel %vm10936_vm13, %v10947_v28, %v10943_v10 }
 0xe1c   : > { %10950 = vst [vmem:[%s389_s12] sm:$0xff] %v10949_v46 }
 0xe1d PF: > { %s21_s17 = sadd.s32 1, %s15583_s17  }
 0xe1e   : > { %p18_p5 = scmp.ge.s32.totalorder %s21_s17, 4  }
 0xe20   :  { %20 = sbr.rel (!%p18_p5) target bundleno = 1 (0x1), region = 94 }

</bundles_post_ra>
